<compile_context>
chip_gen: v6e
topology: v6e:2x2x1
jax: 0.10.0
libtpu: 0.0.40
codegen_flags: <defaults>
</compile_context>

<pallas_src>
import functools

import jax
import jax.numpy as jnp
from jax import lax
from jax.experimental import pallas as pl
from jax.experimental.pallas import tpu as pltpu

N_EMBD = 64       # C (n_embd in the torch module)
BLOCK_SIZE = 128  # max sequence length (size of the torch tril buffer)


def _tensorcores_per_chip() -> int:
    """Best-effort TensorCore-per-device count (perf heuristic only)."""
    try:
        kind = jax.devices()[0].device_kind.lower()
    except Exception:
        return 1
    if "lite" in kind or "v5e" in kind or "v6e" in kind or "v6" in kind:
        return 1
    for tag in ("v7", "7x", "v5p", "v4"):
        if tag in kind:
            return 2
    return 1


def _head_kernel(x_ref, w_ref, o_ref, *, head_size, exact_softmax):
    """One grid step: causal single-head attention for Bb batch elements.

    x_ref : (Bb, T, C)      activations (bf16 fast path or f32 strict path)
    w_ref : (C, 3*H)        fused [Wq | Wk | Wv] (same dtype as x)
    o_ref : (1, T, Bb*H)    lane-dense output slab; columns b*H:(b+1)*H hold
                            the output of local batch element b.
    """
    Bb, T, C = x_ref.shape
    H = head_size
    cd = x_ref.dtype                                   # MXU-input dtype

    # ---- fused QKV projection: one (Bb*T, C) @ (C, 3H) MXU matmul ----------
    x2 = x_ref[...].reshape(Bb * T, C)
    qkv = jnp.dot(x2, w_ref[...], preferred_element_type=jnp.float32)
    qkv = qkv.reshape(Bb, T, 3 * H)

    # Fold the C**-0.5 scale into q (8x fewer elements than the (T,T) scores).
    scale = jnp.float32(C) ** jnp.float32(-0.5)
    q = (qkv[..., 0 * H:1 * H] * scale).astype(cd)     # (Bb, T, H)
    k = qkv[..., 1 * H:2 * H].astype(cd)
    v = qkv[..., 2 * H:3 * H].astype(cd)

    # ---- causal mask: built once per grid step, hoisted above the b loop ---
    row = lax.broadcasted_iota(jnp.int32, (T, T), 0)
    col = lax.broadcasted_iota(jnp.int32, (T, T), 1)
    causal = row >= col                                # (T, T) bool
    neg_fill = jnp.float32(-1e30)                      # finite; softmax stays f32

    # ---- per-batch fused scores/softmax/p@v: only a (T,T) tile live at once -
    outs = []
    for b in range(Bb):                                # short static unroll
        s = lax.dot_general(                           # q_b @ k_b^T, no explicit .T
            q[b], k[b], (((1,), (1,)), ((), ())),
            preferred_element_type=jnp.float32)        # (T, T) f32
        s = jnp.where(causal, s, neg_fill)
        m = jnp.max(s, axis=-1, keepdims=True)
        p = jnp.exp(s - m)
        denom = jnp.sum(p, axis=-1, keepdims=True)
        if exact_softmax:
            p = p / denom                              # strict-f32 path: exact
        else:
            p = p * pl.reciprocal(denom, approx=True)  # EUP slot, ~free
        outs.append(jnp.dot(p.astype(cd), v[b],
                            preferred_element_type=jnp.float32))   # (T, H) f32

    # ---- single lane-dense (T, Bb*H) store (no masked 16-lane vst's) --------
    o_ref[0] = jnp.concatenate(outs, axis=-1).astype(o_ref.dtype)


def fuse_head_weights(wk, wq, wv, compute_dtype=jnp.bfloat16):
    """Fuse + cast the projection weights ONCE at model setup (hoisted work).

    wk/wq/wv: (C, H) pre-transposed nn.Linear weights.  Returns (C, 3H).
    """
    w = jnp.concatenate([wq, wk, wv], axis=1)
    if compute_dtype is not None:
        w = w.astype(compute_dtype)
    return w


def head_forward_fused(x, w_qkv, *, block_b=None, compute_dtype=jnp.bfloat16):
    """Single-head causal self-attention with a pre-fused (C, 3H) weight.

    compute_dtype=jnp.bfloat16 (default): MXU-native inputs, f32 accumulation.
    compute_dtype=None: strict f32 matmuls + exact softmax divide.
    Returns (B, T, H) in x.dtype.
    """
    B, T, C = x.shape
    assert T <= BLOCK_SIZE and C == N_EMBD
    H3 = w_qkv.shape[1]
    assert H3 % 3 == 0
    H = H3 // 3

    cd = compute_dtype if compute_dtype is not None else x.dtype
    exact_softmax = compute_dtype is None

    # Generation-aware batch blocking:
    #   multi-TC (v7x/megacore): keep G >= 2 so the parallel axis feeds both TCs
    #   single-TC (v5e/v6e):     fewer, larger steps (amortize per-step overhead)
    if block_b is None:
        if _tensorcores_per_chip() >= 2 and B >= 2:
            block_b = max(1, min(8, B // 2))
        else:
            block_b = min(16, B)
    Bb = max(1, min(block_b, B))
    while B % Bb:                                      # largest divisor of B <= block_b
        Bb -= 1
    G = B // Bb

    x_in = x if x.dtype == cd else x.astype(cd)
    w_in = w_qkv if w_qkv.dtype == cd else w_qkv.astype(cd)

    kernel = functools.partial(_head_kernel, head_size=H,
                               exact_softmax=exact_softmax)

    y = pl.pallas_call(
        kernel,
        out_shape=jax.ShapeDtypeStruct((G, T, Bb * H), x.dtype),
        grid_spec=pltpu.PrefetchScalarGridSpec(
            num_scalar_prefetch=0,
            grid=(G,),
            in_specs=[
                pl.BlockSpec((Bb, T, C), lambda g: (g, 0, 0)),
                pl.BlockSpec((C, 3 * H), lambda g: (0, 0)),
            ],
            out_specs=pl.BlockSpec((1, T, Bb * H), lambda g: (g, 0, 0)),
        ),
        compiler_params=pltpu.CompilerParams(
            dimension_semantics=("parallel",)),        # batch axis -> both TCs (v7x)
    )(x_in, w_in)

    # Un-interleave the lane-dense slab: (G, T, Bb*H) -> (B, T, H).
    y = y.reshape(G, T, Bb, H)
    y = jnp.transpose(y, (0, 2, 1, 3)).reshape(B, T, H)
    return y


def head_forward(x, wk, wq, wv, *, block_b=None, compute_dtype=jnp.bfloat16):
    """Convenience wrapper taking separate wk/wq/wv (fuses them per call).

    Prefer fuse_head_weights() once at setup + head_forward_fused() per step.
    """
    w_qkv = fuse_head_weights(wk, wq, wv, compute_dtype=compute_dtype)
    return head_forward_fused(x, w_qkv, block_b=block_b,
                              compute_dtype=compute_dtype)


def head_forward_ref(x, wk, wq, wv):
    """Pure-JAX reference matching the PyTorch forward exactly."""
    B, T, C = x.shape
    k = x @ wk
    q = x @ wq
    v = x @ wv
    wei = (q @ jnp.swapaxes(k, -2, -1)) * (C ** -0.5)
    mask = jnp.tril(jnp.ones((T, T), dtype=bool))
    wei = jnp.where(mask, wei, -jnp.inf)
    wei = jax.nn.softmax(wei, axis=-1)
    return wei @ v


if __name__ == "__main__":
    B, T, C = 8, BLOCK_SIZE, N_EMBD   # 8 x 128 x 64, TPU-shaped and small
    head_size = 16

    key = jax.random.PRNGKey(0)
    kx, kk, kq, kv = jax.random.split(key, 4)

    x = jax.random.normal(kx, (B, T, C), dtype=jnp.float32)
    # nn.Linear(n_embd, head_size, bias=False) weight is (H, C); store its
    # transpose (C, H) so the kernel multiplies x @ W directly.
    wscale = 1.0 / jnp.sqrt(jnp.float32(C))
    wk = jax.random.uniform(kk, (C, head_size), jnp.float32, -wscale, wscale)
    wq = jax.random.uniform(kq, (C, head_size), jnp.float32, -wscale, wscale)
    wv = jax.random.uniform(kv, (C, head_size), jnp.float32, -wscale, wscale)

    ref = head_forward_ref(x, wk, wq, wv)

    # Default bf16 fast path; weight fused + cast once (hoisted out of the call).
    w_qkv_bf16 = fuse_head_weights(wk, wq, wv, compute_dtype=jnp.bfloat16)
    out = head_forward_fused(x, w_qkv_bf16)
    jax.block_until_ready(out)
    assert out.shape == (B, T, head_size)
    assert jnp.allclose(out, ref, atol=3e-2, rtol=3e-2), "bf16 path mismatch vs reference"

    # Strict f32 path (exact softmax divide) at a tight tolerance.
    out_f32 = head_forward(x, wk, wq, wv, compute_dtype=None)
    jax.block_until_ready(out_f32)
    assert jnp.allclose(out_f32, ref, atol=2e-3, rtol=2e-3), "f32 path mismatch vs reference"

    # Odd/small shape check (exercises the batch-block divisor fallback).
    xs = jax.random.normal(kx, (2, 8, C), dtype=jnp.float32)
    outs = head_forward(xs, wk, wq, wv)
    jax.block_until_ready(outs)
    refs = head_forward_ref(xs, wk, wq, wv)
    assert jnp.allclose(outs, refs, atol=3e-2, rtol=3e-2), "small-shape mismatch vs reference"

    print("KERNEL_OK")
</pallas_src>

<mosaic_0001>
module attributes {stable_mosaic.version = 11 : i64} {
  func.func @_head_kernel(%arg0: i32, %arg1: memref<8x128x64xbf16, #tpu.memory_space<vmem>>, %arg2: memref<64x48xbf16, #tpu.memory_space<vmem>>, %arg3: memref<1x128x128xf32, #tpu.memory_space<vmem>>) attributes {dimension_semantics = [#tpu.dimension_semantics<parallel>], iteration_bounds = array<i64: 1>, scalar_prefetch = 0 : i64, scratch_operands = 0 : i64, tpu.core_type = #tpu.core_type<tc>, window_params = [{transform_indices = @transform_0, window_bounds = array<i64: 8, 128, 64>}, {pipeline_mode = #tpu.pipeline_mode<synchronous>, transform_indices = @transform_1, window_bounds = array<i64: 64, 48>}, {transform_indices = @transform_2, window_bounds = array<i64: 1, 128, 128>}]} {
    %c0 = arith.constant 0 : index
    %c0_0 = arith.constant 0 : index
    %c0_1 = arith.constant 0 : index
    %0 = vector.load %arg1[%c0, %c0_0, %c0_1] : memref<8x128x64xbf16, #tpu.memory_space<vmem>>, vector<8x128x64xbf16>
    %1 = vector.shape_cast %0 : vector<8x128x64xbf16> to vector<1024x64xbf16>
    %c0_2 = arith.constant 0 : index
    %c0_3 = arith.constant 0 : index
    %2 = vector.load %arg2[%c0_2, %c0_3] : memref<64x48xbf16, #tpu.memory_space<vmem>>, vector<64x48xbf16>
    %cst = arith.constant dense<0.000000e+00> : vector<1024x48xf32>
    %3 = tpu.matmul %1, %2, %cst {dimension_numbers = #tpu.dot_dimension_numbers<[1], [0], [0], [1], [0, 0, 1, 1], [], []>} : vector<1024x64xbf16>, vector<64x48xbf16>, vector<1024x48xf32> -> vector<1024x48xf32>
    %4 = vector.shape_cast %3 : vector<1024x48xf32> to vector<8x128x48xf32>
    %cst_4 = arith.constant 6.400000e+01 : f32
    %cst_5 = arith.constant -5.000000e-01 : f32
    %5 = math.powf %cst_4, %cst_5 : f32
    %6 = vector.extract_strided_slice %4 {offsets = [0, 0, 0], sizes = [8, 128, 16], strides = [1, 1, 1]} : vector<8x128x48xf32> to vector<8x128x16xf32>
    %7 = vector.broadcast %5 : f32 to vector<8x128x16xf32>
    %8 = arith.mulf %6, %7 : vector<8x128x16xf32>
    %9 = arith.truncf %8 : vector<8x128x16xf32> to vector<8x128x16xbf16>
    %10 = vector.extract_strided_slice %4 {offsets = [0, 0, 16], sizes = [8, 128, 16], strides = [1, 1, 1]} : vector<8x128x48xf32> to vector<8x128x16xf32>
    %11 = arith.truncf %10 : vector<8x128x16xf32> to vector<8x128x16xbf16>
    %12 = vector.extract_strided_slice %4 {offsets = [0, 0, 32], sizes = [8, 128, 16], strides = [1, 1, 1]} : vector<8x128x48xf32> to vector<8x128x16xf32>
    %13 = arith.truncf %12 : vector<8x128x16xf32> to vector<8x128x16xbf16>
    %14 = tpu.iota {dimensions = array<i32: 0>} : vector<128x128xi32>
    %15 = tpu.iota {dimensions = array<i32: 1>} : vector<128x128xi32>
    %16 = arith.cmpi sge, %14, %15 : vector<128x128xi32>
    %17 = vector.extract_strided_slice %9 {offsets = [0, 0, 0], sizes = [1, 128, 16], strides = [1, 1, 1]} : vector<8x128x16xbf16> to vector<1x128x16xbf16>
    %18 = vector.shape_cast %17 : vector<1x128x16xbf16> to vector<128x16xbf16>
    %19 = vector.extract_strided_slice %11 {offsets = [0, 0, 0], sizes = [1, 128, 16], strides = [1, 1, 1]} : vector<8x128x16xbf16> to vector<1x128x16xbf16>
    %20 = vector.shape_cast %19 : vector<1x128x16xbf16> to vector<128x16xbf16>
    %cst_6 = arith.constant dense<0.000000e+00> : vector<128x128xf32>
    %21 = tpu.matmul %18, %20, %cst_6 {dimension_numbers = #tpu.dot_dimension_numbers<[1], [1], [0], [0], [0, 0, 1, 0], [], []>} : vector<128x16xbf16>, vector<128x16xbf16>, vector<128x128xf32> -> vector<128x128xf32>
    %cst_7 = arith.constant -1.000000e+30 : f32
    %22 = vector.broadcast %cst_7 : f32 to vector<128x128xf32>
    %23 = arith.select %16, %21, %22 : vector<128x128xi1>, vector<128x128xf32>
    %cst_8 = arith.constant dense<0xFF800000> : vector<128xf32>
    %24 = vector.multi_reduction <maximumf>, %23, %cst_8 [1] : vector<128x128xf32> to vector<128xf32>
    %25 = vector.shape_cast %24 : vector<128xf32> to vector<128x1xf32>
    %26 = vector.broadcast %25 : vector<128x1xf32> to vector<128x128xf32>
    %27 = arith.subf %23, %26 : vector<128x128xf32>
    %28 = math.exp %27 : vector<128x128xf32>
    %cst_9 = arith.constant dense<0.000000e+00> : vector<128xf32>
    %29 = vector.multi_reduction <add>, %28, %cst_9 [1] : vector<128x128xf32> to vector<128xf32>
    %30 = vector.shape_cast %29 : vector<128xf32> to vector<128x1xf32>
    %31 = tpu.reciprocal %30 {approx = true} : vector<128x1xf32> -> vector<128x1xf32>
    %32 = vector.broadcast %31 : vector<128x1xf32> to vector<128x128xf32>
    %33 = arith.mulf %28, %32 : vector<128x128xf32>
    %34 = arith.truncf %33 : vector<128x128xf32> to vector<128x128xbf16>
    %35 = vector.extract_strided_slice %13 {offsets = [0, 0, 0], sizes = [1, 128, 16], strides = [1, 1, 1]} : vector<8x128x16xbf16> to vector<1x128x16xbf16>
    %36 = vector.shape_cast %35 : vector<1x128x16xbf16> to vector<128x16xbf16>
    %cst_10 = arith.constant dense<0.000000e+00> : vector<128x16xf32>
    %37 = tpu.matmul %34, %36, %cst_10 {dimension_numbers = #tpu.dot_dimension_numbers<[1], [0], [0], [1], [0, 0, 1, 1], [], []>} : vector<128x128xbf16>, vector<128x16xbf16>, vector<128x16xf32> -> vector<128x16xf32>
    %38 = vector.extract_strided_slice %9 {offsets = [1, 0, 0], sizes = [1, 128, 16], strides = [1, 1, 1]} : vector<8x128x16xbf16> to vector<1x128x16xbf16>
    %39 = vector.shape_cast %38 : vector<1x128x16xbf16> to vector<128x16xbf16>
    %40 = vector.extract_strided_slice %11 {offsets = [1, 0, 0], sizes = [1, 128, 16], strides = [1, 1, 1]} : vector<8x128x16xbf16> to vector<1x128x16xbf16>
    %41 = vector.shape_cast %40 : vector<1x128x16xbf16> to vector<128x16xbf16>
    %cst_11 = arith.constant dense<0.000000e+00> : vector<128x128xf32>
    %42 = tpu.matmul %39, %41, %cst_11 {dimension_numbers = #tpu.dot_dimension_numbers<[1], [1], [0], [0], [0, 0, 1, 0], [], []>} : vector<128x16xbf16>, vector<128x16xbf16>, vector<128x128xf32> -> vector<128x128xf32>
    %cst_12 = arith.constant -1.000000e+30 : f32
    %43 = vector.broadcast %cst_12 : f32 to vector<128x128xf32>
    %44 = arith.select %16, %42, %43 : vector<128x128xi1>, vector<128x128xf32>
    %cst_13 = arith.constant dense<0xFF800000> : vector<128xf32>
    %45 = vector.multi_reduction <maximumf>, %44, %cst_13 [1] : vector<128x128xf32> to vector<128xf32>
    %46 = vector.shape_cast %45 : vector<128xf32> to vector<128x1xf32>
    %47 = vector.broadcast %46 : vector<128x1xf32> to vector<128x128xf32>
    %48 = arith.subf %44, %47 : vector<128x128xf32>
    %49 = math.exp %48 : vector<128x128xf32>
    %cst_14 = arith.constant dense<0.000000e+00> : vector<128xf32>
    %50 = vector.multi_reduction <add>, %49, %cst_14 [1] : vector<128x128xf32> to vector<128xf32>
    %51 = vector.shape_cast %50 : vector<128xf32> to vector<128x1xf32>
    %52 = tpu.reciprocal %51 {approx = true} : vector<128x1xf32> -> vector<128x1xf32>
    %53 = vector.broadcast %52 : vector<128x1xf32> to vector<128x128xf32>
    %54 = arith.mulf %49, %53 : vector<128x128xf32>
    %55 = arith.truncf %54 : vector<128x128xf32> to vector<128x128xbf16>
    %56 = vector.extract_strided_slice %13 {offsets = [1, 0, 0], sizes = [1, 128, 16], strides = [1, 1, 1]} : vector<8x128x16xbf16> to vector<1x128x16xbf16>
    %57 = vector.shape_cast %56 : vector<1x128x16xbf16> to vector<128x16xbf16>
    %cst_15 = arith.constant dense<0.000000e+00> : vector<128x16xf32>
    %58 = tpu.matmul %55, %57, %cst_15 {dimension_numbers = #tpu.dot_dimension_numbers<[1], [0], [0], [1], [0, 0, 1, 1], [], []>} : vector<128x128xbf16>, vector<128x16xbf16>, vector<128x16xf32> -> vector<128x16xf32>
    %59 = vector.extract_strided_slice %9 {offsets = [2, 0, 0], sizes = [1, 128, 16], strides = [1, 1, 1]} : vector<8x128x16xbf16> to vector<1x128x16xbf16>
    %60 = vector.shape_cast %59 : vector<1x128x16xbf16> to vector<128x16xbf16>
    %61 = vector.extract_strided_slice %11 {offsets = [2, 0, 0], sizes = [1, 128, 16], strides = [1, 1, 1]} : vector<8x128x16xbf16> to vector<1x128x16xbf16>
    %62 = vector.shape_cast %61 : vector<1x128x16xbf16> to vector<128x16xbf16>
    %cst_16 = arith.constant dense<0.000000e+00> : vector<128x128xf32>
    %63 = tpu.matmul %60, %62, %cst_16 {dimension_numbers = #tpu.dot_dimension_numbers<[1], [1], [0], [0], [0, 0, 1, 0], [], []>} : vector<128x16xbf16>, vector<128x16xbf16>, vector<128x128xf32> -> vector<128x128xf32>
    %cst_17 = arith.constant -1.000000e+30 : f32
    %64 = vector.broadcast %cst_17 : f32 to vector<128x128xf32>
    %65 = arith.select %16, %63, %64 : vector<128x128xi1>, vector<128x128xf32>
    %cst_18 = arith.constant dense<0xFF800000> : vector<128xf32>
    %66 = vector.multi_reduction <maximumf>, %65, %cst_18 [1] : vector<128x128xf32> to vector<128xf32>
    %67 = vector.shape_cast %66 : vector<128xf32> to vector<128x1xf32>
    %68 = vector.broadcast %67 : vector<128x1xf32> to vector<128x128xf32>
    %69 = arith.subf %65, %68 : vector<128x128xf32>
    %70 = math.exp %69 : vector<128x128xf32>
    %cst_19 = arith.constant dense<0.000000e+00> : vector<128xf32>
    %71 = vector.multi_reduction <add>, %70, %cst_19 [1] : vector<128x128xf32> to vector<128xf32>
    %72 = vector.shape_cast %71 : vector<128xf32> to vector<128x1xf32>
    %73 = tpu.reciprocal %72 {approx = true} : vector<128x1xf32> -> vector<128x1xf32>
    %74 = vector.broadcast %73 : vector<128x1xf32> to vector<128x128xf32>
    %75 = arith.mulf %70, %74 : vector<128x128xf32>
    %76 = arith.truncf %75 : vector<128x128xf32> to vector<128x128xbf16>
    %77 = vector.extract_strided_slice %13 {offsets = [2, 0, 0], sizes = [1, 128, 16], strides = [1, 1, 1]} : vector<8x128x16xbf16> to vector<1x128x16xbf16>
    %78 = vector.shape_cast %77 : vector<1x128x16xbf16> to vector<128x16xbf16>
    %cst_20 = arith.constant dense<0.000000e+00> : vector<128x16xf32>
    %79 = tpu.matmul %76, %78, %cst_20 {dimension_numbers = #tpu.dot_dimension_numbers<[1], [0], [0], [1], [0, 0, 1, 1], [], []>} : vector<128x128xbf16>, vector<128x16xbf16>, vector<128x16xf32> -> vector<128x16xf32>
    %80 = vector.extract_strided_slice %9 {offsets = [3, 0, 0], sizes = [1, 128, 16], strides = [1, 1, 1]} : vector<8x128x16xbf16> to vector<1x128x16xbf16>
    %81 = vector.shape_cast %80 : vector<1x128x16xbf16> to vector<128x16xbf16>
    %82 = vector.extract_strided_slice %11 {offsets = [3, 0, 0], sizes = [1, 128, 16], strides = [1, 1, 1]} : vector<8x128x16xbf16> to vector<1x128x16xbf16>
    %83 = vector.shape_cast %82 : vector<1x128x16xbf16> to vector<128x16xbf16>
    %cst_21 = arith.constant dense<0.000000e+00> : vector<128x128xf32>
    %84 = tpu.matmul %81, %83, %cst_21 {dimension_numbers = #tpu.dot_dimension_numbers<[1], [1], [0], [0], [0, 0, 1, 0], [], []>} : vector<128x16xbf16>, vector<128x16xbf16>, vector<128x128xf32> -> vector<128x128xf32>
    %cst_22 = arith.constant -1.000000e+30 : f32
    %85 = vector.broadcast %cst_22 : f32 to vector<128x128xf32>
    %86 = arith.select %16, %84, %85 : vector<128x128xi1>, vector<128x128xf32>
    %cst_23 = arith.constant dense<0xFF800000> : vector<128xf32>
    %87 = vector.multi_reduction <maximumf>, %86, %cst_23 [1] : vector<128x128xf32> to vector<128xf32>
    %88 = vector.shape_cast %87 : vector<128xf32> to vector<128x1xf32>
    %89 = vector.broadcast %88 : vector<128x1xf32> to vector<128x128xf32>
    %90 = arith.subf %86, %89 : vector<128x128xf32>
    %91 = math.exp %90 : vector<128x128xf32>
    %cst_24 = arith.constant dense<0.000000e+00> : vector<128xf32>
    %92 = vector.multi_reduction <add>, %91, %cst_24 [1] : vector<128x128xf32> to vector<128xf32>
    %93 = vector.shape_cast %92 : vector<128xf32> to vector<128x1xf32>
    %94 = tpu.reciprocal %93 {approx = true} : vector<128x1xf32> -> vector<128x1xf32>
    %95 = vector.broadcast %94 : vector<128x1xf32> to vector<128x128xf32>
    %96 = arith.mulf %91, %95 : vector<128x128xf32>
    %97 = arith.truncf %96 : vector<128x128xf32> to vector<128x128xbf16>
    %98 = vector.extract_strided_slice %13 {offsets = [3, 0, 0], sizes = [1, 128, 16], strides = [1, 1, 1]} : vector<8x128x16xbf16> to vector<1x128x16xbf16>
    %99 = vector.shape_cast %98 : vector<1x128x16xbf16> to vector<128x16xbf16>
    %cst_25 = arith.constant dense<0.000000e+00> : vector<128x16xf32>
    %100 = tpu.matmul %97, %99, %cst_25 {dimension_numbers = #tpu.dot_dimension_numbers<[1], [0], [0], [1], [0, 0, 1, 1], [], []>} : vector<128x128xbf16>, vector<128x16xbf16>, vector<128x16xf32> -> vector<128x16xf32>
    %101 = vector.extract_strided_slice %9 {offsets = [4, 0, 0], sizes = [1, 128, 16], strides = [1, 1, 1]} : vector<8x128x16xbf16> to vector<1x128x16xbf16>
    %102 = vector.shape_cast %101 : vector<1x128x16xbf16> to vector<128x16xbf16>
    %103 = vector.extract_strided_slice %11 {offsets = [4, 0, 0], sizes = [1, 128, 16], strides = [1, 1, 1]} : vector<8x128x16xbf16> to vector<1x128x16xbf16>
    %104 = vector.shape_cast %103 : vector<1x128x16xbf16> to vector<128x16xbf16>
    %cst_26 = arith.constant dense<0.000000e+00> : vector<128x128xf32>
    %105 = tpu.matmul %102, %104, %cst_26 {dimension_numbers = #tpu.dot_dimension_numbers<[1], [1], [0], [0], [0, 0, 1, 0], [], []>} : vector<128x16xbf16>, vector<128x16xbf16>, vector<128x128xf32> -> vector<128x128xf32>
    %cst_27 = arith.constant -1.000000e+30 : f32
    %106 = vector.broadcast %cst_27 : f32 to vector<128x128xf32>
    %107 = arith.select %16, %105, %106 : vector<128x128xi1>, vector<128x128xf32>
    %cst_28 = arith.constant dense<0xFF800000> : vector<128xf32>
    %108 = vector.multi_reduction <maximumf>, %107, %cst_28 [1] : vector<128x128xf32> to vector<128xf32>
    %109 = vector.shape_cast %108 : vector<128xf32> to vector<128x1xf32>
    %110 = vector.broadcast %109 : vector<128x1xf32> to vector<128x128xf32>
    %111 = arith.subf %107, %110 : vector<128x128xf32>
    %112 = math.exp %111 : vector<128x128xf32>
    %cst_29 = arith.constant dense<0.000000e+00> : vector<128xf32>
    %113 = vector.multi_reduction <add>, %112, %cst_29 [1] : vector<128x128xf32> to vector<128xf32>
    %114 = vector.shape_cast %113 : vector<128xf32> to vector<128x1xf32>
    %115 = tpu.reciprocal %114 {approx = true} : vector<128x1xf32> -> vector<128x1xf32>
    %116 = vector.broadcast %115 : vector<128x1xf32> to vector<128x128xf32>
    %117 = arith.mulf %112, %116 : vector<128x128xf32>
    %118 = arith.truncf %117 : vector<128x128xf32> to vector<128x128xbf16>
    %119 = vector.extract_strided_slice %13 {offsets = [4, 0, 0], sizes = [1, 128, 16], strides = [1, 1, 1]} : vector<8x128x16xbf16> to vector<1x128x16xbf16>
    %120 = vector.shape_cast %119 : vector<1x128x16xbf16> to vector<128x16xbf16>
    %cst_30 = arith.constant dense<0.000000e+00> : vector<128x16xf32>
    %121 = tpu.matmul %118, %120, %cst_30 {dimension_numbers = #tpu.dot_dimension_numbers<[1], [0], [0], [1], [0, 0, 1, 1], [], []>} : vector<128x128xbf16>, vector<128x16xbf16>, vector<128x16xf32> -> vector<128x16xf32>
    %122 = vector.extract_strided_slice %9 {offsets = [5, 0, 0], sizes = [1, 128, 16], strides = [1, 1, 1]} : vector<8x128x16xbf16> to vector<1x128x16xbf16>
    %123 = vector.shape_cast %122 : vector<1x128x16xbf16> to vector<128x16xbf16>
    %124 = vector.extract_strided_slice %11 {offsets = [5, 0, 0], sizes = [1, 128, 16], strides = [1, 1, 1]} : vector<8x128x16xbf16> to vector<1x128x16xbf16>
    %125 = vector.shape_cast %124 : vector<1x128x16xbf16> to vector<128x16xbf16>
    %cst_31 = arith.constant dense<0.000000e+00> : vector<128x128xf32>
    %126 = tpu.matmul %123, %125, %cst_31 {dimension_numbers = #tpu.dot_dimension_numbers<[1], [1], [0], [0], [0, 0, 1, 0], [], []>} : vector<128x16xbf16>, vector<128x16xbf16>, vector<128x128xf32> -> vector<128x128xf32>
    %cst_32 = arith.constant -1.000000e+30 : f32
    %127 = vector.broadcast %cst_32 : f32 to vector<128x128xf32>
    %128 = arith.select %16, %126, %127 : vector<128x128xi1>, vector<128x128xf32>
    %cst_33 = arith.constant dense<0xFF800000> : vector<128xf32>
    %129 = vector.multi_reduction <maximumf>, %128, %cst_33 [1] : vector<128x128xf32> to vector<128xf32>
    %130 = vector.shape_cast %129 : vector<128xf32> to vector<128x1xf32>
    %131 = vector.broadcast %130 : vector<128x1xf32> to vector<128x128xf32>
    %132 = arith.subf %128, %131 : vector<128x128xf32>
    %133 = math.exp %132 : vector<128x128xf32>
    %cst_34 = arith.constant dense<0.000000e+00> : vector<128xf32>
    %134 = vector.multi_reduction <add>, %133, %cst_34 [1] : vector<128x128xf32> to vector<128xf32>
    %135 = vector.shape_cast %134 : vector<128xf32> to vector<128x1xf32>
    %136 = tpu.reciprocal %135 {approx = true} : vector<128x1xf32> -> vector<128x1xf32>
    %137 = vector.broadcast %136 : vector<128x1xf32> to vector<128x128xf32>
    %138 = arith.mulf %133, %137 : vector<128x128xf32>
    %139 = arith.truncf %138 : vector<128x128xf32> to vector<128x128xbf16>
    %140 = vector.extract_strided_slice %13 {offsets = [5, 0, 0], sizes = [1, 128, 16], strides = [1, 1, 1]} : vector<8x128x16xbf16> to vector<1x128x16xbf16>
    %141 = vector.shape_cast %140 : vector<1x128x16xbf16> to vector<128x16xbf16>
    %cst_35 = arith.constant dense<0.000000e+00> : vector<128x16xf32>
    %142 = tpu.matmul %139, %141, %cst_35 {dimension_numbers = #tpu.dot_dimension_numbers<[1], [0], [0], [1], [0, 0, 1, 1], [], []>} : vector<128x128xbf16>, vector<128x16xbf16>, vector<128x16xf32> -> vector<128x16xf32>
    %143 = vector.extract_strided_slice %9 {offsets = [6, 0, 0], sizes = [1, 128, 16], strides = [1, 1, 1]} : vector<8x128x16xbf16> to vector<1x128x16xbf16>
    %144 = vector.shape_cast %143 : vector<1x128x16xbf16> to vector<128x16xbf16>
    %145 = vector.extract_strided_slice %11 {offsets = [6, 0, 0], sizes = [1, 128, 16], strides = [1, 1, 1]} : vector<8x128x16xbf16> to vector<1x128x16xbf16>
    %146 = vector.shape_cast %145 : vector<1x128x16xbf16> to vector<128x16xbf16>
    %cst_36 = arith.constant dense<0.000000e+00> : vector<128x128xf32>
    %147 = tpu.matmul %144, %146, %cst_36 {dimension_numbers = #tpu.dot_dimension_numbers<[1], [1], [0], [0], [0, 0, 1, 0], [], []>} : vector<128x16xbf16>, vector<128x16xbf16>, vector<128x128xf32> -> vector<128x128xf32>
    %cst_37 = arith.constant -1.000000e+30 : f32
    %148 = vector.broadcast %cst_37 : f32 to vector<128x128xf32>
    %149 = arith.select %16, %147, %148 : vector<128x128xi1>, vector<128x128xf32>
    %cst_38 = arith.constant dense<0xFF800000> : vector<128xf32>
    %150 = vector.multi_reduction <maximumf>, %149, %cst_38 [1] : vector<128x128xf32> to vector<128xf32>
    %151 = vector.shape_cast %150 : vector<128xf32> to vector<128x1xf32>
    %152 = vector.broadcast %151 : vector<128x1xf32> to vector<128x128xf32>
    %153 = arith.subf %149, %152 : vector<128x128xf32>
    %154 = math.exp %153 : vector<128x128xf32>
    %cst_39 = arith.constant dense<0.000000e+00> : vector<128xf32>
    %155 = vector.multi_reduction <add>, %154, %cst_39 [1] : vector<128x128xf32> to vector<128xf32>
    %156 = vector.shape_cast %155 : vector<128xf32> to vector<128x1xf32>
    %157 = tpu.reciprocal %156 {approx = true} : vector<128x1xf32> -> vector<128x1xf32>
    %158 = vector.broadcast %157 : vector<128x1xf32> to vector<128x128xf32>
    %159 = arith.mulf %154, %158 : vector<128x128xf32>
    %160 = arith.truncf %159 : vector<128x128xf32> to vector<128x128xbf16>
    %161 = vector.extract_strided_slice %13 {offsets = [6, 0, 0], sizes = [1, 128, 16], strides = [1, 1, 1]} : vector<8x128x16xbf16> to vector<1x128x16xbf16>
    %162 = vector.shape_cast %161 : vector<1x128x16xbf16> to vector<128x16xbf16>
    %cst_40 = arith.constant dense<0.000000e+00> : vector<128x16xf32>
    %163 = tpu.matmul %160, %162, %cst_40 {dimension_numbers = #tpu.dot_dimension_numbers<[1], [0], [0], [1], [0, 0, 1, 1], [], []>} : vector<128x128xbf16>, vector<128x16xbf16>, vector<128x16xf32> -> vector<128x16xf32>
    %164 = vector.extract_strided_slice %9 {offsets = [7, 0, 0], sizes = [1, 128, 16], strides = [1, 1, 1]} : vector<8x128x16xbf16> to vector<1x128x16xbf16>
    %165 = vector.shape_cast %164 : vector<1x128x16xbf16> to vector<128x16xbf16>
    %166 = vector.extract_strided_slice %11 {offsets = [7, 0, 0], sizes = [1, 128, 16], strides = [1, 1, 1]} : vector<8x128x16xbf16> to vector<1x128x16xbf16>
    %167 = vector.shape_cast %166 : vector<1x128x16xbf16> to vector<128x16xbf16>
    %cst_41 = arith.constant dense<0.000000e+00> : vector<128x128xf32>
    %168 = tpu.matmul %165, %167, %cst_41 {dimension_numbers = #tpu.dot_dimension_numbers<[1], [1], [0], [0], [0, 0, 1, 0], [], []>} : vector<128x16xbf16>, vector<128x16xbf16>, vector<128x128xf32> -> vector<128x128xf32>
    %cst_42 = arith.constant -1.000000e+30 : f32
    %169 = vector.broadcast %cst_42 : f32 to vector<128x128xf32>
    %170 = arith.select %16, %168, %169 : vector<128x128xi1>, vector<128x128xf32>
    %cst_43 = arith.constant dense<0xFF800000> : vector<128xf32>
    %171 = vector.multi_reduction <maximumf>, %170, %cst_43 [1] : vector<128x128xf32> to vector<128xf32>
    %172 = vector.shape_cast %171 : vector<128xf32> to vector<128x1xf32>
    %173 = vector.broadcast %172 : vector<128x1xf32> to vector<128x128xf32>
    %174 = arith.subf %170, %173 : vector<128x128xf32>
    %175 = math.exp %174 : vector<128x128xf32>
    %cst_44 = arith.constant dense<0.000000e+00> : vector<128xf32>
    %176 = vector.multi_reduction <add>, %175, %cst_44 [1] : vector<128x128xf32> to vector<128xf32>
    %177 = vector.shape_cast %176 : vector<128xf32> to vector<128x1xf32>
    %178 = tpu.reciprocal %177 {approx = true} : vector<128x1xf32> -> vector<128x1xf32>
    %179 = vector.broadcast %178 : vector<128x1xf32> to vector<128x128xf32>
    %180 = arith.mulf %175, %179 : vector<128x128xf32>
    %181 = arith.truncf %180 : vector<128x128xf32> to vector<128x128xbf16>
    %182 = vector.extract_strided_slice %13 {offsets = [7, 0, 0], sizes = [1, 128, 16], strides = [1, 1, 1]} : vector<8x128x16xbf16> to vector<1x128x16xbf16>
    %183 = vector.shape_cast %182 : vector<1x128x16xbf16> to vector<128x16xbf16>
    %cst_45 = arith.constant dense<0.000000e+00> : vector<128x16xf32>
    %184 = tpu.matmul %181, %183, %cst_45 {dimension_numbers = #tpu.dot_dimension_numbers<[1], [0], [0], [1], [0, 0, 1, 1], [], []>} : vector<128x128xbf16>, vector<128x16xbf16>, vector<128x16xf32> -> vector<128x16xf32>
    %185 = tpu.concatenate %37, %58, %79, %100, %121, %142, %163, %184 in 1 : vector<128x16xf32>, vector<128x16xf32>, vector<128x16xf32>, vector<128x16xf32>, vector<128x16xf32>, vector<128x16xf32>, vector<128x16xf32>, vector<128x16xf32> -> vector<128x128xf32>
    %c0_46 = arith.constant 0 : index
    %c0_47 = arith.constant 0 : index
    %c0_48 = arith.constant 0 : index
    %186 = vector.load %arg3[%c0_46, %c0_47, %c0_48] : memref<1x128x128xf32, #tpu.memory_space<vmem>>, vector<1x128x128xf32>
    %187 = vector.shape_cast %186 : vector<1x128x128xf32> to vector<128x128xf32>
    %188 = vector.shape_cast %185 : vector<128x128xf32> to vector<1x128x128xf32>
    tpu.vector_store %arg3[%c0_46, %c0_47, %c0_48], %188 {strides = array<i32>} : memref<1x128x128xf32, #tpu.memory_space<vmem>>, vector<1x128x128xf32>,
    return
  }
  func.func @transform_0(%arg0: i32) -> (i32, i32, i32) {
    %c0_i32 = arith.constant 0 : i32
    %c0_i32_0 = arith.constant 0 : i32
    %c0_i32_1 = arith.constant 0 : i32
    return %arg0, %c0_i32, %c0_i32_0 : i32, i32, i32
  }
  func.func @transform_1(%arg0: i32) -> (i32, i32) {
    %c0_i32 = arith.constant 0 : i32
    %c0_i32_0 = arith.constant 0 : i32
    %c0_i32_1 = arith.constant 0 : i32
    return %c0_i32, %c0_i32_0 : i32, i32
  }
  func.func @transform_2(%arg0: i32) -> (i32, i32, i32) {
    %c0_i32 = arith.constant 0 : i32
    %c0_i32_0 = arith.constant 0 : i32
    %c0_i32_1 = arith.constant 0 : i32
    return %arg0, %c0_i32, %c0_i32_0 : i32, i32, i32
  }
}

</mosaic_0001>

<bundles_post_ra>
// kernel: tpu_custom_call.1
= control target key start
LH: loop header
LB: loop body
LE: loop exit
PB: predicated region body
PF: predicated region fallthrough
CT: control target
= control target key end

     0   :  { %vm11103_vm0 = vcmask 523264   ;;  %s11100_s0 = inlined_call_operand.vmem [shape: bf16[8,128,64], index: 0, kind: input, shape index: {}]   ;;  %s11101_s1 = inlined_call_operand.vmem [shape: bf16[64,48], index: 1, kind: input, shape index: {}]   ;;  %s11102_s2 = inlined_call_operand.hbm [shape: f32[1,128,128], index: 2, kind: output, shape index: {}]  }
   0x1   :  { %v7026_v0 = vld [vmem:[%s11101_s1 + $0x18] sm:$0xff]   ;;  %v7027_v1 = vld [vmem:[%s11101_s1 + $0x10] sm:$0xff]   ;;  %v7028_v2 = vld [vmem:[%s11101_s1 + $0x8] sm:$0xff]  }
   0x2   :  { %6304 = vmatprep.subr.bf16.mxu0 %v7026_v0  ;;  %v7030_v3 = vld [vmem:[%s11100_s0] sm:$0xff]   ;;  %v7031_v5 = vld [vmem:[%s11100_s0 + $0x8] sm:$0xff]   ;;  %v7032_v6 = vld [vmem:[%s11100_s0 + $0x10] sm:$0xff]  }
   0x3   :  { %6305 = vmatpush3.bf16.msra.mxu0 %v7026_v0  ;;  %6312 = vmatprep.mubr.msk.bf16.mxu0 %vm11103_vm0, %v7030_v3  ;;  %v7029_v4 = vld [vmem:[%s11101_s1] sm:$0xff]   ;;  %v7033_v7 = vld [vmem:[%s11100_s0 + $0x18] sm:$0xff]   ;;  %v7035_v9 = vld [vmem:[%s11100_s0 + $0x28] sm:$0xff]  }
   0x4   :  { %6306 = vmatprep.subr.bf16.mxu0 %v7027_v1  ;;  %v7034_v8 = vld [vmem:[%s11100_s0 + $0x20] sm:$0xff]   ;;  %v7036_v10 = vld [vmem:[%s11100_s0 + $0x30] sm:$0xff]   ;;  %v7037_v11 = vld [vmem:[%s11100_s0 + $0x38] sm:$0xff]  }
   0x7   :  { %6307 = vmatpush3.bf16.msra.mxu0 %v7027_v1 }
   0x8   :  { %6308 = vmatprep.subr.bf16.mxu0 %v7028_v2 }
   0xb   :  { %6309 = vmatpush3.bf16.msra.mxu0 %v7028_v2 }
   0xc   :  { %6310 = vmatprep.subr.bf16.mxu0 %v7029_v4 }
   0xf   :  { %6311 = vmatpush3.bf16.msra.mxu0 %v7029_v4 }
  0x12   :  { %6313 = vmatmul.mubr.msk.bf16.vlgmr.msra.gmra.mxu0 %vm11103_vm0, %v7031_v5 }
  0x13   :  { %6316 = vmatprep.mubr.msk.bf16.mxu0 %vm11103_vm0, %v7032_v6 }
  0x1a   :  { %6317 = vmatmul.mubr.msk.bf16.gmra.mxu0 %vm11103_vm0, %v7033_v7 }
  0x1b   :  { %6320 = vmatprep.mubr.msk.bf16.mxu0 %vm11103_vm0, %v7034_v8 }
  0x22   :  { %6321 = vmatmul.mubr.msk.bf16.gmra.mxu0 %vm11103_vm0, %v7035_v9 }
  0x23   :  { %6324 = vmatprep.mubr.msk.bf16.mxu0 %vm11103_vm0, %v7036_v10 }
  0x2a   :  { %6325 = vmatmul.mubr.msk.bf16.gmra.mxu0 %vm11103_vm0, %v7037_v11 }
  0x2b   :  { %7 = vsyncpa [#allocation3], 0  ;;  %vm11104_vm1 = vcmask 130048   ;;  %s7628_s4 = smov 112   ;;  %s7629_s5 = smov 96   ;;  %v7038_v51 = vld [vmem:[%s11100_s0 + $0x40] sm:$0xff]  }
  0x2c   :  { %6328 = vmatprep.mubr.msk.bf16.mxu0 %vm11103_vm0, %v7038_v51  ;;  %v7039_v52 = vld [vmem:[%s11100_s0 + $0x48] sm:$0xff]   ;;  %v7040_v53 = vld [vmem:[%s11100_s0 + $0x50] sm:$0xff]   ;;  %v7041_v54 = vld [vmem:[%s11100_s0 + $0x58] sm:$0xff]   ;;  %s7631_s10 = smov 32   ;;  %s7632_s11 = smov 48  }
  0x2d   :  { %v7042_v55 = vld [vmem:[%s11100_s0 + $0x60] sm:$0xff]   ;;  %v7043_v56 = vld [vmem:[%s11100_s0 + $0x68] sm:$0xff]   ;;  %v7044_v57 = vld [vmem:[%s11100_s0 + $0x70] sm:$0xff]   ;;  %s7633_s12 = smov 64   ;;  %s7634_s13 = smov 80  }
  0x2e   :  { %v7045_v58 = vld [vmem:[%s11100_s0 + $0x78] sm:$0xff]  }
  0x32   :  { %6329 = vmatmul.mubr.msk.bf16.gmra.mxu0 %vm11103_vm0, %v7039_v52 }
  0x33   :  { %6332 = vmatprep.mubr.msk.bf16.mxu0 %vm11103_vm0, %v7040_v53 }
  0x3a   :  { %6333 = vmatmul.mubr.msk.bf16.gmra.mxu0 %vm11103_vm0, %v7041_v54 }
  0x3b   :  { %6336 = vmatprep.mubr.msk.bf16.mxu0 %vm11103_vm0, %v7042_v55 }
  0x42   :  { %6337 = vmatmul.mubr.msk.bf16.gmra.mxu0 %vm11103_vm0, %v7043_v56 }
  0x43   :  { %6340 = vmatprep.mubr.msk.bf16.mxu0 %vm11103_vm0, %v7044_v57  ;;  %v11273_v57 = vmov 0 }
  0x4a   :  { %6341 = vmatmul.mubr.msk.bf16.gmra.mxu0 %vm11103_vm0, %v7045_v58 }
  0xd2   :  { %v6314_v12 = vpop.f32.mrf.mxu0 }
  0xd3   :  { %v7697_v15 = vmul.f32 0.125, %v6314_v12 }
  0xd4   :  { %v720_v13 = vpop.f32.mrf.mxu0 }
  0xd5   :  { %v1231_v18 = vmul.f32 0.125, %v720_v13 }
  0xd6   :  { %v6315_v14 = vpop.f32.mrf.mxu0 }
  0xd7   :  { %v7699_v16 = vmul.f32 0.125, %v6315_v14  ;;  %v1424_v50 = vpack.c.bf16 %v6315_v14, %v6314_v12 }
  0xd8   :  { %v723_v17 = vpop.f32.mrf.mxu0 }
  0xd9   :  { %v1360_v19 = vpack.c.bf16 %v7699_v16, %v7697_v15  ;;  %v1232_v20 = vmul.f32 0.125, %v723_v17  ;;  %v1423_v47 = vpack.c.bf16 %v723_v17, %v720_v13 }
  0xda   :  { %v6318_v21 = vpop.f32.mrf.mxu0 }
  0xdb   :  { %v1359_v22 = vpack.c.bf16 %v1232_v20, %v1231_v18  ;;  %v7706_v25 = vmul.f32 0.125, %v6318_v21 }
  0xdc   :  { %v7703_v23 = vpop.f32.mrf.mxu0 }
  0xdd   :  { %6456 = vmatprep.mubr.msk.bf16.mxu1 %vm11104_vm1, %v1359_v22 }
  0xde   :  { %v6319_v24 = vpop.f32.mrf.mxu0 }
  0xdf   :  { %v7708_v26 = vmul.f32 0.125, %v6319_v24  ;;  %v1426_v49 = vpack.c.bf16 %v6319_v24, %v6318_v21  ;;  %v1235_v21 = vmul.f32 0.125, %v7703_v23 }
  0xe0   :  { %v7710_v27 = vpop.f32.mrf.mxu0 }
  0xe1   :  { %v1362_v28 = vpack.c.bf16 %v7708_v26, %v7706_v25  ;;  %v1425_v41 = vpack.c.bf16 %v7710_v27, %v7703_v23  ;;  %v1236_v18 = vmul.f32 0.125, %v7710_v27 }
  0xe2   :  { %v6322_v29 = vpop.f32.mrf.mxu0 }
  0xe3   :  { %v7716_v32 = vmul.f32 0.125, %v6322_v29  ;;  %v1361_v22 = vpack.c.bf16 %v1236_v18, %v1235_v21  ;;  %v11300_v18 = vmov 0  ;;  %v11303_v21 = vmov 0 }
  0xe4   :  { %v7714_v30 = vpop.f32.mrf.mxu0 }
  0xe6   :  { %v6323_v31 = vpop.f32.mrf.mxu0 }
  0xe7   :  { %v7718_v33 = vmul.f32 0.125, %v6323_v31  ;;  %v1428_v34 = vpack.c.bf16 %v6323_v31, %v6322_v29  ;;  %v1239_v31 = vmul.f32 0.125, %v7714_v30 }
  0xe8   :  { %v7720_v35 = vpop.f32.mrf.mxu0 }
  0xe9   :  { %v1364_v36 = vpack.c.bf16 %v7718_v33, %v7716_v32  ;;  %1540 = vrot.lane.b32.xlu1 %v1428_v34, %s7628_s4  ;;  %v1427_v38 = vpack.c.bf16 %v7720_v35, %v7714_v30  ;;  %v1240_v29 = vmul.f32 0.125, %v7720_v35 }
  0xea   :  { %v6326_v37 = vpop.f32.mrf.mxu0 }
  0xeb   :  { %v7732_v42 = vmul.f32 0.125, %v6326_v37  ;;  %v1363_v27 = vpack.c.bf16 %v1240_v29, %v1239_v31 }
  0xec   :  { %v7727_v39 = vpop.f32.mrf.mxu0 }
  0xed   :  { %1538 = vrot.lane.b32.xlu1 %v1427_v38, %s7628_s4  ;;  %v1243_v16 = vmul.f32 0.125, %v7727_v39 }
  0xee   :  { %v6327_v40 = vpop.f32.mrf.mxu0 }
  0xef   :  { %v7734_v43 = vmul.f32 0.125, %v6327_v40  ;;  %v1430_v44 = vpack.c.bf16 %v6327_v40, %v6326_v37 }
  0xf0   :  { %v7736_v45 = vpop.f32.mrf.mxu0 }
  0xf1   :  { %v1366_v46 = vpack.c.bf16 %v7734_v43, %v7732_v42  ;;  %1534 = vrot.lane.b32.xlu1 %v1425_v41, %s7628_s4  ;;  %1544 = vrot.lane.b32.xlu0 %v1430_v44, %s7628_s4  ;;  %v1429_v48 = vpack.c.bf16 %v7736_v45, %v7727_v39  ;;  %v1244_v15 = vmul.f32 0.125, %v7736_v45 }
  0xf2   :  { %v6330_v23 = vpop.f32.mrf.mxu0 }
  0xf3   :  { %v7831_v26 = vmul.f32 0.125, %v6330_v23 }
  0xf4   :  { %v7829_v25 = vpop.f32.mrf.mxu0 }
  0xf5   :  { %1530 = vrot.lane.b32.xlu1 %v1423_v47, %s7628_s4  ;;  %1542 = vrot.lane.b32.xlu0 %v1429_v48, %s7628_s4 }
  0xf9   :  { %1874 = vrot.lane.b32.xlu1 %v1430_v44, %s7629_s5  ;;  %1536 = vrot.lane.b32.xlu0 %v1426_v49, %s7628_s4  ;;  %v1487_v44 = vlaneseq }
  0xfb   :  { %v7863_v52 = vand.u32 127, %v1487_v44 }
  0xfd   :  { %1868 = vrot.lane.b32.xlu1 %v1427_v38, %s7629_s5  ;;  %1532 = vrot.lane.b32.xlu0 %v1424_v50, %s7628_s4 }
 0x101   :  { %1866 = vrot.lane.b32.xlu1 %v1426_v49, %s7629_s5  ;;  %1870 = vrot.lane.b32.xlu0 %v1428_v34, %s7629_s5 }
 0x105   :  { %1864 = vrot.lane.b32.xlu1 %v1425_v41, %s7629_s5 }
 0x109   :  { %1862 = vrot.lane.b32.xlu1 %v1424_v50, %s7629_s5 }
 0x10d   :  { %1860 = vrot.lane.b32.xlu1 %v1423_v47, %s7629_s5 }
 0x111   :  { %1872 = vrot.lane.b32.xlu1 %v1429_v48, %s7629_s5  ;;  %v7857_v48 = vshrl.u32 %v1487_v44, 7 }
 0x113   :  { %v1492_v54 = vadd.s32 32, %v7857_v48  ;;  %vm7951_vm13 = vcmp.ge.s32.totalorder %v7857_v48, %v7863_v52 }
 0x115   :  { %vm7871_vm2 = vcmp.ge.s32.totalorder %v1492_v54, %v7863_v52 }
 0x116   :  { %v11274_v57 = vsel %vm7871_vm2, 4294967295, %v11273_v57 }
 0x117   :  { %11275 = vst [vmem:[#allocation5_spill] sm:$0xff] %v11274_v57 }
 0x15b   :  { %v1541_v62 = vpop.permute.xlu1 %1540 }
 0x15c   :  { %v1587_v1 = vsel %vm11104_vm1, %v1541_v62, 0 }
 0x15f   :  { %v1539_v0 = vpop.permute.xlu1 %1538 }
 0x160   :  { %v1584_v4 = vsel %vm11104_vm1, %v1539_v0, 0 }
 0x163   :  { %v1545_v59 = vpop.permute.xlu0 %1544  ;;  %v1535_v2 = vpop.permute.xlu1 %1534 }
 0x164   :  { %6952 = vmatprep.subr.msk.bf16.mxu1 %vm11104_vm1, %v1545_v59  ;;  %v1593_v60 = vsel %vm11104_vm1, %v1545_v59, 0  ;;  %v1578_v9 = vsel %vm11104_vm1, %v1535_v2, 0  ;;  %v1493_v59 = vadd.s32 40, %v7857_v48 }
 0x165   :  { %6441 = vmatpush3.bf16.xpose.msra.mxu1 %v1593_v60 }
 0x166   :  { %vm7881_vm3 = vcmp.ge.s32.totalorder %v1493_v59, %v7863_v52 }
 0x167   :  { %v1543_v61 = vpop.permute.xlu0 %1542  ;;  %v1531_v3 = vpop.permute.xlu1 %1530 }
 0x168   :  { %6953 = vmatprep.subr.msk.bf16.mxu1 %vm11104_vm1, %v1543_v61  ;;  %v1590_v63 = vsel %vm11104_vm1, %v1543_v61, 0  ;;  %v1572_v17 = vsel %vm11104_vm1, %v1531_v3, 0 }
 0x16b   :  { %v1537_v5 = vpop.permute.xlu0 %1536  ;;  %v1875_v6 = vpop.permute.xlu1 %1874 }
 0x16c   :  { %v1581_v7 = vsel %vm11104_vm1, %v1537_v5, 0 }
 0x16d   :  { %6443 = vmatpush3.bf16.xpose.msra.mxu1 %v1590_v63  ;;  %v1498_v63 = vadd.s32 80, %v7857_v48 }
 0x16e   :  { %6954 = vmatprep.subr.msk.bf16.mxu1 %vm11104_vm1, %v1541_v62  ;;  %v11276_v62 = vmov 0 }
 0x16f   :  { %v1869_v8 = vpop.permute.xlu1 %1868  ;;  %v1533_v10 = vpop.permute.xlu0 %1532  ;;  %v11277_v62 = vsel %vm7881_vm3, 4294967295, %v11276_v62  ;;  %vm7889_vm4 = vcmp.ge.s32.totalorder %v1498_v63, %v7863_v52 }
 0x170   :  { %v1575_v13 = vsel %vm11104_vm1, %v1533_v10, 0  ;;  %11278 = vst [vmem:[#allocation6_spill] sm:$0xff] %v11277_v62 }
 0x173   :  { %v1867_v11 = vpop.permute.xlu1 %1866  ;;  %v1871_v34 = vpop.permute.xlu0 %1870 }
 0x175   :  { %6445 = vmatpush3.bf16.xpose.msra.mxu1 %v1587_v1  ;;  %v11279_v1 = vmov 0 }
 0x176   :  { %6955 = vmatprep.subr.msk.bf16.mxu1 %vm11104_vm1, %v1539_v0  ;;  %v11280_v1 = vsel %vm7889_vm4, 4294967295, %v11279_v1 }
 0x177   :  { %v1865_v12 = vpop.permute.xlu1 %1864  ;;  %11281 = vst [vmem:[#allocation7_spill] sm:$0xff] %v11280_v1 }
 0x17b   :  { %v1863_v14 = vpop.permute.xlu1 %1862 }
 0x17d   :  { %6447 = vmatpush3.bf16.xpose.msra.mxu1 %v1584_v4  ;;  %v1499_v4 = vadd.s32 88, %v7857_v48 }
 0x17e   :  { %6956 = vmatprep.subr.msk.bf16.mxu1 %vm11104_vm1, %v1537_v5  ;;  %v11282_v5 = vmov 0 }
 0x17f   :  { %v1861_v20 = vpop.permute.xlu1 %1860  ;;  %vm7903_vm6 = vcmp.ge.s32.totalorder %v1499_v4, %v7863_v52 }
 0x183   :  { %v1873_v24 = vpop.permute.xlu1 %1872 }
 0x185   :  { %6449 = vmatpush3.bf16.xpose.msra.mxu1 %v1581_v7  ;;  %v1497_v7 = vadd.s32 72, %v7857_v48 }
 0x186   :  { %6957 = vmatprep.subr.msk.bf16.mxu1 %vm11104_vm1, %v1535_v2  ;;  %v1496_v2 = vadd.s32 64, %v7857_v48 }
 0x187   :  { %vm7909_vm7 = vcmp.ge.s32.totalorder %v1497_v7, %v7863_v52  ;;  %v1494_v7 = vadd.s32 48, %v7857_v48 }
 0x188   :  { %vm7898_vm5 = vcmp.ge.s32.totalorder %v1496_v2, %v7863_v52 }
 0x189   :  { %v11283_v5 = vsel %vm7898_vm5, 4294967295, %v11282_v5  ;;  %vm7990_vm0 = vcmp.ge.s32.totalorder %v1494_v7, %v7863_v52 }
 0x18a   :  { %11284 = vst [vmem:[#allocation8_spill] sm:$0xff] %v11283_v5 }
 0x18d   :  { %6451 = vmatpush3.bf16.xpose.msra.mxu1 %v1578_v9  ;;  %v1502_v9 = vadd.s32 112, %v7857_v48 }
 0x18e   :  { %6958 = vmatprep.subr.msk.bf16.mxu1 %vm11104_vm1, %v1533_v10  ;;  %v11291_v10 = vmov 0 }
 0x18f   :  { %vm7915_vm8 = vcmp.ge.s32.totalorder %v1502_v9, %v7863_v52 }
 0x190   :  { %v11292_v10 = vsel %vm7915_vm8, 4294967295, %v11291_v10 }
 0x191   :  { %11293 = vst [vmem:[#allocation11_spill] sm:$0xff] %v11292_v10 }
 0x195   :  { %6453 = vmatpush3.bf16.xpose.msra.mxu1 %v1575_v13  ;;  %v11294_v13 = vmov 0 }
 0x196   :  { %6959 = vmatprep.subr.msk.bf16.mxu1 %vm11104_vm1, %v1531_v3 }
 0x19d   :  { %6455 = vmatpush3.bf16.xpose.msra.mxu1 %v1572_v17  ;;  %v1501_v17 = vadd.s32 104, %v7857_v48 }
 0x19e   :  { %6472 = vmatprep.subr.bf16.mxu1 %v1875_v6 }
 0x19f   :  { %vm7933_vm11 = vcmp.ge.s32.totalorder %v1501_v17, %v7863_v52 }
 0x1a0   :  { %v11301_v18 = vsel %vm7933_vm11, 4294967295, %v11300_v18 }
 0x1a1   :  { %11302 = vst [vmem:[#allocation14_spill] sm:$0xff] %v11301_v18 }
 0x1a4   :  { %6457 = vmatmul.mubr.msk.bf16.vlgmr.msra.gmra.mxu1 %vm11104_vm1, %v1360_v19  ;;  %v1365_v19 = vpack.c.bf16 %v1244_v15, %v1243_v16  ;;  %v11309_v16 = vmov 0 }
 0x1a5   :  { %6460 = vmatprep.mubr.msk.bf16.mxu1 %vm11104_vm1, %v1361_v22  ;;  %6473 = vmatpush3.bf16.msra.mxu1 %v1875_v6  ;;  %v11285_v6 = vmov 0 }
 0x1a6   :  { %6474 = vmatprep.subr.bf16.mxu1 %v1873_v24  ;;  %v11286_v6 = vsel %vm7903_vm6, 4294967295, %v11285_v6 }
 0x1a7   :  { %11287 = vst [vmem:[#allocation9_spill] sm:$0xff] %v11286_v6 }
 0x1a9   :  { %6475 = vmatpush3.bf16.msra.mxu1 %v1873_v24  ;;  %v1489_v24 = vadd.s32 8, %v7857_v48 }
 0x1aa   :  { %6476 = vmatprep.subr.bf16.mxu1 %v1871_v34 }
 0x1ab   :  { %vm7957_vm14 = vcmp.ge.s32.totalorder %v1489_v24, %v7863_v52 }
 0x1ac   :  { %6461 = vmatmul.mubr.msk.bf16.gmra.mxu1 %vm11104_vm1, %v1362_v28  ;;  %v6331_v28 = vpop.f32.mrf.mxu0  ;;  %v11310_v16 = vsel %vm7957_vm14, 4294967295, %v11309_v16 }
 0x1ad   :  { %6464 = vmatprep.mubr.msk.bf16.mxu1 %vm11104_vm1, %v1363_v27  ;;  %6477 = vmatpush3.bf16.msra.mxu1 %v1871_v34  ;;  %v7833_v30 = vmul.f32 0.125, %v6331_v28  ;;  %v7835_v32 = vpack.c.bf16 %v6331_v28, %v6330_v23  ;;  %v11306_v34 = vmov 0  ;;  %v1491_v27 = vadd.s32 24, %v7857_v48  ;;  %11311 = vst [vmem:[#allocation17_spill] sm:$0xff] %v11310_v16 }
 0x1ae   :  { %6478 = vmatprep.subr.bf16.mxu1 %v1869_v8  ;;  %v7837_v33 = vpop.f32.mrf.mxu0  ;;  %v11307_v34 = vsel %vm7951_vm13, 4294967295, %v11306_v34  ;;  %v11312_v28 = vmov 0 }
 0x1af   :  { %11308 = vst [vmem:[#allocation16_spill] sm:$0xff] %v11307_v34  ;;  %vm7964_vm15 = vcmp.ge.s32.totalorder %v1491_v27, %v7863_v52 }
 0x1b0   :  { %v11313_v28 = vsel %vm7964_vm15, 4294967295, %v11312_v28 }
 0x1b1   :  { %6479 = vmatpush3.bf16.msra.mxu1 %v1869_v8  ;;  %v11288_v8 = vmov 0  ;;  %11314 = vst [vmem:[#allocation18_spill] sm:$0xff] %v11313_v28 }
 0x1b2   :  { %6480 = vmatprep.subr.bf16.mxu1 %v1867_v11  ;;  %v11289_v8 = vsel %vm7909_vm7, 4294967295, %v11288_v8 }
 0x1b3   :  { %11290 = vst [vmem:[#allocation10_spill] sm:$0xff] %v11289_v8 }
 0x1b4   :  { %6465 = vmatmul.mubr.msk.bf16.gmra.mxu1 %vm11104_vm1, %v1364_v36  ;;  %v6334_v36 = vpop.f32.mrf.mxu0 }
 0x1b5   :  { %6468 = vmatprep.mubr.msk.bf16.mxu1 %vm11104_vm1, %v1365_v19  ;;  %6481 = vmatpush3.bf16.msra.mxu1 %v1867_v11  ;;  %v7843_v38 = vmul.f32 0.125, %v6334_v36  ;;  %v1500_v11 = vadd.s32 96, %v7857_v48 }
 0x1b6   :  { %6482 = vmatprep.subr.bf16.mxu1 %v1865_v12  ;;  %v7841_v37 = vpop.f32.mrf.mxu0 }
 0x1b7   :  { %vm7922_vm9 = vcmp.ge.s32.totalorder %v1500_v11, %v7863_v52  ;;  %v1495_v11 = vadd.s32 56, %v7857_v48 }
 0x1b8   :  { %v6335_v39 = vpop.f32.mrf.mxu0  ;;  %v11295_v13 = vsel %vm7922_vm9, 4294967295, %v11294_v13 }
 0x1b9   :  { %6483 = vmatpush3.bf16.msra.mxu1 %v1865_v12  ;;  %v7845_v40 = vmul.f32 0.125, %v6335_v39  ;;  %v7847_v41 = vpack.c.bf16 %v6335_v39, %v6334_v36  ;;  %v1503_v12 = vadd.s32 120, %v7857_v48  ;;  %11296 = vst [vmem:[#allocation12_spill] sm:$0xff] %v11295_v13 }
 0x1ba   :  { %6484 = vmatprep.subr.bf16.mxu1 %v1863_v14  ;;  %v7849_v42 = vpop.f32.mrf.mxu0 }
 0x1bb   :  { %vm7927_vm10 = vcmp.ge.s32.totalorder %v1503_v12, %v7863_v52  ;;  %v11315_v12 = vmov 0 }
 0x1bc   :  { %6469 = vmatmul.mubr.msk.bf16.gmra.mxu1 %vm11104_vm1, %v1366_v46  ;;  %v6338_v45 = vpop.f32.mrf.mxu0  ;;  %v11316_v12 = vsel %vm7990_vm0, 4294967295, %v11315_v12  ;;  %vm7995_vm1 = vcmp.ge.s32.totalorder %v1495_v11, %v7863_v52 }
 0x1bd   :  { %6485 = vmatpush3.bf16.msra.mxu1 %v1863_v14  ;;  %v7855_v47 = vmul.f32 0.125, %v6338_v45  ;;  %v11297_v14 = vmov 0  ;;  %11317 = vst [vmem:[#allocation19_spill] sm:$0xff] %v11316_v12 }
 0x1be   :  { %6486 = vmatprep.subr.bf16.mxu1 %v1861_v20  ;;  %v7853_v46 = vpop.f32.mrf.mxu0  ;;  %v11298_v14 = vsel %vm7927_vm10, 4294967295, %v11297_v14 }
 0x1bf   :  { %11299 = vst [vmem:[#allocation13_spill] sm:$0xff] %v11298_v14 }
 0x1c0   :  { %v6339_v49 = vpop.f32.mrf.mxu0 }
 0x1c1   :  { %6487 = vmatpush3.bf16.msra.mxu1 %v1861_v20  ;;  %v7859_v50 = vmul.f32 0.125, %v6339_v49  ;;  %v7861_v51 = vpack.c.bf16 %v6339_v49, %v6338_v45  ;;  %v1490_v20 = vadd.s32 16, %v7857_v48 }
 0x1c2   :  { %v7865_v53 = vpop.f32.mrf.mxu0 }
 0x1c3   :  { %vm7939_vm12 = vcmp.ge.s32.totalorder %v1490_v20, %v7863_v52 }
 0x1c4   :  { %v6342_v56 = vpop.f32.mrf.mxu0  ;;  %v11304_v21 = vsel %vm7939_vm12, 4294967295, %v11303_v21 }
 0x1c5   :  { %v7878_v60 = vmul.f32 0.125, %v6342_v56  ;;  %11305 = vst [vmem:[#allocation15_spill] sm:$0xff] %v11304_v21 }
 0x1c6   :  { %v7875_v58 = vpop.f32.mrf.mxu0 }
 0x1c8   :  { %v6343_v61 = vpop.f32.mrf.mxu0 }
 0x1c9   :  { %v7886_v0 = vmul.f32 0.125, %v6343_v61  ;;  %v7983_v49 = vpack.c.bf16 %v6343_v61, %v6342_v56  ;;  %v11318_v61 = vmov 0 }
 0x1ca   :  { %v7975_v44 = vpop.f32.mrf.mxu0  ;;  %v11319_v61 = vsel %vm7995_vm1, 4294967295, %v11318_v61 }
 0x1cb   :  { %v7979_v45 = vpack.c.bf16 %v7975_v44, %v7875_v58  ;;  %11320 = vst [vmem:[#allocation20_spill] sm:$0xff] %v11319_v61 }
 0x264   :  { %v6458_v22 = vpop.f32.mrf.mxu1 }
 0x265   :  { %v7946_v29 = vsel %vm7939_vm12, %v6458_v22, -1e+30 }
 0x266   :  { %1712 = vmax.xlane.f32.xlu0 %v7946_v29  ;;  %v1629_v31 = vpop.f32.mrf.mxu1 }
 0x267   :  { %v1692_v19 = vsel %vm7951_vm13, %v1629_v31, -1e+30 }
 0x268   :  { %v6459_v15 = vpop.f32.mrf.mxu1 }
 0x269   :  { %v1695_v39 = vsel %vm7964_vm15, %v6459_v15, -1e+30 }
 0x26a   :  { %1708 = vmax.xlane.f32.xlu0 %v1692_v19  ;;  %v1632_v23 = vpop.f32.mrf.mxu1 }
 0x26b   :  { %v7970_v36 = vsel %vm7957_vm14, %v1632_v23, -1e+30 }
 0x26c   :  { %1710 = vmax.xlane.f32.xlu1 %v7970_v36  ;;  %v6462_v54 = vpop.f32.mrf.mxu1 }
 0x26d   :  { %v1698_v17 = vsel %vm7990_vm0, %v6462_v54, -1e+30 }
 0x26e   :  { %1714 = vmax.xlane.f32.xlu0 %v1695_v39  ;;  %v1645_v59 = vpop.f32.mrf.mxu1 }
 0x26f   :  { %v1696_v22 = vsel %vm7871_vm2, %v1645_v59, -1e+30 }
 0x270   :  { %v6463_v63 = vpop.f32.mrf.mxu1 }
 0x271   :  { %v8003_v20 = vsel %vm7995_vm1, %v6463_v63, -1e+30 }
 0x272   :  { %v1648_v2 = vpop.f32.mrf.mxu1 }
 0x273   :  { %v8010_v52 = vsel %vm7881_vm3, %v1648_v2, -1e+30 }
 0x274   :  { %v6466_v4 = vpop.f32.mrf.mxu1 }
 0x275   :  { %v8015_v31 = vsel %vm7889_vm4, %v6466_v4, -1e+30 }
 0x276   :  { %v1661_v9 = vpop.f32.mrf.mxu1 }
 0x277   :  { %v8025_v23 = vsel %vm7898_vm5, %v1661_v9, -1e+30 }
 0x278   :  { %v6467_v56 = vpop.f32.mrf.mxu1 }
 0x279   :  { %v8020_v27 = vsel %vm7903_vm6, %v6467_v56, -1e+30 }
 0x27a   :  { %v1664_v48 = vpop.f32.mrf.mxu1 }
 0x27b   :  { %v8030_v54 = vsel %vm7909_vm7, %v1664_v48, -1e+30 }
 0x27c   :  { %v6470_v24 = vpop.f32.mrf.mxu1 }
 0x27d   :  { %2001 = vrot.lane.b32.xlu1 %v7979_v45, %s7628_s4  ;;  %v8035_v63 = vsel %vm7915_vm8, %v6470_v24, -1e+30 }
 0x27e   :  { %v1677_v15 = vpop.f32.mrf.mxu1 }
 0x27f   :  { %v8045_v7 = vsel %vm7922_vm9, %v1677_v15, -1e+30  ;;  %vm11321_vm9 = vcmask 130048  }
 0x280   :  { %v6471_v59 = vpop.f32.mrf.mxu1  ;;  %vm11324_vm8 = vmmov %vm11321_vm9 }
 0x281   :  { %v8040_v2 = vsel %vm7927_vm10, %v6471_v59, -1e+30  ;;  %vm11325_vm10 = vmmov %vm11324_vm8 }
 0x282   :  { %v1680_v4 = vpop.f32.mrf.mxu1 }
 0x283   :  { %v8050_v9 = vsel %vm7933_vm11, %v1680_v4, -1e+30  ;;  %vm11323_vm11 = vmmov %vm11321_vm9 }
 0x284   :  { %2003 = vrot.lane.b32.xlu0 %v7983_v49, %s7628_s4 }
 0x2a1   :  { %1720 = vmax.xlane.f32.xlu1 %v1698_v17 }
 0x2a3   :  { %1722 = vmax.xlane.f32.xlu0 %v8003_v20 }
 0x2a5   :  { %1716 = vmax.xlane.f32.xlu1 %v1696_v22 }
 0x2a7   :  { %1718 = vmax.xlane.f32.xlu0 %v8010_v52 }
 0x2a9   :  { %1728 = vmax.xlane.f32.xlu1 %v8015_v31 }
 0x2ab   :  { %1730 = vmax.xlane.f32.xlu0 %v8020_v27 }
 0x2ad   :  { %1724 = vmax.xlane.f32.xlu1 %v8025_v23 }
 0x2af   :  { %1726 = vmax.xlane.f32.xlu0 %v8030_v54 }
 0x2b1   :  { %1736 = vmax.xlane.f32.xlu1 %v8035_v63 }
 0x2b3   :  { %1738 = vmax.xlane.f32.xlu0 %v8040_v2 }
 0x2b5   :  { %1732 = vmax.xlane.f32.xlu1 %v8045_v7 }
 0x2b7   :  { %1734 = vmax.xlane.f32.xlu0 %v8050_v9 }
 0x2c6   :  { %1999 = vrot.lane.b32.xlu1 %v7861_v51, %s7628_s4 }
 0x2ef   :  { %v1713_v11 = vpop.xlane.xlu0 %1712 }
 0x2f0   :  { %v1742_v56 = vsub.f32 %v7946_v29, %v1713_v11 }
 0x2f2   :  { %v1760_v48 = vmul.f32 1.442695, %v1742_v56 }
 0x2f3   :  { %v1709_v24 = vpop.xlane.xlu0 %1708 }
 0x2f4   :  { %7094 = vpow2.f32 %v1760_v48  ;;  %v1740_v59 = vsub.f32 %v1692_v19, %v1709_v24 }
 0x2f5   :  { %v1711_v15 = vpop.xlane.xlu1 %1710 }
 0x2f6   :  { %v1756_v3 = vmul.f32 1.442695, %v1740_v59  ;;  %v1741_v43 = vsub.f32 %v7970_v36, %v1711_v15 }
 0x2f7   :  { %v1715_v55 = vpop.xlane.xlu0 %1714 }
 0x2f8   :  { %7096 = vpow2.f32 %v1756_v3  ;;  %v1743_v4 = vsub.f32 %v1695_v39, %v1715_v55  ;;  %v1758_v18 = vmul.f32 1.442695, %v1741_v43 }
 0x2fa   :  { %v1762_v35 = vmul.f32 1.442695, %v1743_v4 }
 0x2fb   :  { %v8057_v13 = vpop.permute.xlu0 %2003 }
 0x2fc   :  { %7098 = vpow2.f32 %v1762_v35  ;;  %6960 = vmatprep.subr.msk.bf16.mxu1 %vm11321_vm9, %v8057_v13  ;;  %v8073_v35 = vpop.permute.xlu1 %2001 }
 0x2fd   :  { %7100 = vpow2.f32 %v1758_v18 }
 0x301   :  { %v8061_v29 = vpop.eup %7094 }
 0x302   :  { %1792 = vadd.xlane.f32.xlu0 %v8061_v29 }
 0x305   :  { %v8064_v19 = vpop.eup %7096 }
 0x306   :  { %1788 = vadd.xlane.f32.xlu0 %v8064_v19 }
 0x309   :  { %v8067_v3 = vpop.eup %7098 }
 0x30a   :  { %1794 = vadd.xlane.f32.xlu0 %v8067_v3  ;;  %v8070_v55 = vpop.eup %7100 }
 0x30e   :  { %1790 = vadd.xlane.f32.xlu0 %v8070_v55 }
 0x32a   :  { %v1721_v43 = vpop.xlane.xlu1 %1720 }
 0x32b   :  { %v1746_v18 = vsub.f32 %v1698_v17, %v1721_v43 }
 0x32c   :  { %v1723_v36 = vpop.xlane.xlu0 %1722 }
 0x32d   :  { %v1768_v39 = vmul.f32 1.442695, %v1746_v18  ;;  %v1747_v56 = vsub.f32 %v8003_v20, %v1723_v36  ;;  %v8099_v36 = vpack.c.bf16 %v7849_v42, %v7841_v37 }
 0x32e   :  { %v1717_v11 = vpop.xlane.xlu1 %1716 }
 0x32f   :  { %7102 = vpow2.f32 %v1768_v39  ;;  %v1744_v48 = vsub.f32 %v1696_v22, %v1717_v11  ;;  %v1770_v4 = vmul.f32 1.442695, %v1747_v56  ;;  %11322 = vst [vmem:[#allocation21_spill] sm:$0xff] %v8099_v36 }
 0x330   :  { %v1719_v24 = vpop.xlane.xlu0 %1718 }
 0x331   :  { %v1764_v59 = vmul.f32 1.442695, %v1744_v48  ;;  %v1745_v15 = vsub.f32 %v8010_v52, %v1719_v24 }
 0x332   :  { %v1729_v56 = vpop.xlane.xlu1 %1728 }
 0x333   :  { %7104 = vpow2.f32 %v1764_v59  ;;  %v1766_v10 = vmul.f32 1.442695, %v1745_v15  ;;  %v1750_v24 = vsub.f32 %v8015_v31, %v1729_v56 }
 0x334   :  { %v1731_v22 = vpop.xlane.xlu0 %1730 }
 0x335   :  { %7106 = vpow2.f32 %v1766_v10  ;;  %v8091_v10 = vpack.c.bf16 %v7865_v53, %v7853_v46  ;;  %v1776_v15 = vmul.f32 1.442695, %v1750_v24  ;;  %v1751_v5 = vsub.f32 %v8020_v27, %v1731_v22 }
 0x336   :  { %7108 = vpow2.f32 %v1770_v4  ;;  %v1725_v59 = vpop.xlane.xlu1 %1724 }
 0x337   :  { %v1748_v4 = vsub.f32 %v8025_v23, %v1725_v59  ;;  %v1778_v57 = vmul.f32 1.442695, %v1751_v5 }
 0x338   :  { %v1727_v52 = vpop.xlane.xlu0 %1726 }
 0x339   :  { %v1772_v1 = vmul.f32 1.442695, %v1748_v4  ;;  %v1749_v12 = vsub.f32 %v8030_v54, %v1727_v52 }
 0x33a   :  { %v1737_v62 = vpop.xlane.xlu1 %1736 }
 0x33b   :  { %v1754_v31 = vsub.f32 %v8035_v63, %v1737_v62 }
 0x33c   :  { %v8077_v14 = vpop.eup %7102  ;;  %v1739_v18 = vpop.xlane.xlu0 %1738 }
 0x33d   :  { %1800 = vadd.xlane.f32.xlu0 %v8077_v14  ;;  %v1784_v23 = vmul.f32 1.442695, %v1754_v31 }
 0x340   :  { %v8080_v17 = vpop.eup %7104  ;;  %v1735_v39 = vpop.xlane.xlu0 %1734 }
 0x341   :  { %1796 = vadd.xlane.f32.xlu0 %v8080_v17  ;;  %v1753_v11 = vsub.f32 %v8050_v9, %v1735_v39  ;;  %v1774_v9 = vmul.f32 1.442695, %v1749_v12  ;;  %v1733_v39 = vpop.xlane.xlu1 %1732  ;;  %v8125_v12 = vpack.c.bf16 %v7837_v33, %v7829_v25 }
 0x342   :  { %v8083_v43 = vpop.eup %7106 }
 0x343   :  { %1798 = vadd.xlane.f32.xlu1 %v8083_v43  ;;  %v8086_v20 = vpop.eup %7108  ;;  %v1782_v48 = vmul.f32 1.442695, %v1753_v11  ;;  %v1752_v11 = vsub.f32 %v8045_v7, %v1733_v39 }
 0x345   :  { %1802 = vadd.xlane.f32.xlu0 %v8086_v20  ;;  %7110 = vpow2.f32 %v1782_v48  ;;  %v1780_v5 = vmul.f32 1.442695, %v1752_v11 }
 0x346   :  { %7112 = vpow2.f32 %v1776_v15 }
 0x347   :  { %7114 = vpow2.f32 %v1772_v1  ;;  %v1755_v1 = vsub.f32 %v8040_v2, %v1739_v18 }
 0x348   :  { %7116 = vpow2.f32 %v1778_v57 }
 0x349   :  { %7118 = vpow2.f32 %v1774_v9  ;;  %v1786_v57 = vmul.f32 1.442695, %v1755_v1  ;;  %v2051_v1 = vsel %vm11321_vm9, %v8057_v13, 0  ;;  %vm11326_vm9 = vmmov %vm11324_vm8  ;;  %v7046_v13 = vld [vmem:[%s11100_s0 + $0x80] sm:$0xff]  }
 0x34a   :  { %7120 = vpow2.f32 %v1784_v23 }
 0x34b   :  { %7122 = vpow2.f32 %v1780_v5 }
 0x34c   :  { %7124 = vpow2.f32 %v1786_v57 }
 0x354   :  { %1997 = vrot.lane.b32.xlu1 %v8091_v10, %s7628_s4 }
 0x35b   :  { %1995 = vrot.lane.b32.xlu0 %v7847_v41, %s7628_s4 }
 0x35f   :  { %1993 = vrot.lane.b32.xlu0 %v8099_v36, %s7628_s4  ;;  %v8108_v36 = vpop.eup %7110 }
 0x360   :  { %v8113_v27 = vpop.eup %7112 }
 0x361   :  { %v8117_v54 = vpop.eup %7114 }
 0x362   :  { %v8120_v62 = vpop.eup %7116 }
 0x363   :  { %v8127_v63 = vpop.eup %7118 }
 0x364   :  { %v8132_v7 = vpop.eup %7120 }
 0x365   :  { %v8137_v52 = vpop.eup %7122 }
 0x366   :  { %v8142_v56 = vpop.eup %7124 }
 0x378   :  { %1814 = vadd.xlane.f32.xlu1 %v8108_v36 }
 0x37e   :  { %1808 = vadd.xlane.f32.xlu0 %v8113_v27 }
 0x382   :  { %1804 = vadd.xlane.f32.xlu0 %v8117_v54 }
 0x386   :  { %1810 = vadd.xlane.f32.xlu0 %v8120_v62 }
 0x389   :  { %1989 = vrot.lane.b32.xlu1 %v8125_v12, %s7628_s4 }
 0x38a   :  { %1806 = vadd.xlane.f32.xlu0 %v8127_v63 }
 0x38b   :  { %v1793_v2 = vpop.xlane.xlu0 %1792 }
 0x38d   :  { %2330 = vrot.lane.b32.xlu1 %v7979_v45, %s7629_s5 }
 0x38e   :  { %1816 = vadd.xlane.f32.xlu0 %v8132_v7 }
 0x38f   :  { %v1789_v22 = vpop.xlane.xlu0 %1788 }
 0x391   :  { %2320 = vrot.lane.b32.xlu1 %v7835_v32, %s7629_s5 }
 0x392   :  { %1812 = vadd.xlane.f32.xlu0 %v8137_v52 }
 0x393   :  { %v1795_v18 = vpop.xlane.xlu0 %1794 }
 0x394   :  { %7126 = vrcp.f32 %v1795_v18  ;;  %v7051_v18 = vld [vmem:[%s11100_s0 + $0xa8] sm:$0xff]  }
 0x395   :  { %7128 = vrcp.f32 %v1789_v22  ;;  %v7050_v22 = vld [vmem:[%s11100_s0 + $0xa0] sm:$0xff]  }
 0x396   :  { %1818 = vadd.xlane.f32.xlu0 %v8142_v56  ;;  %7130 = vrcp.f32 %v1793_v2 }
 0x397   :  { %v1791_v48 = vpop.xlane.xlu0 %1790 }
 0x398   :  { %7132 = vrcp.f32 %v1791_v48  ;;  %v7052_v48 = vld [vmem:[%s11100_s0 + $0xb0] sm:$0xff]  }
 0x3a1   :  { %v7127_v45 = vpop.eup %7126 }
 0x3a2   :  { %v7129_v24 = vpop.eup %7128  ;;  %v1839_v4 = vmul.f32 %v7127_v45, %v8067_v3 }
 0x3a3   :  { %v7131_v59 = vpop.eup %7130  ;;  %v1836_v9 = vmul.f32 %v7129_v24, %v8064_v19  ;;  %v2000_v19 = vpop.permute.xlu1 %1999 }
 0x3a4   :  { %v1838_v39 = vmul.f32 %v7131_v59, %v8061_v29  ;;  %v2048_v29 = vsel %vm11324_vm8, %v8073_v35, 0  ;;  %vm11327_vm8 = vcmask 523264  }
 0x3a5   :  { %v7133_v15 = vpop.eup %7132  ;;  %6344 = vmatprep.mubr.msk.bf16.mxu0 %vm11327_vm8, %v7046_v13 }
 0x3a6   :  { %v1837_v31 = vmul.f32 %v7133_v15, %v8070_v55  ;;  %v1853_v11 = vpack.c.bf16 %v1839_v4, %v1838_v39  ;;  %v7048_v55 = vld [vmem:[%s11100_s0 + $0x90] sm:$0xff]   ;;  %v7053_v39 = vld [vmem:[%s11100_s0 + $0xb8] sm:$0xff]  }
 0x3a8   :  { %v1852_v23 = vpack.c.bf16 %v1837_v31, %v1836_v9 }
 0x3aa   :  { %6488 = vmatprep.mubr.bf16.mxu1 %v1852_v23 }
 0x3ab   :  { %6489 = vmatmul.mubr.bf16.vlgmr.msra.gmra.mxu1 %v1853_v11 }
 0x3ac   :  { %6505 = vmatpush3.bf16.xpose.msra.mxu1 %v2051_v1  ;;  %1991 = vrot.lane.b32.xlu0 %v7835_v32, %s7628_s4  ;;  %v2045_v32 = vsel %vm11326_vm9, %v2000_v19, 0  ;;  %vm11330_vm9 = vmmov %vm11327_vm8 }
 0x3ad   :  { %6961 = vmatprep.subr.msk.bf16.mxu1 %vm11323_vm11, %v8073_v35  ;;  %vm11329_vm11 = vmmov %vm11327_vm8 }
 0x3b0   :  { %2332 = vrot.lane.b32.xlu0 %v7983_v49, %s7629_s5  ;;  %v7047_v49 = vld [vmem:[%s11100_s0 + $0x88] sm:$0xff]  }
 0x3b4   :  { %6507 = vmatpush3.bf16.xpose.msra.mxu1 %v2048_v29  ;;  %2328 = vrot.lane.b32.xlu0 %v7861_v51, %s7629_s5 }
 0x3b5   :  { %6962 = vmatprep.subr.msk.bf16.mxu1 %vm11325_vm10, %v2000_v19  ;;  %vm11328_vm10 = vmmov %vm11327_vm8  ;;  %vm11331_vm8 = vcmask 130048  }
 0x3b6   :  { %6345 = vmatmul.mubr.msk.bf16.gmra.mxu0 %vm11328_vm10, %v7047_v49  ;;  %vm11332_vm10 = vmmov %vm11331_vm8 }
 0x3b7   :  { %6348 = vmatprep.mubr.msk.bf16.mxu0 %vm11329_vm11, %v7048_v55  ;;  %vm11333_vm5 = vmmov %vm11331_vm8 }
 0x3b8   :  { %2326 = vrot.lane.b32.xlu0 %v8091_v10, %s7629_s5  ;;  %vm11334_vm11 = vmmov %vm11330_vm9 }
 0x3bc   :  { %6509 = vmatpush3.bf16.xpose.msra.mxu1 %v2045_v32  ;;  %2324 = vrot.lane.b32.xlu0 %v7847_v41, %s7629_s5  ;;  %v7049_v41 = vld [vmem:[%s11100_s0 + $0x98] sm:$0xff]  }
 0x3be   :  { %6349 = vmatmul.mubr.msk.bf16.gmra.mxu0 %vm11330_vm9, %v7049_v41 }
 0x3bf   :  { %6352 = vmatprep.mubr.msk.bf16.mxu0 %vm11334_vm11, %v7050_v22 }
 0x3c6   :  { %v1801_v51 = vpop.xlane.xlu0 %1800  ;;  %6353 = vmatmul.mubr.msk.bf16.gmra.mxu0 %vm11330_vm9, %v7051_v18 }
 0x3ca   :  { %v1797_v3 = vpop.xlane.xlu0 %1796 }
 0x3cb   :  { %7134 = vrcp.f32 %v1797_v3 }
 0x3cc   :  { %7136 = vrcp.f32 %v1801_v51  ;;  %v1799_v35 = vpop.xlane.xlu1 %1798 }
 0x3cd   :  { %7138 = vrcp.f32 %v1799_v35 }
 0x3ce   :  { %v1803_v10 = vpop.xlane.xlu0 %1802 }
 0x3cf   :  { %7140 = vrcp.f32 %v1803_v10 }
 0x3d0   :  { %v1998_v5 = vpop.permute.xlu1 %1997 }
 0x3d1   :  { %6963 = vmatprep.subr.msk.bf16.mxu1 %vm11331_vm8, %v1998_v5  ;;  %v2042_v57 = vsel %vm11332_vm10, %v1998_v5, 0  ;;  %vm11335_vm8 = vmmov %vm11330_vm9 }
 0x3d2   :  { %v1996_v2 = vpop.permute.xlu0 %1995  ;;  %6511 = vmatpush3.bf16.xpose.msra.mxu1 %v2042_v57  ;;  %6356 = vmatprep.mubr.msk.bf16.mxu0 %vm11335_vm8, %v7052_v48  ;;  %vm11336_vm10 = vmmov %vm11333_vm5 }
 0x3d3   :  { %6964 = vmatprep.subr.msk.bf16.mxu1 %vm11333_vm5, %v1996_v2  ;;  %v2039_v59 = vsel %vm11336_vm10, %v1996_v2, 0  ;;  %vm11337_vm11 = vmmov %vm11335_vm8 }
 0x3d4   :  { %6357 = vmatmul.mubr.msk.bf16.gmra.mxu0 %vm11337_vm11, %v7053_v39  ;;  %vm11338_vm9 = vmmov %vm11333_vm5  ;;  %v1247_v39 = vmul.f32 0.125, %v7829_v25 }
 0x3d5   :  { %vm11339_vm8 = vmmov %vm11333_vm5 }
 0x3d6   :  { %v1994_v4 = vpop.permute.xlu0 %1993  ;;  %vm11340_vm10 = vmmov %vm11333_vm5 }
 0x3d7   :  { %v2036_v32 = vsel %vm11338_vm9, %v1994_v4, 0  ;;  %vm11341_vm11 = vmmov %vm11333_vm5 }
 0x3d8   :  { %v7135_v45 = vpop.eup %7134  ;;  %vm11342_vm9 = vmmov %vm11333_vm5 }
 0x3d9   :  { %v7137_v24 = vpop.eup %7136  ;;  %v1840_v9 = vmul.f32 %v7135_v45, %v8080_v17 }
 0x3da   :  { %v7139_v15 = vpop.eup %7138  ;;  %6513 = vmatpush3.bf16.xpose.msra.mxu1 %v2039_v59  ;;  %v1842_v1 = vmul.f32 %v7137_v24, %v8077_v14 }
 0x3db   :  { %6965 = vmatprep.subr.msk.bf16.mxu1 %vm11333_vm5, %v1994_v4  ;;  %v1841_v31 = vmul.f32 %v7139_v15, %v8083_v43 }
 0x3dc   :  { %v7141_v23 = vpop.eup %7140 }
 0x3dd   :  { %v1854_v11 = vpack.c.bf16 %v1841_v31, %v1840_v9  ;;  %v1843_v29 = vmul.f32 %v7141_v23, %v8086_v20  ;;  %v1248_v23 = vmul.f32 0.125, %v7837_v33  ;;  %v11343_v33 = vpack.c.bf16 %v7833_v30, %v7831_v26 }
 0x3de   :  { %v1259_v26 = vmul.f32 0.125, %v7875_v58  ;;  %v1260_v30 = vmul.f32 0.125, %v7975_v44 }
 0x3df   :  { %6492 = vmatprep.mubr.bf16.mxu1 %v1854_v11  ;;  %v1855_v19 = vpack.c.bf16 %v1843_v29, %v1842_v1 }
 0x3e1   :  { %6493 = vmatmul.mubr.bf16.gmra.mxu1 %v1855_v19  ;;  %v1367_v19 = vpack.c.bf16 %v1248_v23, %v1247_v39  ;;  %v7057_v23 = vld [vmem:[%s11100_s0 + $0xd8] sm:$0xff]  }
 0x3e2   :  { %6515 = vmatpush3.bf16.xpose.msra.mxu1 %v2036_v32  ;;  %v1252_v32 = vmul.f32 0.125, %v7849_v42 }
 0x401   :  { %v1815_v51 = vpop.xlane.xlu1 %1814 }
 0x405   :  { %v1990_v24 = vpop.permute.xlu1 %1989 }
 0x407   :  { %v1809_v17 = vpop.xlane.xlu0 %1808 }
 0x40b   :  { %v1805_v43 = vpop.xlane.xlu0 %1804 }
 0x40f   :  { %v1811_v13 = vpop.xlane.xlu0 %1810 }
 0x410   :  { %7142 = vrcp.f32 %v1811_v13  ;;  %v11346_v13 = vpack.c.bf16 %v7845_v40, %v7843_v38  ;;  %v11351_v38 = vpack.c.bf16 %v7886_v0, %v7878_v60 }
 0x411   :  { %7144 = vrcp.f32 %v1805_v43 }
 0x412   :  { %7146 = vrcp.f32 %v1809_v17  ;;  %v2331_v17 = vpop.permute.xlu1 %2330 }
 0x413   :  { %v1807_v49 = vpop.xlane.xlu0 %1806 }
 0x414   :  { %7148 = vrcp.f32 %v1807_v49  ;;  %v11348_v49 = vpack.c.bf16 %v7859_v50, %v7855_v47 }
 0x415   :  { %7150 = vrcp.f32 %v1815_v51 }
 0x416   :  { %v2321_v21 = vpop.permute.xlu1 %2320 }
 0x417   :  { %v1817_v14 = vpop.xlane.xlu0 %1816 }
 0x41b   :  { %v1813_v20 = vpop.xlane.xlu0 %1812 }
 0x41c   :  { %7152 = vrcp.f32 %v1813_v20 }
 0x41d   :  { %v7143_v3 = vpop.eup %7142  ;;  %7154 = vrcp.f32 %v1817_v14 }
 0x41e   :  { %v7145_v55 = vpop.eup %7144  ;;  %v1847_v5 = vmul.f32 %v7143_v3, %v8120_v62 }
 0x41f   :  { %v1819_v41 = vpop.xlane.xlu0 %1818  ;;  %v7147_v35 = vpop.eup %7146  ;;  %v1844_v57 = vmul.f32 %v7145_v55, %v8117_v54 }
 0x420   :  { %7156 = vrcp.f32 %v1819_v41  ;;  %v1846_v18 = vmul.f32 %v7147_v35, %v8113_v27  ;;  %v2030_v27 = vsel %vm11341_vm11, %v1990_v24, 0  ;;  %vm11347_vm11 = vmmov %vm11333_vm5 }
 0x421   :  { %v7149_v10 = vpop.eup %7148 }
 0x422   :  { %v1845_v2 = vmul.f32 %v7149_v10, %v8127_v63  ;;  %v1857_v59 = vpack.c.bf16 %v1847_v5, %v1846_v18  ;;  %v7151_v15 = vpop.eup %7150 }
 0x423   :  { %v1992_v22 = vpop.permute.xlu0 %1991  ;;  %v1849_v63 = vmul.f32 %v7151_v15, %v8108_v36  ;;  %v1251_v36 = vmul.f32 0.125, %v7841_v37 }
 0x424   :  { %6966 = vmatprep.subr.msk.bf16.mxu1 %vm11339_vm8, %v1992_v22  ;;  %v2033_v48 = vsel %vm11340_vm10, %v1992_v22, 0  ;;  %v1856_v45 = vpack.c.bf16 %v1845_v2, %v1844_v57  ;;  %vm11344_vm8 = vmmov %vm11333_vm5 }
 0x425   :  { %6517 = vmatpush3.bf16.xpose.msra.mxu1 %v2033_v48  ;;  %v1369_v25 = vpack.c.bf16 %v1252_v32, %v1251_v36  ;;  %vm11345_vm10 = vmmov %vm11333_vm5 }
 0x426   :  { %6496 = vmatprep.mubr.bf16.mxu1 %v1856_v45  ;;  %6967 = vmatprep.subr.msk.bf16.mxu1 %vm11333_vm5, %v1990_v24 }
 0x427   :  { %6497 = vmatmul.mubr.bf16.gmra.mxu1 %v1857_v59  ;;  %v2333_v11 = vpop.permute.xlu0 %2332 }
 0x429   :  { %v7153_v62 = vpop.eup %7152 }
 0x42a   :  { %v1848_v54 = vmul.f32 %v7153_v62, %v8137_v52  ;;  %v7155_v4 = vpop.eup %7154 }
 0x42b   :  { %v1850_v1 = vmul.f32 %v7155_v4, %v8132_v7  ;;  %v2329_v43 = vpop.permute.xlu0 %2328  ;;  %v1255_v7 = vmul.f32 0.125, %v7853_v46 }
 0x42c   :  { %v1858_v9 = vpack.c.bf16 %v1849_v63, %v1848_v54 }
 0x42d   :  { %v7157_v31 = vpop.eup %7156  ;;  %6519 = vmatpush3.bf16.xpose.msra.mxu1 %v2030_v27  ;;  %v7054_v27 = vld [vmem:[%s11100_s0 + $0xc0] sm:$0xff]  }
 0x42e   :  { %6500 = vmatprep.mubr.bf16.mxu1 %v1858_v9  ;;  %6536 = vmatprep.subr.bf16.mxu1 %v2333_v11  ;;  %v1851_v29 = vmul.f32 %v7157_v31, %v8142_v56  ;;  %v1256_v56 = vmul.f32 0.125, %v7865_v53  ;;  %v1373_v53 = vpack.c.bf16 %v1260_v30, %v1259_v26  ;;  %v7055_v9 = vld [vmem:[%s11100_s0 + $0xc8] sm:$0xff]   ;;  %v7056_v31 = vld [vmem:[%s11100_s0 + $0xd0] sm:$0xff]  }
 0x42f   :  { %v2327_v42 = vpop.permute.xlu0 %2326 }
 0x430   :  { %v1859_v52 = vpack.c.bf16 %v1851_v29, %v1850_v1  ;;  %v1371_v37 = vpack.c.bf16 %v1256_v56, %v1255_v7  ;;  %v7059_v1 = vld [vmem:[%s11100_s0 + $0xe8] sm:$0xff]   ;;  %v7060_v29 = vld [vmem:[%s11100_s0 + $0xf0] sm:$0xff]  }
 0x432   :  { %6501 = vmatmul.mubr.bf16.gmra.mxu1 %v1859_v52  ;;  %v7061_v52 = vld [vmem:[%s11100_s0 + $0xf8] sm:$0xff]  }
 0x433   :  { %6520 = vmatprep.mubr.msk.bf16.mxu1 %vm11342_vm9, %v1367_v19  ;;  %v2325_v46 = vpop.permute.xlu0 %2324  ;;  %vm11349_vm9 = vmmov %vm11333_vm5 }
 0x43a   :  { %6521 = vmatmul.mubr.msk.bf16.vlgmr.msra.gmra.mxu1 %vm11344_vm8, %v11343_v33  ;;  %vm11350_vm8 = vmmov %vm11333_vm5 }
 0x43b   :  { %6537 = vmatpush3.bf16.msra.mxu1 %v2333_v11  ;;  %6524 = vmatprep.mubr.msk.bf16.mxu1 %vm11345_vm10, %v1369_v25  ;;  %vm11352_vm10 = vmmov %vm11333_vm5  ;;  %v7058_v11 = vld [vmem:[%s11100_s0 + $0xe0] sm:$0xff]  }
 0x43c   :  { %6538 = vmatprep.subr.bf16.mxu1 %v2331_v17 }
 0x43f   :  { %6539 = vmatpush3.bf16.msra.mxu1 %v2331_v17 }
 0x440   :  { %6540 = vmatprep.subr.bf16.mxu1 %v2329_v43 }
 0x442   :  { %6525 = vmatmul.mubr.msk.bf16.gmra.mxu1 %vm11333_vm5, %v11346_v13  ;;  %vm11357_vm5 = vcmask 523264  }
 0x443   :  { %6541 = vmatpush3.bf16.msra.mxu1 %v2329_v43  ;;  %6528 = vmatprep.mubr.msk.bf16.mxu1 %vm11347_vm11, %v1371_v37  ;;  %vm11358_vm11 = vmmov %vm11357_vm5 }
 0x444   :  { %6542 = vmatprep.subr.bf16.mxu1 %v2327_v42  ;;  %6360 = vmatprep.mubr.msk.bf16.mxu0 %vm11357_vm5, %v7054_v27 }
 0x445   :  { %6361 = vmatmul.mubr.msk.bf16.gmra.mxu0 %vm11358_vm11, %v7055_v9  ;;  %vm11362_vm11 = vmmov %vm11357_vm5 }
 0x447   :  { %6543 = vmatpush3.bf16.msra.mxu1 %v2327_v42 }
 0x448   :  { %6544 = vmatprep.subr.bf16.mxu1 %v2325_v46 }
 0x44a   :  { %6529 = vmatmul.mubr.msk.bf16.gmra.mxu1 %vm11349_vm9, %v11348_v49  ;;  %vm11359_vm9 = vmmov %vm11357_vm5 }
 0x44b   :  { %6545 = vmatpush3.bf16.msra.mxu1 %v2325_v46  ;;  %6532 = vmatprep.mubr.msk.bf16.mxu1 %vm11350_vm8, %v1373_v53  ;;  %vm11360_vm8 = vmmov %vm11357_vm5 }
 0x44c   :  { %6364 = vmatprep.mubr.msk.bf16.mxu0 %vm11359_vm9, %v7056_v31  ;;  %vm11363_vm9 = vmmov %vm11357_vm5 }
 0x44d   :  { %6365 = vmatmul.mubr.msk.bf16.gmra.mxu0 %vm11360_vm8, %v7057_v23 }
 0x452   :  { %6533 = vmatmul.mubr.msk.bf16.gmra.mxu1 %vm11352_vm10, %v11351_v38  ;;  %vm11361_vm10 = vmmov %vm11357_vm5 }
 0x453   :  { %6368 = vmatprep.mubr.msk.bf16.mxu0 %vm11361_vm10, %v7058_v11 }
 0x455   :  { %6369 = vmatmul.mubr.msk.bf16.gmra.mxu0 %vm11357_vm5, %v7059_v1 }
 0x456   :  { %6372 = vmatprep.mubr.msk.bf16.mxu0 %vm11362_vm11, %v7060_v29 }
 0x45d   :  { %6373 = vmatmul.mubr.msk.bf16.gmra.mxu0 %vm11363_vm9, %v7061_v52 }
 0x46b   :  { %v8328_v19 = vpop.f32.mrf.mxu1 }
 0x46c   :  { %11364 = vst [vmem:[#allocation26_spill] sm:$0xff] %v8328_v19 }
 0x46d   :  { %v8330_v36 = vpop.f32.mrf.mxu1 }
 0x46e   :  { %11365 = vst [vmem:[#allocation27_spill] sm:$0xff] %v8330_v36 }
 0x46f   :  { %v8332_v32 = vpop.f32.mrf.mxu1 }
 0x470   :  { %11366 = vst [vmem:[#allocation28_spill] sm:$0xff] %v8332_v32  ;;  %v11391_v32 = vld [vmem:[#allocation14_spill] sm:$0xff] }
 0x471   :  { %v8334_v25 = vpop.f32.mrf.mxu1  ;;  %vm11392_vm11 = vnez %v11391_v32 }
 0x472   :  { %11367 = vst [vmem:[#allocation29_spill] sm:$0xff] %v8334_v25 }
 0x476   :  { %v6346_v40 = vpop.f32.mrf.mxu0 }
 0x477   :  { %v8251_v44 = vmul.f32 0.125, %v6346_v40 }
 0x478   :  { %v8249_v58 = vpop.f32.mrf.mxu0 }
 0x47a   :  { %v6347_v51 = vpop.f32.mrf.mxu0 }
 0x47b   :  { %v8253_v14 = vmul.f32 0.125, %v6347_v51  ;;  %v8255_v20 = vpack.c.bf16 %v6347_v51, %v6346_v40 }
 0x47c   :  { %v8257_v47 = vpop.f32.mrf.mxu0 }
 0x47e   :  { %v6350_v3 = vpop.f32.mrf.mxu0 }
 0x47f   :  { %v8263_v60 = vmul.f32 0.125, %v6350_v3 }
 0x480   :  { %v8261_v55 = vpop.f32.mrf.mxu0 }
 0x482   :  { %v6351_v0 = vpop.f32.mrf.mxu0 }
 0x483   :  { %v8265_v41 = vmul.f32 0.125, %v6351_v0  ;;  %v8267_v35 = vpack.c.bf16 %v6351_v0, %v6350_v3 }
 0x484   :  { %v8269_v10 = vpop.f32.mrf.mxu0 }
 0x486   :  { %v6354_v57 = vpop.f32.mrf.mxu0 }
 0x487   :  { %v8275_v22 = vmul.f32 0.125, %v6354_v57 }
 0x488   :  { %v8273_v2 = vpop.f32.mrf.mxu0 }
 0x489   :  { %11353 = vst [vmem:[#allocation22_spill] sm:$0xff] %v8275_v22 }
 0x48a   :  { %v6355_v18 = vpop.f32.mrf.mxu0 }
 0x48b   :  { %v8277_v48 = vmul.f32 0.125, %v6355_v18  ;;  %v8279_v45 = vpack.c.bf16 %v6355_v18, %v6354_v57 }
 0x48c   :  { %v8281_v24 = vpop.f32.mrf.mxu0 }
 0x48d   :  { %11354 = vst [vmem:[#allocation23_spill] sm:$0xff] %v8277_v48 }
 0x494   :  { %v8285_v15 = vpop.f32.mrf.mxu0 }
 0x495   :  { %v8290_v54 = vmul.f32 0.125, %v8285_v15 }
 0x496   :  { %v8287_v62 = vpop.f32.mrf.mxu0 }
 0x497   :  { %11355 = vst [vmem:[#allocation24_spill] sm:$0xff] %v8290_v54 }
 0x498   :  { %v6359_v63 = vpop.f32.mrf.mxu0 }
 0x499   :  { %v8292_v4 = vmul.f32 0.125, %v6359_v63 }
 0x49b   :  { %11356 = vst [vmem:[#allocation25_spill] sm:$0xff] %v8292_v4 }
 0x4a1   :  { %v8336_v33 = vpop.f32.mrf.mxu1 }
 0x4a2   :  { %11368 = vst [vmem:[#allocation30_spill] sm:$0xff] %v8336_v33 }
 0x4a3   :  { %v8338_v17 = vpop.f32.mrf.mxu1 }
 0x4a4   :  { %11369 = vst [vmem:[#allocation31_spill] sm:$0xff] %v8338_v17 }
 0x4a5   :  { %v8340_v43 = vpop.f32.mrf.mxu1 }
 0x4a6   :  { %11370 = vst [vmem:[#allocation32_spill] sm:$0xff] %v8340_v43 }
 0x4a7   :  { %v8342_v7 = vpop.f32.mrf.mxu1 }
 0x4a8   :  { %11371 = vst [vmem:[#allocation33_spill] sm:$0xff] %v8342_v7  ;;  %v11389_v7 = vld [vmem:[#allocation11_spill] sm:$0xff] }
 0x4a9   :  { %vm11390_vm5 = vnez %v11389_v7 }
 0x4e7   :  { %v8344_v56 = vpop.f32.mrf.mxu1 }
 0x4e8   :  { %11372 = vst [vmem:[#allocation34_spill] sm:$0xff] %v8344_v56 }
 0x4e9   :  { %v8346_v37 = vpop.f32.mrf.mxu1 }
 0x4ea   :  { %11373 = vst [vmem:[#allocation35_spill] sm:$0xff] %v8346_v37 }
 0x4eb   :  { %v8348_v42 = vpop.f32.mrf.mxu1 }
 0x4ec   :  { %11374 = vst [vmem:[#allocation36_spill] sm:$0xff] %v8348_v42  ;;  %v11385_v42 = vld [vmem:[#allocation8_spill] sm:$0xff] }
 0x4ed   :  { %v8350_v13 = vpop.f32.mrf.mxu1  ;;  %vm11386_vm8 = vnez %v11385_v42 }
 0x4ee   :  { %11375 = vst [vmem:[#allocation37_spill] sm:$0xff] %v8350_v13  ;;  %v11387_v13 = vld [vmem:[#allocation13_spill] sm:$0xff] }
 0x4ef   :  { %vm11388_vm10 = vnez %v11387_v13 }
 0x4f2   :  { %v8352_v26 = vpop.f32.mrf.mxu1 }
 0x4f3   :  { %11376 = vst [vmem:[#allocation38_spill] sm:$0xff] %v8352_v26 }
 0x4f4   :  { %v8354_v30 = vpop.f32.mrf.mxu1 }
 0x4f5   :  { %11377 = vst [vmem:[#allocation39_spill] sm:$0xff] %v8354_v30 }
 0x4f6   :  { %v8356_v46 = vpop.f32.mrf.mxu1 }
 0x4f7   :  { %11378 = vst [vmem:[#allocation40_spill] sm:$0xff] %v8356_v46  ;;  %v8447_v46 = vpop.f32.mrf.mxu0 }
 0x4f8   :  { %v8358_v53 = vpop.f32.mrf.mxu1 }
 0x4f9   :  { %11379 = vst [vmem:[#allocation41_spill] sm:$0xff] %v8358_v53 }
 0x4fa   :  { %v6522_v49 = vpop.f32.mrf.mxu1 }
 0x4fb   :  { %v8362_v38 = vsel %vm7939_vm12, %v6522_v49, -1e+30 }
 0x4fc   :  { %2170 = vmax.xlane.f32.xlu0 %v8362_v38  ;;  %v2087_v40 = vpop.f32.mrf.mxu1 }
 0x4fd   :  { %v8367_v3 = vsel %vm7951_vm13, %v2087_v40, -1e+30 }
 0x4fe   :  { %v6523_v51 = vpop.f32.mrf.mxu1 }
 0x4ff   :  { %v8377_v27 = vsel %vm7964_vm15, %v6523_v51, -1e+30 }
 0x500   :  { %2166 = vmax.xlane.f32.xlu0 %v8367_v3  ;;  %v2090_v0 = vpop.f32.mrf.mxu1 }
 0x501   :  { %v8372_v57 = vsel %vm7957_vm14, %v2090_v0, -1e+30  ;;  %v11380_v0 = vld [vmem:[#allocation21_spill] sm:$0xff] }
 0x502   :  { %2168 = vmax.xlane.f32.xlu1 %v8372_v57  ;;  %v6526_v18 = vpop.f32.mrf.mxu1  ;;  %11395 = vst [vmem:[#allocation21_spill] sm:$0xff] %v8447_v46 }
 0x503   :  { %v8404_v39 = vsel %vm7990_vm0, %v6526_v18, -1e+30 }
 0x504   :  { %2172 = vmax.xlane.f32.xlu0 %v8377_v27  ;;  %v2103_v9 = vpop.f32.mrf.mxu1 }
 0x506   :  { %v6527_v31 = vpop.f32.mrf.mxu1 }
 0x507   :  { %v8382_v23 = vsel %vm7995_vm1, %v6527_v31, -1e+30  ;;  %v8398_v31 = vpack.c.bf16 %v6359_v63, %v8285_v15 }
 0x508   :  { %2180 = vmax.xlane.f32.xlu1 %v8382_v23  ;;  %v2106_v11 = vpop.f32.mrf.mxu1 }
 0x509   :  { %v8414_v15 = vsel %vm7881_vm3, %v2106_v11, -1e+30 }
 0x50a   :  { %v6530_v1 = vpop.f32.mrf.mxu1 }
 0x50b   :  { %v8419_v18 = vsel %vm7889_vm4, %v6530_v1, -1e+30 }
 0x50c   :  { %v2119_v29 = vpop.f32.mrf.mxu1 }
 0x50e   :  { %v6531_v52 = vpop.f32.mrf.mxu1 }
 0x50f   :  { %v8387_v49 = vsel %vm7903_vm6, %v6531_v52, -1e+30 }
 0x510   :  { %2188 = vmax.xlane.f32.xlu1 %v8387_v49  ;;  %v2122_v40 = vpop.f32.mrf.mxu1 }
 0x511   :  { %v8392_v51 = vsel %vm7909_vm7, %v2122_v40, -1e+30  ;;  %v8409_v40 = vsel %vm7871_vm2, %v2103_v9, -1e+30  ;;  %v8424_v9 = vsel %vm11386_vm8, %v2119_v29, -1e+30 }
 0x512   :  { %v6534_v5 = vpop.f32.mrf.mxu1  ;;  %v11393_v29 = vld [vmem:[#allocation12_spill] sm:$0xff] }
 0x513   :  { %v8434_v1 = vsel %vm11390_vm5, %v6534_v5, -1e+30  ;;  %vm11394_vm9 = vnez %v11393_v29  ;;  %v8451_v5 = vpop.f32.mrf.mxu0 }
 0x514   :  { %2184 = vmax.xlane.f32.xlu1 %v8392_v51  ;;  %v2135_v63 = vpop.f32.mrf.mxu1 }
 0x515   :  { %v8457_v30 = vpop.f32.mrf.mxu0 }
 0x516   :  { %v6535_v53 = vpop.f32.mrf.mxu1 }
 0x517   :  { %v8428_v43 = vsel %vm11388_vm10, %v6535_v53, -1e+30  ;;  %v8444_v53 = vsel %vm11394_vm9, %v2135_v63, -1e+30  ;;  %v8462_v63 = vmul.f32 0.125, %v8451_v5  ;;  %v8464_v56 = vpop.f32.mrf.mxu0  ;;  %vm11407_vm10 = vcmask 130048  }
 0x518   :  { %v2138_v11 = vpop.f32.mrf.mxu1  ;;  %v8467_v37 = vmul.f32 0.125, %v8464_v56 }
 0x519   :  { %v8438_v25 = vsel %vm11392_vm11, %v2138_v11, -1e+30  ;;  %v8455_v11 = vpack.c.bf16 %v8447_v46, %v8287_v62  ;;  %11396 = vst [vmem:[#allocation42_spill] sm:$0xff] %v8462_v63  ;;  %vm11404_vm11 = vcmask 523264  }
 0x51a   :  { %2322 = vrot.lane.b32.xlu0 %v11380_v0, %s7629_s5  ;;  %11397 = vst [vmem:[#allocation43_spill] sm:$0xff] %v8467_v37  ;;  %vm11405_vm9 = vmmov %vm11404_vm11 }
 0x525   :  { %2461 = vrot.lane.b32.xlu1 %v8398_v31, %s7628_s4 }
 0x539   :  { %2178 = vmax.xlane.f32.xlu0 %v8404_v39 }
 0x53d   :  { %2174 = vmax.xlane.f32.xlu0 %v8409_v40 }
 0x541   :  { %2176 = vmax.xlane.f32.xlu0 %v8414_v15 }
 0x545   :  { %2186 = vmax.xlane.f32.xlu0 %v8419_v18 }
 0x549   :  { %2182 = vmax.xlane.f32.xlu0 %v8424_v9  ;;  %2196 = vmax.xlane.f32.xlu1 %v8428_v43 }
 0x54d   :  { %2194 = vmax.xlane.f32.xlu0 %v8434_v1  ;;  %2192 = vmax.xlane.f32.xlu1 %v8438_v25 }
 0x551   :  { %2190 = vmax.xlane.f32.xlu0 %v8444_v53 }
 0x567   :  { %2318 = vrot.lane.b32.xlu0 %v8125_v12, %s7629_s5  ;;  %v8469_v12 = vpop.f32.mrf.mxu0 }
 0x569   :  { %v8475_v17 = vpop.f32.mrf.mxu0 }
 0x56a   :  { %v8482_v36 = vmul.f32 0.125, %v8475_v17 }
 0x56b   :  { %2459 = vrot.lane.b32.xlu0 %v8455_v11, %s7628_s4  ;;  %v8477_v19 = vpop.f32.mrf.mxu0 }
 0x56c   :  { %11398 = vst [vmem:[#allocation44_spill] sm:$0xff] %v8482_v36 }
 0x56d   :  { %v8484_v26 = vpop.f32.mrf.mxu0 }
 0x56e   :  { %v8487_v32 = vmul.f32 0.125, %v8484_v26 }
 0x56f   :  { %2457 = vrot.lane.b32.xlu0 %v8279_v45, %s7628_s4  ;;  %v8489_v29 = vpop.f32.mrf.mxu0 }
 0x570   :  { %11399 = vst [vmem:[#allocation45_spill] sm:$0xff] %v8487_v32 }
 0x571   :  { %v8493_v13 = vpop.f32.mrf.mxu0 }
 0x572   :  { %v8498_v8 = vmul.f32 0.125, %v8493_v13 }
 0x573   :  { %2453 = vrot.lane.b32.xlu0 %v8267_v35, %s7628_s4  ;;  %v8495_v7 = vpop.f32.mrf.mxu0 }
 0x574   :  { %11400 = vst [vmem:[#allocation46_spill] sm:$0xff] %v8498_v8 }
 0x575   :  { %v8500_v42 = vpop.f32.mrf.mxu0 }
 0x576   :  { %v8503_v6 = vmul.f32 0.125, %v8500_v42 }
 0x577   :  { %v8505_v50 = vpop.f32.mrf.mxu0 }
 0x578   :  { %11401 = vst [vmem:[#allocation47_spill] sm:$0xff] %v8503_v6 }
 0x579   :  { %v8509_v59 = vpop.f32.mrf.mxu0 }
 0x57a   :  { %v8514_v61 = vmul.f32 0.125, %v8509_v59 }
 0x57b   :  { %v8511_v33 = vpop.f32.mrf.mxu0 }
 0x57c   :  { %11402 = vst [vmem:[#allocation48_spill] sm:$0xff] %v8514_v61 }
 0x57d   :  { %v8516_v52 = vpop.f32.mrf.mxu0 }
 0x57e   :  { %v8519_v28 = vmul.f32 0.125, %v8516_v52 }
 0x580   :  { %11403 = vst [vmem:[#allocation49_spill] sm:$0xff] %v8519_v28 }
 0x585   :  { %v2171_v16 = vpop.xlane.xlu0 %2170 }
 0x586   :  { %v2200_v34 = vsub.f32 %v8362_v38, %v2171_v16 }
 0x588   :  { %v2218_v0 = vmul.f32 1.442695, %v2200_v34 }
 0x589   :  { %v2167_v8 = vpop.xlane.xlu0 %2166 }
 0x58a   :  { %7158 = vpow2.f32 %v2218_v0  ;;  %v2198_v6 = vsub.f32 %v8367_v3, %v2167_v8 }
 0x58b   :  { %v2169_v32 = vpop.xlane.xlu1 %2168 }
 0x58c   :  { %v2214_v63 = vmul.f32 1.442695, %v2198_v6  ;;  %v2199_v54 = vsub.f32 %v8372_v57, %v2169_v32 }
 0x58d   :  { %v2173_v37 = vpop.xlane.xlu0 %2172 }
 0x58e   :  { %7160 = vpow2.f32 %v2214_v63  ;;  %v2201_v4 = vsub.f32 %v8377_v27, %v2173_v37  ;;  %v2216_v16 = vmul.f32 1.442695, %v2199_v54 }
 0x590   :  { %v2220_v22 = vmul.f32 1.442695, %v2201_v4 }
 0x591   :  { %v2323_v48 = vpop.permute.xlu0 %2322 }
 0x592   :  { %7162 = vpow2.f32 %v2220_v22  ;;  %6546 = vmatprep.subr.bf16.mxu1 %v2323_v48  ;;  %v8541_v22 = vpack.c.bf16 %v8281_v24, %v8273_v2 }
 0x593   :  { %6547 = vmatpush3.bf16.msra.mxu1 %v2323_v48  ;;  %7164 = vpow2.f32 %v2216_v16 }
 0x594   :  { %6548 = vmatprep.subr.bf16.mxu1 %v2321_v21 }
 0x597   :  { %v8527_v34 = vpop.eup %7158  ;;  %6549 = vmatpush3.bf16.msra.mxu1 %v2321_v21  ;;  %v2181_v21 = vpop.xlane.xlu1 %2180 }
 0x598   :  { %2250 = vadd.xlane.f32.xlu1 %v8527_v34  ;;  %v2205_v38 = vsub.f32 %v8382_v23, %v2181_v21 }
 0x59a   :  { %v2228_v63 = vmul.f32 1.442695, %v2205_v38 }
 0x59b   :  { %v8530_v6 = vpop.eup %7160  ;;  %v2189_v48 = vpop.xlane.xlu1 %2188 }
 0x59c   :  { %2246 = vadd.xlane.f32.xlu1 %v8530_v6  ;;  %v2209_v21 = vsub.f32 %v8387_v49, %v2189_v48 }
 0x59f   :  { %v8533_v8 = vpop.eup %7162  ;;  %v2185_v27 = vpop.xlane.xlu1 %2184 }
 0x5a0   :  { %2252 = vadd.xlane.f32.xlu1 %v8533_v8  ;;  %v8536_v4 = vpop.eup %7164  ;;  %v2207_v49 = vsub.f32 %v8392_v51, %v2185_v27 }
 0x5a3   :  { %v8549_v28 = vpop.permute.xlu1 %2461 }
 0x5a4   :  { %2248 = vadd.xlane.f32.xlu1 %v8536_v4 }
 0x5b5   :  { %2455 = vrot.lane.b32.xlu1 %v8541_v22, %s7628_s4 }
 0x5c2   :  { %v2179_v54 = vpop.xlane.xlu0 %2178 }
 0x5c3   :  { %v2204_v32 = vsub.f32 %v8404_v39, %v2179_v54 }
 0x5c5   :  { %v2226_v37 = vmul.f32 1.442695, %v2204_v32 }
 0x5c6   :  { %v2175_v3 = vpop.xlane.xlu0 %2174 }
 0x5c7   :  { %7166 = vpow2.f32 %v2226_v37  ;;  %v2202_v57 = vsub.f32 %v8409_v40, %v2175_v3 }
 0x5c9   :  { %v2222_v0 = vmul.f32 1.442695, %v2202_v57  ;;  %v2232_v57 = vmul.f32 1.442695, %v2207_v49  ;;  %v7068_v49 = vld [vmem:[%s11100_s0 + $0x130] sm:$0xff]  }
 0x5ca   :  { %v2177_v16 = vpop.xlane.xlu0 %2176 }
 0x5cb   :  { %7168 = vpow2.f32 %v2222_v0  ;;  %v2203_v36 = vsub.f32 %v8414_v15, %v2177_v16  ;;  %v7062_v15 = vld [vmem:[%s11100_s0 + $0x100] sm:$0xff]  }
 0x5cc   :  { %7170 = vpow2.f32 %v2228_v63  ;;  %6376 = vmatprep.mubr.msk.bf16.mxu0 %vm11404_vm11, %v7062_v15  ;;  %vm11406_vm11 = vmmov %vm11405_vm9  ;;  %v7067_v15 = vld [vmem:[%s11100_s0 + $0x128] sm:$0xff]  }
 0x5cd   :  { %v2224_v61 = vmul.f32 1.442695, %v2203_v36  ;;  %v7063_v36 = vld [vmem:[%s11100_s0 + $0x108] sm:$0xff]  }
 0x5ce   :  { %v2187_v46 = vpop.xlane.xlu0 %2186  ;;  %6377 = vmatmul.mubr.msk.bf16.gmra.mxu0 %vm11405_vm9, %v7063_v36 }
 0x5cf   :  { %7172 = vpow2.f32 %v2224_v61  ;;  %v2208_v39 = vsub.f32 %v8419_v18, %v2187_v46  ;;  %v2236_v46 = vmul.f32 1.442695, %v2209_v21 }
 0x5d1   :  { %v2234_v23 = vmul.f32 1.442695, %v2208_v39 }
 0x5d2   :  { %v2183_v54 = vpop.xlane.xlu0 %2182  ;;  %v2197_v40 = vpop.xlane.xlu1 %2196 }
 0x5d3   :  { %7174 = vpow2.f32 %v2234_v23  ;;  %v2206_v32 = vsub.f32 %v8424_v9, %v2183_v54  ;;  %v2213_v0 = vsub.f32 %v8428_v43, %v2197_v40  ;;  %v7066_v40 = vld [vmem:[%s11100_s0 + $0x120] sm:$0xff]  }
 0x5d4   :  { %v8560_v37 = vpop.eup %7166 }
 0x5d5   :  { %v2230_v61 = vmul.f32 1.442695, %v2206_v32  ;;  %2258 = vadd.xlane.f32.xlu0 %v8560_v37  ;;  %v2244_v43 = vmul.f32 1.442695, %v2213_v0  ;;  %v1454_v0 = vpack.c.bf16 %v8516_v52, %v8509_v59 }
 0x5d6   :  { %v2195_v18 = vpop.xlane.xlu0 %2194  ;;  %v2193_v38 = vpop.xlane.xlu1 %2192 }
 0x5d7   :  { %7176 = vpow2.f32 %v2230_v61  ;;  %v2212_v9 = vsub.f32 %v8434_v1, %v2195_v18  ;;  %v2211_v51 = vsub.f32 %v8438_v25, %v2193_v38  ;;  %v7064_v1 = vld [vmem:[%s11100_s0 + $0x110] sm:$0xff]   ;;  %v7065_v25 = vld [vmem:[%s11100_s0 + $0x118] sm:$0xff]  }
 0x5d8   :  { %v8567_v48 = vpop.eup %7168  ;;  %7178 = vpow2.f32 %v2236_v46  ;;  %6380 = vmatprep.mubr.msk.bf16.mxu0 %vm11406_vm11, %v7064_v1  ;;  %vm11408_vm11 = vmmov %vm11405_vm9  ;;  %v1450_v1 = vpack.c.bf16 %v8484_v26, %v8475_v17  ;;  %v1449_v17 = vpack.c.bf16 %v8489_v29, %v8477_v19  ;;  %v1447_v26 = vpack.c.bf16 %v8469_v12, %v8457_v30 }
 0x5d9   :  { %v2242_v3 = vmul.f32 1.442695, %v2212_v9  ;;  %2254 = vadd.xlane.f32.xlu1 %v8567_v48  ;;  %v8571_v16 = vpop.eup %7170  ;;  %6381 = vmatmul.mubr.msk.bf16.gmra.mxu0 %vm11405_vm9, %v7065_v25  ;;  %v7069_v9 = vld [vmem:[%s11100_s0 + $0x138] sm:$0xff]  }
 0x5da   :  { %v2191_v63 = vpop.xlane.xlu0 %2190  ;;  %6384 = vmatprep.mubr.msk.bf16.mxu0 %vm11408_vm11, %v7066_v40  ;;  %vm11410_vm11 = vmmov %vm11405_vm9 }
 0x5db   :  { %7180 = vpow2.f32 %v2242_v3  ;;  %v2210_v27 = vsub.f32 %v8444_v53, %v2191_v63  ;;  %v2240_v53 = vmul.f32 1.442695, %v2211_v51  ;;  %v1452_v63 = vpack.c.bf16 %v8500_v42, %v8493_v13  ;;  %v8639_v51 = vpop.f32.mrf.mxu0 }
 0x5dc   :  { %v8578_v39 = vpop.eup %7172  ;;  %7182 = vpow2.f32 %v2232_v57  ;;  %v1441_v57 = vpack.c.bf16 %v8269_v10, %v8261_v55  ;;  %v1453_v59 = vpack.c.bf16 %v8639_v51, %v8511_v33  ;;  %v1451_v42 = vpack.c.bf16 %v8505_v50, %v8495_v7 }
 0x5dd   :  { %v2238_v23 = vmul.f32 1.442695, %v2210_v27  ;;  %2260 = vadd.xlane.f32.xlu1 %v8571_v16  ;;  %2256 = vadd.xlane.f32.xlu0 %v8578_v39  ;;  %v1439_v27 = vpack.c.bf16 %v8257_v47, %v8249_v58  ;;  %v1448_v13 = vpack.c.bf16 %v8464_v56, %v8451_v5 }
 0x5de   :  { %v2319_v21 = vpop.permute.xlu0 %2318 }
 0x5df   :  { %7184 = vpow2.f32 %v2238_v23  ;;  %6550 = vmatprep.subr.bf16.mxu1 %v2319_v21 }
 0x5e0   :  { %v8586_v54 = vpop.eup %7174  ;;  %6551 = vmatpush3.bf16.msra.mxu1 %v2319_v21  ;;  %7186 = vpow2.f32 %v2244_v43 }
 0x5e1   :  { %2266 = vadd.xlane.f32.xlu1 %v8586_v54  ;;  %6968 = vmatprep.subr.msk.bf16.mxu1 %vm11407_vm10, %v8549_v28  ;;  %7188 = vpow2.f32 %v2240_v53  ;;  %vm11409_vm10 = vmmov %vm11405_vm9 }
 0x5e2   :  { %6385 = vmatmul.mubr.msk.bf16.gmra.mxu0 %vm11409_vm10, %v7067_v15  ;;  %vm11411_vm10 = vcmask 130048   ;;  %v2460_v15 = vpop.permute.xlu0 %2459 }
 0x5e3   :  { %6388 = vmatprep.mubr.msk.bf16.mxu0 %vm11405_vm9, %v7068_v49  ;;  %v2509_v40 = vsel %vm11411_vm10, %v8549_v28, 0  ;;  %vm11412_vm9 = vmmov %vm11411_vm10 }
 0x5e4   :  { %v8595_v32 = vpop.eup %7176  ;;  %vm11414_vm5 = vmmov %vm11412_vm9 }
 0x5e5   :  { %2262 = vadd.xlane.f32.xlu1 %v8595_v32  ;;  %v8602_v36 = vpop.eup %7178  ;;  %vm11415_vm7 = vmmov %vm11414_vm5 }
 0x5e6   :  { %vm11416_vm8 = vmmov %vm11414_vm5 }
 0x5e7   :  { %vm11417_vm6 = vmmov %vm11414_vm5 }
 0x5e8   :  { %v8604_v61 = vpop.eup %7180  ;;  %vm11418_vm10 = vmmov %vm11414_vm5 }
 0x5e9   :  { %2268 = vadd.xlane.f32.xlu1 %v8602_v36  ;;  %2274 = vadd.xlane.f32.xlu0 %v8604_v61  ;;  %v8609_v46 = vpop.eup %7182  ;;  %vm11419_vm4 = vmmov %vm11414_vm5 }
 0x5ea   :  { %6389 = vmatmul.mubr.msk.bf16.gmra.mxu0 %vm11410_vm11, %v7069_v9  ;;  %vm11413_vm11 = vmmov %vm11412_vm9 }
 0x5eb   :  { %v2506_v49 = vsel %vm11413_vm11, %v2460_v15, 0  ;;  %vm11425_vm11 = vmmov %vm11419_vm4 }
 0x5ec   :  { %v8614_v18 = vpop.eup %7184 }
 0x5ed   :  { %2264 = vadd.xlane.f32.xlu1 %v8609_v46  ;;  %2270 = vadd.xlane.f32.xlu0 %v8614_v18  ;;  %v8622_v38 = vpop.eup %7186 }
 0x5ee   :  { %v8624_v3 = vpop.eup %7188 }
 0x5f1   :  { %2272 = vadd.xlane.f32.xlu1 %v8624_v3  ;;  %2276 = vadd.xlane.f32.xlu0 %v8622_v38 }
 0x602   :  { %2451 = vrot.lane.b32.xlu1 %v1441_v57, %s7628_s4 }
 0x606   :  { %2919 = vrot.lane.b32.xlu1 %v1454_v0, %s7628_s4 }
 0x607   :  { %2449 = vrot.lane.b32.xlu0 %v8255_v20, %s7628_s4 }
 0x60a   :  { %2915 = vrot.lane.b32.xlu1 %v1452_v63, %s7628_s4 }
 0x60b   :  { %2447 = vrot.lane.b32.xlu0 %v1439_v27, %s7628_s4 }
 0x60e   :  { %2911 = vrot.lane.b32.xlu1 %v1450_v1, %s7628_s4 }
 0x60f   :  { %2917 = vrot.lane.b32.xlu0 %v1453_v59, %s7628_s4 }
 0x612   :  { %2907 = vrot.lane.b32.xlu1 %v1448_v13, %s7628_s4 }
 0x613   :  { %2913 = vrot.lane.b32.xlu0 %v1451_v42, %s7628_s4 }
 0x616   :  { %2788 = vrot.lane.b32.xlu1 %v8455_v11, %s7629_s5 }
 0x617   :  { %2909 = vrot.lane.b32.xlu0 %v1449_v17, %s7628_s4 }
 0x61a   :  { %2786 = vrot.lane.b32.xlu1 %v8279_v45, %s7629_s5 }
 0x61b   :  { %2905 = vrot.lane.b32.xlu0 %v1447_v26, %s7628_s4 }
 0x61e   :  { %2780 = vrot.lane.b32.xlu1 %v1441_v57, %s7629_s5 }
 0x61f   :  { %2790 = vrot.lane.b32.xlu0 %v8398_v31, %s7629_s5 }
 0x621   :  { %v2251_v56 = vpop.xlane.xlu1 %2250 }
 0x622   :  { %2778 = vrot.lane.b32.xlu1 %v8255_v20, %s7629_s5 }
 0x623   :  { %2784 = vrot.lane.b32.xlu0 %v8541_v22, %s7629_s5 }
 0x625   :  { %v2247_v52 = vpop.xlane.xlu1 %2246 }
 0x626   :  { %3246 = vrot.lane.b32.xlu1 %v1453_v59, %s7629_s5 }
 0x627   :  { %2782 = vrot.lane.b32.xlu0 %v8267_v35, %s7629_s5 }
 0x629   :  { %v2253_v45 = vpop.xlane.xlu1 %2252 }
 0x62a   :  { %3244 = vrot.lane.b32.xlu1 %v1452_v63, %s7629_s5  ;;  %7190 = vrcp.f32 %v2253_v45 }
 0x62b   :  { %2776 = vrot.lane.b32.xlu0 %v1439_v27, %s7629_s5  ;;  %7192 = vrcp.f32 %v2247_v52 }
 0x62c   :  { %7194 = vrcp.f32 %v2251_v56 }
 0x62d   :  { %v2249_v31 = vpop.xlane.xlu1 %2248 }
 0x62e   :  { %7196 = vrcp.f32 %v2249_v31  ;;  %3242 = vrot.lane.b32.xlu1 %v1451_v42, %s7629_s5 }
 0x62f   :  { %3248 = vrot.lane.b32.xlu0 %v1454_v0, %s7629_s5 }
 0x632   :  { %3238 = vrot.lane.b32.xlu1 %v1449_v17, %s7629_s5 }
 0x633   :  { %3240 = vrot.lane.b32.xlu0 %v1450_v1, %s7629_s5 }
 0x636   :  { %3236 = vrot.lane.b32.xlu1 %v1448_v13, %s7629_s5 }
 0x637   :  { %v7191_v20 = vpop.eup %7190 }
 0x638   :  { %v7193_v35 = vpop.eup %7192  ;;  %v2297_v22 = vmul.f32 %v7191_v20, %v8533_v8  ;;  %v2458_v8 = vpop.permute.xlu0 %2457 }
 0x639   :  { %v7195_v5 = vpop.eup %7194  ;;  %v2294_v23 = vmul.f32 %v7193_v35, %v8530_v6  ;;  %v2503_v6 = vsel %vm11415_vm7, %v2458_v8, 0  ;;  %vm11421_vm7 = vmmov %vm11419_vm4 }
 0x63a   :  { %3234 = vrot.lane.b32.xlu1 %v1447_v26, %s7629_s5  ;;  %v2296_v21 = vmul.f32 %v7195_v5, %v8527_v34  ;;  %v2456_v34 = vpop.permute.xlu1 %2455 }
 0x63b   :  { %v7197_v11 = vpop.eup %7196 }
 0x63c   :  { %v2295_v43 = vmul.f32 %v7197_v11, %v8536_v4  ;;  %v2311_v53 = vpack.c.bf16 %v2297_v22, %v2296_v21  ;;  %v2500_v4 = vsel %vm11417_vm6, %v2456_v34, 0  ;;  %v2454_v9 = vpop.permute.xlu0 %2453  ;;  %vm11420_vm6 = vmmov %vm11419_vm4 }
 0x63d   :  { %v2497_v28 = vsel %vm11419_vm4, %v2454_v9, 0 }
 0x63e   :  { %v2310_v25 = vpack.c.bf16 %v2295_v43, %v2294_v23 }
 0x640   :  { %6552 = vmatprep.mubr.bf16.mxu1 %v2310_v25 }
 0x641   :  { %6553 = vmatmul.mubr.bf16.vlgmr.msra.gmra.mxu1 %v2311_v53 }
 0x642   :  { %6569 = vmatpush3.bf16.xpose.msra.mxu1 %v2509_v40 }
 0x643   :  { %6969 = vmatprep.subr.msk.bf16.mxu1 %vm11412_vm9, %v2460_v15  ;;  %vm11424_vm9 = vmmov %vm11419_vm4 }
 0x64a   :  { %6571 = vmatpush3.bf16.xpose.msra.mxu1 %v2506_v49 }
 0x64b   :  { %6970 = vmatprep.subr.msk.bf16.mxu1 %vm11414_vm5, %v2458_v8  ;;  %vm11423_vm5 = vmmov %vm11419_vm4 }
 0x652   :  { %6573 = vmatpush3.bf16.xpose.msra.mxu1 %v2503_v6 }
 0x653   :  { %6971 = vmatprep.subr.msk.bf16.mxu1 %vm11416_vm8, %v2456_v34  ;;  %vm11422_vm8 = vmmov %vm11419_vm4 }
 0x65a   :  { %6575 = vmatpush3.bf16.xpose.msra.mxu1 %v2500_v4 }
 0x65b   :  { %6972 = vmatprep.subr.msk.bf16.mxu1 %vm11418_vm10, %v2454_v9  ;;  %vm11426_vm10 = vmmov %vm11419_vm4 }
 0x65e   :  { %v2259_v57 = vpop.xlane.xlu0 %2258 }
 0x65f   :  { %7198 = vrcp.f32 %v2259_v57 }
 0x662   :  { %6577 = vmatpush3.bf16.xpose.msra.mxu1 %v2497_v28  ;;  %v2255_v0 = vpop.xlane.xlu1 %2254 }
 0x663   :  { %7200 = vrcp.f32 %v2255_v0 }
 0x666   :  { %v2261_v63 = vpop.xlane.xlu1 %2260  ;;  %v2257_v27 = vpop.xlane.xlu0 %2256 }
 0x667   :  { %7202 = vrcp.f32 %v2261_v63 }
 0x668   :  { %7204 = vrcp.f32 %v2257_v27 }
 0x66a   :  { %v2267_v1 = vpop.xlane.xlu1 %2266 }
 0x66c   :  { %v7199_v42 = vpop.eup %7198 }
 0x66d   :  { %v2300_v45 = vmul.f32 %v7199_v42, %v8560_v37 }
 0x66e   :  { %v2263_v59 = vpop.xlane.xlu1 %2262 }
 0x670   :  { %v7201_v26 = vpop.eup %7200 }
 0x671   :  { %v2298_v5 = vmul.f32 %v7201_v26, %v8567_v48  ;;  %v1263_v26 = vmul.f32 0.125, %v8249_v58  ;;  %v1267_v58 = vmul.f32 0.125, %v8261_v55 }
 0x672   :  { %v2269_v13 = vpop.xlane.xlu1 %2268  ;;  %v2275_v17 = vpop.xlane.xlu0 %2274 }
 0x673   :  { %7206 = vrcp.f32 %v2269_v13 }
 0x674   :  { %v7203_v56 = vpop.eup %7202  ;;  %7208 = vrcp.f32 %v2263_v59 }
 0x675   :  { %v7205_v52 = vpop.eup %7204  ;;  %v2301_v31 = vmul.f32 %v7203_v56, %v8571_v16  ;;  %7210 = vrcp.f32 %v2267_v1  ;;  %v1264_v56 = vmul.f32 0.125, %v8257_v47  ;;  %v1268_v47 = vmul.f32 0.125, %v8269_v10 }
 0x676   :  { %v2265_v20 = vpop.xlane.xlu1 %2264  ;;  %v2271_v35 = vpop.xlane.xlu0 %2270  ;;  %v2299_v11 = vmul.f32 %v7205_v52, %v8578_v39 }
 0x677   :  { %7212 = vrcp.f32 %v2265_v20  ;;  %v2313_v22 = vpack.c.bf16 %v2301_v31, %v2300_v45  ;;  %v1375_v20 = vpack.c.bf16 %v1264_v56, %v1263_v26  ;;  %v1279_v26 = vmul.f32 0.125, %v8457_v30  ;;  %v11457_v30 = vld [vmem:[#allocation24_spill] sm:$0xff] }
 0x678   :  { %v2312_v23 = vpack.c.bf16 %v2299_v11, %v2298_v5  ;;  %7214 = vrcp.f32 %v2271_v35  ;;  %v1377_v11 = vpack.c.bf16 %v1268_v47, %v1267_v58  ;;  %v1280_v56 = vmul.f32 0.125, %v8469_v12  ;;  %v11518_v58 = vld [vmem:[#allocation9_spill] sm:$0xff] }
 0x67a   :  { %6556 = vmatprep.mubr.bf16.mxu1 %v2312_v23  ;;  %v2273_v43 = vpop.xlane.xlu1 %2272  ;;  %v2277_v21 = vpop.xlane.xlu0 %2276  ;;  %v11427_v23 = vpack.c.bf16 %v8253_v14, %v8251_v44  ;;  %v1271_v44 = vmul.f32 0.125, %v8273_v2  ;;  %v1272_v14 = vmul.f32 0.125, %v8281_v24  ;;  %v1383_v47 = vpack.c.bf16 %v1280_v56, %v1279_v26 }
 0x67b   :  { %7216 = vrcp.f32 %v2273_v43  ;;  %6557 = vmatmul.mubr.bf16.gmra.mxu1 %v2313_v22 }
 0x67c   :  { %7218 = vrcp.f32 %v2277_v21 }
 0x67d   :  { %7220 = vrcp.f32 %v2275_v17 }
 0x67e   :  { %v2452_v37 = vpop.permute.xlu1 %2451  ;;  %v2450_v16 = vpop.permute.xlu0 %2449 }
 0x67f   :  { %6973 = vmatprep.subr.msk.bf16.mxu1 %vm11419_vm4, %v2452_v37  ;;  %v2494_v25 = vsel %vm11420_vm6, %v2452_v37, 0  ;;  %v2491_v0 = vsel %vm11422_vm8, %v2450_v16, 0  ;;  %vm11428_vm6 = vmmov %vm11419_vm4 }
 0x680   :  { %6579 = vmatpush3.bf16.xpose.msra.mxu1 %v2494_v25  ;;  %v7207_v48 = vpop.eup %7206  ;;  %vm11431_vm8 = vmmov %vm11419_vm4 }
 0x681   :  { %6974 = vmatprep.subr.msk.bf16.mxu1 %vm11421_vm7, %v2450_v16  ;;  %v7209_v39 = vpop.eup %7208  ;;  %v2305_v8 = vmul.f32 %v7207_v48, %v8602_v36  ;;  %vm11430_vm7 = vmmov %vm11419_vm4 }
 0x682   :  { %v2448_v53 = vpop.permute.xlu0 %2447  ;;  %v2920_v40 = vpop.permute.xlu1 %2919  ;;  %v2302_v6 = vmul.f32 %v7209_v39, %v8595_v32  ;;  %v11520_v39 = vld [vmem:[#allocation8_spill] sm:$0xff] }
 0x683   :  { %v7211_v15 = vpop.eup %7210  ;;  %v2967_v43 = vsel %vm11428_vm6, %v2920_v40, 0  ;;  %vm11448_vm6 = vmmov %vm11419_vm4 }
 0x684   :  { %v7213_v49 = vpop.eup %7212  ;;  %v2304_v57 = vmul.f32 %v7211_v15, %v8586_v54  ;;  %v11434_v15 = vpack.c.bf16 %v8265_v41, %v8263_v60  ;;  %v11441_v60 = vld [vmem:[#allocation21_spill] sm:$0xff] }
 0x685   :  { %v2303_v34 = vmul.f32 %v7213_v49, %v8609_v46  ;;  %v7215_v4 = vpop.eup %7214  ;;  %v1276_v41 = vmul.f32 0.125, %v11441_v60  ;;  %v11475_v60 = vld [vmem:[#allocation42_spill] sm:$0xff] }
 0x686   :  { %v8709_v9 = vpop.permute.xlu1 %2915  ;;  %v8711_v28 = vpop.permute.xlu0 %2917  ;;  %v2315_v1 = vpack.c.bf16 %v2305_v8, %v2304_v57  ;;  %v2306_v32 = vmul.f32 %v7215_v4, %v8614_v18 }
 0x687   :  { %v2314_v63 = vpack.c.bf16 %v2303_v34, %v2302_v6  ;;  %v1275_v6 = vmul.f32 0.125, %v8287_v62  ;;  %v11446_v62 = vld [vmem:[#allocation22_spill] sm:$0xff] }
 0x688   :  { %v7217_v27 = vpop.eup %7216  ;;  %6581 = vmatpush3.bf16.xpose.msra.mxu1 %v2491_v0 }
 0x689   :  { %v7219_v59 = vpop.eup %7218  ;;  %6560 = vmatprep.mubr.bf16.mxu1 %v2314_v63  ;;  %6975 = vmatprep.subr.msk.bf16.mxu1 %vm11423_vm5, %v2448_v53  ;;  %v2307_v36 = vmul.f32 %v7217_v27, %v8624_v3  ;;  %v2488_v3 = vsel %vm11424_vm9, %v2448_v53, 0  ;;  %vm11435_vm5 = vmmov %vm11419_vm4  ;;  %v1381_v27 = vpack.c.bf16 %v1276_v41, %v1275_v6  ;;  %v11474_v6 = vld [vmem:[#allocation43_spill] sm:$0xff] }
 0x68a   :  { %6561 = vmatmul.mubr.bf16.gmra.mxu1 %v2315_v1  ;;  %v8718_v46 = vpop.permute.xlu1 %2911  ;;  %v8720_v42 = vpop.permute.xlu0 %2913  ;;  %v2309_v17 = vmul.f32 %v7219_v59, %v8622_v38  ;;  %vm11436_vm9 = vmmov %vm11419_vm4  ;;  %v11445_v59 = vld [vmem:[#allocation23_spill] sm:$0xff]  ;;  %v11476_v41 = vpack.c.bf16 %v11474_v6, %v11475_v60 }
 0x68b   :  { %v7221_v54 = vpop.eup %7220  ;;  %v2316_v13 = vpack.c.bf16 %v2307_v36, %v2306_v32  ;;  %v2964_v2 = vsel %vm11436_vm9, %v8711_v28, 0  ;;  %v11447_v32 = vpack.c.bf16 %v11445_v59, %v11446_v62  ;;  %v2961_v36 = vsel %vm11448_vm6, %v8709_v9, 0  ;;  %vm11460_vm9 = vmmov %vm11419_vm4  ;;  %v11483_v62 = vld [vmem:[#allocation47_spill] sm:$0xff] }
 0x68c   :  { %v2308_v18 = vmul.f32 %v7221_v54, %v8604_v61  ;;  %v2958_v12 = vsel %vm11460_vm9, %v8720_v42, 0  ;;  %vm11468_vm6 = vmmov %vm11419_vm4 }
 0x68d   :  { %6564 = vmatprep.mubr.bf16.mxu1 %v2316_v13  ;;  %vm11472_vm9 = vmmov %vm11419_vm4 }
 0x68e   :  { %v8725_v52 = vpop.permute.xlu0 %2909  ;;  %v8729_v45 = vpop.permute.xlu1 %2907  ;;  %v2317_v31 = vpack.c.bf16 %v2309_v17, %v2308_v18 }
 0x68f   :  { %v6378_v5 = vpop.f32.mrf.mxu0 }
 0x690   :  { %6583 = vmatpush3.bf16.xpose.msra.mxu1 %v2488_v3  ;;  %v8744_v21 = vmul.f32 0.125, %v6378_v5 }
 0x691   :  { %6976 = vmatprep.subr.msk.bf16.mxu1 %vm11425_vm11, %v2920_v40  ;;  %v8737_v22 = vpop.f32.mrf.mxu0  ;;  %v1379_v40 = vpack.c.bf16 %v1272_v14, %v1271_v44  ;;  %vm11437_vm11 = vmmov %vm11419_vm4 }
 0x692   :  { %6565 = vmatmul.mubr.bf16.gmra.mxu1 %v2317_v31  ;;  %v8732_v38 = vpop.permute.xlu0 %2905  ;;  %v2789_v35 = vpop.permute.xlu1 %2788  ;;  %11429 = vst [vmem:[#allocation50_spill] sm:$0xff] %v8744_v21 }
 0x693   :  { %6584 = vmatprep.mubr.msk.bf16.mxu1 %vm11426_vm10, %v1375_v20  ;;  %v6379_v55 = vpop.f32.mrf.mxu0  ;;  %vm11439_vm10 = vmmov %vm11419_vm4 }
 0x694   :  { %v8749_v37 = vmul.f32 0.125, %v6379_v55  ;;  %v8751_v16 = vpack.c.bf16 %v6379_v55, %v6378_v5 }
 0x695   :  { %v8755_v25 = vpop.f32.mrf.mxu0 }
 0x696   :  { %v2791_v61 = vpop.permute.xlu0 %2790  ;;  %v2787_v10 = vpop.permute.xlu1 %2786  ;;  %11432 = vst [vmem:[#allocation51_spill] sm:$0xff] %v8749_v37  ;;  %11433 = vst [vmem:[#allocation52_spill] sm:$0xff] %v8751_v16 }
 0x697   :  { %6600 = vmatprep.subr.bf16.mxu0 %v2791_v61 }
 0x698   :  { %6601 = vmatpush3.bf16.msra.mxu0 %v2791_v61  ;;  %v11456_v61 = vld [vmem:[#allocation25_spill] sm:$0xff] }
 0x699   :  { %6602 = vmatprep.subr.bf16.mxu0 %v2789_v35  ;;  %v6382_v53 = vpop.f32.mrf.mxu0  ;;  %v11458_v5 = vpack.c.bf16 %v11456_v61, %v11457_v30 }
 0x69a   :  { %6585 = vmatmul.mubr.msk.bf16.vlgmr.msra.gmra.mxu1 %vm11419_vm4, %v11427_v23  ;;  %v2785_v48 = vpop.permute.xlu0 %2784  ;;  %v8770_v8 = vmul.f32 0.125, %v6382_v53  ;;  %v2781_v4 = vpop.permute.xlu1 %2780 }
 0x69b   :  { %6633 = vmatpush3.bf16.xpose.msra.mxu1 %v2967_v43  ;;  %6588 = vmatprep.mubr.msk.bf16.mxu1 %vm11430_vm7, %v1377_v11  ;;  %v8766_v24 = vpop.f32.mrf.mxu0  ;;  %vm11449_vm7 = vmmov %vm11419_vm4 }
 0x69c   :  { %6977 = vmatprep.subr.msk.bf16.mxu1 %vm11431_vm8, %v8711_v28  ;;  %6603 = vmatpush3.bf16.msra.mxu0 %v2789_v35  ;;  %11438 = vst [vmem:[#allocation53_spill] sm:$0xff] %v8766_v24  ;;  %11440 = vst [vmem:[#allocation54_spill] sm:$0xff] %v8770_v8 }
 0x69d   :  { %6604 = vmatprep.subr.bf16.mxu0 %v2787_v10  ;;  %v6383_v34 = vpop.f32.mrf.mxu0  ;;  %vm11451_vm8 = vmmov %vm11419_vm4 }
 0x69e   :  { %v2783_v49 = vpop.permute.xlu0 %2782  ;;  %v8774_v28 = vmul.f32 0.125, %v6383_v34  ;;  %v8776_v57 = vpack.c.bf16 %v6383_v34, %v6382_v53  ;;  %v2779_v13 = vpop.permute.xlu1 %2778  ;;  %v2955_v53 = vsel %vm11419_vm4, %v8718_v46, 0  ;;  %v1288_v34 = vmul.f32 0.125, %v8505_v50  ;;  %v11488_v50 = vld [vmem:[#allocation49_spill] sm:$0xff] }
 0x69f   :  { %v8778_v0 = vpop.f32.mrf.mxu0 }
 0x6a0   :  { %6605 = vmatpush3.bf16.msra.mxu0 %v2787_v10  ;;  %11442 = vst [vmem:[#allocation21_spill] sm:$0xff] %v8774_v28  ;;  %11443 = vst [vmem:[#allocation55_spill] sm:$0xff] %v8776_v57 }
 0x6a1   :  { %6606 = vmatprep.subr.bf16.mxu0 %v2785_v48  ;;  %11444 = vst [vmem:[#allocation56_spill] sm:$0xff] %v8778_v0 }
 0x6a2   :  { %6589 = vmatmul.mubr.msk.bf16.gmra.mxu1 %vm11435_vm5, %v11434_v15  ;;  %v6386_v1 = vpop.f32.mrf.mxu0  ;;  %v2777_v3 = vpop.permute.xlu0 %2776  ;;  %vm11459_vm5 = vmmov %vm11419_vm4 }
 0x6a3   :  { %6635 = vmatpush3.bf16.xpose.msra.mxu1 %v2964_v2  ;;  %6592 = vmatprep.mubr.msk.bf16.mxu1 %vm11437_vm11, %v1379_v40  ;;  %v8793_v17 = vmul.f32 0.125, %v6386_v1  ;;  %vm11461_vm11 = vmmov %vm11419_vm4  ;;  %v1283_v2 = vmul.f32 0.125, %v8477_v19  ;;  %v1291_v19 = vmul.f32 0.125, %v8511_v33 }
 0x6a4   :  { %6978 = vmatprep.subr.msk.bf16.mxu1 %vm11439_vm10, %v8709_v9  ;;  %6607 = vmatpush3.bf16.msra.mxu0 %v2785_v48  ;;  %v8789_v54 = vpop.f32.mrf.mxu0  ;;  %vm11463_vm10 = vmmov %vm11419_vm4 }
 0x6a5   :  { %6608 = vmatprep.subr.bf16.mxu0 %v2783_v49  ;;  %11450 = vst [vmem:[#allocation23_spill] sm:$0xff] %v8789_v54  ;;  %11452 = vst [vmem:[#allocation22_spill] sm:$0xff] %v8793_v17  ;;  %v7073_v17 = vld [vmem:[%s11100_s0 + $0x158] sm:$0xff]  }
 0x6a6   :  { %v6387_v18 = vpop.f32.mrf.mxu0  ;;  %v8814_v23 = vpop.permute.xlu0 %3248 }
 0x6a7   :  { %v8797_v9 = vmul.f32 0.125, %v6387_v18  ;;  %v8799_v31 = vpack.c.bf16 %v6387_v18, %v6386_v1 }
 0x6a8   :  { %6609 = vmatpush3.bf16.msra.mxu0 %v2783_v49  ;;  %v8801_v20 = vpop.f32.mrf.mxu0  ;;  %v1284_v49 = vmul.f32 0.125, %v8489_v29  ;;  %v1292_v29 = vmul.f32 0.125, %v8639_v51 }
 0x6a9   :  { %6610 = vmatprep.subr.bf16.mxu0 %v2781_v4  ;;  %11453 = vst [vmem:[#allocation57_spill] sm:$0xff] %v8797_v9  ;;  %11454 = vst [vmem:[#allocation58_spill] sm:$0xff] %v8799_v31  ;;  %v7074_v9 = vld [vmem:[%s11100_s0 + $0x160] sm:$0xff]  }
 0x6aa   :  { %6593 = vmatmul.mubr.msk.bf16.gmra.mxu1 %vm11419_vm4, %v11447_v32  ;;  %11455 = vst [vmem:[#allocation59_spill] sm:$0xff] %v8801_v20  ;;  %v6390_v35 = vpop.f32.mrf.mxu0  ;;  %v1389_v59 = vpack.c.bf16 %v1292_v29, %v1291_v19  ;;  %v11484_v32 = vld [vmem:[#allocation46_spill] sm:$0xff]  ;;  %v9102_v28 = vpop.permute.xlu0 %3240 }
 0x6ab   :  { %6637 = vmatpush3.bf16.xpose.msra.mxu1 %v2961_v36  ;;  %6596 = vmatprep.mubr.msk.bf16.mxu1 %vm11449_vm7, %v1381_v27  ;;  %v8818_v43 = vmul.f32 0.125, %v6390_v35  ;;  %vm11469_vm7 = vmmov %vm11419_vm4  ;;  %v11478_v27 = vld [vmem:[#allocation45_spill] sm:$0xff]  ;;  %v11485_v36 = vpack.c.bf16 %v11483_v62, %v11484_v32 }
 0x6ac   :  { %6979 = vmatprep.subr.msk.bf16.mxu1 %vm11451_vm8, %v8720_v42  ;;  %6611 = vmatpush3.bf16.msra.mxu0 %v2781_v4  ;;  %v8812_v11 = vpop.f32.mrf.mxu0  ;;  %v2952_v40 = vsel %vm11469_vm7, %v8725_v52, 0  ;;  %vm11470_vm8 = vmmov %vm11419_vm4 }
 0x6ad   :  { %6612 = vmatprep.subr.bf16.mxu0 %v2779_v13  ;;  %11462 = vst [vmem:[#allocation25_spill] sm:$0xff] %v8812_v11  ;;  %11464 = vst [vmem:[#allocation24_spill] sm:$0xff] %v8818_v43 }
 0x6ae   :  { %v6391_v55 = vpop.f32.mrf.mxu0  ;;  %vm11482_vm7 = vmmov %vm11419_vm4 }
 0x6af   :  { %v8821_v10 = vmul.f32 0.125, %v6391_v55  ;;  %v8823_v44 = vpack.c.bf16 %v6391_v55, %v6390_v35 }
 0x6b0   :  { %6613 = vmatpush3.bf16.msra.mxu0 %v2779_v13  ;;  %v8825_v42 = vpop.f32.mrf.mxu0 }
 0x6b1   :  { %6614 = vmatprep.subr.bf16.mxu0 %v2777_v3  ;;  %11465 = vst [vmem:[#allocation60_spill] sm:$0xff] %v8821_v10  ;;  %11466 = vst [vmem:[#allocation61_spill] sm:$0xff] %v8823_v44  ;;  %3377 = vrot.lane.b32.xlu1 %v8823_v44, %s7628_s4  ;;  %v8833_v48 = vpack.c.bf16 %v8825_v42, %v8812_v11  ;;  %v7071_v10 = vld [vmem:[%s11100_s0 + $0x148] sm:$0xff]  }
 0x6b2   :  { %6597 = vmatmul.mubr.msk.bf16.gmra.mxu1 %vm11459_vm5, %v11458_v5  ;;  %11467 = vst [vmem:[#allocation62_spill] sm:$0xff] %v8825_v42  ;;  %vm11471_vm5 = vmmov %vm11419_vm4  ;;  %v7076_v42 = vld [vmem:[%s11100_s0 + $0x170] sm:$0xff]  }
 0x6b3   :  { %6639 = vmatpush3.bf16.xpose.msra.mxu1 %v2958_v12  ;;  %6648 = vmatprep.mubr.msk.bf16.mxu1 %vm11461_vm11, %v1383_v47  ;;  %v2949_v15 = vsel %vm11471_vm5, %v8729_v45, 0  ;;  %vm11473_vm11 = vmmov %vm11419_vm4 }
 0x6b4   :  { %6980 = vmatprep.subr.msk.bf16.mxu1 %vm11463_vm10, %v8718_v46  ;;  %6615 = vmatpush3.bf16.msra.mxu0 %v2777_v3  ;;  %v2946_v46 = vsel %vm11473_vm11, %v8732_v38, 0  ;;  %vm11477_vm10 = vmmov %vm11419_vm4 }
 0x6b5   :  { %6664 = vmatprep.subr.bf16.mxu0 %v8814_v23  ;;  %3375 = vrot.lane.b32.xlu1 %v8833_v48, %s7628_s4  ;;  %vm11487_vm5 = vmmov %vm11419_vm4 }
 0x6bb   :  { %6641 = vmatpush3.bf16.xpose.msra.mxu1 %v2955_v53 }
 0x6bc   :  { %6981 = vmatprep.subr.msk.bf16.mxu1 %vm11468_vm6, %v8725_v52  ;;  %v1385_v52 = vpack.c.bf16 %v1284_v49, %v1283_v2  ;;  %vm11481_vm6 = vmmov %vm11419_vm4 }
 0x6c3   :  { %6643 = vmatpush3.bf16.xpose.msra.mxu1 %v2952_v40 }
 0x6c4   :  { %6982 = vmatprep.subr.msk.bf16.mxu1 %vm11470_vm8, %v8729_v45  ;;  %v1287_v45 = vmul.f32 0.125, %v8495_v7  ;;  %vm11486_vm8 = vmmov %vm11419_vm4  ;;  %v11489_v7 = vld [vmem:[#allocation48_spill] sm:$0xff] }
 0x6c5   :  { %v11490_v13 = vpack.c.bf16 %v11488_v50, %v11489_v7 }
 0x6c6   :  { %v1387_v4 = vpack.c.bf16 %v1288_v34, %v1287_v45 }
 0x6cb   :  { %6645 = vmatpush3.bf16.xpose.msra.mxu1 %v2949_v15 }
 0x6cc   :  { %6983 = vmatprep.subr.msk.bf16.mxu1 %vm11472_vm9, %v8732_v38  ;;  %v11479_v38 = vld [vmem:[#allocation44_spill] sm:$0xff]  ;;  %vm11491_vm9 = vmmov %vm11419_vm4 }
 0x6cd   :  { %v11480_v1 = vpack.c.bf16 %v11478_v27, %v11479_v38 }
 0x6d3   :  { %6647 = vmatpush3.bf16.xpose.msra.mxu1 %v2946_v46 }
 0x6da   :  { %6649 = vmatmul.mubr.msk.bf16.vlgmr.msra.gmra.mxu1 %vm11477_vm10, %v11476_v41  ;;  %vm11519_vm10 = vnez %v11518_v58 }
 0x6db   :  { %6652 = vmatprep.mubr.msk.bf16.mxu1 %vm11419_vm4, %v1385_v52  ;;  %vm11521_vm4 = vnez %v11520_v39 }
 0x6e2   :  { %6653 = vmatmul.mubr.msk.bf16.gmra.mxu1 %vm11481_vm6, %v11480_v1 }
 0x6e3   :  { %6656 = vmatprep.mubr.msk.bf16.mxu1 %vm11482_vm7, %v1387_v4 }
 0x6ea   :  { %6657 = vmatmul.mubr.msk.bf16.gmra.mxu1 %vm11486_vm8, %v11485_v36 }
 0x6eb   :  { %6660 = vmatprep.mubr.msk.bf16.mxu1 %vm11487_vm5, %v1389_v59 }
 0x6f2   :  { %6661 = vmatmul.mubr.msk.bf16.gmra.mxu1 %vm11491_vm9, %v11490_v13 }
 0x701   :  { %v8876_v26 = vpop.f32.mrf.mxu1 }
 0x702   :  { %11492 = vst [vmem:[#allocation43_spill] sm:$0xff] %v8876_v26 }
 0x703   :  { %v8878_v56 = vpop.f32.mrf.mxu1 }
 0x704   :  { %11493 = vst [vmem:[#allocation42_spill] sm:$0xff] %v8878_v56  ;;  %v11528_v56 = vld [vmem:[#allocation12_spill] sm:$0xff] }
 0x705   :  { %v8880_v33 = vpop.f32.mrf.mxu1  ;;  %vm11529_vm5 = vnez %v11528_v56 }
 0x706   :  { %11494 = vst [vmem:[#allocation45_spill] sm:$0xff] %v8880_v33 }
 0x707   :  { %v8882_v51 = vpop.f32.mrf.mxu1 }
 0x708   :  { %11495 = vst [vmem:[#allocation44_spill] sm:$0xff] %v8882_v51 }
 0x73b   :  { %v8884_v18 = vpop.f32.mrf.mxu1 }
 0x73c   :  { %11496 = vst [vmem:[#allocation47_spill] sm:$0xff] %v8884_v18 }
 0x73d   :  { %v8886_v3 = vpop.f32.mrf.mxu1 }
 0x73e   :  { %11497 = vst [vmem:[#allocation46_spill] sm:$0xff] %v8886_v3 }
 0x73f   :  { %v8888_v47 = vpop.f32.mrf.mxu1 }
 0x740   :  { %11498 = vst [vmem:[#allocation49_spill] sm:$0xff] %v8888_v47 }
 0x741   :  { %v8890_v35 = vpop.f32.mrf.mxu1 }
 0x742   :  { %11499 = vst [vmem:[#allocation48_spill] sm:$0xff] %v8890_v35  ;;  %v11526_v35 = vld [vmem:[#allocation13_spill] sm:$0xff] }
 0x743   :  { %vm11527_vm8 = vnez %v11526_v35  ;;  %v7072_v35 = vld [vmem:[%s11100_s0 + $0x150] sm:$0xff]  }
 0x74a   :  { %v8892_v61 = vpop.f32.mrf.mxu1 }
 0x74b   :  { %11500 = vst [vmem:[#allocation63_spill] sm:$0xff] %v8892_v61 }
 0x74c   :  { %v8894_v30 = vpop.f32.mrf.mxu1 }
 0x74d   :  { %11501 = vst [vmem:[#allocation64_spill] sm:$0xff] %v8894_v30 }
 0x74e   :  { %v8896_v5 = vpop.f32.mrf.mxu1 }
 0x74f   :  { %11502 = vst [vmem:[#allocation65_spill] sm:$0xff] %v8896_v5 }
 0x750   :  { %v8898_v12 = vpop.f32.mrf.mxu1 }
 0x751   :  { %11503 = vst [vmem:[#allocation66_spill] sm:$0xff] %v8898_v12  ;;  %v11524_v12 = vld [vmem:[#allocation11_spill] sm:$0xff] }
 0x752   :  { %v8900_v55 = vpop.f32.mrf.mxu1  ;;  %vm11525_vm7 = vnez %v11524_v12 }
 0x753   :  { %11504 = vst [vmem:[#allocation67_spill] sm:$0xff] %v8900_v55  ;;  %v11530_v55 = vld [vmem:[#allocation14_spill] sm:$0xff] }
 0x754   :  { %v8902_v53 = vpop.f32.mrf.mxu1  ;;  %vm11531_vm9 = vnez %v11530_v55 }
 0x755   :  { %11505 = vst [vmem:[#allocation68_spill] sm:$0xff] %v8902_v53 }
 0x756   :  { %v8904_v40 = vpop.f32.mrf.mxu1 }
 0x757   :  { %11506 = vst [vmem:[#allocation69_spill] sm:$0xff] %v8904_v40 }
 0x758   :  { %v8906_v15 = vpop.f32.mrf.mxu1 }
 0x759   :  { %11507 = vst [vmem:[#allocation70_spill] sm:$0xff] %v8906_v15  ;;  %v11522_v15 = vld [vmem:[#allocation10_spill] sm:$0xff] }
 0x75a   :  { %v6586_v46 = vpop.f32.mrf.mxu1  ;;  %vm11523_vm6 = vnez %v11522_v15 }
 0x75b   :  { %v8910_v49 = vsel %vm7939_vm12, %v6586_v46, -1e+30 }
 0x75c   :  { %v2545_v52 = vpop.f32.mrf.mxu1  ;;  %2628 = vmax.xlane.f32.xlu0 %v8910_v49 }
 0x75d   :  { %v8915_v60 = vsel %vm7951_vm13, %v2545_v52, -1e+30 }
 0x75e   :  { %v6587_v41 = vpop.f32.mrf.mxu1  ;;  %2624 = vmax.xlane.f32.xlu1 %v8915_v60 }
 0x75f   :  { %v8920_v4 = vsel %vm7964_vm15, %v6587_v41, -1e+30 }
 0x760   :  { %v2548_v45 = vpop.f32.mrf.mxu1 }
 0x761   :  { %v8924_v38 = vsel %vm7957_vm14, %v2548_v45, -1e+30 }
 0x762   :  { %v6590_v1 = vpop.f32.mrf.mxu1  ;;  %2626 = vmax.xlane.f32.xlu0 %v8924_v38  ;;  %2630 = vmax.xlane.f32.xlu1 %v8920_v4 }
 0x763   :  { %v8930_v59 = vsel %vm7990_vm0, %v6590_v1, -1e+30  ;;  %v11516_v1 = vld [vmem:[#allocation7_spill] sm:$0xff] }
 0x764   :  { %v2561_v19 = vpop.f32.mrf.mxu1  ;;  %vm11517_vm11 = vnez %v11516_v1  ;;  %v9035_v1 = vpop.permute.xlu1 %3246 }
 0x765   :  { %v8940_v13 = vsel %vm7871_vm2, %v2561_v19, -1e+30 }
 0x766   :  { %v6591_v62 = vpop.f32.mrf.mxu1  ;;  %2636 = vmax.xlane.f32.xlu0 %v8930_v59 }
 0x767   :  { %v8935_v36 = vsel %vm7995_vm1, %v6591_v62, -1e+30 }
 0x768   :  { %v2564_v50 = vpop.f32.mrf.mxu1  ;;  %2638 = vmax.xlane.f32.xlu1 %v8935_v36  ;;  %v9040_v39 = vpop.permute.xlu1 %3244 }
 0x769   :  { %v8945_v41 = vsel %vm7881_vm3, %v2564_v50, -1e+30 }
 0x76a   :  { %v6594_v46 = vpop.f32.mrf.mxu1  ;;  %2632 = vmax.xlane.f32.xlu0 %v8940_v13 }
 0x76b   :  { %v8950_v62 = vsel %vm11517_vm11, %v6594_v46, -1e+30 }
 0x76c   :  { %v2577_v45 = vpop.f32.mrf.mxu1  ;;  %2634 = vmax.xlane.f32.xlu1 %v8945_v41 }
 0x76d   :  { %v8960_v50 = vsel %vm11521_vm4, %v2577_v45, -1e+30 }
 0x76e   :  { %v6595_v14 = vpop.f32.mrf.mxu1  ;;  %2644 = vmax.xlane.f32.xlu0 %v8950_v62 }
 0x76f   :  { %v8955_v19 = vsel %vm11519_vm10, %v6595_v14, -1e+30 }
 0x770   :  { %v2580_v63 = vpop.f32.mrf.mxu1  ;;  %2646 = vmax.xlane.f32.xlu1 %v8955_v19 }
 0x771   :  { %v8965_v46 = vsel %vm11523_vm6, %v2580_v63, -1e+30 }
 0x772   :  { %v6598_v40 = vpop.f32.mrf.mxu1  ;;  %2640 = vmax.xlane.f32.xlu0 %v8960_v50 }
 0x773   :  { %v8970_v14 = vsel %vm11525_vm7, %v6598_v40, -1e+30 }
 0x774   :  { %v2593_v5 = vpop.f32.mrf.mxu1  ;;  %2642 = vmax.xlane.f32.xlu1 %v8965_v46 }
 0x775   :  { %v8980_v63 = vsel %vm11529_vm5, %v2593_v5, -1e+30 }
 0x776   :  { %v6599_v47 = vpop.f32.mrf.mxu1  ;;  %2652 = vmax.xlane.f32.xlu0 %v8970_v14 }
 0x777   :  { %v8975_v45 = vsel %vm11527_vm8, %v6599_v47, -1e+30 }
 0x778   :  { %v2596_v33 = vpop.f32.mrf.mxu1  ;;  %2654 = vmax.xlane.f32.xlu1 %v8975_v45 }
 0x779   :  { %v8985_v40 = vsel %vm11531_vm9, %v2596_v33, -1e+30 }
 0x77a   :  { %2648 = vmax.xlane.f32.xlu0 %v8980_v63 }
 0x77c   :  { %2650 = vmax.xlane.f32.xlu1 %v8985_v40 }
 0x79a   :  { %v6650_v53 = vpop.f32.mrf.mxu1 }
 0x79b   :  { %v8990_v47 = vsel %vm7939_vm12, %v6650_v53, -1e+30 }
 0x79c   :  { %3086 = vmax.xlane.f32.xlu0 %v8990_v47  ;;  %v3003_v61 = vpop.f32.mrf.mxu1 }
 0x79d   :  { %v8995_v5 = vsel %vm7951_vm13, %v3003_v61, -1e+30 }
 0x79e   :  { %v6651_v30 = vpop.f32.mrf.mxu1 }
 0x79f   :  { %v8999_v18 = vsel %vm7964_vm15, %v6651_v30, -1e+30 }
 0x7a0   :  { %3082 = vmax.xlane.f32.xlu0 %v8995_v5  ;;  %v3006_v33 = vpop.f32.mrf.mxu1  ;;  %3088 = vmax.xlane.f32.xlu1 %v8999_v18 }
 0x7a1   :  { %v9005_v53 = vsel %vm7957_vm14, %v3006_v33, -1e+30 }
 0x7a2   :  { %v6654_v3 = vpop.f32.mrf.mxu1 }
 0x7a3   :  { %v9009_v26 = vsel %vm7990_vm0, %v6654_v3, -1e+30 }
 0x7a4   :  { %3094 = vmax.xlane.f32.xlu0 %v9009_v26  ;;  %v3019_v61 = vpop.f32.mrf.mxu1  ;;  %3084 = vmax.xlane.f32.xlu1 %v9005_v53 }
 0x7a5   :  { %v9015_v51 = vsel %vm7871_vm2, %v3019_v61, -1e+30 }
 0x7a6   :  { %v6655_v30 = vpop.f32.mrf.mxu1 }
 0x7a8   :  { %3090 = vmax.xlane.f32.xlu0 %v9015_v51  ;;  %v3022_v34 = vpop.f32.mrf.mxu1 }
 0x7aa   :  { %v6658_v27 = vpop.f32.mrf.mxu1 }
 0x7ab   :  { %v9020_v33 = vsel %vm11517_vm11, %v6658_v27, -1e+30 }
 0x7ac   :  { %3102 = vmax.xlane.f32.xlu0 %v9020_v33  ;;  %v3035_v3 = vpop.f32.mrf.mxu1 }
 0x7ad   :  { %v9025_v6 = vsel %vm11521_vm4, %v3035_v3, -1e+30  ;;  %v7070_v3 = vld [vmem:[%s11100_s0 + $0x140] sm:$0xff]   ;;  %vm11532_vm4 = vcmask 523264  }
 0x7ae   :  { %v6659_v29 = vpop.f32.mrf.mxu1  ;;  %6392 = vmatprep.mubr.msk.bf16.mxu0 %vm11532_vm4, %v7070_v3  ;;  %vm11533_vm11 = vmmov %vm11532_vm4  ;;  %v7075_v3 = vld [vmem:[%s11100_s0 + $0x168] sm:$0xff]  }
 0x7af   :  { %6393 = vmatmul.mubr.msk.bf16.gmra.mxu0 %vm11533_vm11, %v7071_v10  ;;  %vm11535_vm2 = vmmov %vm11532_vm4  ;;  %v9100_v32 = vsel %vm11519_vm10, %v6659_v29, -1e+30 }
 0x7b0   :  { %3098 = vmax.xlane.f32.xlu0 %v9025_v6  ;;  %v3038_v61 = vpop.f32.mrf.mxu1  ;;  %vm11537_vm11 = vmmov %vm11535_vm2 }
 0x7b1   :  { %vm11538_vm0 = vmmov %vm11535_vm2 }
 0x7b2   :  { %v6662_v7 = vpop.f32.mrf.mxu1 }
 0x7b3   :  { %v9116_v29 = vsel %vm11525_vm7, %v6662_v7, -1e+30 }
 0x7b4   :  { %v3051_v2 = vpop.f32.mrf.mxu1 }
 0x7b5   :  { %3373 = vrot.lane.b32.xlu1 %v8799_v31, %s7628_s4 }
 0x7b6   :  { %v6663_v43 = vpop.f32.mrf.mxu1 }
 0x7b7   :  { %v9032_v27 = vsel %vm11527_vm8, %v6663_v43, -1e+30  ;;  %v9047_v43 = vpop.permute.xlu1 %3242  ;;  %vm11534_vm8 = vmmov %vm11532_vm4 }
 0x7b8   :  { %3112 = vmax.xlane.f32.xlu0 %v9032_v27  ;;  %6396 = vmatprep.mubr.msk.bf16.mxu0 %vm11534_vm8, %v7072_v35  ;;  %vm11536_vm4 = vmmov %vm11535_vm2  ;;  %v7078_v35 = vld [vmem:[%s11100_s0 + $0x180] sm:$0xff]  }
 0x7b9   :  { %6397 = vmatmul.mubr.msk.bf16.gmra.mxu0 %vm11535_vm2, %v7073_v17  ;;  %v7077_v17 = vld [vmem:[%s11100_s0 + $0x178] sm:$0xff]   ;;  %vm11539_vm2 = vmmov %vm11538_vm0 }
 0x7ba   :  { %6400 = vmatprep.mubr.msk.bf16.mxu0 %vm11536_vm4, %v7074_v9  ;;  %v9078_v9 = vsel %vm7995_vm1, %v6655_v30, -1e+30  ;;  %v7079_v30 = vld [vmem:[%s11100_s0 + $0x188] sm:$0xff]   ;;  %vm11541_vm8 = vmmov %vm11538_vm0 }
 0x7bb   :  { %v9061_v10 = vpop.permute.xlu1 %3238  ;;  %vm11542_vm4 = vmmov %vm11538_vm0 }
 0x7bf   :  { %v9069_v11 = vpop.permute.xlu1 %3236 }
 0x7c1   :  { %6401 = vmatmul.mubr.msk.bf16.gmra.mxu0 %vm11537_vm11, %v7075_v3  ;;  %vm11543_vm11 = vmmov %vm11538_vm0 }
 0x7c2   :  { %6404 = vmatprep.mubr.msk.bf16.mxu0 %vm11538_vm0, %v7076_v42  ;;  %v9089_v42 = vsel %vm7881_vm3, %v3022_v34, -1e+30 }
 0x7c3   :  { %v9083_v8 = vpop.permute.xlu1 %3234 }
 0x7c7   :  { %v9092_v3 = vpop.permute.xlu1 %3377 }
 0x7c9   :  { %6405 = vmatmul.mubr.msk.bf16.gmra.mxu0 %vm11539_vm2, %v7077_v17  ;;  %v9110_v17 = vsel %vm11523_vm6, %v3038_v61, -1e+30  ;;  %v7081_v61 = vld [vmem:[%s11100_s0 + $0x198] sm:$0xff]   ;;  %vm11544_vm2 = vmmov %vm11538_vm0 }
 0x7ca   :  { %6408 = vmatprep.mubr.msk.bf16.mxu0 %vm11538_vm0, %v7078_v35 }
 0x7cb   :  { %v9105_v34 = vpop.permute.xlu1 %3375 }
 0x7cc   :  { %11540 = vst [vmem:[#allocation71_spill] sm:$0xff] %v9105_v34 }
 0x7d1   :  { %6409 = vmatmul.mubr.msk.bf16.gmra.mxu0 %vm11541_vm8, %v7079_v30  ;;  %v7080_v30 = vld [vmem:[%s11100_s0 + $0x190] sm:$0xff]   ;;  %vm11545_vm8 = vmmov %vm11538_vm0 }
 0x7d2   :  { %6412 = vmatprep.mubr.msk.bf16.mxu0 %vm11542_vm4, %v7080_v30  ;;  %vm11546_vm4 = vmmov %vm11538_vm0 }
 0x7d9   :  { %3096 = vmax.xlane.f32.xlu1 %v9078_v9  ;;  %6413 = vmatmul.mubr.msk.bf16.gmra.mxu0 %vm11543_vm11, %v7081_v61  ;;  %vm11547_vm11 = vmmov %vm11538_vm0 }
 0x7dd   :  { %3092 = vmax.xlane.f32.xlu1 %v9089_v42 }
 0x7e1   :  { %3104 = vmax.xlane.f32.xlu1 %v9100_v32 }
 0x7e5   :  { %3100 = vmax.xlane.f32.xlu1 %v9110_v17  ;;  %v2629_v35 = vpop.xlane.xlu0 %2628 }
 0x7e6   :  { %v2658_v52 = vsub.f32 %v8910_v49, %v2629_v35 }
 0x7e7   :  { %v2625_v58 = vpop.xlane.xlu1 %2624 }
 0x7e8   :  { %v2676_v21 = vmul.f32 1.442695, %v2658_v52  ;;  %v2656_v37 = vsub.f32 %v8915_v60, %v2625_v58  ;;  %v9130_v58 = vsel %vm11529_vm5, %v3051_v2, -1e+30  ;;  %v3054_v52 = vpop.f32.mrf.mxu1  ;;  %v7082_v2 = vld [vmem:[%s11100_s0 + $0x1a0] sm:$0xff]  }
 0x7e9   :  { %3110 = vmax.xlane.f32.xlu1 %v9116_v29  ;;  %v9137_v30 = vsel %vm11531_vm9, %v3054_v52, -1e+30  ;;  %6416 = vmatprep.mubr.msk.bf16.mxu0 %vm11544_vm2, %v7082_v2  ;;  %vm11548_vm2 = vmmov %vm11538_vm0 }
 0x7ea   :  { %7222 = vpow2.f32 %v2676_v21  ;;  %v2672_v49 = vmul.f32 1.442695, %v2656_v37 }
 0x7eb   :  { %v2627_v35 = vpop.xlane.xlu0 %2626  ;;  %v2631_v7 = vpop.xlane.xlu1 %2630 }
 0x7ec   :  { %v2659_v60 = vsub.f32 %v8920_v4, %v2631_v7  ;;  %7224 = vpow2.f32 %v2672_v49  ;;  %v2657_v12 = vsub.f32 %v8924_v38, %v2627_v35  ;;  %v7083_v49 = vld [vmem:[%s11100_s0 + $0x1a8] sm:$0xff]  }
 0x7ed   :  { %3106 = vmax.xlane.f32.xlu1 %v9130_v58  ;;  %6417 = vmatmul.mubr.msk.bf16.gmra.mxu0 %vm11538_vm0, %v7083_v49 }
 0x7ee   :  { %v2678_v21 = vmul.f32 1.442695, %v2659_v60  ;;  %v2674_v38 = vmul.f32 1.442695, %v2657_v12 }
 0x7ef   :  { %v2637_v37 = vpop.xlane.xlu0 %2636 }
 0x7f0   :  { %v2662_v61 = vsub.f32 %v8930_v59, %v2637_v37  ;;  %7226 = vpow2.f32 %v2678_v21 }
 0x7f1   :  { %3108 = vmax.xlane.f32.xlu1 %v9137_v30  ;;  %v2639_v4 = vpop.xlane.xlu1 %2638 }
 0x7f2   :  { %v2684_v35 = vmul.f32 1.442695, %v2662_v61  ;;  %v2663_v7 = vsub.f32 %v8935_v36, %v2639_v4  ;;  %v7084_v61 = vld [vmem:[%s11100_s0 + $0x1b0] sm:$0xff]  }
 0x7f3   :  { %v2633_v60 = vpop.xlane.xlu0 %2632  ;;  %6420 = vmatprep.mubr.msk.bf16.mxu0 %vm11545_vm8, %v7084_v61  ;;  %vm11549_vm8 = vmmov %vm11538_vm0 }
 0x7f4   :  { %7228 = vpow2.f32 %v2684_v35  ;;  %v2686_v59 = vmul.f32 1.442695, %v2663_v7  ;;  %v2660_v52 = vsub.f32 %v8940_v13, %v2633_v60  ;;  %v7085_v13 = vld [vmem:[%s11100_s0 + $0x1b8] sm:$0xff]  }
 0x7f5   :  { %v2635_v37 = vpop.xlane.xlu1 %2634  ;;  %7230 = vpow2.f32 %v2674_v38  ;;  %6421 = vmatmul.mubr.msk.bf16.gmra.mxu0 %vm11546_vm4, %v7085_v13  ;;  %vm11550_vm4 = vmmov %vm11538_vm0 }
 0x7f6   :  { %v2680_v56 = vmul.f32 1.442695, %v2660_v52  ;;  %v2661_v55 = vsub.f32 %v8945_v41, %v2635_v37  ;;  %7232 = vpow2.f32 %v2686_v59  ;;  %v7086_v59 = vld [vmem:[%s11100_s0 + $0x1c0] sm:$0xff]  }
 0x7f7   :  { %v9152_v15 = vpop.eup %7222  ;;  %v2645_v12 = vpop.xlane.xlu0 %2644  ;;  %6424 = vmatprep.mubr.msk.bf16.mxu0 %vm11547_vm11, %v7086_v59  ;;  %vm11551_vm11 = vmmov %vm11538_vm0 }
 0x7f8   :  { %v2682_v21 = vmul.f32 1.442695, %v2661_v55  ;;  %v2666_v36 = vsub.f32 %v8950_v62, %v2645_v12  ;;  %2708 = vadd.xlane.f32.xlu1 %v9152_v15  ;;  %7234 = vpow2.f32 %v2680_v56 }
 0x7f9   :  { %v2647_v2 = vpop.xlane.xlu1 %2646  ;;  %v9163_v4 = vpop.eup %7224 }
 0x7fa   :  { %v2692_v41 = vmul.f32 1.442695, %v2666_v36  ;;  %7236 = vpow2.f32 %v2682_v21  ;;  %v2667_v49 = vsub.f32 %v8955_v19, %v2647_v2 }
 0x7fb   :  { %v2641_v55 = vpop.xlane.xlu0 %2640 }
 0x7fc   :  { %v2664_v62 = vsub.f32 %v8960_v50, %v2641_v55  ;;  %2704 = vadd.xlane.f32.xlu1 %v9163_v4  ;;  %7238 = vpow2.f32 %v2692_v41  ;;  %v7087_v50 = vld [vmem:[%s11100_s0 + $0x1c8] sm:$0xff]   ;;  %v2694_v12 = vmul.f32 1.442695, %v2667_v49 }
 0x7fd   :  { %v2643_v38 = vpop.xlane.xlu1 %2642  ;;  %v9170_v7 = vpop.eup %7226  ;;  %6425 = vmatmul.mubr.msk.bf16.gmra.mxu0 %vm11548_vm2, %v7087_v50  ;;  %v7090_v50 = vld [vmem:[%s11100_s0 + $0x1e0] sm:$0xff]   ;;  %vm11552_vm2 = vmmov %vm11538_vm0 }
 0x7fe   :  { %v2688_v35 = vmul.f32 1.442695, %v2664_v62  ;;  %v2665_v56 = vsub.f32 %v8965_v46, %v2643_v38 }
 0x7ff   :  { %v2653_v60 = vpop.xlane.xlu0 %2652 }
 0x800   :  { %v2690_v52 = vmul.f32 1.442695, %v2665_v56  ;;  %v2670_v37 = vsub.f32 %v8970_v14, %v2653_v60  ;;  %2710 = vadd.xlane.f32.xlu1 %v9170_v7  ;;  %7240 = vpow2.f32 %v2688_v35  ;;  %v7089_v35 = vld [vmem:[%s11100_s0 + $0x1d8] sm:$0xff]  }
 0x801   :  { %v9180_v19 = vpop.eup %7228  ;;  %v2655_v46 = vpop.xlane.xlu1 %2654 }
 0x802   :  { %7242 = vpow2.f32 %v2690_v52  ;;  %v2700_v21 = vmul.f32 1.442695, %v2670_v37  ;;  %v2671_v36 = vsub.f32 %v8975_v45, %v2655_v46  ;;  %2716 = vadd.xlane.f32.xlu0 %v9180_v19  ;;  %v9185_v61 = vpop.eup %7230  ;;  %v7091_v52 = vld [vmem:[%s11100_s0 + $0x1e8] sm:$0xff]  }
 0x803   :  { %v2649_v2 = vpop.xlane.xlu0 %2648  ;;  %v9190_v13 = vpop.eup %7232  ;;  %7244 = vpow2.f32 %v2694_v12 }
 0x804   :  { %v2668_v14 = vsub.f32 %v8980_v63, %v2649_v2  ;;  %2706 = vadd.xlane.f32.xlu1 %v9185_v61  ;;  %v2702_v41 = vmul.f32 1.442695, %v2671_v36  ;;  %7246 = vpow2.f32 %v2700_v21  ;;  %v7088_v63 = vld [vmem:[%s11100_s0 + $0x1d0] sm:$0xff]   ;;  %v7093_v2 = vld [vmem:[%s11100_s0 + $0x1f8] sm:$0xff]  }
 0x805   :  { %v2651_v55 = vpop.xlane.xlu1 %2650  ;;  %v9194_v49 = vpop.eup %7234  ;;  %6428 = vmatprep.mubr.msk.bf16.mxu0 %vm11538_vm0, %v7088_v63  ;;  %v7092_v36 = vld [vmem:[%s11100_s0 + $0x1f0] sm:$0xff]   ;;  %s7630_s0 = smov 16  }
 0x806   :  { %v2696_v62 = vmul.f32 1.442695, %v2668_v14  ;;  %v2669_v45 = vsub.f32 %v8985_v40, %v2651_v55  ;;  %2718 = vadd.xlane.f32.xlu0 %v9190_v13  ;;  %7248 = vpow2.f32 %v2702_v41  ;;  %6429 = vmatmul.mubr.msk.bf16.gmra.mxu0 %vm11549_vm8, %v7089_v35  ;;  %vm11588_vm8 = vcmask 130048  }
 0x807   :  { %v9200_v38 = vpop.eup %7236  ;;  %6432 = vmatprep.mubr.msk.bf16.mxu0 %vm11550_vm4, %v7090_v50  ;;  %vm11610_vm4 = vmmov %vm11588_vm8 }
 0x808   :  { %2712 = vadd.xlane.f32.xlu1 %v9194_v49  ;;  %7250 = vpow2.f32 %v2696_v62  ;;  %v2698_v56 = vmul.f32 1.442695, %v2669_v45 }
 0x809   :  { %v9207_v40 = vpop.eup %7238 }
 0x80a   :  { %2714 = vadd.xlane.f32.xlu0 %v9200_v38  ;;  %7252 = vpow2.f32 %v2698_v56 }
 0x80c   :  { %2724 = vadd.xlane.f32.xlu1 %v9207_v40 }
 0x80d   :  { %v9211_v60 = vpop.eup %7240 }
 0x80e   :  { %6433 = vmatmul.mubr.msk.bf16.gmra.mxu0 %vm11551_vm11, %v7091_v52  ;;  %vm11614_vm11 = vmmov %vm11610_vm4 }
 0x80f   :  { %v9213_v59 = vpop.eup %7242  ;;  %6436 = vmatprep.mubr.msk.bf16.mxu0 %vm11552_vm2, %v7092_v36  ;;  %vm11619_vm2 = vmmov %vm11610_vm4 }
 0x810   :  { %2720 = vadd.xlane.f32.xlu1 %v9211_v60  ;;  %2722 = vadd.xlane.f32.xlu0 %v9213_v59  ;;  %v9223_v37 = vpop.eup %7244 }
 0x811   :  { %v9226_v12 = vpop.eup %7246 }
 0x813   :  { %v9231_v46 = vpop.eup %7248 }
 0x814   :  { %2726 = vadd.xlane.f32.xlu1 %v9223_v37  ;;  %2732 = vadd.xlane.f32.xlu0 %v9226_v12 }
 0x815   :  { %v9233_v21 = vpop.eup %7250 }
 0x816   :  { %6437 = vmatmul.mubr.msk.bf16.gmra.mxu0 %vm11538_vm0, %v7093_v2  ;;  %vm11621_vm0 = vmmov %vm11619_vm2 }
 0x817   :  { %v9244_v14 = vpop.eup %7252 }
 0x818   :  { %2728 = vadd.xlane.f32.xlu1 %v9233_v21  ;;  %2734 = vadd.xlane.f32.xlu0 %v9231_v46 }
 0x81c   :  { %2730 = vadd.xlane.f32.xlu0 %v9244_v14 }
 0x825   :  { %v3087_v41 = vpop.xlane.xlu0 %3086 }
 0x826   :  { %v3116_v55 = vsub.f32 %v8990_v47, %v3087_v41 }
 0x828   :  { %v3134_v62 = vmul.f32 1.442695, %v3116_v55 }
 0x829   :  { %v3083_v45 = vpop.xlane.xlu0 %3082  ;;  %v3089_v63 = vpop.xlane.xlu1 %3088 }
 0x82a   :  { %7254 = vpow2.f32 %v3134_v62  ;;  %v3114_v35 = vsub.f32 %v8995_v5, %v3083_v45  ;;  %v3117_v56 = vsub.f32 %v8999_v18, %v3089_v63 }
 0x82c   :  { %v3130_v50 = vmul.f32 1.442695, %v3114_v35  ;;  %v3136_v31 = vmul.f32 1.442695, %v3117_v56 }
 0x82d   :  { %v3095_v52 = vpop.xlane.xlu0 %3094  ;;  %v3085_v36 = vpop.xlane.xlu1 %3084 }
 0x82e   :  { %7256 = vpow2.f32 %v3130_v50  ;;  %v3115_v2 = vsub.f32 %v9005_v53, %v3085_v36  ;;  %v3120_v44 = vsub.f32 %v9009_v26, %v3095_v52 }
 0x82f   :  { %7258 = vpow2.f32 %v3136_v31 }
 0x830   :  { %v3132_v34 = vmul.f32 1.442695, %v3115_v2  ;;  %v3142_v47 = vmul.f32 1.442695, %v3120_v44 }
 0x831   :  { %v3091_v16 = vpop.xlane.xlu0 %3090  ;;  %v9272_v44 = vpop.permute.xlu1 %3373 }
 0x832   :  { %7260 = vpow2.f32 %v3132_v34  ;;  %v3118_v41 = vsub.f32 %v9015_v51, %v3091_v16  ;;  %11556 = vst [vmem:[#allocation75_spill] sm:$0xff] %v9272_v44 }
 0x833   :  { %7262 = vpow2.f32 %v3142_v47 }
 0x834   :  { %v3138_v18 = vmul.f32 1.442695, %v3118_v41 }
 0x835   :  { %v3103_v47 = vpop.xlane.xlu0 %3102 }
 0x836   :  { %7264 = vpow2.f32 %v3138_v18 }
 0x837   :  { %v9254_v55 = vpop.eup %7254 }
 0x838   :  { %3166 = vadd.xlane.f32.xlu1 %v9254_v55 }
 0x839   :  { %v9290_v18 = vpop.xlane.xlu0 %3098 }
 0x83b   :  { %v9257_v5 = vpop.eup %7256 }
 0x83c   :  { %3162 = vadd.xlane.f32.xlu1 %v9257_v5  ;;  %v9260_v53 = vpop.eup %7258 }
 0x83f   :  { %v9262_v26 = vpop.eup %7260 }
 0x840   :  { %11553 = vst [vmem:[#allocation72_spill] sm:$0xff] %v9262_v26  ;;  %3168 = vadd.xlane.f32.xlu1 %v9260_v53  ;;  %3164 = vadd.xlane.f32.xlu0 %v9262_v26  ;;  %v9266_v16 = vpop.eup %7262 }
 0x841   :  { %11554 = vst [vmem:[#allocation73_spill] sm:$0xff] %v9266_v16 }
 0x843   :  { %v9269_v31 = vpop.eup %7264 }
 0x844   :  { %3174 = vadd.xlane.f32.xlu0 %v9266_v16  ;;  %11555 = vst [vmem:[#allocation74_spill] sm:$0xff] %v9269_v31  ;;  %v9300_v16 = vpack.c.bf16 %v8801_v20, %v8789_v54 }
 0x848   :  { %3170 = vadd.xlane.f32.xlu0 %v9269_v31 }
 0x862   :  { %v3097_v51 = vpop.xlane.xlu1 %3096 }
 0x863   :  { %v3121_v34 = vsub.f32 %v9078_v9, %v3097_v51 }
 0x865   :  { %v3144_v62 = vmul.f32 1.442695, %v3121_v34 }
 0x866   :  { %v3093_v45 = vpop.xlane.xlu1 %3092 }
 0x867   :  { %7266 = vpow2.f32 %v3144_v62  ;;  %v3119_v63 = vsub.f32 %v9089_v42, %v3093_v45 }
 0x869   :  { %v3140_v35 = vmul.f32 1.442695, %v3119_v63  ;;  %v9296_v63 = vpop.xlane.xlu0 %3112 }
 0x86a   :  { %v9276_v56 = vpop.xlane.xlu1 %3104 }
 0x86b   :  { %7268 = vpow2.f32 %v3140_v35 }
 0x86e   :  { %v9278_v50 = vpop.xlane.xlu1 %3100 }
 0x86f   :  { %v6394_v51 = vpop.f32.mrf.mxu0 }
 0x870   :  { %v9294_v45 = vmul.f32 0.125, %v6394_v51 }
 0x871   :  { %v9292_v62 = vpop.f32.mrf.mxu0 }
 0x872   :  { %v9280_v52 = vpop.xlane.xlu1 %3110  ;;  %11559 = vst [vmem:[#allocation78_spill] sm:$0xff] %v9292_v62  ;;  %11560 = vst [vmem:[#allocation79_spill] sm:$0xff] %v9294_v45 }
 0x873   :  { %v6395_v35 = vpop.f32.mrf.mxu0 }
 0x874   :  { %v9282_v36 = vpop.eup %7266  ;;  %v9302_v31 = vmul.f32 0.125, %v6395_v35 }
 0x875   :  { %11557 = vst [vmem:[#allocation76_spill] sm:$0xff] %v9282_v36  ;;  %3176 = vadd.xlane.f32.xlu0 %v9282_v36  ;;  %v9306_v44 = vpop.f32.mrf.mxu0 }
 0x876   :  { %v9285_v2 = vpop.xlane.xlu1 %3106  ;;  %11561 = vst [vmem:[#allocation80_spill] sm:$0xff] %v9302_v31  ;;  %11563 = vst [vmem:[#allocation82_spill] sm:$0xff] %v9306_v44 }
 0x878   :  { %v9287_v9 = vpop.eup %7268 }
 0x879   :  { %11558 = vst [vmem:[#allocation77_spill] sm:$0xff] %v9287_v9  ;;  %3172 = vadd.xlane.f32.xlu1 %v9287_v9  ;;  %v9304_v9 = vpack.c.bf16 %v6395_v35, %v6394_v51  ;;  %v6398_v20 = vpop.f32.mrf.mxu0  ;;  %v9316_v51 = vpack.c.bf16 %v8778_v0, %v8766_v24  ;;  %v3124_v24 = vsub.f32 %v9020_v33, %v3103_v47 }
 0x87a   :  { %v3109_v42 = vpop.xlane.xlu1 %3108 }
 0x87b   :  { %11562 = vst [vmem:[#allocation81_spill] sm:$0xff] %v9304_v9  ;;  %11564 = vst [vmem:[#allocation83_spill] sm:$0xff] %v9316_v51  ;;  %v9318_v44 = vpop.f32.mrf.mxu0  ;;  %v9320_v9 = vmul.f32 0.125, %v6398_v20 }
 0x87c   :  { %11565 = vst [vmem:[#allocation84_spill] sm:$0xff] %v9318_v44 }
 0x87d   :  { %11566 = vst [vmem:[#allocation85_spill] sm:$0xff] %v9320_v9  ;;  %v6399_v62 = vpop.f32.mrf.mxu0 }
 0x87e   :  { %v9324_v45 = vmul.f32 0.125, %v6399_v62  ;;  %v9326_v31 = vpack.c.bf16 %v6399_v62, %v6398_v20 }
 0x87f   :  { %v9328_v54 = vpop.f32.mrf.mxu0 }
 0x880   :  { %11567 = vst [vmem:[#allocation86_spill] sm:$0xff] %v9324_v45  ;;  %11568 = vst [vmem:[#allocation87_spill] sm:$0xff] %v9326_v31  ;;  %v3122_v45 = vsub.f32 %v9025_v6, %v9290_v18 }
 0x881   :  { %v2709_v41 = vpop.xlane.xlu1 %2708  ;;  %11569 = vst [vmem:[#allocation88_spill] sm:$0xff] %v9328_v54  ;;  %v6402_v44 = vpop.f32.mrf.mxu0  ;;  %v3127_v54 = vsub.f32 %v9137_v30, %v3109_v42 }
 0x885   :  { %v2705_v34 = vpop.xlane.xlu1 %2704 }
 0x889   :  { %v2711_v36 = vpop.xlane.xlu1 %2710 }
 0x88a   :  { %3371 = vrot.lane.b32.xlu1 %v9300_v16, %s7628_s4  ;;  %7270 = vrcp.f32 %v2711_v36 }
 0x88b   :  { %3369 = vrot.lane.b32.xlu0 %v8776_v57, %s7628_s4  ;;  %v2717_v26 = vpop.xlane.xlu0 %2716  ;;  %7272 = vrcp.f32 %v2705_v34  ;;  %v9335_v57 = vmul.f32 0.125, %v6402_v44 }
 0x88c   :  { %7274 = vrcp.f32 %v2709_v41 }
 0x88d   :  { %v2707_v35 = vpop.xlane.xlu1 %2706  ;;  %11571 = vst [vmem:[#allocation90_spill] sm:$0xff] %v9335_v57 }
 0x88e   :  { %7276 = vrcp.f32 %v2707_v35 }
 0x88f   :  { %3367 = vrot.lane.b32.xlu0 %v9316_v51, %s7628_s4  ;;  %v2719_v36 = vpop.xlane.xlu0 %2718  ;;  %v9332_v51 = vpop.f32.mrf.mxu0 }
 0x890   :  { %11570 = vst [vmem:[#allocation89_spill] sm:$0xff] %v9332_v51 }
 0x891   :  { %v2713_v34 = vpop.xlane.xlu1 %2712  ;;  %v6403_v20 = vpop.f32.mrf.mxu0 }
 0x892   :  { %7278 = vrcp.f32 %v2713_v34  ;;  %v9338_v34 = vmul.f32 0.125, %v6403_v20  ;;  %v9340_v31 = vpack.c.bf16 %v6403_v20, %v6402_v44  ;;  %v3156_v44 = vmul.f32 1.442695, %v3127_v54 }
 0x893   :  { %7280 = vrcp.f32 %v2719_v36  ;;  %v2715_v35 = vpop.xlane.xlu0 %2714  ;;  %v9346_v47 = vpop.f32.mrf.mxu0 }
 0x894   :  { %7282 = vrcp.f32 %v2715_v35  ;;  %11572 = vst [vmem:[#allocation91_spill] sm:$0xff] %v9338_v34  ;;  %11573 = vst [vmem:[#allocation92_spill] sm:$0xff] %v9340_v31 }
 0x895   :  { %7284 = vrcp.f32 %v2717_v26  ;;  %v2725_v0 = vpop.xlane.xlu1 %2724  ;;  %v3150_v26 = vmul.f32 1.442695, %v3124_v24  ;;  %v6406_v31 = vpop.f32.mrf.mxu0 }
 0x897   :  { %v7271_v62 = vpop.eup %7270  ;;  %v9352_v57 = vpop.f32.mrf.mxu0 }
 0x898   :  { %v7273_v36 = vpop.eup %7272  ;;  %v2755_v30 = vmul.f32 %v7271_v62, %v9170_v7 }
 0x899   :  { %v2723_v41 = vpop.xlane.xlu0 %2722  ;;  %v2721_v9 = vpop.xlane.xlu1 %2720  ;;  %v2752_v42 = vmul.f32 %v7273_v36, %v9163_v4  ;;  %v3125_v4 = vsub.f32 %v9100_v32, %v9276_v56 }
 0x89a   :  { %v7275_v35 = vpop.eup %7274  ;;  %7286 = vrcp.f32 %v2723_v41  ;;  %v3146_v41 = vmul.f32 1.442695, %v3122_v45 }
 0x89b   :  { %v7277_v51 = vpop.eup %7276  ;;  %7288 = vrcp.f32 %v2721_v9  ;;  %v2754_v24 = vmul.f32 %v7275_v35, %v9152_v15  ;;  %v9354_v9 = vmul.f32 0.125, %v6406_v31  ;;  %v6407_v15 = vpop.f32.mrf.mxu0 }
 0x89c   :  { %v2753_v20 = vmul.f32 %v7277_v51, %v9185_v61  ;;  %7290 = vrcp.f32 %v2725_v0  ;;  %v9358_v45 = vmul.f32 0.125, %v6407_v15  ;;  %v9360_v62 = vpack.c.bf16 %v6407_v15, %v6406_v31 }
 0x89d   :  { %v2733_v6 = vpop.xlane.xlu0 %2732  ;;  %v2727_v18 = vpop.xlane.xlu1 %2726  ;;  %7292 = vpow2.f32 %v3150_v26  ;;  %v2769_v7 = vpack.c.bf16 %v2755_v30, %v2754_v24  ;;  %v3152_v31 = vmul.f32 1.442695, %v3125_v4  ;;  %v3123_v30 = vsub.f32 %v9110_v17, %v9278_v50 }
 0x89e   :  { %v2768_v33 = vpack.c.bf16 %v2753_v20, %v2752_v42  ;;  %7294 = vrcp.f32 %v2727_v18  ;;  %v9365_v32 = vpop.f32.mrf.mxu0  ;;  %v3128_v24 = vsub.f32 %v9116_v29, %v9280_v52  ;;  %v3126_v15 = vsub.f32 %v9130_v58, %v9285_v2 }
 0x89f   :  { %v7279_v34 = vpop.eup %7278  ;;  %7296 = vpow2.f32 %v3156_v44  ;;  %v3148_v50 = vmul.f32 1.442695, %v3123_v30 }
 0x8a0   :  { %v7281_v54 = vpop.eup %7280  ;;  %6616 = vmatprep.mubr.bf16.mxu0 %v2768_v33  ;;  %7298 = vpow2.f32 %v3146_v41  ;;  %v2756_v35 = vmul.f32 %v7279_v34, %v9194_v49  ;;  %v6410_v44 = vpop.f32.mrf.mxu0 }
 0x8a1   :  { %v7283_v0 = vpop.eup %7282  ;;  %v2735_v61 = vpop.xlane.xlu0 %2734  ;;  %6617 = vmatmul.mubr.bf16.vlgmr.msra.gmra.mxu0 %v2769_v7  ;;  %v2759_v56 = vmul.f32 %v7281_v54, %v9190_v13  ;;  %v9378_v20 = vmul.f32 0.125, %v6410_v44 }
 0x8a2   :  { %v2729_v51 = vpop.xlane.xlu1 %2728  ;;  %v7285_v36 = vpop.eup %7284  ;;  %6665 = vmatpush3.bf16.msra.mxu0 %v8814_v23  ;;  %v2757_v26 = vmul.f32 %v7283_v0, %v9200_v38  ;;  %7300 = vrcp.f32 %v2735_v61 }
 0x8a3   :  { %6666 = vmatprep.subr.bf16.mxu0 %v9035_v1  ;;  %7302 = vrcp.f32 %v2729_v51  ;;  %v2758_v38 = vmul.f32 %v7285_v36, %v9180_v19  ;;  %v9375_v34 = vpop.f32.mrf.mxu0  ;;  %11575 = vst [vmem:[#allocation94_spill] sm:$0xff] %v9378_v20 }
 0x8a4   :  { %v2770_v23 = vpack.c.bf16 %v2757_v26, %v2756_v35  ;;  %7304 = vrcp.f32 %v2733_v6  ;;  %11574 = vst [vmem:[#allocation93_spill] sm:$0xff] %v9375_v34 }
 0x8a5   :  { %v2731_v49 = vpop.xlane.xlu0 %2730  ;;  %v2771_v42 = vpack.c.bf16 %v2759_v56, %v2758_v38  ;;  %v6411_v6 = vpop.f32.mrf.mxu0  ;;  %v3129_v56 = vsub.f32 %v9032_v27, %v9296_v63 }
 0x8a6   :  { %7306 = vrcp.f32 %v2731_v49  ;;  %6667 = vmatpush3.bf16.msra.mxu0 %v9035_v1  ;;  %6620 = vmatprep.mubr.bf16.mxu0 %v2770_v23  ;;  %v9384_v18 = vmul.f32 0.125, %v6411_v6  ;;  %v9386_v41 = vpack.c.bf16 %v6411_v6, %v6410_v44 }
 0x8a7   :  { %v7287_v13 = vpop.eup %7286  ;;  %6668 = vmatprep.subr.bf16.mxu0 %v9040_v39  ;;  %7308 = vpow2.f32 %v3152_v31  ;;  %v9389_v54 = vpop.f32.mrf.mxu0  ;;  %v3160_v38 = vmul.f32 1.442695, %v3129_v56 }
 0x8a8   :  { %v7289_v17 = vpop.eup %7288  ;;  %v2761_v19 = vmul.f32 %v7287_v13, %v9213_v59  ;;  %11576 = vst [vmem:[#allocation95_spill] sm:$0xff] %v9384_v18  ;;  %11577 = vst [vmem:[#allocation96_spill] sm:$0xff] %v9386_v41  ;;  %7310 = vpow2.f32 %v3148_v50 }
 0x8a9   :  { %6621 = vmatmul.mubr.bf16.gmra.mxu0 %v2771_v42  ;;  %v2760_v1 = vmul.f32 %v7289_v17, %v9211_v60  ;;  %v7291_v7 = vpop.eup %7290  ;;  %11578 = vst [vmem:[#allocation97_spill] sm:$0xff] %v9389_v54  ;;  %v3158_v60 = vmul.f32 1.442695, %v3128_v24  ;;  %v6414_v0 = vpop.f32.mrf.mxu0 }
 0x8aa   :  { %6669 = vmatpush3.bf16.msra.mxu0 %v9040_v39  ;;  %v9391_v4 = vpop.eup %7292  ;;  %v2762_v39 = vmul.f32 %v7291_v7, %v9207_v40  ;;  %v9409_v58 = vmul.f32 0.125, %v6414_v0  ;;  %v3154_v40 = vmul.f32 1.442695, %v3126_v15 }
 0x8ab   :  { %6670 = vmatprep.subr.bf16.mxu0 %v9047_v43  ;;  %v2772_v29 = vpack.c.bf16 %v2761_v19, %v2760_v1  ;;  %v7295_v52 = vpop.eup %7294  ;;  %v9404_v36 = vpop.f32.mrf.mxu0  ;;  %7312 = vpow2.f32 %v3158_v60  ;;  %v9455_v60 = vpack.c.bf16 %v8755_v25, %v8737_v22 }
 0x8ac   :  { %v9398_v61 = vpop.eup %7296  ;;  %v2763_v51 = vmul.f32 %v7295_v52, %v9223_v37  ;;  %11579 = vst [vmem:[#allocation98_spill] sm:$0xff] %v9404_v36  ;;  %11580 = vst [vmem:[#allocation99_spill] sm:$0xff] %v9409_v58  ;;  %7314 = vpow2.f32 %v3154_v40 }
 0x8ad   :  { %6624 = vmatprep.mubr.bf16.mxu0 %v2772_v29  ;;  %v9406_v35 = vpop.eup %7298  ;;  %v6415_v37 = vpop.f32.mrf.mxu0  ;;  %7316 = vpow2.f32 %v3160_v38 }
 0x8ae   :  { %3182 = vadd.xlane.f32.xlu0 %v9391_v4  ;;  %3188 = vadd.xlane.f32.xlu1 %v9398_v61  ;;  %v2773_v26 = vpack.c.bf16 %v2763_v51, %v2762_v39  ;;  %v9414_v30 = vmul.f32 0.125, %v6415_v37  ;;  %v9416_v23 = vpack.c.bf16 %v6415_v37, %v6414_v0 }
 0x8af   :  { %6671 = vmatpush3.bf16.msra.mxu0 %v9047_v43  ;;  %v7301_v2 = vpop.eup %7300  ;;  %v9419_v43 = vpop.f32.mrf.mxu0 }
 0x8b0   :  { %6672 = vmatprep.subr.bf16.mxu0 %v9102_v28  ;;  %v7303_v31 = vpop.eup %7302  ;;  %11581 = vst [vmem:[#allocation100_spill] sm:$0xff] %v9414_v30  ;;  %11582 = vst [vmem:[#allocation101_spill] sm:$0xff] %v9419_v43  ;;  %v2767_v27 = vmul.f32 %v7301_v2, %v9231_v46 }
 0x8b1   :  { %6625 = vmatmul.mubr.bf16.gmra.mxu0 %v2773_v26  ;;  %v7305_v44 = vpop.eup %7304  ;;  %v2764_v13 = vmul.f32 %v7303_v31, %v9233_v21  ;;  %v6418_v17 = vpop.f32.mrf.mxu0 }
 0x8b2   :  { %3178 = vadd.xlane.f32.xlu0 %v9406_v35  ;;  %v2766_v24 = vmul.f32 %v7305_v44, %v9226_v12  ;;  %v9435_v6 = vmul.f32 0.125, %v6418_v17 }
 0x8b3   :  { %v7307_v49 = vpop.eup %7306  ;;  %6673 = vmatpush3.bf16.msra.mxu0 %v9102_v28  ;;  %v9432_v46 = vpop.f32.mrf.mxu0 }
 0x8b4   :  { %6674 = vmatprep.subr.bf16.mxu0 %v9061_v10  ;;  %v2765_v42 = vmul.f32 %v7307_v49, %v9244_v14  ;;  %v9428_v50 = vpop.eup %7308  ;;  %11583 = vst [vmem:[#allocation102_spill] sm:$0xff] %v9432_v46  ;;  %v2775_v19 = vpack.c.bf16 %v2767_v27, %v2766_v24  ;;  %11584 = vst [vmem:[#allocation103_spill] sm:$0xff] %v9435_v6  ;;  %v11590_v49 = vld [vmem:[#allocation52_spill] sm:$0xff] }
 0x8b5   :  { %v6419_v21 = vpop.f32.mrf.mxu0  ;;  %v9438_v14 = vpop.eup %7310 }
 0x8b6   :  { %3184 = vadd.xlane.f32.xlu0 %v9428_v50  ;;  %v2774_v28 = vpack.c.bf16 %v2765_v42, %v2764_v13  ;;  %v9440_v1 = vmul.f32 0.125, %v6419_v21  ;;  %v9442_v12 = vpack.c.bf16 %v6419_v21, %v6418_v17 }
 0x8b7   :  { %6675 = vmatpush3.bf16.msra.mxu0 %v9061_v10  ;;  %v9445_v7 = vpop.f32.mrf.mxu0 }
 0x8b8   :  { %6676 = vmatprep.subr.bf16.mxu0 %v9069_v11  ;;  %6628 = vmatprep.mubr.bf16.mxu0 %v2774_v28  ;;  %11585 = vst [vmem:[#allocation104_spill] sm:$0xff] %v9440_v1  ;;  %11586 = vst [vmem:[#allocation105_spill] sm:$0xff] %v9445_v7  ;;  %v9451_v52 = vpop.eup %7312 }
 0x8b9   :  { %6629 = vmatmul.mubr.bf16.gmra.mxu0 %v2775_v19  ;;  %v6422_v29 = vpop.f32.mrf.mxu0  ;;  %v9467_v39 = vpop.eup %7314 }
 0x8ba   :  { %3180 = vadd.xlane.f32.xlu0 %v9438_v14  ;;  %v9480_v37 = vpop.eup %7316 }
 0x8bb   :  { %6677 = vmatpush3.bf16.msra.mxu0 %v9069_v11  ;;  %v9458_v15 = vpop.f32.mrf.mxu0  ;;  %v9463_v11 = vmul.f32 0.125, %v6422_v29 }
 0x8bc   :  { %6678 = vmatprep.subr.bf16.mxu0 %v9083_v8 }
 0x8bd   :  { %11587 = vst [vmem:[#allocation106_spill] sm:$0xff] %v9463_v11  ;;  %v6423_v0 = vpop.f32.mrf.mxu0 }
 0x8be   :  { %3190 = vadd.xlane.f32.xlu0 %v9451_v52  ;;  %v9469_v26 = vmul.f32 0.125, %v6423_v0  ;;  %v9471_v2 = vpack.c.bf16 %v6423_v0, %v6422_v29 }
 0x8bf   :  { %6679 = vmatpush3.bf16.msra.mxu0 %v9083_v8  ;;  %3363 = vrot.lane.b32.xlu1 %v9455_v60, %s7628_s4  ;;  %v9474_v56 = vpop.f32.mrf.mxu0 }
 0x8c0   :  { %6984 = vmatprep.subr.msk.bf16.mxu0 %vm11588_vm8, %v9092_v3  ;;  %11589 = vst [vmem:[#allocation107_spill] sm:$0xff] %v9469_v26  ;;  %vm11623_vm8 = vmmov %vm11621_vm0 }
 0x8c1   :  { %v3167_v51 = vpop.xlane.xlu1 %3166  ;;  %v6426_v40 = vpop.f32.mrf.mxu0 }
 0x8c2   :  { %3186 = vadd.xlane.f32.xlu0 %v9467_v39  ;;  %7318 = vrcp.f32 %v3167_v51  ;;  %v9485_v27 = vmul.f32 0.125, %v6426_v40 }
 0x8c3   :  { %3704 = vrot.lane.b32.xlu1 %v8833_v48, %s7629_s5  ;;  %v1168_v44 = vpop.f32.mrf.mxu0 }
 0x8c4   :  { %11591 = vst [vmem:[#allocation52_spill] sm:$0xff] %v9485_v27  ;;  %v9487_v48 = vmul.f32 0.125, %v1168_v44 }
 0x8c5   :  { %v3163_v31 = vpop.xlane.xlu1 %3162  ;;  %v6427_v38 = vpop.f32.mrf.mxu0 }
 0x8c6   :  { %3192 = vadd.xlane.f32.xlu0 %v9480_v37  ;;  %7320 = vrcp.f32 %v3163_v31  ;;  %11592 = vst [vmem:[#allocation108_spill] sm:$0xff] %v9487_v48  ;;  %v9489_v42 = vmul.f32 0.125, %v6427_v38  ;;  %v9491_v17 = vpack.c.bf16 %v6427_v38, %v6426_v40 }
 0x8c7   :  { %3694 = vrot.lane.b32.xlu1 %v11590_v49, %s7629_s5  ;;  %v1171_v28 = vpop.f32.mrf.mxu0 }
 0x8c8   :  { %11593 = vst [vmem:[#allocation109_spill] sm:$0xff] %v9489_v42  ;;  %11594 = vst [vmem:[#allocation110_spill] sm:$0xff] %v9491_v17  ;;  %v9495_v21 = vmul.f32 0.125, %v1171_v28  ;;  %v9497_v29 = vpack.c.bf16 %v1171_v28, %v1168_v44 }
 0x8c9   :  { %v3169_v13 = vpop.xlane.xlu1 %3168  ;;  %v3165_v24 = vpop.xlane.xlu0 %3164 }
 0x8ca   :  { %7322 = vrcp.f32 %v3169_v13  ;;  %11595 = vst [vmem:[#allocation111_spill] sm:$0xff] %v9495_v21  ;;  %11596 = vst [vmem:[#allocation112_spill] sm:$0xff] %v9497_v29  ;;  %v6430_v0 = vpop.f32.mrf.mxu0 }
 0x8cb   :  { %7324 = vrcp.f32 %v3165_v24  ;;  %v9501_v8 = vmul.f32 0.125, %v6430_v0 }
 0x8cc   :  { %v1184_v31 = vpop.f32.mrf.mxu0 }
 0x8cd   :  { %11597 = vst [vmem:[#allocation113_spill] sm:$0xff] %v9501_v8  ;;  %v9503_v38 = vmul.f32 0.125, %v1184_v31 }
 0x8ce   :  { %v6431_v40 = vpop.f32.mrf.mxu0 }
 0x8cf   :  { %11598 = vst [vmem:[#allocation114_spill] sm:$0xff] %v9503_v38  ;;  %v9505_v13 = vmul.f32 0.125, %v6431_v40  ;;  %v9507_v24 = vpack.c.bf16 %v6431_v40, %v6430_v0  ;;  %v7319_v63 = vpop.eup %7318 }
 0x8d0   :  { %v1187_v10 = vpop.f32.mrf.mxu0  ;;  %v3212_v40 = vmul.f32 %v7319_v63, %v9254_v55  ;;  %v3425_v63 = vsel %vm11610_vm4, %v9092_v3, 0  ;;  %v11618_v3 = vld [vmem:[#allocation58_spill] sm:$0xff]  ;;  %vm11624_vm4 = vmmov %vm11621_vm0 }
 0x8d1   :  { %11599 = vst [vmem:[#allocation115_spill] sm:$0xff] %v9505_v13  ;;  %11600 = vst [vmem:[#allocation116_spill] sm:$0xff] %v9507_v24  ;;  %v9511_v44 = vmul.f32 0.125, %v1187_v10  ;;  %v9513_v28 = vpack.c.bf16 %v1187_v10, %v1184_v31  ;;  %v11604_v10 = vld [vmem:[#allocation72_spill] sm:$0xff]  ;;  %v11713_v24 = vld [vmem:[#allocation11_spill] sm:$0xff] }
 0x8d2   :  { %v6434_v51 = vpop.f32.mrf.mxu0 }
 0x8d3   :  { %11601 = vst [vmem:[#allocation117_spill] sm:$0xff] %v9511_v44  ;;  %11602 = vst [vmem:[#allocation118_spill] sm:$0xff] %v9513_v28  ;;  %v7321_v59 = vpop.eup %7320  ;;  %v9517_v48 = vmul.f32 0.125, %v6434_v51  ;;  %v11631_v28 = vld [vmem:[#allocation73_spill] sm:$0xff] }
 0x8d4   :  { %v1200_v27 = vpop.f32.mrf.mxu0  ;;  %v3210_v19 = vmul.f32 %v7321_v59, %v9257_v5 }
 0x8d5   :  { %11603 = vst [vmem:[#allocation119_spill] sm:$0xff] %v9517_v48  ;;  %v9523_v13 = vmul.f32 0.125, %v1200_v27 }
 0x8d6   :  { %v6435_v8 = vpop.f32.mrf.mxu0 }
 0x8d7   :  { %v7323_v42 = vpop.eup %7322  ;;  %11605 = vst [vmem:[#allocation72_spill] sm:$0xff] %v9523_v13  ;;  %v9525_v29 = vmul.f32 0.125, %v6435_v8  ;;  %v9527_v17 = vpack.c.bf16 %v6435_v8, %v6434_v51  ;;  %v11709_v13 = vld [vmem:[#allocation8_spill] sm:$0xff] }
 0x8d8   :  { %v7325_v0 = vpop.eup %7324  ;;  %v3213_v21 = vmul.f32 %v7323_v42, %v9260_v53  ;;  %v1203_v38 = vpop.f32.mrf.mxu0 }
 0x8d9   :  { %v3211_v31 = vmul.f32 %v7325_v0, %v11604_v10  ;;  %11606 = vst [vmem:[#allocation120_spill] sm:$0xff] %v9525_v29  ;;  %11607 = vst [vmem:[#allocation121_spill] sm:$0xff] %v9527_v17  ;;  %v9531_v55 = vmul.f32 0.125, %v1203_v38  ;;  %v9533_v53 = vpack.c.bf16 %v1203_v38, %v1200_v27  ;;  %v11615_v27 = vld [vmem:[#allocation61_spill] sm:$0xff]  ;;  %v11622_v0 = vld [vmem:[#allocation55_spill] sm:$0xff]  ;;  %v3175_v10 = vpop.xlane.xlu0 %3174 }
 0x8da   :  { %v3227_v33 = vpack.c.bf16 %v3213_v21, %v3212_v40  ;;  %v6438_v5 = vpop.f32.mrf.mxu0 }
 0x8db   :  { %v3226_v44 = vpack.c.bf16 %v3211_v31, %v3210_v19  ;;  %11608 = vst [vmem:[#allocation122_spill] sm:$0xff] %v9531_v55  ;;  %11609 = vst [vmem:[#allocation123_spill] sm:$0xff] %v9533_v53  ;;  %v9543_v42 = vmul.f32 0.125, %v6438_v5  ;;  %v11613_v19 = vld [vmem:[#allocation71_spill] sm:$0xff]  ;;  %v11711_v55 = vld [vmem:[#allocation13_spill] sm:$0xff] }
 0x8dc   :  { %3365 = vrot.lane.b32.xlu0 %v11590_v49, %s7628_s4  ;;  %v9541_v8 = vpop.f32.mrf.mxu0  ;;  %v3422_v38 = vsel %vm11619_vm2, %v11613_v19, 0  ;;  %vm11626_vm2 = vmmov %vm11621_vm0 }
 0x8dd   :  { %6680 = vmatprep.mubr.bf16.mxu0 %v3226_v44  ;;  %11611 = vst [vmem:[#allocation124_spill] sm:$0xff] %v9541_v8  ;;  %11612 = vst [vmem:[#allocation125_spill] sm:$0xff] %v9543_v42  ;;  %v11620_v44 = vld [vmem:[#allocation75_spill] sm:$0xff]  ;;  %v3171_v31 = vpop.xlane.xlu0 %3170 }
 0x8de   :  { %6681 = vmatmul.mubr.bf16.vlgmr.msra.gmra.mxu0 %v3227_v33  ;;  %v6439_v49 = vpop.f32.mrf.mxu0  ;;  %v3419_v40 = vsel %vm11623_vm8, %v11620_v44, 0  ;;  %vm11628_vm8 = vmmov %vm11621_vm0  ;;  %v11630_v33 = vld [vmem:[#allocation77_spill] sm:$0xff]  ;;  %v11717_v8 = vld [vmem:[#allocation87_spill] sm:$0xff] }
 0x8df   :  { %6697 = vmatpush3.bf16.xpose.msra.mxu0 %v3425_v63  ;;  %v9549_v21 = vmul.f32 0.125, %v6439_v49  ;;  %v9551_v51 = vpack.c.bf16 %v6439_v49, %v6438_v5 }
 0x8e0   :  { %6985 = vmatprep.subr.msk.bf16.mxu0 %vm11614_vm11, %v11613_v19  ;;  %3706 = vrot.lane.b32.xlu0 %v11615_v27, %s7629_s5  ;;  %vm11625_vm11 = vmmov %vm11621_vm0 }
 0x8e1   :  { %11616 = vst [vmem:[#allocation71_spill] sm:$0xff] %v9549_v21  ;;  %11617 = vst [vmem:[#allocation61_spill] sm:$0xff] %v9551_v51 }
 0x8e4   :  { %3702 = vrot.lane.b32.xlu0 %v11618_v3, %s7629_s5 }
 0x8e7   :  { %6699 = vmatpush3.bf16.xpose.msra.mxu0 %v3422_v38 }
 0x8e8   :  { %6986 = vmatprep.subr.msk.bf16.mxu0 %vm11621_vm0, %v11620_v44  ;;  %3700 = vrot.lane.b32.xlu0 %v9300_v16, %s7629_s5 }
 0x8ec   :  { %3698 = vrot.lane.b32.xlu0 %v11622_v0, %s7629_s5 }
 0x8ef   :  { %6701 = vmatpush3.bf16.xpose.msra.mxu0 %v3419_v40 }
 0x8fe   :  { %v3177_v5 = vpop.xlane.xlu0 %3176 }
 0x8ff   :  { %7326 = vrcp.f32 %v3177_v5  ;;  %v11629_v5 = vld [vmem:[#allocation74_spill] sm:$0xff] }
 0x900   :  { %7328 = vrcp.f32 %v3171_v31 }
 0x901   :  { %7330 = vrcp.f32 %v3175_v10  ;;  %v11627_v10 = vld [vmem:[#allocation76_spill] sm:$0xff] }
 0x902   :  { %v3173_v63 = vpop.xlane.xlu1 %3172  ;;  %v3370_v27 = vpop.permute.xlu0 %3369 }
 0x903   :  { %7332 = vrcp.f32 %v3173_v63  ;;  %v3413_v44 = vsel %vm11621_vm0, %v3370_v27, 0 }
 0x906   :  { %v3372_v19 = vpop.permute.xlu1 %3371  ;;  %v3368_v40 = vpop.permute.xlu0 %3367 }
 0x907   :  { %6987 = vmatprep.subr.msk.bf16.mxu0 %vm11624_vm4, %v3372_v19  ;;  %v3416_v16 = vsel %vm11625_vm11, %v3372_v19, 0  ;;  %vm11632_vm4 = vmmov %vm11621_vm0 }
 0x908   :  { %6703 = vmatpush3.bf16.xpose.msra.mxu0 %v3416_v16  ;;  %v3410_v21 = vsel %vm11632_vm4, %v3368_v40, 0  ;;  %vm11633_vm11 = vmmov %vm11621_vm0 }
 0x909   :  { %6988 = vmatprep.subr.msk.bf16.mxu0 %vm11626_vm2, %v3370_v27  ;;  %vm11634_vm2 = vmmov %vm11621_vm0 }
 0x90a   :  { %vm11636_vm4 = vmmov %vm11621_vm0 }
 0x90c   :  { %v7327_v49 = vpop.eup %7326 }
 0x90d   :  { %v7329_v3 = vpop.eup %7328  ;;  %v3217_v31 = vmul.f32 %v7327_v49, %v11627_v10 }
 0x90e   :  { %v7331_v38 = vpop.eup %7330  ;;  %v3214_v63 = vmul.f32 %v7329_v3, %v11629_v5 }
 0x90f   :  { %v3216_v16 = vmul.f32 %v7331_v38, %v11631_v28 }
 0x910   :  { %v7333_v0 = vpop.eup %7332  ;;  %6705 = vmatpush3.bf16.xpose.msra.mxu0 %v3413_v44 }
 0x911   :  { %6989 = vmatprep.subr.msk.bf16.mxu0 %vm11628_vm8, %v3368_v40  ;;  %v3215_v19 = vmul.f32 %v7333_v0, %v11630_v33  ;;  %v3229_v42 = vpack.c.bf16 %v3217_v31, %v3216_v16  ;;  %vm11635_vm8 = vmmov %vm11621_vm0 }
 0x913   :  { %v3228_v59 = vpack.c.bf16 %v3215_v19, %v3214_v63 }
 0x915   :  { %6684 = vmatprep.mubr.bf16.mxu0 %v3228_v59 }
 0x916   :  { %6685 = vmatmul.mubr.bf16.gmra.mxu0 %v3229_v42 }
 0x918   :  { %6707 = vmatpush3.bf16.xpose.msra.mxu0 %v3410_v21 }
 0x937   :  { %v3183_v27 = vpop.xlane.xlu0 %3182  ;;  %v3189_v3 = vpop.xlane.xlu1 %3188 }
 0x93b   :  { %v3179_v48 = vpop.xlane.xlu0 %3178  ;;  %v3364_v31 = vpop.permute.xlu1 %3363 }
 0x93f   :  { %v3185_v44 = vpop.xlane.xlu0 %3184 }
 0x940   :  { %7334 = vrcp.f32 %v3185_v44 }
 0x941   :  { %7336 = vrcp.f32 %v3179_v48 }
 0x942   :  { %7338 = vrcp.f32 %v3183_v27 }
 0x943   :  { %v3181_v49 = vpop.xlane.xlu0 %3180 }
 0x944   :  { %7340 = vrcp.f32 %v3181_v49 }
 0x945   :  { %7342 = vrcp.f32 %v3189_v3 }
 0x947   :  { %v3191_v10 = vpop.xlane.xlu0 %3190 }
 0x94b   :  { %v3187_v33 = vpop.xlane.xlu0 %3186 }
 0x94c   :  { %7344 = vrcp.f32 %v3187_v33  ;;  %v3404_v33 = vsel %vm11635_vm8, %v3364_v31, 0  ;;  %vm11649_vm8 = vmmov %vm11621_vm0 }
 0x94d   :  { %v7335_v28 = vpop.eup %7334  ;;  %7346 = vrcp.f32 %v3191_v10 }
 0x94e   :  { %v7337_v59 = vpop.eup %7336  ;;  %v3221_v0 = vmul.f32 %v7335_v28, %v9428_v50 }
 0x94f   :  { %v3193_v42 = vpop.xlane.xlu0 %3192  ;;  %v7339_v38 = vpop.eup %7338  ;;  %v3218_v40 = vmul.f32 %v7337_v59, %v9406_v35 }
 0x950   :  { %7348 = vrcp.f32 %v3193_v42  ;;  %v3220_v63 = vmul.f32 %v7339_v38, %v9391_v4  ;;  %v1295_v42 = vmul.f32 0.125, %v8737_v22  ;;  %v1296_v38 = vmul.f32 0.125, %v8755_v25 }
 0x951   :  { %v7341_v21 = vpop.eup %7340 }
 0x952   :  { %v3219_v48 = vmul.f32 %v7341_v21, %v9438_v14  ;;  %v3231_v27 = vpack.c.bf16 %v3221_v0, %v3220_v63  ;;  %v7343_v44 = vpop.eup %7342  ;;  %v3705_v14 = vpop.permute.xlu1 %3704 }
 0x953   :  { %v3366_v5 = vpop.permute.xlu0 %3365  ;;  %v3223_v49 = vmul.f32 %v7343_v44, %v9398_v61  ;;  %v11645_v44 = vld [vmem:[#allocation59_spill] sm:$0xff] }
 0x954   :  { %6990 = vmatprep.subr.msk.bf16.mxu0 %vm11633_vm11, %v3366_v5  ;;  %v3407_v19 = vsel %vm11634_vm2, %v3366_v5, 0  ;;  %v3230_v16 = vpack.c.bf16 %v3219_v48, %v3218_v40  ;;  %v1391_v40 = vpack.c.bf16 %v1296_v38, %v1295_v42  ;;  %v11637_v48 = vld [vmem:[#allocation53_spill] sm:$0xff]  ;;  %vm11642_vm11 = vmmov %vm11621_vm0  ;;  %v11653_v38 = vld [vmem:[#allocation22_spill] sm:$0xff] }
 0x955   :  { %6709 = vmatpush3.bf16.xpose.msra.mxu0 %v3407_v19  ;;  %v1299_v22 = vmul.f32 0.125, %v11637_v48  ;;  %v11640_v19 = vld [vmem:[#allocation50_spill] sm:$0xff]  ;;  %vm11643_vm2 = vmmov %vm11621_vm0  ;;  %v11652_v42 = vld [vmem:[#allocation57_spill] sm:$0xff] }
 0x956   :  { %6688 = vmatprep.mubr.bf16.mxu0 %v3230_v16  ;;  %6991 = vmatprep.subr.msk.bf16.mxu0 %vm11621_vm0, %v3364_v31  ;;  %v11638_v31 = vld [vmem:[#allocation56_spill] sm:$0xff]  ;;  %v11644_v16 = vld [vmem:[#allocation23_spill] sm:$0xff]  ;;  %v3695_v11 = vpop.permute.xlu1 %3694 }
 0x957   :  { %v3707_v50 = vpop.permute.xlu0 %3706  ;;  %6689 = vmatmul.mubr.bf16.gmra.mxu0 %v3231_v27  ;;  %v1300_v25 = vmul.f32 0.125, %v11638_v31  ;;  %v1303_v27 = vmul.f32 0.125, %v11644_v16 }
 0x958   :  { %6728 = vmatprep.subr.bf16.mxu1 %v3707_v50 }
 0x959   :  { %v7345_v35 = vpop.eup %7344  ;;  %6729 = vmatpush3.bf16.msra.mxu1 %v3707_v50  ;;  %v1393_v63 = vpack.c.bf16 %v1300_v25, %v1299_v22  ;;  %v1304_v50 = vmul.f32 0.125, %v11645_v44 }
 0x95a   :  { %6730 = vmatprep.subr.bf16.mxu1 %v3705_v14  ;;  %v3222_v4 = vmul.f32 %v7345_v35, %v9467_v39  ;;  %v7347_v3 = vpop.eup %7346 }
 0x95b   :  { %v3703_v10 = vpop.permute.xlu0 %3702  ;;  %v3224_v21 = vmul.f32 %v7347_v3, %v9451_v52  ;;  %v11639_v52 = vld [vmem:[#allocation51_spill] sm:$0xff]  ;;  %v1395_v35 = vpack.c.bf16 %v1304_v50, %v1303_v27  ;;  %v11650_v3 = vld [vmem:[#allocation25_spill] sm:$0xff] }
 0x95c   :  { %v3232_v28 = vpack.c.bf16 %v3223_v49, %v3222_v4  ;;  %v11647_v4 = vld [vmem:[#allocation54_spill] sm:$0xff] }
 0x95d   :  { %v7349_v59 = vpop.eup %7348  ;;  %6711 = vmatpush3.bf16.xpose.msra.mxu0 %v3404_v33  ;;  %6731 = vmatpush3.bf16.msra.mxu1 %v3705_v14  ;;  %v11646_v14 = vld [vmem:[#allocation21_spill] sm:$0xff]  ;;  %v11651_v33 = vld [vmem:[#allocation62_spill] sm:$0xff] }
 0x95e   :  { %6692 = vmatprep.mubr.bf16.mxu0 %v3232_v28  ;;  %6732 = vmatprep.subr.bf16.mxu1 %v3703_v10  ;;  %v3225_v39 = vmul.f32 %v7349_v59, %v9480_v37  ;;  %v11641_v37 = vpack.c.bf16 %v11639_v52, %v11640_v19  ;;  %v11648_v49 = vpack.c.bf16 %v11646_v14, %v11647_v4  ;;  %v1308_v28 = vmul.f32 0.125, %v11651_v33 }
 0x95f   :  { %v3701_v0 = vpop.permute.xlu0 %3700 }
 0x960   :  { %v3233_v61 = vpack.c.bf16 %v3225_v39, %v3224_v21  ;;  %v11654_v21 = vpack.c.bf16 %v11652_v42, %v11653_v38  ;;  %v11657_v39 = vld [vmem:[#allocation60_spill] sm:$0xff] }
 0x961   :  { %6733 = vmatpush3.bf16.msra.mxu1 %v3703_v10  ;;  %v1307_v10 = vmul.f32 0.125, %v11650_v3 }
 0x962   :  { %6693 = vmatmul.mubr.bf16.gmra.mxu0 %v3233_v61  ;;  %6734 = vmatprep.subr.bf16.mxu1 %v3701_v0 }
 0x963   :  { %6712 = vmatprep.mubr.msk.bf16.mxu0 %vm11636_vm4, %v1391_v40  ;;  %v3699_v5 = vpop.permute.xlu0 %3698  ;;  %v1397_v59 = vpack.c.bf16 %v1308_v28, %v1307_v10  ;;  %vm11655_vm4 = vmmov %vm11621_vm0  ;;  %v9617_v40 = vpop.f32.mrf.mxu0 }
 0x964   :  { %11661 = vst [vmem:[#allocation58_spill] sm:$0xff] %v9617_v40 }
 0x965   :  { %6735 = vmatpush3.bf16.msra.mxu1 %v3701_v0  ;;  %v11658_v0 = vld [vmem:[#allocation24_spill] sm:$0xff]  ;;  %v9619_v48 = vpop.f32.mrf.mxu0 }
 0x966   :  { %6736 = vmatprep.subr.bf16.mxu1 %v3699_v5  ;;  %v11659_v61 = vpack.c.bf16 %v11657_v39, %v11658_v0  ;;  %11662 = vst [vmem:[#allocation75_spill] sm:$0xff] %v9619_v48 }
 0x967   :  { %v9621_v22 = vpop.f32.mrf.mxu0 }
 0x968   :  { %11663 = vst [vmem:[#allocation55_spill] sm:$0xff] %v9621_v22  ;;  %v11707_v22 = vld [vmem:[#allocation7_spill] sm:$0xff] }
 0x969   :  { %6737 = vmatpush3.bf16.msra.mxu1 %v3699_v5  ;;  %v9623_v31 = vpop.f32.mrf.mxu0 }
 0x96a   :  { %6713 = vmatmul.mubr.msk.bf16.vlgmr.msra.gmra.mxu0 %vm11642_vm11, %v11641_v37  ;;  %vm11656_vm11 = vmmov %vm11621_vm0  ;;  %11664 = vst [vmem:[#allocation76_spill] sm:$0xff] %v9623_v31 }
 0x96b   :  { %6716 = vmatprep.mubr.msk.bf16.mxu0 %vm11643_vm2, %v1393_v63  ;;  %vm11660_vm2 = vmmov %vm11621_vm0  ;;  %v9625_v25 = vpop.f32.mrf.mxu0 }
 0x96c   :  { %11665 = vst [vmem:[#allocation74_spill] sm:$0xff] %v9625_v25 }
 0x96d   :  { %v9627_v5 = vpop.f32.mrf.mxu0 }
 0x96e   :  { %11666 = vst [vmem:[#allocation77_spill] sm:$0xff] %v9627_v5 }
 0x96f   :  { %v9629_v63 = vpop.f32.mrf.mxu0 }
 0x970   :  { %11667 = vst [vmem:[#allocation73_spill] sm:$0xff] %v9629_v63 }
 0x971   :  { %v9631_v52 = vpop.f32.mrf.mxu0 }
 0x972   :  { %6717 = vmatmul.mubr.msk.bf16.gmra.mxu0 %vm11621_vm0, %v11648_v49  ;;  %11668 = vst [vmem:[#allocation53_spill] sm:$0xff] %v9631_v52 }
 0x973   :  { %6720 = vmatprep.mubr.msk.bf16.mxu0 %vm11649_vm8, %v1395_v35  ;;  %v9633_v19 = vpop.f32.mrf.mxu0 }
 0x974   :  { %11669 = vst [vmem:[#allocation56_spill] sm:$0xff] %v9633_v19 }
 0x975   :  { %v9635_v37 = vpop.f32.mrf.mxu0 }
 0x976   :  { %11670 = vst [vmem:[#allocation51_spill] sm:$0xff] %v9635_v37  ;;  %v11702_v37 = vld [vmem:[#allocation19_spill] sm:$0xff] }
 0x977   :  { %v9637_v16 = vpop.f32.mrf.mxu0  ;;  %vm11703_vm0 = vnez %v11702_v37 }
 0x978   :  { %11671 = vst [vmem:[#allocation50_spill] sm:$0xff] %v9637_v16 }
 0x979   :  { %v9639_v27 = vpop.f32.mrf.mxu0 }
 0x97a   :  { %6721 = vmatmul.mubr.msk.bf16.gmra.mxu0 %vm11655_vm4, %v11654_v21  ;;  %11672 = vst [vmem:[#allocation23_spill] sm:$0xff] %v9639_v27  ;;  %vm11708_vm4 = vnez %v11707_v22 }
 0x97b   :  { %6724 = vmatprep.mubr.msk.bf16.mxu0 %vm11656_vm11, %v1397_v59  ;;  %v9641_v44 = vpop.f32.mrf.mxu0  ;;  %vm11710_vm11 = vnez %v11709_v13 }
 0x97c   :  { %11673 = vst [vmem:[#allocation59_spill] sm:$0xff] %v9641_v44 }
 0x97d   :  { %v9643_v50 = vpop.f32.mrf.mxu0 }
 0x97e   :  { %11674 = vst [vmem:[#allocation21_spill] sm:$0xff] %v9643_v50  ;;  %v11700_v50 = vld [vmem:[#allocation10_spill] sm:$0xff] }
 0x97f   :  { %v9645_v35 = vpop.f32.mrf.mxu0 }
 0x980   :  { %11675 = vst [vmem:[#allocation54_spill] sm:$0xff] %v9645_v35 }
 0x981   :  { %v9647_v14 = vpop.f32.mrf.mxu0 }
 0x982   :  { %6725 = vmatmul.mubr.msk.bf16.gmra.mxu0 %vm11660_vm2, %v11659_v61  ;;  %11676 = vst [vmem:[#allocation25_spill] sm:$0xff] %v9647_v14  ;;  %vm11712_vm2 = vnez %v11711_v55 }
 0x983   :  { %v9649_v4 = vpop.f32.mrf.mxu0 }
 0x984   :  { %11677 = vst [vmem:[#allocation62_spill] sm:$0xff] %v9649_v4 }
 0x99e   :  { %v9651_v49 = vpop.f32.mrf.mxu0 }
 0x99f   :  { %11678 = vst [vmem:[#allocation57_spill] sm:$0xff] %v9651_v49 }
 0x9a0   :  { %v9653_v3 = vpop.f32.mrf.mxu0 }
 0x9a1   :  { %11679 = vst [vmem:[#allocation22_spill] sm:$0xff] %v9653_v3  ;;  %v11699_v3 = vld [vmem:[#allocation9_spill] sm:$0xff] }
 0x9a2   :  { %v9655_v10 = vpop.f32.mrf.mxu0 }
 0x9a3   :  { %11680 = vst [vmem:[#allocation60_spill] sm:$0xff] %v9655_v10 }
 0x9a4   :  { %v9657_v33 = vpop.f32.mrf.mxu0 }
 0x9a5   :  { %11681 = vst [vmem:[#allocation24_spill] sm:$0xff] %v9657_v33 }
 0x9d6   :  { %v9659_v28 = vpop.f32.mrf.mxu0 }
 0x9d7   :  { %11682 = vst [vmem:[#allocation126_spill] sm:$0xff] %v9659_v28 }
 0x9d8   :  { %v9661_v59 = vpop.f32.mrf.mxu0 }
 0x9d9   :  { %11683 = vst [vmem:[#allocation127_spill] sm:$0xff] %v9661_v59 }
 0x9da   :  { %v9663_v42 = vpop.f32.mrf.mxu0 }
 0x9db   :  { %11684 = vst [vmem:[#allocation128_spill] sm:$0xff] %v9663_v42 }
 0x9dc   :  { %v9665_v38 = vpop.f32.mrf.mxu0 }
 0x9dd   :  { %11685 = vst [vmem:[#allocation129_spill] sm:$0xff] %v9665_v38 }
 0xa17   :  { %v9667_v21 = vpop.f32.mrf.mxu0 }
 0xa18   :  { %11686 = vst [vmem:[#allocation130_spill] sm:$0xff] %v9667_v21 }
 0xa19   :  { %v9669_v39 = vpop.f32.mrf.mxu0 }
 0xa1a   :  { %11687 = vst [vmem:[#allocation131_spill] sm:$0xff] %v9669_v39 }
 0xa1b   :  { %v9671_v0 = vpop.f32.mrf.mxu0 }
 0xa1c   :  { %11688 = vst [vmem:[#allocation132_spill] sm:$0xff] %v9671_v0 }
 0xa1d   :  { %v9673_v61 = vpop.f32.mrf.mxu0 }
 0xa1e   :  { %11689 = vst [vmem:[#allocation133_spill] sm:$0xff] %v9673_v61 }
 0xa22   :  { %v9675_v14 = vpop.f32.mrf.mxu0 }
 0xa23   :  { %11690 = vst [vmem:[#allocation134_spill] sm:$0xff] %v9675_v14 }
 0xa24   :  { %v9677_v10 = vpop.f32.mrf.mxu0 }
 0xa25   :  { %11691 = vst [vmem:[#allocation135_spill] sm:$0xff] %v9677_v10 }
 0xa26   :  { %v9679_v33 = vpop.f32.mrf.mxu0 }
 0xa27   :  { %11692 = vst [vmem:[#allocation136_spill] sm:$0xff] %v9679_v33 }
 0xa28   :  { %v9681_v4 = vpop.f32.mrf.mxu0 }
 0xa29   :  { %11693 = vst [vmem:[#allocation137_spill] sm:$0xff] %v9681_v4 }
 0xa2a   :  { %v6714_v27 = vpop.f32.mrf.mxu0 }
 0xa2b   :  { %v3526_v38 = vsel %vm7939_vm12, %v6714_v27, -1e+30 }
 0xa2c   :  { %3544 = vmax.xlane.f32.xlu0 %v3526_v38  ;;  %v3461_v44 = vpop.f32.mrf.mxu0 }
 0xa2d   :  { %v3524_v0 = vsel %vm7951_vm13, %v3461_v44, -1e+30 }
 0xa2e   :  { %v6715_v52 = vpop.f32.mrf.mxu0 }
 0xa2f   :  { %v3527_v4 = vsel %vm7964_vm15, %v6715_v52, -1e+30 }
 0xa30   :  { %3540 = vmax.xlane.f32.xlu0 %v3524_v0  ;;  %v3464_v61 = vpop.f32.mrf.mxu0 }
 0xa31   :  { %v3525_v14 = vsel %vm7957_vm14, %v3464_v61, -1e+30 }
 0xa32   :  { %3542 = vmax.xlane.f32.xlu1 %v3525_v14  ;;  %v6718_v10 = vpop.f32.mrf.mxu0 }
 0xa33   :  { %v9712_v16 = vsel %vm11703_vm0, %v6718_v10, -1e+30 }
 0xa34   :  { %3546 = vmax.xlane.f32.xlu0 %v3527_v4  ;;  %v3477_v25 = vpop.f32.mrf.mxu0 }
 0xa36   :  { %v6719_v21 = vpop.f32.mrf.mxu0 }
 0xa37   :  { %v9693_v39 = vsel %vm7995_vm1, %v6719_v21, -1e+30  ;;  %v11701_v21 = vld [vmem:[#allocation83_spill] sm:$0xff] }
 0xa38   :  { %3554 = vmax.xlane.f32.xlu1 %v9693_v39  ;;  %v3480_v44 = vpop.f32.mrf.mxu0 }
 0xa39   :  { %v9722_v48 = vsel %vm7881_vm3, %v3480_v44, -1e+30 }
 0xa3a   :  { %v6722_v28 = vpop.f32.mrf.mxu0 }
 0xa3b   :  { %v9727_v10 = vsel %vm11708_vm4, %v6722_v28, -1e+30 }
 0xa3c   :  { %v3493_v59 = vpop.f32.mrf.mxu0 }
 0xa3e   :  { %v6723_v49 = vpop.f32.mrf.mxu0 }
 0xa3f   :  { %v9698_v61 = vsel %vm11519_vm10, %v6723_v49, -1e+30  ;;  %v11704_v49 = vld [vmem:[#allocation5_spill] sm:$0xff] }
 0xa40   :  { %3562 = vmax.xlane.f32.xlu1 %v9698_v61  ;;  %v3496_v52 = vpop.f32.mrf.mxu0  ;;  %vm11705_vm8 = vnez %v11704_v49 }
 0xa41   :  { %v9703_v35 = vsel %vm11523_vm6, %v3496_v52, -1e+30  ;;  %v9717_v5 = vsel %vm11705_vm8, %v3477_v25, -1e+30  ;;  %v9732_v25 = vsel %vm11710_vm11, %v3493_v59, -1e+30 }
 0xa42   :  { %v6726_v52 = vpop.f32.mrf.mxu0  ;;  %v11715_v59 = vld [vmem:[#allocation12_spill] sm:$0xff] }
 0xa43   :  { %v9742_v28 = vsel %vm11525_vm7, %v6726_v52, -1e+30  ;;  %v9759_v52 = vpack.c.bf16 %v9365_v32, %v9352_v57 }
 0xa44   :  { %3558 = vmax.xlane.f32.xlu1 %v9703_v35 }
 0xa4a   :  { %3696 = vrot.lane.b32.xlu0 %v11701_v21, %s7629_s5  ;;  %v3509_v21 = vpop.f32.mrf.mxu0 }
 0xa4c   :  { %v6727_v29 = vpop.f32.mrf.mxu0 }
 0xa4d   :  { %v9736_v53 = vsel %vm11712_vm2, %v6727_v29, -1e+30  ;;  %v9752_v29 = vsel %vm11529_vm5, %v3509_v21, -1e+30 }
 0xa4e   :  { %v3512_v44 = vpop.f32.mrf.mxu0 }
 0xa4f   :  { %v9746_v40 = vsel %vm11531_vm9, %v3512_v44, -1e+30  ;;  %v11716_v44 = vld [vmem:[#allocation92_spill] sm:$0xff]  ;;  %vm11719_vm9 = vcmask 130048  }
 0xa50   :  { %vm11725_vm2 = vmmov %vm11719_vm9 }
 0xa51   :  { %vm11726_vm5 = vmmov %vm11725_vm2 }
 0xa52   :  { %vm11727_vm7 = vmmov %vm11725_vm2 }
 0xa53   :  { %vm11728_vm6 = vmmov %vm11725_vm2 }
 0xa54   :  { %vm11729_vm11 = vmmov %vm11725_vm2 }
 0xa55   :  { %3835 = vrot.lane.b32.xlu1 %v9360_v62, %s7628_s4  ;;  %vm11730_vm10 = vmmov %vm11725_vm2 }
 0xa56   :  { %vm11732_vm4 = vmmov %vm11725_vm2 }
 0xa69   :  { %3552 = vmax.xlane.f32.xlu0 %v9712_v16 }
 0xa6d   :  { %3548 = vmax.xlane.f32.xlu0 %v9717_v5 }
 0xa71   :  { %3550 = vmax.xlane.f32.xlu0 %v9722_v48 }
 0xa75   :  { %3560 = vmax.xlane.f32.xlu0 %v9727_v10 }
 0xa79   :  { %3556 = vmax.xlane.f32.xlu0 %v9732_v25  ;;  %3570 = vmax.xlane.f32.xlu1 %v9736_v53 }
 0xa7d   :  { %3568 = vmax.xlane.f32.xlu0 %v9742_v28  ;;  %3566 = vmax.xlane.f32.xlu1 %v9746_v40 }
 0xa81   :  { %3564 = vmax.xlane.f32.xlu0 %v9752_v29 }
 0xa97   :  { %3692 = vrot.lane.b32.xlu0 %v9455_v60, %s7629_s5 }
 0xa9b   :  { %3833 = vrot.lane.b32.xlu0 %v9759_v52, %s7628_s4 }
 0xa9f   :  { %3831 = vrot.lane.b32.xlu0 %v11716_v44, %s7628_s4 }
 0xaa3   :  { %3827 = vrot.lane.b32.xlu0 %v11717_v8, %s7628_s4 }
 0xab5   :  { %v3545_v21 = vpop.xlane.xlu0 %3544 }
 0xab6   :  { %v3574_v51 = vsub.f32 %v3526_v38, %v3545_v21 }
 0xab8   :  { %v3592_v26 = vmul.f32 1.442695, %v3574_v51 }
 0xab9   :  { %v3541_v6 = vpop.xlane.xlu0 %3540 }
 0xaba   :  { %7350 = vpow2.f32 %v3592_v26  ;;  %v3572_v60 = vsub.f32 %v3524_v0, %v3541_v6 }
 0xabb   :  { %v3543_v1 = vpop.xlane.xlu1 %3542 }
 0xabc   :  { %v3588_v58 = vmul.f32 1.442695, %v3572_v60  ;;  %v3573_v20 = vsub.f32 %v3525_v14, %v3543_v1 }
 0xabd   :  { %v3547_v30 = vpop.xlane.xlu0 %3546 }
 0xabe   :  { %7352 = vpow2.f32 %v3588_v58  ;;  %v3575_v18 = vsub.f32 %v3527_v4, %v3547_v30  ;;  %v3590_v41 = vmul.f32 1.442695, %v3573_v20 }
 0xac0   :  { %v3594_v54 = vmul.f32 1.442695, %v3575_v18 }
 0xac1   :  { %v3697_v34 = vpop.permute.xlu0 %3696 }
 0xac2   :  { %7354 = vpow2.f32 %v3594_v54  ;;  %6738 = vmatprep.subr.bf16.mxu1 %v3697_v34 }
 0xac3   :  { %6739 = vmatpush3.bf16.msra.mxu1 %v3697_v34  ;;  %7356 = vpow2.f32 %v3590_v41  ;;  %v11718_v34 = vld [vmem:[#allocation89_spill] sm:$0xff]  ;;  %v3555_v41 = vpop.xlane.xlu1 %3554 }
 0xac4   :  { %6740 = vmatprep.subr.bf16.mxu1 %v3695_v11  ;;  %v9781_v20 = vpack.c.bf16 %v9346_v47, %v11718_v34  ;;  %v3579_v26 = vsub.f32 %v9693_v39, %v3555_v41 }
 0xac6   :  { %v3602_v21 = vmul.f32 1.442695, %v3579_v26 }
 0xac7   :  { %v9767_v38 = vpop.eup %7350  ;;  %6741 = vmatpush3.bf16.msra.mxu1 %v3695_v11 }
 0xac8   :  { %3624 = vadd.xlane.f32.xlu1 %v9767_v38 }
 0xac9   :  { %v3563_v54 = vpop.xlane.xlu1 %3562 }
 0xaca   :  { %v3583_v41 = vsub.f32 %v9698_v61, %v3563_v54 }
 0xacb   :  { %v9770_v6 = vpop.eup %7352 }
 0xacc   :  { %3620 = vadd.xlane.f32.xlu1 %v9770_v6 }
 0xacd   :  { %v3559_v4 = vpop.xlane.xlu1 %3558 }
 0xacf   :  { %v9773_v58 = vpop.eup %7354 }
 0xad0   :  { %3626 = vadd.xlane.f32.xlu1 %v9773_v58  ;;  %v9776_v18 = vpop.eup %7356 }
 0xad1   :  { %v9789_v7 = vpop.permute.xlu1 %3835 }
 0xad4   :  { %3622 = vadd.xlane.f32.xlu1 %v9776_v18 }
 0xae5   :  { %3829 = vrot.lane.b32.xlu1 %v9781_v20, %s7628_s4 }
 0xaf2   :  { %v3553_v30 = vpop.xlane.xlu0 %3552 }
 0xaf3   :  { %v3578_v1 = vsub.f32 %v9712_v16, %v3553_v30 }
 0xaf5   :  { %v3600_v11 = vmul.f32 1.442695, %v3578_v1 }
 0xaf6   :  { %v3549_v51 = vpop.xlane.xlu0 %3548 }
 0xaf7   :  { %7358 = vpow2.f32 %v3600_v11  ;;  %v3576_v14 = vsub.f32 %v9717_v5, %v3549_v51 }
 0xaf9   :  { %v3596_v0 = vmul.f32 1.442695, %v3576_v14 }
 0xafa   :  { %v3551_v60 = vpop.xlane.xlu0 %3550 }
 0xafb   :  { %7360 = vpow2.f32 %v3596_v0  ;;  %v3577_v43 = vsub.f32 %v9722_v48, %v3551_v60  ;;  %v3581_v48 = vsub.f32 %v9703_v35, %v3559_v4 }
 0xafc   :  { %7362 = vpow2.f32 %v3602_v21 }
 0xafd   :  { %v3598_v36 = vmul.f32 1.442695, %v3577_v43  ;;  %v3610_v43 = vmul.f32 1.442695, %v3583_v41 }
 0xafe   :  { %v3561_v46 = vpop.xlane.xlu0 %3560 }
 0xaff   :  { %7364 = vpow2.f32 %v3598_v36  ;;  %v3582_v16 = vsub.f32 %v9727_v10, %v3561_v46 }
 0xb01   :  { %v3608_v39 = vmul.f32 1.442695, %v3582_v16 }
 0xb02   :  { %v3557_v30 = vpop.xlane.xlu0 %3556  ;;  %v3571_v5 = vpop.xlane.xlu1 %3570 }
 0xb03   :  { %7366 = vpow2.f32 %v3608_v39  ;;  %v3580_v1 = vsub.f32 %v9732_v25, %v3557_v30  ;;  %v3606_v25 = vmul.f32 1.442695, %v3581_v48  ;;  %v3587_v54 = vsub.f32 %v9736_v53, %v3571_v5  ;;  %v11721_v48 = vld [vmem:[#allocation88_spill] sm:$0xff] }
 0xb04   :  { %v9794_v11 = vpop.eup %7358 }
 0xb05   :  { %v3604_v26 = vmul.f32 1.442695, %v3580_v1  ;;  %3632 = vadd.xlane.f32.xlu0 %v9794_v11  ;;  %v3618_v60 = vmul.f32 1.442695, %v3587_v54 }
 0xb06   :  { %v3569_v51 = vpop.xlane.xlu0 %3568  ;;  %v3567_v61 = vpop.xlane.xlu1 %3566 }
 0xb07   :  { %7368 = vpow2.f32 %v3604_v26  ;;  %v3586_v36 = vsub.f32 %v9742_v28, %v3569_v51  ;;  %v3585_v35 = vsub.f32 %v9746_v40, %v3567_v61  ;;  %v11723_v61 = vld [vmem:[#allocation78_spill] sm:$0xff] }
 0xb08   :  { %v9799_v46 = vpop.eup %7360  ;;  %7370 = vpow2.f32 %v3610_v43  ;;  %v11720_v43 = vld [vmem:[#allocation84_spill] sm:$0xff] }
 0xb09   :  { %v3616_v10 = vmul.f32 1.442695, %v3586_v36  ;;  %3628 = vadd.xlane.f32.xlu1 %v9799_v46  ;;  %v9803_v0 = vpop.eup %7362  ;;  %v3614_v39 = vmul.f32 1.442695, %v3585_v35  ;;  %v9839_v51 = vpack.c.bf16 %v11721_v48, %v11720_v43  ;;  %v11722_v36 = vld [vmem:[#allocation81_spill] sm:$0xff] }
 0xb0a   :  { %v3565_v14 = vpop.xlane.xlu0 %3564 }
 0xb0b   :  { %7372 = vpow2.f32 %v3616_v10  ;;  %v3584_v4 = vsub.f32 %v9752_v29, %v3565_v14  ;;  %v11724_v10 = vld [vmem:[#allocation82_spill] sm:$0xff] }
 0xb0c   :  { %v9807_v21 = vpop.eup %7364  ;;  %7374 = vpow2.f32 %v3606_v25  ;;  %v9849_v25 = vpack.c.bf16 %v11724_v10, %v11723_v61 }
 0xb0d   :  { %v3612_v28 = vmul.f32 1.442695, %v3584_v4  ;;  %3630 = vadd.xlane.f32.xlu0 %v9807_v21  ;;  %3634 = vadd.xlane.f32.xlu1 %v9803_v0 }
 0xb0e   :  { %v3693_v16 = vpop.permute.xlu0 %3692 }
 0xb0f   :  { %7376 = vpow2.f32 %v3612_v28  ;;  %6742 = vmatprep.subr.bf16.mxu1 %v3693_v16 }
 0xb10   :  { %v9811_v53 = vpop.eup %7366  ;;  %6743 = vmatpush3.bf16.msra.mxu1 %v3693_v16  ;;  %7378 = vpow2.f32 %v3618_v60 }
 0xb11   :  { %6992 = vmatprep.subr.msk.bf16.mxu1 %vm11719_vm9, %v9789_v7  ;;  %3640 = vadd.xlane.f32.xlu1 %v9811_v53  ;;  %7380 = vpow2.f32 %v3614_v39 }
 0xb14   :  { %v9816_v40 = vpop.eup %7368 }
 0xb15   :  { %3636 = vadd.xlane.f32.xlu1 %v9816_v40  ;;  %v9819_v29 = vpop.eup %7370 }
 0xb18   :  { %v9821_v41 = vpop.eup %7372 }
 0xb19   :  { %3648 = vadd.xlane.f32.xlu0 %v9821_v41  ;;  %3642 = vadd.xlane.f32.xlu1 %v9819_v29  ;;  %v9825_v30 = vpop.eup %7374 }
 0xb1c   :  { %v9827_v5 = vpop.eup %7376 }
 0xb1d   :  { %3644 = vadd.xlane.f32.xlu0 %v9827_v5  ;;  %3638 = vadd.xlane.f32.xlu1 %v9825_v30  ;;  %v9831_v1 = vpop.eup %7378 }
 0xb1e   :  { %v9833_v26 = vpop.eup %7380 }
 0xb21   :  { %3650 = vadd.xlane.f32.xlu0 %v9831_v1  ;;  %3646 = vadd.xlane.f32.xlu1 %v9833_v26 }
 0xb32   :  { %3825 = vrot.lane.b32.xlu1 %v9839_v51, %s7628_s4 }
 0xb36   :  { %4162 = vrot.lane.b32.xlu1 %v9759_v52, %s7629_s5 }
 0xb37   :  { %3823 = vrot.lane.b32.xlu0 %v11722_v36, %s7628_s4 }
 0xb3b   :  { %3821 = vrot.lane.b32.xlu0 %v9849_v25, %s7628_s4 }
 0xb3f   :  { %4164 = vrot.lane.b32.xlu0 %v9360_v62, %s7629_s5 }
 0xb43   :  { %4160 = vrot.lane.b32.xlu0 %v11716_v44, %s7629_s5 }
 0xb47   :  { %4158 = vrot.lane.b32.xlu0 %v9781_v20, %s7629_s5 }
 0xb4b   :  { %4156 = vrot.lane.b32.xlu0 %v11717_v8, %s7629_s5 }
 0xb51   :  { %v3625_v52 = vpop.xlane.xlu1 %3624 }
 0xb55   :  { %v3621_v54 = vpop.xlane.xlu1 %3620 }
 0xb59   :  { %v3627_v14 = vpop.xlane.xlu1 %3626 }
 0xb5a   :  { %7382 = vrcp.f32 %v3627_v14 }
 0xb5b   :  { %7384 = vrcp.f32 %v3621_v54  ;;  %v3834_v54 = vpop.permute.xlu0 %3833 }
 0xb5c   :  { %7386 = vrcp.f32 %v3625_v52  ;;  %v3883_v52 = vsel %vm11719_vm9, %v9789_v7, 0  ;;  %v3880_v14 = vsel %vm11726_vm5, %v3834_v54, 0  ;;  %vm11731_vm9 = vmmov %vm11725_vm2 }
 0xb5d   :  { %v3623_v35 = vpop.xlane.xlu1 %3622  ;;  %vm11736_vm5 = vmmov %vm11725_vm2 }
 0xb5e   :  { %7388 = vrcp.f32 %v3623_v35 }
 0xb67   :  { %v7383_v4 = vpop.eup %7382 }
 0xb68   :  { %v7385_v28 = vpop.eup %7384  ;;  %v3671_v44 = vmul.f32 %v7383_v4, %v9773_v58  ;;  %v3832_v58 = vpop.permute.xlu0 %3831 }
 0xb69   :  { %v7387_v62 = vpop.eup %7386  ;;  %v3668_v16 = vmul.f32 %v7385_v28, %v9770_v6  ;;  %v3877_v6 = vsel %vm11728_vm6, %v3832_v58, 0  ;;  %vm11734_vm6 = vmmov %vm11725_vm2 }
 0xb6a   :  { %v3670_v8 = vmul.f32 %v7387_v62, %v9767_v38  ;;  %v3830_v38 = vpop.permute.xlu1 %3829 }
 0xb6b   :  { %v7389_v60 = vpop.eup %7388 }
 0xb6c   :  { %v3669_v20 = vmul.f32 %v7389_v60, %v9776_v18  ;;  %v3685_v17 = vpack.c.bf16 %v3671_v44, %v3670_v8  ;;  %v3828_v18 = vpop.permute.xlu0 %3827 }
 0xb6d   :  { %v3871_v7 = vsel %vm11732_vm4, %v3828_v18, 0  ;;  %vm11737_vm4 = vmmov %vm11725_vm2 }
 0xb6e   :  { %v3684_v39 = vpack.c.bf16 %v3669_v20, %v3668_v16 }
 0xb70   :  { %6744 = vmatprep.mubr.bf16.mxu1 %v3684_v39 }
 0xb71   :  { %6745 = vmatmul.mubr.bf16.vlgmr.msra.gmra.mxu1 %v3685_v17  ;;  %v3874_v17 = vsel %vm11730_vm10, %v3830_v38, 0  ;;  %vm11733_vm10 = vmmov %vm11725_vm2 }
 0xb72   :  { %6761 = vmatpush3.bf16.xpose.msra.mxu1 %v3883_v52 }
 0xb73   :  { %6993 = vmatprep.subr.msk.bf16.mxu1 %vm11725_vm2, %v3834_v54 }
 0xb7a   :  { %6763 = vmatpush3.bf16.xpose.msra.mxu1 %v3880_v14 }
 0xb7b   :  { %6994 = vmatprep.subr.msk.bf16.mxu1 %vm11727_vm7, %v3832_v58  ;;  %vm11735_vm7 = vmmov %vm11725_vm2 }
 0xb82   :  { %6765 = vmatpush3.bf16.xpose.msra.mxu1 %v3877_v6 }
 0xb83   :  { %6995 = vmatprep.subr.msk.bf16.mxu1 %vm11729_vm11, %v3830_v38  ;;  %vm11738_vm11 = vmmov %vm11725_vm2 }
 0xb8a   :  { %6767 = vmatpush3.bf16.xpose.msra.mxu1 %v3874_v17 }
 0xb8b   :  { %6996 = vmatprep.subr.msk.bf16.mxu1 %vm11731_vm9, %v3828_v18  ;;  %vm11742_vm9 = vmmov %vm11725_vm2 }
 0xb8e   :  { %v3633_v35 = vpop.xlane.xlu0 %3632 }
 0xb92   :  { %6769 = vmatpush3.bf16.xpose.msra.mxu1 %v3871_v7  ;;  %v3629_v4 = vpop.xlane.xlu1 %3628 }
 0xb93   :  { %7390 = vrcp.f32 %v3629_v4 }
 0xb94   :  { %7392 = vrcp.f32 %v3633_v35 }
 0xb96   :  { %v3631_v28 = vpop.xlane.xlu0 %3630  ;;  %v3635_v62 = vpop.xlane.xlu1 %3634 }
 0xb97   :  { %7394 = vrcp.f32 %v3631_v28 }
 0xb98   :  { %7396 = vrcp.f32 %v3635_v62 }
 0xb9a   :  { %v3641_v60 = vpop.xlane.xlu1 %3640 }
 0xb9e   :  { %v3637_v44 = vpop.xlane.xlu1 %3636 }
 0xba0   :  { %v7391_v16 = vpop.eup %7390 }
 0xba1   :  { %v7393_v39 = vpop.eup %7392  ;;  %v3672_v14 = vmul.f32 %v7391_v16, %v9799_v46 }
 0xba2   :  { %v3649_v20 = vpop.xlane.xlu0 %3648  ;;  %v3643_v8 = vpop.xlane.xlu1 %3642  ;;  %v3674_v17 = vmul.f32 %v7393_v39, %v9794_v11 }
 0xba3   :  { %7398 = vrcp.f32 %v3643_v8 }
 0xba4   :  { %v7395_v52 = vpop.eup %7394  ;;  %7400 = vrcp.f32 %v3637_v44 }
 0xba5   :  { %v7397_v54 = vpop.eup %7396  ;;  %v3673_v58 = vmul.f32 %v7395_v52, %v9807_v21  ;;  %7402 = vrcp.f32 %v3641_v60 }
 0xba6   :  { %v3645_v6 = vpop.xlane.xlu0 %3644  ;;  %v3639_v38 = vpop.xlane.xlu1 %3638  ;;  %v3675_v18 = vmul.f32 %v7397_v54, %v9803_v0 }
 0xba7   :  { %v3686_v7 = vpack.c.bf16 %v3673_v58, %v3672_v14  ;;  %7404 = vrcp.f32 %v3639_v38 }
 0xba8   :  { %v3687_v35 = vpack.c.bf16 %v3675_v18, %v3674_v17  ;;  %7406 = vrcp.f32 %v3645_v6 }
 0xba9   :  { %6748 = vmatprep.mubr.bf16.mxu1 %v3686_v7 }
 0xbaa   :  { %v3651_v4 = vpop.xlane.xlu0 %3650  ;;  %6749 = vmatmul.mubr.bf16.gmra.mxu1 %v3687_v35  ;;  %v3647_v28 = vpop.xlane.xlu1 %3646 }
 0xbab   :  { %7408 = vrcp.f32 %v3647_v28  ;;  %v1311_v28 = vmul.f32 0.125, %v11723_v61  ;;  %v1316_v61 = vmul.f32 0.125, %v11721_v48  ;;  %v1324_v48 = vmul.f32 0.125, %v9365_v32 }
 0xbac   :  { %7410 = vrcp.f32 %v3651_v4 }
 0xbad   :  { %7412 = vrcp.f32 %v3649_v20 }
 0xbae   :  { %v3824_v46 = vpop.permute.xlu0 %3823  ;;  %v3826_v21 = vpop.permute.xlu1 %3825 }
 0xbaf   :  { %6997 = vmatprep.subr.msk.bf16.mxu1 %vm11733_vm10, %v3826_v21  ;;  %v3868_v11 = vsel %vm11734_vm6, %v3826_v21, 0  ;;  %v3865_v14 = vsel %vm11736_vm5, %v3824_v46, 0  ;;  %vm11743_vm10 = vmmov %vm11725_vm2 }
 0xbb0   :  { %6771 = vmatpush3.bf16.xpose.msra.mxu1 %v3868_v11  ;;  %v7399_v0 = vpop.eup %7398  ;;  %vm11747_vm6 = vmmov %vm11725_vm2 }
 0xbb1   :  { %6998 = vmatprep.subr.msk.bf16.mxu1 %vm11735_vm7, %v3824_v46  ;;  %v7401_v60 = vpop.eup %7400  ;;  %v3679_v8 = vmul.f32 %v7399_v0, %v9819_v29  ;;  %v1312_v46 = vmul.f32 0.125, %v11724_v10  ;;  %vm11748_vm7 = vmmov %vm11725_vm2 }
 0xbb2   :  { %v3822_v62 = vpop.permute.xlu0 %3821  ;;  %v7403_v44 = vpop.eup %7402  ;;  %v3676_v52 = vmul.f32 %v7401_v60, %v9816_v40  ;;  %vm11752_vm5 = vmmov %vm11725_vm2 }
 0xbb3   :  { %v3678_v58 = vmul.f32 %v7403_v44, %v9811_v53  ;;  %v4163_v6 = vpop.permute.xlu1 %4162  ;;  %v3862_v11 = vsel %vm11738_vm11, %v3822_v62, 0  ;;  %v11740_v44 = vld [vmem:[#allocation79_spill] sm:$0xff]  ;;  %vm11755_vm11 = vmmov %vm11725_vm2 }
 0xbb4   :  { %v7405_v16 = vpop.eup %7404 }
 0xbb5   :  { %v3677_v54 = vmul.f32 %v7405_v16, %v9825_v30  ;;  %v7407_v20 = vpop.eup %7406  ;;  %v3689_v29 = vpack.c.bf16 %v3679_v8, %v3678_v58  ;;  %v1319_v16 = vmul.f32 0.125, %v11718_v34  ;;  %v1320_v8 = vmul.f32 0.125, %v9346_v47  ;;  %v11749_v58 = vld [vmem:[#allocation91_spill] sm:$0xff] }
 0xbb6   :  { %v4165_v39 = vpop.permute.xlu0 %4164  ;;  %v3680_v30 = vmul.f32 %v7407_v20, %v9827_v5  ;;  %v11754_v47 = vpack.c.bf16 %v9358_v45, %v9354_v9 }
 0xbb7   :  { %6792 = vmatprep.subr.bf16.mxu0 %v4165_v39  ;;  %v3688_v38 = vpack.c.bf16 %v3677_v54, %v3676_v52  ;;  %v11744_v52 = vld [vmem:[#allocation86_spill] sm:$0xff]  ;;  %v11745_v54 = vld [vmem:[#allocation85_spill] sm:$0xff] }
 0xbb8   :  { %6773 = vmatpush3.bf16.xpose.msra.mxu1 %v3865_v14  ;;  %6793 = vmatpush3.bf16.msra.mxu0 %v4165_v39  ;;  %v7409_v17 = vpop.eup %7408  ;;  %v1403_v39 = vpack.c.bf16 %v1320_v8, %v1319_v16  ;;  %v11746_v20 = vpack.c.bf16 %v11744_v52, %v11745_v54 }
 0xbb9   :  { %6999 = vmatprep.subr.msk.bf16.mxu1 %vm11737_vm4, %v3822_v62  ;;  %6794 = vmatprep.subr.bf16.mxu0 %v4163_v6  ;;  %v7411_v18 = vpop.eup %7410  ;;  %v3681_v7 = vmul.f32 %v7409_v17, %v9833_v26  ;;  %v1399_v26 = vpack.c.bf16 %v1312_v46, %v1311_v28  ;;  %v11739_v62 = vld [vmem:[#allocation80_spill] sm:$0xff]  ;;  %vm11753_vm4 = vmmov %vm11725_vm2 }
 0xbba   :  { %6752 = vmatprep.mubr.bf16.mxu1 %v3688_v38  ;;  %v4161_v40 = vpop.permute.xlu0 %4160  ;;  %v7413_v35 = vpop.eup %7412  ;;  %v3683_v4 = vmul.f32 %v7411_v18, %v9831_v1  ;;  %v1315_v1 = vmul.f32 0.125, %v11720_v43  ;;  %v1323_v43 = vmul.f32 0.125, %v9352_v57 }
 0xbbb   :  { %6753 = vmatmul.mubr.bf16.gmra.mxu1 %v3689_v29  ;;  %v3690_v53 = vpack.c.bf16 %v3681_v7, %v3680_v30  ;;  %v3682_v0 = vmul.f32 %v7413_v35, %v9821_v41  ;;  %v11741_v41 = vpack.c.bf16 %v11739_v62, %v11740_v44 }
 0xbbc   :  { %6795 = vmatpush3.bf16.msra.mxu0 %v4163_v6  ;;  %v1401_v10 = vpack.c.bf16 %v1316_v61, %v1315_v1  ;;  %v1405_v14 = vpack.c.bf16 %v1324_v48, %v1323_v43  ;;  %v11750_v6 = vld [vmem:[#allocation90_spill] sm:$0xff] }
 0xbbd   :  { %6796 = vmatprep.subr.bf16.mxu0 %v4161_v40  ;;  %6756 = vmatprep.mubr.bf16.mxu1 %v3690_v53  ;;  %v3691_v5 = vpack.c.bf16 %v3683_v4, %v3682_v0  ;;  %v11751_v38 = vpack.c.bf16 %v11749_v58, %v11750_v6 }
 0xbbe   :  { %v4159_v21 = vpop.permute.xlu0 %4158 }
 0xbc0   :  { %6775 = vmatpush3.bf16.xpose.msra.mxu1 %v3862_v11  ;;  %6797 = vmatpush3.bf16.msra.mxu0 %v4161_v40 }
 0xbc1   :  { %6798 = vmatprep.subr.bf16.mxu0 %v4159_v21 }
 0xbc2   :  { %v4157_v60 = vpop.permute.xlu0 %4156 }
 0xbc3   :  { %6757 = vmatmul.mubr.bf16.gmra.mxu1 %v3691_v5 }
 0xbc4   :  { %6776 = vmatprep.mubr.msk.bf16.mxu1 %vm11725_vm2, %v1399_v26  ;;  %6799 = vmatpush3.bf16.msra.mxu0 %v4159_v21  ;;  %vm11766_vm2 = vnez %v11707_v22 }
 0xbc5   :  { %6800 = vmatprep.subr.bf16.mxu0 %v4157_v60 }
 0xbc8   :  { %6801 = vmatpush3.bf16.msra.mxu0 %v4157_v60 }
 0xbcb   :  { %6777 = vmatmul.mubr.msk.bf16.vlgmr.msra.gmra.mxu1 %vm11742_vm9, %v11741_v41  ;;  %vm11767_vm9 = vnez %v11699_v3 }
 0xbcc   :  { %6780 = vmatprep.mubr.msk.bf16.mxu1 %vm11743_vm10, %v1401_v10  ;;  %vm11768_vm10 = vnez %v11709_v13 }
 0xbd3   :  { %6781 = vmatmul.mubr.msk.bf16.gmra.mxu1 %vm11747_vm6, %v11746_v20  ;;  %vm11769_vm6 = vnez %v11700_v50 }
 0xbd4   :  { %6784 = vmatprep.mubr.msk.bf16.mxu1 %vm11748_vm7, %v1403_v39  ;;  %vm11770_vm7 = vnez %v11713_v24 }
 0xbdb   :  { %6785 = vmatmul.mubr.msk.bf16.gmra.mxu1 %vm11752_vm5, %v11751_v38  ;;  %vm11771_vm5 = vnez %v11715_v59 }
 0xbdc   :  { %6788 = vmatprep.mubr.msk.bf16.mxu1 %vm11753_vm4, %v1405_v14  ;;  %vm11772_vm4 = vnez %v11711_v55 }
 0xbe3   :  { %6789 = vmatmul.mubr.msk.bf16.gmra.mxu1 %vm11755_vm11, %v11754_v47 }
 0xc31   :  { %v9921_v34 = vpop.f32.mrf.mxu1 }
 0xc33   :  { %v9923_v17 = vpop.f32.mrf.mxu1 }
 0xc35   :  { %v9925_v57 = vpop.f32.mrf.mxu1 }
 0xc36   :  { %11756 = vst [vmem:[#allocation15_spill] sm:$0xff] %v9925_v57 }
 0xc37   :  { %v9927_v32 = vpop.f32.mrf.mxu1 }
 0xc38   :  { %11757 = vst [vmem:[#allocation16_spill] sm:$0xff] %v9927_v32 }
 0xc6a   :  { %v9929_v29 = vpop.f32.mrf.mxu1 }
 0xc6c   :  { %v9931_v18 = vpop.f32.mrf.mxu1 }
 0xc6e   :  { %v9933_v40 = vpop.f32.mrf.mxu1 }
 0xc6f   :  { %11758 = vst [vmem:[#allocation17_spill] sm:$0xff] %v9933_v40 }
 0xc70   :  { %v9935_v30 = vpop.f32.mrf.mxu1 }
 0xc71   :  { %11759 = vst [vmem:[#allocation18_spill] sm:$0xff] %v9935_v30 }
 0xc7b   :  { %v9937_v7 = vpop.f32.mrf.mxu1 }
 0xc7d   :  { %v9939_v9 = vpop.f32.mrf.mxu1 }
 0xc7f   :  { %v9941_v45 = vpop.f32.mrf.mxu1 }
 0xc80   :  { %11760 = vst [vmem:[#allocation20_spill] sm:$0xff] %v9941_v45 }
 0xc81   :  { %v9943_v35 = vpop.f32.mrf.mxu1 }
 0xc82   :  { %11761 = vst [vmem:[#allocation9_spill] sm:$0xff] %v9943_v35 }
 0xc83   :  { %v9945_v53 = vpop.f32.mrf.mxu1 }
 0xc84   :  { %11762 = vst [vmem:[#allocation10_spill] sm:$0xff] %v9945_v53 }
 0xc85   :  { %v9947_v4 = vpop.f32.mrf.mxu1 }
 0xc86   :  { %11763 = vst [vmem:[#allocation83_spill] sm:$0xff] %v9947_v4 }
 0xc87   :  { %v9949_v28 = vpop.f32.mrf.mxu1 }
 0xc88   :  { %11764 = vst [vmem:[#allocation19_spill] sm:$0xff] %v9949_v28 }
 0xc89   :  { %v9951_v46 = vpop.f32.mrf.mxu1 }
 0xc8a   :  { %11765 = vst [vmem:[#allocation5_spill] sm:$0xff] %v9951_v46 }
 0xc8b   :  { %v6778_v21 = vpop.f32.mrf.mxu1 }
 0xc8c   :  { %v3984_v11 = vsel %vm7939_vm12, %v6778_v21, -1e+30 }
 0xc8d   :  { %4002 = vmax.xlane.f32.xlu0 %v3984_v11  ;;  %v3919_v0 = vpop.f32.mrf.mxu1 }
 0xc8e   :  { %v3982_v5 = vsel %vm7951_vm13, %v3919_v0, -1e+30  ;;  %v10024_v0 = vpack.c.bf16 %v9474_v56, %v9458_v15 }
 0xc8f   :  { %3998 = vmax.xlane.f32.xlu1 %v3982_v5  ;;  %v6779_v26 = vpop.f32.mrf.mxu1 }
 0xc90   :  { %v3985_v1 = vsel %vm7964_vm15, %v6779_v26, -1e+30 }
 0xc91   :  { %v3922_v60 = vpop.f32.mrf.mxu1 }
 0xc92   :  { %v9961_v61 = vsel %vm7957_vm14, %v3922_v60, -1e+30 }
 0xc93   :  { %4004 = vmax.xlane.f32.xlu1 %v3985_v1  ;;  %4000 = vmax.xlane.f32.xlu0 %v9961_v61  ;;  %v6782_v10 = vpop.f32.mrf.mxu1 }
 0xc94   :  { %v9970_v8 = vsel %vm11703_vm0, %v6782_v10, -1e+30 }
 0xc95   :  { %v3935_v62 = vpop.f32.mrf.mxu1 }
 0xc97   :  { %v6783_v44 = vpop.f32.mrf.mxu1 }
 0xc98   :  { %v9974_v39 = vsel %vm7995_vm1, %v6783_v44, -1e+30 }
 0xc99   :  { %v3938_v41 = vpop.f32.mrf.mxu1 }
 0xc9b   :  { %v6786_v16 = vpop.f32.mrf.mxu1 }
 0xc9c   :  { %v9990_v20 = vsel %vm11766_vm2, %v6786_v16, -1e+30 }
 0xc9d   :  { %v3951_v52 = vpop.f32.mrf.mxu1 }
 0xc9e   :  { %v10000_v14 = vsel %vm11768_vm10, %v3951_v52, -1e+30 }
 0xc9f   :  { %v6787_v54 = vpop.f32.mrf.mxu1 }
 0xca0   :  { %v9994_v43 = vsel %vm11767_vm9, %v6787_v54, -1e+30 }
 0xca1   :  { %v3954_v48 = vpop.f32.mrf.mxu1 }
 0xca2   :  { %v10004_v58 = vsel %vm11769_vm6, %v3954_v48, -1e+30 }
 0xca3   :  { %v6790_v6 = vpop.f32.mrf.mxu1 }
 0xca4   :  { %4152 = vrot.lane.b32.xlu1 %v11722_v36, %s7629_s5  ;;  %v9984_v36 = vsel %vm7881_vm3, %v3938_v41, -1e+30  ;;  %v10010_v38 = vsel %vm11770_vm7, %v6790_v6, -1e+30 }
 0xca5   :  { %v3967_v47 = vpop.f32.mrf.mxu1 }
 0xca6   :  { %v10015_v21 = vsel %vm11771_vm5, %v3967_v47, -1e+30 }
 0xca7   :  { %v6791_v26 = vpop.f32.mrf.mxu1 }
 0xca8   :  { %v10034_v60 = vsel %vm11772_vm4, %v6791_v26, -1e+30 }
 0xca9   :  { %4154 = vrot.lane.b32.xlu0 %v9839_v51, %s7629_s5  ;;  %v9980_v51 = vsel %vm11705_vm8, %v3935_v62, -1e+30  ;;  %v3970_v10 = vpop.f32.mrf.mxu1 }
 0xcc8   :  { %4010 = vmax.xlane.f32.xlu0 %v9970_v8  ;;  %4012 = vmax.xlane.f32.xlu1 %v9974_v39 }
 0xccc   :  { %4006 = vmax.xlane.f32.xlu0 %v9980_v51  ;;  %4008 = vmax.xlane.f32.xlu1 %v9984_v36 }
 0xcd0   :  { %4018 = vmax.xlane.f32.xlu0 %v9990_v20  ;;  %4020 = vmax.xlane.f32.xlu1 %v9994_v43 }
 0xcd4   :  { %4014 = vmax.xlane.f32.xlu0 %v10000_v14  ;;  %4016 = vmax.xlane.f32.xlu1 %v10004_v58 }
 0xcd8   :  { %4026 = vmax.xlane.f32.xlu0 %v10010_v38 }
 0xcdc   :  { %4022 = vmax.xlane.f32.xlu0 %v10015_v21 }
 0xce5   :  { %4293 = vrot.lane.b32.xlu1 %v9471_v2, %s7628_s4 }
 0xcf2   :  { %4150 = vrot.lane.b32.xlu0 %v9849_v25, %s7629_s5  ;;  %v11773_v25 = vld [vmem:[#allocation14_spill] sm:$0xff] }
 0xcf3   :  { %vm11774_vm11 = vnez %v11773_v25 }
 0xcf4   :  { %v10039_v62 = vsel %vm11774_vm11, %v3970_v10, -1e+30  ;;  %vm11777_vm11 = vcmask 130048  }
 0xcf5   :  { %vm11783_vm4 = vmmov %vm11777_vm11 }
 0xcf6   :  { %4291 = vrot.lane.b32.xlu0 %v10024_v0, %s7628_s4  ;;  %vm11784_vm5 = vmmov %vm11783_vm4 }
 0xcf7   :  { %vm11785_vm7 = vmmov %vm11783_vm4 }
 0xcf8   :  { %vm11786_vm6 = vmmov %vm11783_vm4 }
 0xcf9   :  { %vm11787_vm10 = vmmov %vm11783_vm4 }
 0xcfa   :  { %4289 = vrot.lane.b32.xlu0 %v9442_v12, %s7628_s4  ;;  %vm11788_vm9 = vmmov %vm11783_vm4 }
 0xcfe   :  { %4285 = vrot.lane.b32.xlu0 %v9416_v23, %s7628_s4 }
 0xd09   :  { %4028 = vmax.xlane.f32.xlu1 %v10034_v60 }
 0xd0d   :  { %4024 = vmax.xlane.f32.xlu1 %v10039_v62 }
 0xd16   :  { %v4003_v44 = vpop.xlane.xlu0 %4002 }
 0xd17   :  { %v4032_v41 = vsub.f32 %v3984_v11, %v4003_v44 }
 0xd18   :  { %v3999_v16 = vpop.xlane.xlu1 %3998 }
 0xd19   :  { %v4050_v52 = vmul.f32 1.442695, %v4032_v41  ;;  %v4030_v54 = vsub.f32 %v3982_v5, %v3999_v16 }
 0xd1b   :  { %7414 = vpow2.f32 %v4050_v52  ;;  %v4046_v48 = vmul.f32 1.442695, %v4030_v54 }
 0xd1c   :  { %v4001_v6 = vpop.xlane.xlu0 %4000  ;;  %v4005_v47 = vpop.xlane.xlu1 %4004 }
 0xd1d   :  { %v4033_v26 = vsub.f32 %v3985_v1, %v4005_v47  ;;  %7416 = vpow2.f32 %v4046_v48  ;;  %v4031_v28 = vsub.f32 %v9961_v61, %v4001_v6 }
 0xd1f   :  { %v4052_v46 = vmul.f32 1.442695, %v4033_v26  ;;  %v4048_v35 = vmul.f32 1.442695, %v4031_v28  ;;  %v11776_v28 = vld [vmem:[#allocation105_spill] sm:$0xff] }
 0xd20   :  { %v4155_v45 = vpop.permute.xlu0 %4154  ;;  %v4153_v10 = vpop.permute.xlu1 %4152 }
 0xd21   :  { %6802 = vmatprep.subr.bf16.mxu0 %v4155_v45  ;;  %7418 = vpow2.f32 %v4052_v46 }
 0xd22   :  { %6803 = vmatpush3.bf16.msra.mxu0 %v4155_v45  ;;  %7420 = vpow2.f32 %v4048_v35  ;;  %v11775_v45 = vld [vmem:[#allocation102_spill] sm:$0xff] }
 0xd23   :  { %6804 = vmatprep.subr.bf16.mxu0 %v4153_v10  ;;  %v10057_v46 = vpack.c.bf16 %v11776_v28, %v11775_v45 }
 0xd26   :  { %6805 = vmatpush3.bf16.msra.mxu0 %v4153_v10 }
 0xd28   :  { %v10043_v11 = vpop.eup %7414 }
 0xd29   :  { %4082 = vadd.xlane.f32.xlu1 %v10043_v11 }
 0xd2a   :  { %v10046_v5 = vpop.eup %7416 }
 0xd2d   :  { %4078 = vadd.xlane.f32.xlu1 %v10046_v5 }
 0xd2e   :  { %v10049_v1 = vpop.eup %7418 }
 0xd2f   :  { %v10052_v61 = vpop.eup %7420 }
 0xd31   :  { %4084 = vadd.xlane.f32.xlu1 %v10049_v1 }
 0xd35   :  { %4080 = vadd.xlane.f32.xlu1 %v10052_v61 }
 0xd46   :  { %4287 = vrot.lane.b32.xlu1 %v10057_v46, %s7628_s4 }
 0xd51   :  { %v4011_v35 = vpop.xlane.xlu0 %4010  ;;  %v4013_v44 = vpop.xlane.xlu1 %4012 }
 0xd52   :  { %v4036_v41 = vsub.f32 %v9970_v8, %v4011_v35  ;;  %v4037_v47 = vsub.f32 %v9974_v39, %v4013_v44 }
 0xd54   :  { %v4058_v16 = vmul.f32 1.442695, %v4036_v41  ;;  %v4060_v30 = vmul.f32 1.442695, %v4037_v47 }
 0xd55   :  { %v4007_v52 = vpop.xlane.xlu0 %4006  ;;  %v4009_v54 = vpop.xlane.xlu1 %4008 }
 0xd56   :  { %7422 = vpow2.f32 %v4058_v16  ;;  %v4034_v48 = vsub.f32 %v9980_v51, %v4007_v52  ;;  %v4035_v6 = vsub.f32 %v9984_v36, %v4009_v54 }
 0xd58   :  { %v4054_v26 = vmul.f32 1.442695, %v4034_v48  ;;  %v4056_v10 = vmul.f32 1.442695, %v4035_v6 }
 0xd59   :  { %v4019_v40 = vpop.xlane.xlu0 %4018  ;;  %v4021_v8 = vpop.xlane.xlu1 %4020 }
 0xd5a   :  { %7424 = vpow2.f32 %v4056_v10  ;;  %v4040_v57 = vsub.f32 %v9990_v20, %v4019_v40  ;;  %v4041_v39 = vsub.f32 %v9994_v43, %v4021_v8 }
 0xd5b   :  { %7426 = vpow2.f32 %v4054_v26 }
 0xd5c   :  { %7428 = vpow2.f32 %v4060_v30  ;;  %v4066_v35 = vmul.f32 1.442695, %v4040_v57 }
 0xd5d   :  { %v4015_v32 = vpop.xlane.xlu0 %4014  ;;  %v4017_v54 = vpop.xlane.xlu1 %4016 }
 0xd5e   :  { %v4038_v41 = vsub.f32 %v10000_v14, %v4015_v32  ;;  %7430 = vpow2.f32 %v4066_v35  ;;  %v4068_v32 = vmul.f32 1.442695, %v4041_v39  ;;  %v4039_v20 = vsub.f32 %v10004_v58, %v4017_v54 }
 0xd60   :  { %v4062_v44 = vmul.f32 1.442695, %v4038_v41 }
 0xd61   :  { %v4027_v16 = vpop.xlane.xlu0 %4026  ;;  %v4294_v48 = vpop.permute.xlu1 %4293 }
 0xd62   :  { %v4044_v51 = vsub.f32 %v10010_v38, %v4027_v16  ;;  %v4341_v53 = vsel %vm11777_vm11, %v4294_v48, 0 }
 0xd63   :  { %v10068_v36 = vpop.eup %7422 }
 0xd64   :  { %v4074_v52 = vmul.f32 1.442695, %v4044_v51  ;;  %4090 = vadd.xlane.f32.xlu0 %v10068_v36 }
 0xd65   :  { %v4023_v40 = vpop.xlane.xlu0 %4022 }
 0xd66   :  { %7432 = vpow2.f32 %v4074_v52  ;;  %v4042_v30 = vsub.f32 %v10015_v21, %v4023_v40  ;;  %v4064_v21 = vmul.f32 1.442695, %v4039_v20  ;;  %v11778_v20 = vld [vmem:[#allocation98_spill] sm:$0xff] }
 0xd67   :  { %v10073_v57 = vpop.eup %7424  ;;  %7434 = vpow2.f32 %v4062_v44 }
 0xd68   :  { %v4070_v14 = vmul.f32 1.442695, %v4042_v30  ;;  %v10076_v38 = vpop.eup %7426  ;;  %4088 = vadd.xlane.f32.xlu0 %v10073_v57 }
 0xd69   :  { %v4151_v43 = vpop.permute.xlu0 %4150  ;;  %v10081_v6 = vpop.eup %7428 }
 0xd6a   :  { %7436 = vpow2.f32 %v4070_v14  ;;  %4086 = vadd.xlane.f32.xlu1 %v10076_v38  ;;  %6806 = vmatprep.subr.bf16.mxu0 %v4151_v43  ;;  %v11779_v14 = vld [vmem:[#allocation101_spill] sm:$0xff] }
 0xd6b   :  { %6807 = vmatpush3.bf16.msra.mxu0 %v4151_v43  ;;  %7438 = vpow2.f32 %v4068_v32  ;;  %v10084_v58 = vpop.eup %7430  ;;  %v11780_v43 = vld [vmem:[#allocation96_spill] sm:$0xff] }
 0xd6c   :  { %7000 = vmatprep.subr.msk.bf16.mxu0 %vm11777_vm11, %v4294_v48  ;;  %7440 = vpow2.f32 %v4064_v21  ;;  %v11781_v21 = vld [vmem:[#allocation93_spill] sm:$0xff]  ;;  %vm11789_vm11 = vmmov %vm11783_vm4 }
 0xd6d   :  { %v4292_v4 = vpop.permute.xlu0 %4291 }
 0xd6e   :  { %4092 = vadd.xlane.f32.xlu1 %v10081_v6 }
 0xd72   :  { %4098 = vadd.xlane.f32.xlu1 %v10084_v58 }
 0xd73   :  { %v10087_v47 = vpop.eup %7432 }
 0xd74   :  { %4106 = vadd.xlane.f32.xlu0 %v10087_v47  ;;  %v10090_v26 = vpop.eup %7434 }
 0xd76   :  { %4094 = vadd.xlane.f32.xlu1 %v10090_v26 }
 0xd77   :  { %v10093_v10 = vpop.eup %7436 }
 0xd78   :  { %4102 = vadd.xlane.f32.xlu0 %v10093_v10  ;;  %v10096_v8 = vpop.eup %7438 }
 0xd79   :  { %v10099_v35 = vpop.eup %7440 }
 0xd7a   :  { %4100 = vadd.xlane.f32.xlu1 %v10096_v8 }
 0xd7e   :  { %4096 = vadd.xlane.f32.xlu1 %v10099_v35 }
 0xd92   :  { %v4029_v41 = vpop.xlane.xlu1 %4028 }
 0xd93   :  { %v4045_v16 = vsub.f32 %v10034_v60, %v4029_v41  ;;  %v10112_v60 = vpack.c.bf16 %v11779_v14, %v11778_v20  ;;  %v11782_v41 = vld [vmem:[#allocation97_spill] sm:$0xff] }
 0xd95   :  { %v4076_v51 = vmul.f32 1.442695, %v4045_v16  ;;  %v10120_v16 = vpack.c.bf16 %v11782_v41, %v11781_v21 }
 0xd96   :  { %v4025_v39 = vpop.xlane.xlu1 %4024 }
 0xd97   :  { %7442 = vpow2.f32 %v4076_v51  ;;  %v4043_v44 = vsub.f32 %v10039_v62, %v4025_v39 }
 0xd99   :  { %v4072_v52 = vmul.f32 1.442695, %v4043_v44 }
 0xd9b   :  { %7444 = vpow2.f32 %v4072_v52 }
 0xda4   :  { %v10104_v54 = vpop.eup %7442 }
 0xda5   :  { %4108 = vadd.xlane.f32.xlu0 %v10104_v54 }
 0xda8   :  { %v10107_v40 = vpop.eup %7444 }
 0xda9   :  { %4104 = vadd.xlane.f32.xlu1 %v10107_v40 }
 0xdb2   :  { %v4083_v30 = vpop.xlane.xlu1 %4082 }
 0xdb6   :  { %v4079_v32 = vpop.xlane.xlu1 %4078 }
 0xdba   :  { %4283 = vrot.lane.b32.xlu1 %v10112_v60, %s7628_s4  ;;  %v4085_v62 = vpop.xlane.xlu1 %4084 }
 0xdbb   :  { %4281 = vrot.lane.b32.xlu0 %v11780_v43, %s7628_s4  ;;  %7446 = vrcp.f32 %v4085_v62 }
 0xdbc   :  { %7448 = vrcp.f32 %v4079_v32 }
 0xdbd   :  { %7450 = vrcp.f32 %v4083_v30 }
 0xdbe   :  { %4620 = vrot.lane.b32.xlu1 %v10024_v0, %s7629_s5  ;;  %v4081_v51 = vpop.xlane.xlu1 %4080 }
 0xdbf   :  { %7452 = vrcp.f32 %v4081_v51  ;;  %4279 = vrot.lane.b32.xlu0 %v10120_v16, %s7628_s4 }
 0xdc3   :  { %4622 = vrot.lane.b32.xlu0 %v9471_v2, %s7629_s5 }
 0xdc7   :  { %4618 = vrot.lane.b32.xlu0 %v9442_v12, %s7629_s5 }
 0xdc8   :  { %v7447_v39 = vpop.eup %7446 }
 0xdc9   :  { %v7449_v44 = vpop.eup %7448  ;;  %v4129_v0 = vmul.f32 %v7447_v39, %v10049_v1  ;;  %v4338_v1 = vsel %vm11784_vm5, %v4292_v4, 0  ;;  %vm11794_vm5 = vmmov %vm11783_vm4 }
 0xdca   :  { %v7451_v52 = vpop.eup %7450  ;;  %v4126_v32 = vmul.f32 %v7449_v44, %v10046_v5  ;;  %v4290_v5 = vpop.permute.xlu0 %4289 }
 0xdcb   :  { %4616 = vrot.lane.b32.xlu0 %v10057_v46, %s7629_s5  ;;  %v4128_v51 = vmul.f32 %v7451_v52, %v10043_v11  ;;  %v4335_v11 = vsel %vm11786_vm6, %v4290_v5, 0  ;;  %vm11792_vm6 = vmmov %vm11783_vm4 }
 0xdcc   :  { %v7453_v30 = vpop.eup %7452 }
 0xdcd   :  { %v4127_v62 = vmul.f32 %v7453_v30, %v10052_v61  ;;  %v4143_v12 = vpack.c.bf16 %v4129_v0, %v4128_v51  ;;  %v4288_v61 = vpop.permute.xlu1 %4287 }
 0xdce   :  { %v4332_v46 = vsel %vm11788_vm9, %v4288_v61, 0  ;;  %vm11790_vm9 = vmmov %vm11783_vm4 }
 0xdcf   :  { %4614 = vrot.lane.b32.xlu0 %v9416_v23, %s7629_s5  ;;  %v4142_v2 = vpack.c.bf16 %v4127_v62, %v4126_v32  ;;  %v4286_v23 = vpop.permute.xlu0 %4285 }
 0xdd1   :  { %6808 = vmatprep.mubr.bf16.mxu0 %v4142_v2 }
 0xdd2   :  { %6809 = vmatmul.mubr.bf16.vlgmr.msra.gmra.mxu0 %v4143_v12 }
 0xdd3   :  { %6825 = vmatpush3.bf16.xpose.msra.mxu0 %v4341_v53 }
 0xdd4   :  { %7001 = vmatprep.subr.msk.bf16.mxu0 %vm11783_vm4, %v4292_v4  ;;  %v4329_v4 = vsel %vm11783_vm4, %v4286_v23, 0 }
 0xddb   :  { %6827 = vmatpush3.bf16.xpose.msra.mxu0 %v4338_v1 }
 0xddc   :  { %7002 = vmatprep.subr.msk.bf16.mxu0 %vm11785_vm7, %v4290_v5  ;;  %vm11793_vm7 = vmmov %vm11783_vm4 }
 0xde3   :  { %6829 = vmatpush3.bf16.xpose.msra.mxu0 %v4335_v11 }
 0xde4   :  { %7003 = vmatprep.subr.msk.bf16.mxu0 %vm11787_vm10, %v4288_v61  ;;  %vm11791_vm10 = vmmov %vm11783_vm4 }
 0xdeb   :  { %6831 = vmatpush3.bf16.xpose.msra.mxu0 %v4332_v46 }
 0xdec   :  { %7004 = vmatprep.subr.msk.bf16.mxu0 %vm11789_vm11, %v4286_v23  ;;  %vm11795_vm11 = vmmov %vm11783_vm4 }
 0xded   :  { %v4091_v53 = vpop.xlane.xlu0 %4090 }
 0xdf1   :  { %v4089_v48 = vpop.xlane.xlu0 %4088 }
 0xdf2   :  { %7454 = vrcp.f32 %v4089_v48 }
 0xdf3   :  { %6833 = vmatpush3.bf16.xpose.msra.mxu0 %v4329_v4  ;;  %v4087_v39 = vpop.xlane.xlu1 %4086 }
 0xdf4   :  { %7456 = vrcp.f32 %v4087_v39 }
 0xdf5   :  { %7458 = vrcp.f32 %v4091_v53 }
 0xdf7   :  { %v4093_v44 = vpop.xlane.xlu1 %4092 }
 0xdf8   :  { %7460 = vrcp.f32 %v4093_v44 }
 0xdfb   :  { %v4099_v52 = vpop.xlane.xlu1 %4098 }
 0xdff   :  { %v4095_v30 = vpop.xlane.xlu1 %4094  ;;  %v7455_v0 = vpop.eup %7454 }
 0xe00   :  { %v4131_v51 = vmul.f32 %v7455_v0, %v10073_v57 }
 0xe01   :  { %v7457_v32 = vpop.eup %7456 }
 0xe02   :  { %v4130_v62 = vmul.f32 %v7457_v32, %v10076_v38  ;;  %v7459_v2 = vpop.eup %7458 }
 0xe03   :  { %v4101_v12 = vpop.xlane.xlu1 %4100  ;;  %v4132_v11 = vmul.f32 %v7459_v2, %v10068_v36 }
 0xe04   :  { %v4144_v1 = vpack.c.bf16 %v4131_v51, %v4130_v62  ;;  %7462 = vrcp.f32 %v4101_v12 }
 0xe05   :  { %v7461_v5 = vpop.eup %7460  ;;  %7464 = vrcp.f32 %v4095_v30 }
 0xe06   :  { %6812 = vmatprep.mubr.bf16.mxu0 %v4144_v1  ;;  %v4133_v61 = vmul.f32 %v7461_v5, %v10081_v6  ;;  %7466 = vrcp.f32 %v4099_v52  ;;  %v4107_v6 = vpop.xlane.xlu0 %4106 }
 0xe07   :  { %v4097_v23 = vpop.xlane.xlu1 %4096 }
 0xe08   :  { %7468 = vrcp.f32 %v4097_v23  ;;  %v4145_v46 = vpack.c.bf16 %v4133_v61, %v4132_v11 }
 0xe0a   :  { %6813 = vmatmul.mubr.bf16.gmra.mxu0 %v4145_v46  ;;  %v4103_v52 = vpop.xlane.xlu0 %4102 }
 0xe11   :  { %v7463_v53 = vpop.eup %7462 }
 0xe12   :  { %v7465_v38 = vpop.eup %7464  ;;  %v4137_v4 = vmul.f32 %v7463_v53, %v10096_v8  ;;  %v1327_v53 = vmul.f32 0.125, %v11781_v21 }
 0xe13   :  { %v7467_v48 = vpop.eup %7466  ;;  %v4134_v39 = vmul.f32 %v7465_v38, %v10090_v26  ;;  %v1328_v38 = vmul.f32 0.125, %v11782_v41  ;;  %v11796_v41 = vld [vmem:[#allocation95_spill] sm:$0xff] }
 0xe14   :  { %v4136_v30 = vmul.f32 %v7467_v48, %v10084_v58 }
 0xe15   :  { %v7469_v57 = vpop.eup %7468 }
 0xe16   :  { %v4135_v44 = vmul.f32 %v7469_v57, %v10099_v35  ;;  %v4147_v0 = vpack.c.bf16 %v4137_v4, %v4136_v30 }
 0xe18   :  { %v4146_v36 = vpack.c.bf16 %v4135_v44, %v4134_v39 }
 0xe1a   :  { %6816 = vmatprep.mubr.bf16.mxu0 %v4146_v36  ;;  %v1407_v36 = vpack.c.bf16 %v1328_v38, %v1327_v53 }
 0xe1b   :  { %6817 = vmatmul.mubr.bf16.gmra.mxu0 %v4147_v0  ;;  %v11797_v0 = vld [vmem:[#allocation94_spill] sm:$0xff] }
 0xe2e   :  { %v4109_v32 = vpop.xlane.xlu0 %4108 }
 0xe2f   :  { %7470 = vrcp.f32 %v4109_v32  ;;  %v1336_v32 = vmul.f32 0.125, %v11776_v28  ;;  %v11812_v28 = vld [vmem:[#allocation106_spill] sm:$0xff] }
 0xe30   :  { %7472 = vrcp.f32 %v4103_v52  ;;  %v1335_v52 = vmul.f32 0.125, %v11775_v45  ;;  %v11811_v45 = vld [vmem:[#allocation107_spill] sm:$0xff] }
 0xe31   :  { %7474 = vrcp.f32 %v4107_v6  ;;  %v11798_v6 = vpack.c.bf16 %v11796_v41, %v11797_v0 }
 0xe32   :  { %v4282_v62 = vpop.permute.xlu0 %4281  ;;  %v4105_v51 = vpop.xlane.xlu1 %4104 }
 0xe33   :  { %7476 = vrcp.f32 %v4105_v51  ;;  %v4323_v61 = vsel %vm11793_vm7, %v4282_v62, 0  ;;  %v11801_v51 = vld [vmem:[#allocation100_spill] sm:$0xff]  ;;  %vm11805_vm7 = vmmov %vm11783_vm4 }
 0xe36   :  { %v4280_v8 = vpop.permute.xlu0 %4279  ;;  %v4284_v2 = vpop.permute.xlu1 %4283 }
 0xe37   :  { %7005 = vmatprep.subr.msk.bf16.mxu0 %vm11790_vm9, %v4284_v2  ;;  %v4326_v26 = vsel %vm11791_vm10, %v4284_v2, 0  ;;  %vm11799_vm9 = vmmov %vm11783_vm4 }
 0xe38   :  { %6835 = vmatpush3.bf16.xpose.msra.mxu0 %v4326_v26  ;;  %vm11800_vm10 = vmmov %vm11783_vm4 }
 0xe39   :  { %7006 = vmatprep.subr.msk.bf16.mxu0 %vm11792_vm6, %v4282_v62  ;;  %v1411_v62 = vpack.c.bf16 %v1336_v32, %v1335_v52  ;;  %vm11804_vm6 = vmmov %vm11783_vm4 }
 0xe3a   :  { %v4623_v58 = vpop.permute.xlu0 %4622  ;;  %v4621_v35 = vpop.permute.xlu1 %4620 }
 0xe3b   :  { %6856 = vmatprep.subr.bf16.mxu1 %v4623_v58 }
 0xe3c   :  { %6857 = vmatpush3.bf16.msra.mxu1 %v4623_v58  ;;  %v7471_v12 = vpop.eup %7470  ;;  %v11806_v58 = vld [vmem:[#allocation104_spill] sm:$0xff] }
 0xe3d   :  { %6858 = vmatprep.subr.bf16.mxu1 %v4621_v35  ;;  %v7473_v1 = vpop.eup %7472  ;;  %v4141_v46 = vmul.f32 %v7471_v12, %v10104_v54  ;;  %v4320_v54 = vsel %vm11783_vm4, %v4280_v8, 0 }
 0xe3e   :  { %v4619_v5 = vpop.permute.xlu0 %4618  ;;  %v7475_v11 = vpop.eup %7474  ;;  %v4138_v48 = vmul.f32 %v7473_v1, %v10093_v10  ;;  %v1331_v10 = vmul.f32 0.125, %v11778_v20  ;;  %v1339_v20 = vmul.f32 0.125, %v9458_v15  ;;  %v11813_v1 = vpack.c.bf16 %v11811_v45, %v11812_v28 }
 0xe3f   :  { %v4140_v39 = vmul.f32 %v7475_v11, %v10087_v47 }
 0xe40   :  { %v7477_v23 = vpop.eup %7476  ;;  %6837 = vmatpush3.bf16.xpose.msra.mxu0 %v4323_v61  ;;  %6859 = vmatpush3.bf16.msra.mxu1 %v4621_v35  ;;  %v11807_v35 = vld [vmem:[#allocation103_spill] sm:$0xff] }
 0xe41   :  { %7007 = vmatprep.subr.msk.bf16.mxu0 %vm11794_vm5, %v4280_v8  ;;  %6860 = vmatprep.subr.bf16.mxu1 %v4619_v5  ;;  %v4139_v57 = vmul.f32 %v7477_v23, %v10107_v40  ;;  %v4149_v30 = vpack.c.bf16 %v4141_v46, %v4140_v39  ;;  %v1332_v40 = vmul.f32 0.125, %v11779_v14  ;;  %v11802_v8 = vld [vmem:[#allocation99_spill] sm:$0xff]  ;;  %v1340_v14 = vmul.f32 0.125, %v9474_v56  ;;  %vm11809_vm5 = vmmov %vm11783_vm4 }
 0xe42   :  { %v4617_v4 = vpop.permute.xlu0 %4616  ;;  %v11803_v2 = vpack.c.bf16 %v11801_v51, %v11802_v8  ;;  %v11808_v12 = vpack.c.bf16 %v11806_v58, %v11807_v35 }
 0xe43   :  { %v4148_v44 = vpack.c.bf16 %v4139_v57, %v4138_v48  ;;  %v1409_v47 = vpack.c.bf16 %v1332_v40, %v1331_v10  ;;  %v1413_v26 = vpack.c.bf16 %v1340_v14, %v1339_v20 }
 0xe44   :  { %6861 = vmatpush3.bf16.msra.mxu1 %v4619_v5 }
 0xe45   :  { %6820 = vmatprep.mubr.bf16.mxu0 %v4148_v44  ;;  %6862 = vmatprep.subr.bf16.mxu1 %v4617_v4 }
 0xe46   :  { %6821 = vmatmul.mubr.bf16.gmra.mxu0 %v4149_v30  ;;  %v4615_v21 = vpop.permute.xlu0 %4614 }
 0xe47   :  { %6840 = vmatprep.mubr.msk.bf16.mxu0 %vm11795_vm11, %v1407_v36  ;;  %vm11810_vm11 = vmmov %vm11783_vm4 }
 0xe48   :  { %6839 = vmatpush3.bf16.xpose.msra.mxu0 %v4320_v54  ;;  %6863 = vmatpush3.bf16.msra.mxu1 %v4617_v4 }
 0xe49   :  { %6864 = vmatprep.subr.bf16.mxu1 %v4615_v21 }
 0xe4c   :  { %6865 = vmatpush3.bf16.msra.mxu1 %v4615_v21 }
 0xe4f   :  { %6841 = vmatmul.mubr.msk.bf16.vlgmr.msra.gmra.mxu0 %vm11799_vm9, %v11798_v6  ;;  %vm11827_vm9 = vnez %v11699_v3 }
 0xe50   :  { %6844 = vmatprep.mubr.msk.bf16.mxu0 %vm11800_vm10, %v1409_v47  ;;  %vm11828_vm10 = vnez %v11709_v13 }
 0xe57   :  { %6845 = vmatmul.mubr.msk.bf16.gmra.mxu0 %vm11804_vm6, %v11803_v2  ;;  %vm11829_vm6 = vnez %v11700_v50 }
 0xe58   :  { %6848 = vmatprep.mubr.msk.bf16.mxu0 %vm11805_vm7, %v1411_v62  ;;  %vm11830_vm7 = vnez %v11713_v24 }
 0xe5f   :  { %6849 = vmatmul.mubr.msk.bf16.gmra.mxu0 %vm11809_vm5, %v11808_v12  ;;  %vm11831_vm5 = vnez %v11715_v59 }
 0xe60   :  { %6852 = vmatprep.mubr.msk.bf16.mxu0 %vm11810_vm11, %v1413_v26  ;;  %vm11837_vm11 = vnez %v11711_v55 }
 0xe67   :  { %6853 = vmatmul.mubr.msk.bf16.gmra.mxu0 %vm11783_vm4, %v11813_v1  ;;  %vm11838_vm4 = vnez %v11773_v25 }
 0xe92   :  { %v10193_v5 = vpop.f32.mrf.mxu0 }
 0xe94   :  { %v10195_v11 = vpop.f32.mrf.mxu0 }
 0xe96   :  { %v10197_v15 = vpop.f32.mrf.mxu0 }
 0xe97   :  { %11814 = vst [vmem:[#allocation6_spill] sm:$0xff] %v10197_v15 }
 0xe98   :  { %v10199_v56 = vpop.f32.mrf.mxu0 }
 0xe99   :  { %11815 = vst [vmem:[#allocation7_spill] sm:$0xff] %v10199_v56 }
 0xeca   :  { %v10201_v61 = vpop.f32.mrf.mxu0 }
 0xecb   :  { %11816 = vst [vmem:[#allocation8_spill] sm:$0xff] %v10201_v61 }
 0xecc   :  { %v10203_v23 = vpop.f32.mrf.mxu0 }
 0xece   :  { %v10205_v46 = vpop.f32.mrf.mxu0 }
 0xecf   :  { %11817 = vst [vmem:[#allocation13_spill] sm:$0xff] %v10205_v46 }
 0xed0   :  { %v10207_v53 = vpop.f32.mrf.mxu0 }
 0xed1   :  { %11818 = vst [vmem:[#allocation11_spill] sm:$0xff] %v10207_v53 }
 0xedb   :  { %v10209_v38 = vpop.f32.mrf.mxu0 }
 0xedc   :  { %11819 = vst [vmem:[#allocation12_spill] sm:$0xff] %v10209_v38 }
 0xedd   :  { %v10211_v48 = vpop.f32.mrf.mxu0 }
 0xede   :  { %11820 = vst [vmem:[#allocation92_spill] sm:$0xff] %v10211_v48 }
 0xedf   :  { %v10213_v57 = vpop.f32.mrf.mxu0 }
 0xee0   :  { %11821 = vst [vmem:[#allocation87_spill] sm:$0xff] %v10213_v57 }
 0xee1   :  { %v10215_v4 = vpop.f32.mrf.mxu0 }
 0xee2   :  { %11822 = vst [vmem:[#allocation89_spill] sm:$0xff] %v10215_v4 }
 0xf06   :  { %v10217_v39 = vpop.f32.mrf.mxu0 }
 0xf07   :  { %11823 = vst [vmem:[#allocation84_spill] sm:$0xff] %v10217_v39 }
 0xf08   :  { %v10219_v44 = vpop.f32.mrf.mxu0 }
 0xf09   :  { %11824 = vst [vmem:[#allocation88_spill] sm:$0xff] %v10219_v44 }
 0xf0a   :  { %v10221_v30 = vpop.f32.mrf.mxu0 }
 0xf0b   :  { %11825 = vst [vmem:[#allocation81_spill] sm:$0xff] %v10221_v30 }
 0xf0c   :  { %v10223_v36 = vpop.f32.mrf.mxu0 }
 0xf0d   :  { %11826 = vst [vmem:[#allocation78_spill] sm:$0xff] %v10223_v36 }
 0xf0f   :  { %v6842_v54 = vpop.f32.mrf.mxu0 }
 0xf10   :  { %v4442_v21 = vsel %vm7939_vm12, %v6842_v54, -1e+30 }
 0xf11   :  { %4460 = vmax.xlane.f32.xlu0 %v4442_v21  ;;  %v4377_v10 = vpop.f32.mrf.mxu0 }
 0xf12   :  { %v4440_v40 = vsel %vm7951_vm13, %v4377_v10, -1e+30 }
 0xf13   :  { %4456 = vmax.xlane.f32.xlu1 %v4440_v40  ;;  %v6843_v47 = vpop.f32.mrf.mxu0 }
 0xf14   :  { %v4443_v0 = vsel %vm7964_vm15, %v6843_v47, -1e+30 }
 0xf15   :  { %v4380_v41 = vpop.f32.mrf.mxu0 }
 0xf16   :  { %v10233_v6 = vsel %vm7957_vm14, %v4380_v41, -1e+30  ;;  %v11832_v41 = vld [vmem:[#allocation61_spill] sm:$0xff] }
 0xf17   :  { %4462 = vmax.xlane.f32.xlu1 %v4443_v0  ;;  %4458 = vmax.xlane.f32.xlu0 %v10233_v6  ;;  %v6846_v52 = vpop.f32.mrf.mxu0 }
 0xf18   :  { %v10242_v2 = vsel %vm11703_vm0, %v6846_v52, -1e+30  ;;  %v11833_v52 = vld [vmem:[#allocation124_spill] sm:$0xff] }
 0xf19   :  { %v4393_v32 = vpop.f32.mrf.mxu0 }
 0xf1b   :  { %v6847_v62 = vpop.f32.mrf.mxu0 }
 0xf1c   :  { %v10246_v20 = vsel %vm7995_vm1, %v6847_v62, -1e+30 }
 0xf1d   :  { %v4396_v51 = vpop.f32.mrf.mxu0 }
 0xf1f   :  { %v6850_v8 = vpop.f32.mrf.mxu0 }
 0xf20   :  { %v10262_v58 = vsel %vm11766_vm2, %v6850_v8, -1e+30  ;;  %v11836_v8 = vld [vmem:[#allocation116_spill] sm:$0xff] }
 0xf21   :  { %v4409_v14 = vpop.f32.mrf.mxu0 }
 0xf22   :  { %v10272_v45 = vsel %vm11828_vm10, %v4409_v14, -1e+30 }
 0xf23   :  { %v6851_v26 = vpop.f32.mrf.mxu0 }
 0xf24   :  { %v10266_v35 = vsel %vm11827_vm9, %v6851_v26, -1e+30 }
 0xf25   :  { %v4412_v12 = vpop.f32.mrf.mxu0 }
 0xf26   :  { %v10276_v28 = vsel %vm11829_vm6, %v4412_v12, -1e+30 }
 0xf27   :  { %v6854_v1 = vpop.f32.mrf.mxu0 }
 0xf28   :  { %4610 = vrot.lane.b32.xlu1 %v11780_v43, %s7629_s5  ;;  %v10256_v43 = vsel %vm7881_vm3, %v4396_v51, -1e+30  ;;  %v10282_v54 = vsel %vm11830_vm7, %v6854_v1, -1e+30  ;;  %v11835_v51 = vld [vmem:[#allocation121_spill] sm:$0xff] }
 0xf29   :  { %v4425_v10 = vpop.f32.mrf.mxu0 }
 0xf2a   :  { %v10287_v47 = vsel %vm11831_vm5, %v4425_v10, -1e+30 }
 0xf2b   :  { %v6855_v14 = vpop.f32.mrf.mxu0 }
 0xf2c   :  { %v10306_v26 = vsel %vm11837_vm11, %v6855_v14, -1e+30 }
 0xf2d   :  { %4612 = vrot.lane.b32.xlu0 %v10112_v60, %s7629_s5  ;;  %v10252_v60 = vsel %vm11705_vm8, %v4393_v32, -1e+30  ;;  %v11834_v32 = vld [vmem:[#allocation58_spill] sm:$0xff]  ;;  %v4428_v12 = vpop.f32.mrf.mxu0 }
 0xf2e   :  { %v10296_v62 = vpack.c.bf16 %v11834_v32, %v11833_v52 }
 0xf4c   :  { %4468 = vmax.xlane.f32.xlu0 %v10242_v2  ;;  %4470 = vmax.xlane.f32.xlu1 %v10246_v20 }
 0xf50   :  { %4464 = vmax.xlane.f32.xlu0 %v10252_v60  ;;  %4466 = vmax.xlane.f32.xlu1 %v10256_v43 }
 0xf54   :  { %4476 = vmax.xlane.f32.xlu0 %v10262_v58  ;;  %4478 = vmax.xlane.f32.xlu1 %v10266_v35 }
 0xf58   :  { %4472 = vmax.xlane.f32.xlu0 %v10272_v45  ;;  %4474 = vmax.xlane.f32.xlu1 %v10276_v28 }
 0xf5c   :  { %4484 = vmax.xlane.f32.xlu0 %v10282_v54 }
 0xf60   :  { %4480 = vmax.xlane.f32.xlu0 %v10287_v47 }
 0xf69   :  { %4751 = vrot.lane.b32.xlu1 %v11832_v41, %s7628_s4 }
 0xf76   :  { %4608 = vrot.lane.b32.xlu0 %v10120_v16, %s7629_s5  ;;  %v10311_v16 = vsel %vm11838_vm4, %v4428_v12, -1e+30  ;;  %vm11840_vm4 = vcmask 130048  }
 0xf77   :  { %vm11844_vm11 = vmmov %vm11840_vm4 }
 0xf78   :  { %vm11845_vm5 = vmmov %vm11840_vm4 }
 0xf79   :  { %vm11846_vm7 = vmmov %vm11840_vm4 }
 0xf7a   :  { %4749 = vrot.lane.b32.xlu0 %v10296_v62, %s7628_s4  ;;  %vm11847_vm6 = vmmov %vm11840_vm4 }
 0xf7b   :  { %vm11848_vm10 = vmmov %vm11840_vm4 }
 0xf7c   :  { %vm11849_vm9 = vmmov %vm11840_vm4 }
 0xf7e   :  { %4747 = vrot.lane.b32.xlu0 %v11835_v51, %s7628_s4 }
 0xf82   :  { %4743 = vrot.lane.b32.xlu0 %v11836_v8, %s7628_s4 }
 0xf8d   :  { %4486 = vmax.xlane.f32.xlu1 %v10306_v26 }
 0xf91   :  { %4482 = vmax.xlane.f32.xlu1 %v10311_v16 }
 0xf9a   :  { %v4461_v1 = vpop.xlane.xlu0 %4460 }
 0xf9b   :  { %v4490_v10 = vsub.f32 %v4442_v21, %v4461_v1 }
 0xf9c   :  { %v4457_v30 = vpop.xlane.xlu1 %4456 }
 0xf9d   :  { %v4508_v36 = vmul.f32 1.442695, %v4490_v10  ;;  %v4488_v57 = vsub.f32 %v4440_v40, %v4457_v30 }
 0xf9f   :  { %7478 = vpow2.f32 %v4508_v36  ;;  %v4504_v4 = vmul.f32 1.442695, %v4488_v57 }
 0xfa0   :  { %v4459_v46 = vpop.xlane.xlu0 %4458  ;;  %v4463_v53 = vpop.xlane.xlu1 %4462 }
 0xfa1   :  { %v4491_v14 = vsub.f32 %v4443_v0, %v4463_v53  ;;  %7480 = vpow2.f32 %v4504_v4  ;;  %v4489_v15 = vsub.f32 %v10233_v6, %v4459_v46 }
 0xfa3   :  { %v4510_v56 = vmul.f32 1.442695, %v4491_v14  ;;  %v4506_v44 = vmul.f32 1.442695, %v4489_v15  ;;  %v11839_v15 = vld [vmem:[#allocation123_spill] sm:$0xff] }
 0xfa4   :  { %v4613_v39 = vpop.permute.xlu0 %4612  ;;  %v4611_v12 = vpop.permute.xlu1 %4610 }
 0xfa5   :  { %6866 = vmatprep.subr.bf16.mxu1 %v4613_v39  ;;  %7482 = vpow2.f32 %v4510_v56 }
 0xfa6   :  { %6867 = vmatpush3.bf16.msra.mxu1 %v4613_v39  ;;  %7484 = vpow2.f32 %v4506_v44 }
 0xfa7   :  { %6868 = vmatprep.subr.bf16.mxu1 %v4611_v12 }
 0xfaa   :  { %6869 = vmatpush3.bf16.msra.mxu1 %v4611_v12 }
 0xfac   :  { %v10315_v21 = vpop.eup %7478 }
 0xfad   :  { %4540 = vadd.xlane.f32.xlu1 %v10315_v21 }
 0xfae   :  { %v10318_v57 = vpop.eup %7480 }
 0xfb1   :  { %4536 = vadd.xlane.f32.xlu1 %v10318_v57 }
 0xfb2   :  { %v10321_v53 = vpop.eup %7482 }
 0xfb3   :  { %v10324_v46 = vpop.eup %7484 }
 0xfb5   :  { %4542 = vadd.xlane.f32.xlu1 %v10321_v53 }
 0xfb9   :  { %4538 = vadd.xlane.f32.xlu1 %v10324_v46 }
 0xfca   :  { %4745 = vrot.lane.b32.xlu1 %v11839_v15, %s7628_s4 }
 0xfd5   :  { %v4469_v56 = vpop.xlane.xlu0 %4468  ;;  %v4471_v4 = vpop.xlane.xlu1 %4470 }
 0xfd6   :  { %v4494_v39 = vsub.f32 %v10242_v2, %v4469_v56  ;;  %v4495_v6 = vsub.f32 %v10246_v20, %v4471_v4 }
 0xfd8   :  { %v4516_v44 = vmul.f32 1.442695, %v4494_v39  ;;  %v4518_v12 = vmul.f32 1.442695, %v4495_v6 }
 0xfd9   :  { %v4465_v30 = vpop.xlane.xlu0 %4464  ;;  %v4467_v36 = vpop.xlane.xlu1 %4466 }
 0xfda   :  { %7486 = vpow2.f32 %v4516_v44  ;;  %v4492_v40 = vsub.f32 %v10252_v60, %v4465_v30  ;;  %v4493_v0 = vsub.f32 %v10256_v43, %v4467_v36 }
 0xfdc   :  { %v4512_v1 = vmul.f32 1.442695, %v4492_v40  ;;  %v4514_v10 = vmul.f32 1.442695, %v4493_v0 }
 0xfdd   :  { %v4477_v14 = vpop.xlane.xlu0 %4476  ;;  %v4479_v2 = vpop.xlane.xlu1 %4478 }
 0xfde   :  { %7488 = vpow2.f32 %v4514_v10  ;;  %v4498_v38 = vsub.f32 %v10262_v58, %v4477_v14  ;;  %v4499_v20 = vsub.f32 %v10266_v35, %v4479_v2 }
 0xfdf   :  { %7490 = vpow2.f32 %v4512_v1 }
 0xfe0   :  { %7492 = vpow2.f32 %v4518_v12  ;;  %v4524_v56 = vmul.f32 1.442695, %v4498_v38 }
 0xfe1   :  { %v4473_v48 = vpop.xlane.xlu0 %4472  ;;  %v4475_v36 = vpop.xlane.xlu1 %4474 }
 0xfe2   :  { %v4496_v39 = vsub.f32 %v10272_v45, %v4473_v48  ;;  %7494 = vpow2.f32 %v4524_v56  ;;  %v4526_v48 = vmul.f32 1.442695, %v4499_v20  ;;  %v4497_v45 = vsub.f32 %v10276_v28, %v4475_v36 }
 0xfe4   :  { %v4520_v4 = vmul.f32 1.442695, %v4496_v39 }
 0xfe5   :  { %v4485_v44 = vpop.xlane.xlu0 %4484  ;;  %v4752_v6 = vpop.permute.xlu1 %4751 }
 0xfe6   :  { %v4502_v60 = vsub.f32 %v10282_v54, %v4485_v44 }
 0xfe7   :  { %v10336_v43 = vpop.eup %7486 }
 0xfe8   :  { %v4532_v30 = vmul.f32 1.442695, %v4502_v60  ;;  %4548 = vadd.xlane.f32.xlu0 %v10336_v43 }
 0xfe9   :  { %v4481_v58 = vpop.xlane.xlu0 %4480 }
 0xfea   :  { %7496 = vpow2.f32 %v4532_v30  ;;  %v4500_v40 = vsub.f32 %v10287_v47, %v4481_v58  ;;  %v4522_v47 = vmul.f32 1.442695, %v4497_v45  ;;  %v11841_v45 = vld [vmem:[#allocation118_spill] sm:$0xff] }
 0xfeb   :  { %v10341_v38 = vpop.eup %7488  ;;  %7498 = vpow2.f32 %v4520_v4 }
 0xfec   :  { %v4528_v54 = vmul.f32 1.442695, %v4500_v40  ;;  %v10344_v0 = vpop.eup %7490  ;;  %4546 = vadd.xlane.f32.xlu0 %v10341_v38 }
 0xfed   :  { %v4609_v35 = vpop.permute.xlu0 %4608  ;;  %v10349_v1 = vpop.eup %7492 }
 0xfee   :  { %7500 = vpow2.f32 %v4528_v54  ;;  %4544 = vadd.xlane.f32.xlu1 %v10344_v0  ;;  %6870 = vmatprep.subr.bf16.mxu1 %v4609_v35  ;;  %v11842_v54 = vld [vmem:[#allocation110_spill] sm:$0xff] }
 0xfef   :  { %6871 = vmatpush3.bf16.msra.mxu1 %v4609_v35  ;;  %7502 = vpow2.f32 %v4526_v48  ;;  %v10352_v28 = vpop.eup %7494  ;;  %v11843_v35 = vld [vmem:[#allocation112_spill] sm:$0xff] }
 0xff0   :  { %7008 = vmatprep.subr.msk.bf16.mxu1 %vm11840_vm4, %v4752_v6  ;;  %7504 = vpow2.f32 %v4522_v47 }
 0xff2   :  { %4550 = vadd.xlane.f32.xlu1 %v10349_v1 }
 0xff6   :  { %4556 = vadd.xlane.f32.xlu1 %v10352_v28 }
 0xff7   :  { %v10355_v10 = vpop.eup %7496 }
 0xff8   :  { %4564 = vadd.xlane.f32.xlu0 %v10355_v10  ;;  %v10358_v14 = vpop.eup %7498 }
 0xffa   :  { %4552 = vadd.xlane.f32.xlu1 %v10358_v14 }
 0xffb   :  { %v10361_v12 = vpop.eup %7500 }
 0xffc   :  { %4560 = vadd.xlane.f32.xlu0 %v10361_v12  ;;  %v10364_v2 = vpop.eup %7502 }
 0xffd   :  { %v10367_v56 = vpop.eup %7504 }
 0xffe   :  { %4558 = vadd.xlane.f32.xlu1 %v10364_v2 }
0x1002   :  { %4554 = vadd.xlane.f32.xlu1 %v10367_v56 }
0x1016   :  { %v4487_v39 = vpop.xlane.xlu1 %4486 }
0x1017   :  { %v4503_v44 = vsub.f32 %v10306_v26, %v4487_v39 }
0x1019   :  { %v4534_v60 = vmul.f32 1.442695, %v4503_v44 }
0x101a   :  { %v4483_v20 = vpop.xlane.xlu1 %4482 }
0x101b   :  { %7506 = vpow2.f32 %v4534_v60  ;;  %v4501_v4 = vsub.f32 %v10311_v16, %v4483_v20 }
0x101d   :  { %v4530_v30 = vmul.f32 1.442695, %v4501_v4 }
0x101f   :  { %7508 = vpow2.f32 %v4530_v30 }
0x1028   :  { %v10372_v36 = vpop.eup %7506 }
0x1029   :  { %4566 = vadd.xlane.f32.xlu0 %v10372_v36 }
0x102c   :  { %v10375_v58 = vpop.eup %7508 }
0x102d   :  { %4562 = vadd.xlane.f32.xlu1 %v10375_v58 }
0x1036   :  { %v4541_v40 = vpop.xlane.xlu1 %4540 }
0x103a   :  { %v4537_v48 = vpop.xlane.xlu1 %4536 }
0x103e   :  { %4741 = vrot.lane.b32.xlu1 %v11841_v45, %s7628_s4  ;;  %v4543_v26 = vpop.xlane.xlu1 %4542 }
0x103f   :  { %4739 = vrot.lane.b32.xlu0 %v11842_v54, %s7628_s4  ;;  %7510 = vrcp.f32 %v4543_v26  ;;  %v4799_v26 = vsel %vm11840_vm4, %v4752_v6, 0 }
0x1040   :  { %7512 = vrcp.f32 %v4537_v48 }
0x1041   :  { %7514 = vrcp.f32 %v4541_v40 }
0x1042   :  { %v4539_v16 = vpop.xlane.xlu1 %4538  ;;  %5078 = vrot.lane.b32.xlu1 %v10296_v62, %s7629_s5 }
0x1043   :  { %7516 = vrcp.f32 %v4539_v16  ;;  %4737 = vrot.lane.b32.xlu0 %v11843_v35, %s7628_s4  ;;  %v4750_v16 = vpop.permute.xlu0 %4749 }
0x1047   :  { %5080 = vrot.lane.b32.xlu0 %v11832_v41, %s7629_s5  ;;  %v4796_v41 = vsel %vm11845_vm5, %v4750_v16, 0  ;;  %v4748_v61 = vpop.permute.xlu0 %4747  ;;  %vm11855_vm5 = vmmov %vm11840_vm4 }
0x104c   :  { %v7511_v47 = vpop.eup %7510 }
0x104d   :  { %v7513_v39 = vpop.eup %7512  ;;  %v4587_v20 = vmul.f32 %v7511_v47, %v10321_v53  ;;  %v4746_v53 = vpop.permute.xlu1 %4745 }
0x104e   :  { %v7515_v44 = vpop.eup %7514  ;;  %v4584_v4 = vmul.f32 %v7513_v39, %v10318_v57  ;;  %v4793_v57 = vsel %vm11847_vm6, %v4748_v61, 0  ;;  %vm11853_vm6 = vmmov %vm11840_vm4 }
0x104f   :  { %v4586_v40 = vmul.f32 %v7515_v44, %v10315_v21  ;;  %v4744_v21 = vpop.permute.xlu0 %4743 }
0x1050   :  { %v7517_v60 = vpop.eup %7516 }
0x1051   :  { %v4585_v30 = vmul.f32 %v7517_v60, %v10324_v46  ;;  %v4601_v48 = vpack.c.bf16 %v4587_v20, %v4586_v40  ;;  %v4790_v46 = vsel %vm11849_vm9, %v4746_v53, 0  ;;  %vm11851_vm9 = vmmov %vm11840_vm4 }
0x1053   :  { %v4600_v62 = vpack.c.bf16 %v4585_v30, %v4584_v4 }
0x1055   :  { %6872 = vmatprep.mubr.bf16.mxu1 %v4600_v62 }
0x1056   :  { %6873 = vmatmul.mubr.bf16.vlgmr.msra.gmra.mxu1 %v4601_v48 }
0x1057   :  { %6889 = vmatpush3.bf16.xpose.msra.mxu1 %v4799_v26 }
0x1058   :  { %7009 = vmatprep.subr.msk.bf16.mxu1 %vm11844_vm11, %v4750_v16  ;;  %vm11850_vm11 = vmmov %vm11840_vm4 }
0x1059   :  { %v4787_v39 = vsel %vm11850_vm11, %v4744_v21, 0  ;;  %vm11859_vm11 = vmmov %vm11840_vm4 }
0x105f   :  { %6891 = vmatpush3.bf16.xpose.msra.mxu1 %v4796_v41 }
0x1060   :  { %7010 = vmatprep.subr.msk.bf16.mxu1 %vm11846_vm7, %v4748_v61  ;;  %vm11854_vm7 = vmmov %vm11840_vm4 }
0x1067   :  { %6893 = vmatpush3.bf16.xpose.msra.mxu1 %v4793_v57 }
0x1068   :  { %7011 = vmatprep.subr.msk.bf16.mxu1 %vm11848_vm10, %v4746_v53  ;;  %vm11852_vm10 = vmmov %vm11840_vm4 }
0x106f   :  { %6895 = vmatpush3.bf16.xpose.msra.mxu1 %v4790_v46 }
0x1070   :  { %7012 = vmatprep.subr.msk.bf16.mxu1 %vm11840_vm4, %v4744_v21 }
0x1071   :  { %v4549_v6 = vpop.xlane.xlu0 %4548 }
0x1075   :  { %v4547_v47 = vpop.xlane.xlu0 %4546 }
0x1076   :  { %7518 = vrcp.f32 %v4547_v47 }
0x1077   :  { %6897 = vmatpush3.bf16.xpose.msra.mxu1 %v4787_v39  ;;  %v4545_v44 = vpop.xlane.xlu1 %4544 }
0x1078   :  { %7520 = vrcp.f32 %v4545_v44 }
0x1079   :  { %7522 = vrcp.f32 %v4549_v6 }
0x107b   :  { %v4551_v61 = vpop.xlane.xlu1 %4550 }
0x107c   :  { %7524 = vrcp.f32 %v4551_v61 }
0x107f   :  { %v4557_v60 = vpop.xlane.xlu1 %4556 }
0x1083   :  { %v4553_v20 = vpop.xlane.xlu1 %4552  ;;  %v7519_v4 = vpop.eup %7518 }
0x1084   :  { %v4589_v62 = vmul.f32 %v7519_v4, %v10341_v38 }
0x1085   :  { %v7521_v30 = vpop.eup %7520 }
0x1086   :  { %v4588_v40 = vmul.f32 %v7521_v30, %v10344_v0  ;;  %v7523_v48 = vpop.eup %7522 }
0x1087   :  { %v4559_v26 = vpop.xlane.xlu1 %4558  ;;  %v4590_v57 = vmul.f32 %v7523_v48, %v10336_v43 }
0x1088   :  { %v4602_v16 = vpack.c.bf16 %v4589_v62, %v4588_v40  ;;  %7526 = vrcp.f32 %v4559_v26 }
0x1089   :  { %v7525_v41 = vpop.eup %7524  ;;  %7528 = vrcp.f32 %v4553_v20 }
0x108a   :  { %6876 = vmatprep.mubr.bf16.mxu1 %v4602_v16  ;;  %v4591_v53 = vmul.f32 %v7525_v41, %v10349_v1  ;;  %7530 = vrcp.f32 %v4557_v60  ;;  %v4565_v1 = vpop.xlane.xlu0 %4564 }
0x108b   :  { %v4555_v21 = vpop.xlane.xlu1 %4554 }
0x108c   :  { %7532 = vrcp.f32 %v4555_v21  ;;  %v4603_v46 = vpack.c.bf16 %v4591_v53, %v4590_v57 }
0x108e   :  { %6877 = vmatmul.mubr.bf16.gmra.mxu1 %v4603_v46  ;;  %v4561_v60 = vpop.xlane.xlu0 %4560 }
0x1095   :  { %v7527_v6 = vpop.eup %7526 }
0x1096   :  { %v7529_v0 = vpop.eup %7528  ;;  %v4595_v39 = vmul.f32 %v7527_v6, %v10364_v2 }
0x1097   :  { %v7531_v47 = vpop.eup %7530  ;;  %v4592_v44 = vmul.f32 %v7529_v0, %v10358_v14 }
0x1098   :  { %v4594_v20 = vmul.f32 %v7531_v47, %v10352_v28 }
0x1099   :  { %v7533_v38 = vpop.eup %7532 }
0x109a   :  { %v4593_v61 = vmul.f32 %v7533_v38, %v10367_v56  ;;  %v4605_v4 = vpack.c.bf16 %v4595_v39, %v4594_v20  ;;  %v11856_v39 = vld [vmem:[#allocation111_spill] sm:$0xff] }
0x109c   :  { %v4604_v43 = vpack.c.bf16 %v4593_v61, %v4592_v44  ;;  %v11857_v44 = vld [vmem:[#allocation108_spill] sm:$0xff] }
0x109d   :  { %v11858_v61 = vpack.c.bf16 %v11856_v39, %v11857_v44 }
0x109e   :  { %6880 = vmatprep.mubr.bf16.mxu1 %v4604_v43  ;;  %v11861_v43 = vld [vmem:[#allocation52_spill] sm:$0xff] }
0x109f   :  { %6881 = vmatmul.mubr.bf16.gmra.mxu1 %v4605_v4 }
0x10b2   :  { %v4567_v30 = vpop.xlane.xlu0 %4566 }
0x10b3   :  { %7534 = vrcp.f32 %v4567_v30 }
0x10b4   :  { %7536 = vrcp.f32 %v4561_v60  ;;  %v11869_v60 = vld [vmem:[#allocation113_spill] sm:$0xff] }
0x10b5   :  { %7538 = vrcp.f32 %v4565_v1  ;;  %v11868_v1 = vld [vmem:[#allocation115_spill] sm:$0xff] }
0x10b6   :  { %v4563_v40 = vpop.xlane.xlu1 %4562  ;;  %v4740_v62 = vpop.permute.xlu0 %4739  ;;  %v11870_v30 = vpack.c.bf16 %v11868_v1, %v11869_v60 }
0x10b7   :  { %7540 = vrcp.f32 %v4563_v40  ;;  %v4781_v57 = vsel %vm11854_vm7, %v4740_v62, 0  ;;  %v11872_v40 = vld [vmem:[#allocation122_spill] sm:$0xff]  ;;  %vm11875_vm7 = vmmov %vm11840_vm4 }
0x10ba   :  { %v4742_v2 = vpop.permute.xlu1 %4741  ;;  %v4738_v48 = vpop.permute.xlu0 %4737 }
0x10bb   :  { %7013 = vmatprep.subr.msk.bf16.mxu1 %vm11851_vm9, %v4742_v2  ;;  %v4784_v14 = vsel %vm11852_vm10, %v4742_v2, 0  ;;  %v4778_v20 = vsel %vm11859_vm11, %v4738_v48, 0  ;;  %vm11863_vm9 = vmmov %vm11840_vm4 }
0x10bc   :  { %6899 = vmatpush3.bf16.xpose.msra.mxu1 %v4784_v14  ;;  %vm11867_vm10 = vmmov %vm11840_vm4  ;;  %v1356_v14 = vmul.f32 0.125, %v11834_v32 }
0x10bd   :  { %7014 = vmatprep.subr.msk.bf16.mxu1 %vm11853_vm6, %v4740_v62  ;;  %vm11871_vm6 = vmmov %vm11840_vm4  ;;  %v11873_v62 = vld [vmem:[#allocation72_spill] sm:$0xff] }
0x10be   :  { %v5081_v28 = vpop.permute.xlu0 %5080  ;;  %v5079_v56 = vpop.permute.xlu1 %5078  ;;  %v11874_v2 = vpack.c.bf16 %v11872_v40, %v11873_v62  ;;  %vm11883_vm11 = vmmov %vm11840_vm4 }
0x10bf   :  { %6920 = vmatprep.subr.bf16.mxu0 %v5081_v28 }
0x10c0   :  { %6921 = vmatpush3.bf16.msra.mxu0 %v5081_v28  ;;  %v7535_v26 = vpop.eup %7534 }
0x10c1   :  { %6922 = vmatprep.subr.bf16.mxu0 %v5079_v56  ;;  %v7537_v16 = vpop.eup %7536  ;;  %v4599_v21 = vmul.f32 %v7535_v26, %v10372_v36  ;;  %v11860_v36 = vld [vmem:[#allocation109_spill] sm:$0xff]  ;;  %v11877_v26 = vld [vmem:[#allocation119_spill] sm:$0xff] }
0x10c2   :  { %v7539_v41 = vpop.eup %7538  ;;  %v4596_v46 = vmul.f32 %v7537_v16, %v10361_v12  ;;  %v11862_v4 = vpack.c.bf16 %v11860_v36, %v11861_v43  ;;  %v11864_v12 = vld [vmem:[#allocation117_spill] sm:$0xff] }
0x10c3   :  { %v4598_v0 = vmul.f32 %v7539_v41, %v10355_v10  ;;  %v11880_v41 = vld [vmem:[#allocation71_spill] sm:$0xff] }
0x10c4   :  { %v7541_v53 = vpop.eup %7540  ;;  %6901 = vmatpush3.bf16.xpose.msra.mxu1 %v4781_v57  ;;  %6923 = vmatpush3.bf16.msra.mxu0 %v5079_v56  ;;  %v11876_v56 = vld [vmem:[#allocation120_spill] sm:$0xff]  ;;  %v11881_v57 = vld [vmem:[#allocation125_spill] sm:$0xff] }
0x10c5   :  { %7015 = vmatprep.subr.msk.bf16.mxu1 %vm11855_vm5, %v4738_v48  ;;  %v4597_v6 = vmul.f32 %v7541_v53, %v10375_v58  ;;  %v4607_v38 = vpack.c.bf16 %v4599_v21, %v4598_v0  ;;  %v11865_v58 = vld [vmem:[#allocation114_spill] sm:$0xff]  ;;  %v1355_v48 = vmul.f32 0.125, %v11833_v52  ;;  %v11878_v16 = vpack.c.bf16 %v11876_v56, %v11877_v26  ;;  %vm11879_vm5 = vmmov %vm11840_vm4 }
0x10c6   :  { %v11866_v10 = vpack.c.bf16 %v11864_v12, %v11865_v58  ;;  %v11882_v53 = vpack.c.bf16 %v11880_v41, %v11881_v57 }
0x10c7   :  { %v4606_v47 = vpack.c.bf16 %v4597_v6, %v4596_v46  ;;  %v1421_v28 = vpack.c.bf16 %v1356_v14, %v1355_v48 }
0x10c9   :  { %6884 = vmatprep.mubr.bf16.mxu1 %v4606_v47 }
0x10ca   :  { %6885 = vmatmul.mubr.bf16.gmra.mxu1 %v4607_v38 }
0x10cb   :  { %6904 = vmatprep.mubr.msk.bf16.mxu1 %vm11840_vm4, %v11858_v61 }
0x10cc   :  { %6903 = vmatpush3.bf16.xpose.msra.mxu1 %v4778_v20 }
0x10d3   :  { %6905 = vmatmul.mubr.msk.bf16.vlgmr.msra.gmra.mxu1 %vm11863_vm9, %v11862_v4  ;;  %vm11958_vm9 = vmmov %vm11840_vm4 }
0x10d4   :  { %6908 = vmatprep.mubr.msk.bf16.mxu1 %vm11867_vm10, %v11866_v10  ;;  %vm5668_vm10 = vcmask 392192  }
0x10db   :  { %6909 = vmatmul.mubr.msk.bf16.gmra.mxu1 %vm11871_vm6, %v11870_v30  ;;  %vm11962_vm6 = vmmov %vm11840_vm4 }
0x10dc   :  { %6912 = vmatprep.mubr.msk.bf16.mxu1 %vm11875_vm7, %v11874_v2  ;;  %vm11965_vm7 = vmmov %vm11840_vm4 }
0x10e3   :  { %6913 = vmatmul.mubr.msk.bf16.gmra.mxu1 %vm11879_vm5, %v11878_v16  ;;  %vm11968_vm5 = vmmov %vm11840_vm4 }
0x10e4   :  { %6916 = vmatprep.mubr.msk.bf16.mxu1 %vm11840_vm4, %v1421_v28 }
0x10eb   :  { %6917 = vmatmul.mubr.msk.bf16.gmra.mxu1 %vm11883_vm11, %v11882_v53  ;;  %vm11973_vm11 = vmmov %vm11840_vm4 }
0x1116   :  { %v10450_v21 = vpop.f32.mrf.mxu1 }
0x1118   :  { %v10452_v46 = vpop.f32.mrf.mxu1 }
0x111a   :  { %v10454_v52 = vpop.f32.mrf.mxu1 }
0x111c   :  { %v10456_v32 = vpop.f32.mrf.mxu1 }
0x114e   :  { %v10458_v6 = vpop.f32.mrf.mxu1 }
0x1150   :  { %v10460_v0 = vpop.f32.mrf.mxu1 }
0x1152   :  { %v10462_v47 = vpop.f32.mrf.mxu1 }
0x1154   :  { %v10464_v38 = vpop.f32.mrf.mxu1 }
0x115f   :  { %v10466_v39 = vpop.f32.mrf.mxu1 }
0x1161   :  { %v10468_v44 = vpop.f32.mrf.mxu1 }
0x1163   :  { %v10470_v61 = vpop.f32.mrf.mxu1 }
0x1165   :  { %v10472_v20 = vpop.f32.mrf.mxu1 }
0x118a   :  { %v10474_v36 = vpop.f32.mrf.mxu1 }
0x118c   :  { %v10476_v43 = vpop.f32.mrf.mxu1 }
0x118e   :  { %v10478_v4 = vpop.f32.mrf.mxu1 }
0x1190   :  { %v10480_v12 = vpop.f32.mrf.mxu1 }
0x1193   :  { %v6906_v58 = vpop.f32.mrf.mxu1 }
0x1194   :  { %v4900_v10 = vsel %vm7939_vm12, %v6906_v58, -1e+30  ;;  %vm11885_vm12 = vnez %v11709_v13 }
0x1195   :  { %4918 = vmax.xlane.f32.xlu0 %v4900_v10  ;;  %v4835_v1 = vpop.f32.mrf.mxu1 }
0x1196   :  { %v4898_v60 = vsel %vm7951_vm13, %v4835_v1, -1e+30  ;;  %vm11887_vm13 = vnez %v11713_v24 }
0x1197   :  { %4914 = vmax.xlane.f32.xlu1 %v4898_v60  ;;  %v6907_v30 = vpop.f32.mrf.mxu1 }
0x1198   :  { %v4901_v62 = vsel %vm7964_vm15, %v6907_v30, -1e+30  ;;  %vm11889_vm15 = vnez %v11711_v55 }
0x1199   :  { %v4838_v40 = vpop.f32.mrf.mxu1 }
0x119a   :  { %v4899_v2 = vsel %vm7957_vm14, %v4838_v40, -1e+30  ;;  %vm11888_vm14 = vnez %v11715_v59 }
0x119b   :  { %4920 = vmax.xlane.f32.xlu1 %v4901_v62  ;;  %4916 = vmax.xlane.f32.xlu0 %v4899_v2  ;;  %v6910_v48 = vpop.f32.mrf.mxu1 }
0x119c   :  { %v4904_v42 = vsel %vm11703_vm0, %v6910_v48, -1e+30  ;;  %vm11890_vm0 = vnez %v11773_v25 }
0x119d   :  { %v4851_v14 = vpop.f32.mrf.mxu1 }
0x119e   :  { %v4902_v31 = vsel %vm11705_vm8, %v4851_v14, -1e+30  ;;  %vm11956_vm8 = vmmov %vm11840_vm4 }
0x119f   :  { %4926 = vmax.xlane.f32.xlu0 %v4904_v42  ;;  %v6911_v28 = vpop.f32.mrf.mxu1 }
0x11a0   :  { %v10494_v19 = vsel %vm7995_vm1, %v6911_v28, -1e+30  ;;  %vm11884_vm1 = vnez %v11699_v3 }
0x11a1   :  { %4928 = vmax.xlane.f32.xlu1 %v10494_v19  ;;  %v4854_v33 = vpop.f32.mrf.mxu1 }
0x11a2   :  { %v4903_v26 = vsel %vm7881_vm3, %v4854_v33, -1e+30  ;;  %vm11886_vm3 = vnez %v11700_v50 }
0x11a3   :  { %4922 = vmax.xlane.f32.xlu0 %v4902_v31  ;;  %v6914_v56 = vpop.f32.mrf.mxu1 }
0x11a4   :  { %v10503_v16 = vsel %vm11766_vm2, %v6914_v56, -1e+30  ;;  %vm5651_vm2 = vcmask 261120  }
0x11a5   :  { %4924 = vmax.xlane.f32.xlu1 %v4903_v26  ;;  %v4867_v37 = vpop.f32.mrf.mxu1 }
0x11a6   :  { %v10513_v63 = vsel %vm11885_vm12, %v4867_v37, -1e+30  ;;  %vm11977_vm12 = vcmask 523264  }
0x11a7   :  { %4934 = vmax.xlane.f32.xlu0 %v10503_v16  ;;  %v6915_v27 = vpop.f32.mrf.mxu1 }
0x11a8   :  { %v10508_v41 = vsel %vm11884_vm1, %v6915_v27, -1e+30  ;;  %vm11976_vm1 = vmmov %vm11840_vm4 }
0x11a9   :  { %4936 = vmax.xlane.f32.xlu1 %v10508_v41  ;;  %v4870_v49 = vpop.f32.mrf.mxu1 }
0x11aa   :  { %v10518_v22 = vsel %vm11886_vm3, %v4870_v49, -1e+30  ;;  %vm11978_vm3 = vmmov %vm11977_vm12 }
0x11ab   :  { %4930 = vmax.xlane.f32.xlu0 %v10513_v63  ;;  %v6918_v57 = vpop.f32.mrf.mxu1 }
0x11ac   :  { %v10523_v3 = vsel %vm11887_vm13, %v6918_v57, -1e+30  ;;  %vm11979_vm13 = vmmov %vm11978_vm3 }
0x11ad   :  { %4932 = vmax.xlane.f32.xlu1 %v10518_v22  ;;  %v4883_v53 = vpop.f32.mrf.mxu1 }
0x11ae   :  { %v10528_v13 = vsel %vm11888_vm14, %v4883_v53, -1e+30  ;;  %vm11981_vm14 = vmmov %vm11976_vm1 }
0x11af   :  { %4942 = vmax.xlane.f32.xlu0 %v10523_v3  ;;  %v6919_v24 = vpop.f32.mrf.mxu1 }
0x11b0   :  { %v10541_v50 = vsel %vm11889_vm15, %v6919_v24, -1e+30  ;;  %vm11982_vm15 = vmmov %vm11978_vm3 }
0x11b1   :  { %v4886_v59 = vpop.f32.mrf.mxu1 }
0x11b3   :  { %4938 = vmax.xlane.f32.xlu0 %v10528_v13 }
0x11be   :  { %5072 = vrot.lane.b32.xlu1 %v11836_v8, %s7629_s5  ;;  %v10546_v8 = vsel %vm11890_vm0, %v4886_v59, -1e+30  ;;  %vm11984_vm0 = vmmov %vm11976_vm1 }
0x11c9   :  { %5076 = vrot.lane.b32.xlu0 %v11835_v51, %s7629_s5 }
0x11cd   :  { %5074 = vrot.lane.b32.xlu0 %v11839_v15, %s7629_s5 }
0x11d1   :  { %5068 = vrot.lane.b32.xlu0 %v11842_v54, %s7629_s5 }
0x11e2   :  { %4944 = vmax.xlane.f32.xlu1 %v10541_v50 }
0x11e6   :  { %4940 = vmax.xlane.f32.xlu1 %v10546_v8 }
0x11f7   :  { %5070 = vrot.lane.b32.xlu1 %v11841_v45, %s7629_s5 }
0x121e   :  { %v4919_v51 = vpop.xlane.xlu0 %4918 }
0x121f   :  { %v4948_v15 = vsub.f32 %v4900_v10, %v4919_v51 }
0x1220   :  { %v4915_v54 = vpop.xlane.xlu1 %4914 }
0x1221   :  { %v4966_v58 = vmul.f32 1.442695, %v4948_v15  ;;  %v4946_v1 = vsub.f32 %v4898_v60, %v4915_v54 }
0x1223   :  { %7542 = vpow2.f32 %v4966_v58  ;;  %v4962_v55 = vmul.f32 1.442695, %v4946_v1 }
0x1224   :  { %v4921_v30 = vpop.xlane.xlu1 %4920  ;;  %v4917_v40 = vpop.xlane.xlu0 %4916 }
0x1225   :  { %v4949_v48 = vsub.f32 %v4901_v62, %v4921_v30  ;;  %7544 = vpow2.f32 %v4962_v55  ;;  %v4947_v25 = vsub.f32 %v4899_v2, %v4917_v40 }
0x1227   :  { %v4968_v14 = vmul.f32 1.442695, %v4949_v48  ;;  %v4964_v37 = vmul.f32 1.442695, %v4947_v25 }
0x1228   :  { %v4927_v28 = vpop.xlane.xlu0 %4926 }
0x1229   :  { %v4952_v33 = vsub.f32 %v4904_v42, %v4927_v28  ;;  %7546 = vpow2.f32 %v4968_v14 }
0x122a   :  { %v4929_v56 = vpop.xlane.xlu1 %4928 }
0x122b   :  { %v4974_v27 = vmul.f32 1.442695, %v4952_v33  ;;  %v4953_v10 = vsub.f32 %v10494_v19, %v4929_v56 }
0x122c   :  { %v4923_v45 = vpop.xlane.xlu0 %4922 }
0x122d   :  { %7548 = vpow2.f32 %v4974_v27  ;;  %v4950_v49 = vsub.f32 %v4902_v31, %v4923_v45  ;;  %v4976_v59 = vmul.f32 1.442695, %v4953_v10 }
0x122e   :  { %v4925_v60 = vpop.xlane.xlu1 %4924  ;;  %7550 = vpow2.f32 %v4964_v37 }
0x122f   :  { %v4970_v57 = vmul.f32 1.442695, %v4950_v49  ;;  %v4951_v53 = vsub.f32 %v4903_v26, %v4925_v60 }
0x1230   :  { %v10552_v24 = vpop.eup %7542  ;;  %v4935_v62 = vpop.xlane.xlu0 %4934 }
0x1231   :  { %7552 = vpow2.f32 %v4970_v57  ;;  %v4972_v2 = vmul.f32 1.442695, %v4951_v53  ;;  %v4956_v42 = vsub.f32 %v10503_v16, %v4935_v62  ;;  %4998 = vadd.xlane.f32.xlu1 %v10552_v24 }
0x1232   :  { %v4937_v51 = vpop.xlane.xlu1 %4936  ;;  %v10556_v15 = vpop.eup %7544 }
0x1233   :  { %7554 = vpow2.f32 %v4972_v2  ;;  %v4982_v31 = vmul.f32 1.442695, %v4956_v42  ;;  %v4957_v16 = vsub.f32 %v10508_v41, %v4937_v51  ;;  %v11892_v2 = vld [vmem:[#allocation43_spill] sm:$0xff]  ;;  %v11893_v51 = vld [vmem:[#allocation46_spill] sm:$0xff] }
0x1234   :  { %v4931_v19 = vpop.xlane.xlu0 %4930  ;;  %7556 = vpow2.f32 %v4976_v59  ;;  %v11891_v59 = vld [vmem:[#allocation44_spill] sm:$0xff] }
0x1235   :  { %v4954_v54 = vsub.f32 %v10513_v63, %v4931_v19  ;;  %4994 = vadd.xlane.f32.xlu1 %v10556_v15  ;;  %7558 = vpow2.f32 %v4982_v31  ;;  %v4984_v28 = vmul.f32 1.442695, %v4957_v16 }
0x1236   :  { %v4933_v26 = vpop.xlane.xlu1 %4932  ;;  %v10561_v1 = vpop.eup %7546 }
0x1237   :  { %v4955_v58 = vsub.f32 %v10518_v22, %v4933_v26  ;;  %v4978_v30 = vmul.f32 1.442695, %v4954_v54 }
0x1238   :  { %v4943_v55 = vpop.xlane.xlu0 %4942 }
0x1239   :  { %v4980_v40 = vmul.f32 1.442695, %v4955_v58  ;;  %v4960_v48 = vsub.f32 %v10523_v3, %v4943_v55  ;;  %5000 = vadd.xlane.f32.xlu1 %v10561_v1  ;;  %v11894_v58 = vld [vmem:[#allocation47_spill] sm:$0xff] }
0x123a   :  { %v10566_v14 = vpop.eup %7548  ;;  %v5073_v10 = vpop.permute.xlu1 %5072 }
0x123b   :  { %7560 = vpow2.f32 %v4980_v40  ;;  %v4990_v63 = vmul.f32 1.442695, %v4960_v48  ;;  %5006 = vadd.xlane.f32.xlu0 %v10566_v14  ;;  %v10569_v25 = vpop.eup %7550  ;;  %v11898_v48 = vld [vmem:[#allocation67_spill] sm:$0xff] }
0x123c   :  { %v4939_v22 = vpop.xlane.xlu0 %4938  ;;  %7562 = vpow2.f32 %v4978_v30  ;;  %v11895_v30 = vld [vmem:[#allocation64_spill] sm:$0xff] }
0x123d   :  { %v4958_v41 = vsub.f32 %v10528_v13, %v4939_v22  ;;  %4996 = vadd.xlane.f32.xlu1 %v10569_v25  ;;  %7564 = vpow2.f32 %v4990_v63  ;;  %v11899_v22 = vld [vmem:[#allocation55_spill] sm:$0xff] }
0x123e   :  { %v10573_v33 = vpop.eup %7552  ;;  %7566 = vpow2.f32 %v4984_v28  ;;  %v11900_v28 = vld [vmem:[#allocation75_spill] sm:$0xff] }
0x123f   :  { %v4986_v3 = vmul.f32 1.442695, %v4958_v41  ;;  %5002 = vadd.xlane.f32.xlu0 %v10573_v33  ;;  %v11901_v41 = vld [vmem:[#allocation73_spill] sm:$0xff] }
0x1240   :  { %v10576_v56 = vpop.eup %7554  ;;  %v5077_v37 = vpop.permute.xlu0 %5076 }
0x1241   :  { %6924 = vmatprep.subr.bf16.mxu0 %v5077_v37  ;;  %5004 = vadd.xlane.f32.xlu1 %v10576_v56  ;;  %v10579_v27 = vpop.eup %7556  ;;  %7568 = vpow2.f32 %v4986_v3  ;;  %v11902_v3 = vld [vmem:[#allocation77_spill] sm:$0xff] }
0x1242   :  { %6925 = vmatpush3.bf16.msra.mxu0 %v5077_v37  ;;  %v10582_v45 = vpop.eup %7558  ;;  %v11903_v37 = vld [vmem:[#allocation50_spill] sm:$0xff] }
0x1243   :  { %5008 = vadd.xlane.f32.xlu0 %v10579_v27 }
0x1244   :  { %v5075_v13 = vpop.permute.xlu0 %5074 }
0x1245   :  { %6926 = vmatprep.subr.bf16.mxu0 %v5075_v13 }
0x1246   :  { %6927 = vmatpush3.bf16.msra.mxu0 %v5075_v13  ;;  %v11904_v13 = vld [vmem:[#allocation51_spill] sm:$0xff] }
0x1247   :  { %5014 = vadd.xlane.f32.xlu0 %v10582_v45  ;;  %6928 = vmatprep.subr.bf16.mxu0 %v5073_v10 }
0x1248   :  { %v10585_v49 = vpop.eup %7560  ;;  %v5069_v55 = vpop.permute.xlu0 %5068 }
0x1249   :  { %5012 = vadd.xlane.f32.xlu1 %v10585_v49  ;;  %v10588_v60 = vpop.eup %7562 }
0x124a   :  { %6929 = vmatpush3.bf16.msra.mxu0 %v5073_v10  ;;  %v10591_v57 = vpop.eup %7564  ;;  %v11905_v10 = vld [vmem:[#allocation42_spill] sm:$0xff] }
0x124b   :  { %5010 = vadd.xlane.f32.xlu0 %v10588_v60  ;;  %v10594_v53 = vpop.eup %7566 }
0x124d   :  { %5022 = vadd.xlane.f32.xlu1 %v10591_v57 }
0x124e   :  { %v10597_v62 = vpop.eup %7568 }
0x124f   :  { %5016 = vadd.xlane.f32.xlu0 %v10594_v53 }
0x1251   :  { %5018 = vadd.xlane.f32.xlu1 %v10597_v62 }
0x1262   :  { %5066 = vrot.lane.b32.xlu1 %v11843_v35, %s7629_s5 }
0x1266   :  { %5205 = vrot.lane.b32.xlu1 %v11891_v59, %s7630_s0  ;;  %v11906_v59 = vld [vmem:[#allocation54_spill] sm:$0xff] }
0x126a   :  { %5207 = vrot.lane.b32.xlu1 %v11892_v2, %s7630_s0  ;;  %v11907_v2 = vld [vmem:[#allocation45_spill] sm:$0xff] }
0x126b   :  { %v4945_v42 = vpop.xlane.xlu1 %4944 }
0x126c   :  { %v4961_v31 = vsub.f32 %v10541_v50, %v4945_v42  ;;  %v11896_v50 = vld [vmem:[#allocation63_spill] sm:$0xff]  ;;  %v11908_v42 = vld [vmem:[#allocation21_spill] sm:$0xff] }
0x126e   :  { %5211 = vrot.lane.b32.xlu1 %v11893_v51, %s7630_s0  ;;  %v4992_v16 = vmul.f32 1.442695, %v4961_v31  ;;  %v11909_v51 = vld [vmem:[#allocation48_spill] sm:$0xff]  ;;  %v11911_v31 = vld [vmem:[#allocation49_spill] sm:$0xff] }
0x126f   :  { %v4941_v19 = vpop.xlane.xlu1 %4940 }
0x1270   :  { %v4959_v54 = vsub.f32 %v10546_v8, %v4941_v19  ;;  %v11897_v8 = vld [vmem:[#allocation68_spill] sm:$0xff]  ;;  %v11910_v19 = vld [vmem:[#allocation22_spill] sm:$0xff] }
0x1272   :  { %v4988_v26 = vmul.f32 1.442695, %v4959_v54  ;;  %5215 = vrot.lane.b32.xlu1 %v11894_v58, %s7630_s0  ;;  %v11912_v54 = vld [vmem:[#allocation57_spill] sm:$0xff]  ;;  %v11914_v58 = vld [vmem:[#allocation127_spill] sm:$0xff] }
0x1273   :  { %v5071_v35 = vpop.permute.xlu1 %5070 }
0x1274   :  { %7570 = vpow2.f32 %v4988_v26  ;;  %6930 = vmatprep.subr.bf16.mxu0 %v5071_v35  ;;  %v11913_v26 = vld [vmem:[#allocation66_spill] sm:$0xff] }
0x1275   :  { %6931 = vmatpush3.bf16.msra.mxu0 %v5071_v35  ;;  %7572 = vpow2.f32 %v4992_v16  ;;  %v11915_v35 = vld [vmem:[#allocation65_spill] sm:$0xff]  ;;  %v11916_v16 = vld [vmem:[#allocation126_spill] sm:$0xff] }
0x1276   :  { %5219 = vrot.lane.b32.xlu1 %v11895_v30, %s7630_s0  ;;  %6932 = vmatprep.subr.bf16.mxu0 %v5069_v55  ;;  %v11918_v30 = vld [vmem:[#allocation131_spill] sm:$0xff] }
0x1279   :  { %6933 = vmatpush3.bf16.msra.mxu0 %v5069_v55  ;;  %v11917_v55 = vld [vmem:[#allocation70_spill] sm:$0xff] }
0x127a   :  { %5223 = vrot.lane.b32.xlu1 %v11896_v50, %s7630_s0  ;;  %v11919_v50 = vld [vmem:[#allocation69_spill] sm:$0xff] }
0x127e   :  { %5227 = vrot.lane.b32.xlu1 %v11897_v8, %s7630_s0  ;;  %v11920_v8 = vld [vmem:[#allocation130_spill] sm:$0xff] }
0x1281   :  { %v10618_v40 = vpop.eup %7570 }
0x1282   :  { %5231 = vrot.lane.b32.xlu1 %v11898_v48, %s7630_s0  ;;  %5020 = vadd.xlane.f32.xlu0 %v10618_v40  ;;  %v10623_v63 = vpop.eup %7572 }
0x1286   :  { %5267 = vrot.lane.b32.xlu1 %v11899_v22, %s7631_s10  ;;  %5024 = vadd.xlane.f32.xlu0 %v10623_v63  ;;  %v11921_v22 = vld [vmem:[#allocation74_spill] sm:$0xff] }
0x128a   :  { %5271 = vrot.lane.b32.xlu1 %v11900_v28, %s7631_s10  ;;  %v11922_v28 = vld [vmem:[#allocation135_spill] sm:$0xff] }
0x128e   :  { %5275 = vrot.lane.b32.xlu1 %v11901_v41, %s7631_s10 }
0x1292   :  { %5279 = vrot.lane.b32.xlu1 %v11902_v3, %s7631_s10  ;;  %v11923_v3 = vld [vmem:[#allocation76_spill] sm:$0xff] }
0x1296   :  { %5283 = vrot.lane.b32.xlu1 %v11903_v37, %s7631_s10  ;;  %v11924_v37 = vld [vmem:[#allocation134_spill] sm:$0xff] }
0x129a   :  { %5287 = vrot.lane.b32.xlu1 %v11904_v13, %s7631_s10 }
0x129c   :  { %5203 = vrot.lane.b32.xlu0 %v11905_v10, %s7630_s0 }
0x129e   :  { %5291 = vrot.lane.b32.xlu1 %v11906_v59, %s7631_s10  ;;  %v11925_v59 = vld [vmem:[#allocation56_spill] sm:$0xff] }
0x12a0   :  { %5209 = vrot.lane.b32.xlu0 %v11907_v2, %s7630_s0 }
0x12a2   :  { %5295 = vrot.lane.b32.xlu1 %v11908_v42, %s7631_s10 }
0x12a4   :  { %5213 = vrot.lane.b32.xlu0 %v11909_v51, %s7630_s0  ;;  %v11926_v51 = vld [vmem:[#allocation53_spill] sm:$0xff] }
0x12a6   :  { %5331 = vrot.lane.b32.xlu1 %v11910_v19, %s7632_s11 }
0x12a8   :  { %5217 = vrot.lane.b32.xlu0 %v11911_v31, %s7630_s0 }
0x12aa   :  { %5335 = vrot.lane.b32.xlu1 %v11912_v54, %s7632_s11  ;;  %v11927_v54 = vld [vmem:[#allocation59_spill] sm:$0xff] }
0x12ac   :  { %5221 = vrot.lane.b32.xlu0 %v11913_v26, %s7630_s0  ;;  %v11928_v26 = vld [vmem:[#allocation23_spill] sm:$0xff] }
0x12ae   :  { %5339 = vrot.lane.b32.xlu1 %v11914_v58, %s7632_s11 }
0x12b0   :  { %5225 = vrot.lane.b32.xlu0 %v11915_v35, %s7630_s0 }
0x12b2   :  { %5343 = vrot.lane.b32.xlu1 %v11916_v16, %s7632_s11 }
0x12b4   :  { %5229 = vrot.lane.b32.xlu0 %v11917_v55, %s7630_s0  ;;  %v11929_v55 = vld [vmem:[#allocation62_spill] sm:$0xff] }
0x12b6   :  { %5347 = vrot.lane.b32.xlu1 %v11918_v30, %s7632_s11 }
0x12b8   :  { %5233 = vrot.lane.b32.xlu0 %v11919_v50, %s7630_s0 }
0x12ba   :  { %5351 = vrot.lane.b32.xlu1 %v11920_v8, %s7632_s11  ;;  %v4999_v48 = vpop.xlane.xlu1 %4998 }
0x12bc   :  { %5269 = vrot.lane.b32.xlu0 %v11921_v22, %s7631_s10 }
0x12be   :  { %5355 = vrot.lane.b32.xlu1 %v11922_v28, %s7632_s11  ;;  %v4995_v41 = vpop.xlane.xlu1 %4994 }
0x12bf   :  { %7574 = vrcp.f32 %v4995_v41 }
0x12c0   :  { %5273 = vrot.lane.b32.xlu0 %v11923_v3, %s7631_s10 }
0x12c2   :  { %5359 = vrot.lane.b32.xlu1 %v11924_v37, %s7632_s11  ;;  %v5001_v13 = vpop.xlane.xlu1 %5000  ;;  %v11932_v37 = vld [vmem:[#allocation83_spill] sm:$0xff] }
0x12c4   :  { %v5007_v10 = vpop.xlane.xlu0 %5006  ;;  %5277 = vrot.lane.b32.xlu0 %v11925_v59, %s7631_s10 }
0x12c6   :  { %5395 = vrot.lane.b32.xlu1 %v9923_v17, %s7633_s12  ;;  %v4997_v2 = vpop.xlane.xlu1 %4996 }
0x12c7   :  { %7576 = vrcp.f32 %v4997_v2 }
0x12c8   :  { %v5003_v42 = vpop.xlane.xlu0 %5002  ;;  %5281 = vrot.lane.b32.xlu0 %v11926_v51, %s7631_s10  ;;  %7578 = vrcp.f32 %v5001_v13 }
0x12ca   :  { %5399 = vrot.lane.b32.xlu1 %v9921_v34, %s7633_s12  ;;  %v5005_v19 = vpop.xlane.xlu1 %5004 }
0x12cb   :  { %7580 = vrcp.f32 %v5005_v19 }
0x12cc   :  { %v5009_v31 = vpop.xlane.xlu0 %5008  ;;  %5285 = vrot.lane.b32.xlu0 %v11927_v54, %s7631_s10  ;;  %7582 = vrcp.f32 %v4999_v48  ;;  %v7575_v58 = vpop.eup %7574 }
0x12cd   :  { %7584 = vrcp.f32 %v5003_v42  ;;  %v5042_v30 = vmul.f32 %v7575_v58, %v10556_v15 }
0x12ce   :  { %5403 = vrot.lane.b32.xlu1 %v9931_v18, %s7633_s12  ;;  %7586 = vrcp.f32 %v5009_v31 }
0x12d0   :  { %v5015_v17 = vpop.xlane.xlu0 %5014  ;;  %5289 = vrot.lane.b32.xlu0 %v11928_v26, %s7631_s10 }
0x12d2   :  { %5407 = vrot.lane.b32.xlu1 %v9929_v29, %s7633_s12  ;;  %v5013_v34 = vpop.xlane.xlu1 %5012  ;;  %v11930_v29 = vld [vmem:[#allocation25_spill] sm:$0xff] }
0x12d4   :  { %v7577_v35 = vpop.eup %7576  ;;  %v5011_v16 = vpop.xlane.xlu0 %5010  ;;  %5293 = vrot.lane.b32.xlu0 %v11929_v55, %s7631_s10 }
0x12d5   :  { %v5043_v18 = vmul.f32 %v7577_v35, %v10569_v25  ;;  %7588 = vrcp.f32 %v5011_v16  ;;  %v7579_v48 = vpop.eup %7578  ;;  %v11936_v35 = vld [vmem:[#allocation128_spill] sm:$0xff] }
0x12d6   :  { %5411 = vrot.lane.b32.xlu1 %v9939_v9, %s7633_s12  ;;  %v10700_v50 = vpop.xlane.xlu1 %5022  ;;  %7590 = vrcp.f32 %v5007_v10  ;;  %v11931_v9 = vld [vmem:[#allocation24_spill] sm:$0xff]  ;;  %v5045_v3 = vmul.f32 %v7579_v48, %v10561_v1  ;;  %v11934_v1 = vld [vmem:[#allocation10_spill] sm:$0xff] }
0x12d7   :  { %v5058_v8 = vpack.c.bf16 %v5043_v18, %v5042_v30  ;;  %7592 = vrcp.f32 %v5013_v34  ;;  %v11939_v48 = vld [vmem:[#allocation8_spill] sm:$0xff] }
0x12d8   :  { %5297 = vrot.lane.b32.xlu0 %v11930_v29, %s7631_s10  ;;  %v5017_v22 = vpop.xlane.xlu0 %5016  ;;  %v7581_v25 = vpop.eup %7580 }
0x12d9   :  { %6936 = vmatprep.mubr.bf16.mxu0 %v5058_v8  ;;  %v7583_v28 = vpop.eup %7582  ;;  %7594 = vrcp.f32 %v5017_v22  ;;  %v5047_v10 = vmul.f32 %v7581_v25, %v10576_v56  ;;  %v11937_v8 = vld [vmem:[#allocation133_spill] sm:$0xff] }
0x12da   :  { %5415 = vrot.lane.b32.xlu1 %v9937_v7, %s7633_s12  ;;  %v10706_v15 = vpop.xlane.xlu1 %5018  ;;  %v7585_v41 = vpop.eup %7584  ;;  %v5044_v59 = vmul.f32 %v7583_v28, %v10552_v24  ;;  %7596 = vrcp.f32 %v5015_v17  ;;  %v11933_v7 = vld [vmem:[#allocation60_spill] sm:$0xff]  ;;  %v11935_v24 = vld [vmem:[#allocation129_spill] sm:$0xff] }
0x12db   :  { %v5046_v2 = vmul.f32 %v7585_v41, %v10573_v33  ;;  %v7587_v51 = vpop.eup %7586  ;;  %v11940_v25 = vld [vmem:[#allocation137_spill] sm:$0xff]  ;;  %v11943_v28 = vld [vmem:[#allocation12_spill] sm:$0xff]  ;;  %7598 = vrcp.f32 %v10706_v15 }
0x12dc   :  { %5333 = vrot.lane.b32.xlu0 %v11931_v9, %s7632_s11  ;;  %v5059_v42 = vpack.c.bf16 %v5045_v3, %v5044_v59  ;;  %v5049_v26 = vmul.f32 %v7587_v51, %v10579_v27  ;;  %v11944_v41 = vld [vmem:[#allocation16_spill] sm:$0xff] }
0x12dd   :  { %v5060_v31 = vpack.c.bf16 %v5047_v10, %v5046_v2  ;;  %v11945_v3 = vld [vmem:[#allocation88_spill] sm:$0xff] }
0x12de   :  { %5419 = vrot.lane.b32.xlu1 %v11932_v37, %s7633_s12  ;;  %v5067_v13 = vpop.permute.xlu1 %5066  ;;  %v11947_v10 = vld [vmem:[#allocation84_spill] sm:$0xff] }
0x12df   :  { %6934 = vmatprep.subr.bf16.mxu0 %v5067_v13 }
0x12e0   :  { %5337 = vrot.lane.b32.xlu0 %v11933_v7, %s7632_s11  ;;  %6935 = vmatpush3.bf16.msra.mxu0 %v5067_v13  ;;  %v11946_v13 = vld [vmem:[#allocation15_spill] sm:$0xff]  ;;  %v11948_v7 = vld [vmem:[#allocation18_spill] sm:$0xff] }
0x12e2   :  { %5423 = vrot.lane.b32.xlu1 %v11934_v1, %s7633_s12  ;;  %v10720_v19 = vpop.permute.xlu1 %5205  ;;  %v7589_v54 = vpop.eup %7588 }
0x12e3   :  { %6937 = vmatmul.mubr.bf16.vlgmr.msra.gmra.mxu0 %v5059_v42  ;;  %v7591_v56 = vpop.eup %7590  ;;  %v5050_v58 = vmul.f32 %v7589_v54, %v10588_v60  ;;  %v11949_v42 = vld [vmem:[#allocation17_spill] sm:$0xff] }
0x12e4   :  { %5341 = vrot.lane.b32.xlu0 %v11935_v24, %s7632_s11  ;;  %6940 = vmatprep.mubr.bf16.mxu0 %v5060_v31  ;;  %v7593_v17 = vpop.eup %7592  ;;  %v5048_v34 = vmul.f32 %v7591_v56, %v10566_v14  ;;  %v11950_v31 = vld [vmem:[#allocation9_spill] sm:$0xff]  ;;  %v11951_v56 = vld [vmem:[#allocation20_spill] sm:$0xff] }
0x12e5   :  { %v5051_v16 = vmul.f32 %v7593_v17, %v10585_v49  ;;  %v11952_v24 = vld [vmem:[#allocation5_spill] sm:$0xff] }
0x12e6   :  { %5459 = vrot.lane.b32.xlu1 %v10195_v11, %s7634_s13  ;;  %v10727_v33 = vpop.permute.xlu1 %5207  ;;  %v5061_v55 = vpack.c.bf16 %v5049_v26, %v5048_v34  ;;  %v7595_v30 = vpop.eup %7594  ;;  %v11953_v26 = vld [vmem:[#allocation19_spill] sm:$0xff] }
0x12e7   :  { %v5062_v18 = vpack.c.bf16 %v5051_v16, %v5050_v58  ;;  %v7597_v11 = vpop.eup %7596  ;;  %v5053_v14 = vmul.f32 %v7595_v30, %v10594_v53  ;;  %v11941_v53 = vld [vmem:[#allocation92_spill] sm:$0xff] }
0x12e8   :  { %5345 = vrot.lane.b32.xlu0 %v11936_v35, %s7632_s11  ;;  %v5052_v60 = vmul.f32 %v7597_v11, %v10582_v45  ;;  %v11942_v45 = vld [vmem:[#allocation136_spill] sm:$0xff]  ;;  %v7599_v17 = vpop.eup %7598  ;;  %v11955_v11 = vld [vmem:[#allocation38_spill] sm:$0xff] }
0x12e9   :  { %v5054_v34 = vmul.f32 %v7599_v17, %v10597_v62 }
0x12ea   :  { %5463 = vrot.lane.b32.xlu1 %v10193_v5, %s7634_s13  ;;  %v10736_v27 = vpop.permute.xlu1 %5211  ;;  %v11938_v5 = vld [vmem:[#allocation132_spill] sm:$0xff]  ;;  %v5063_v29 = vpack.c.bf16 %v5053_v14, %v5052_v60  ;;  %v11957_v14 = vld [vmem:[#allocation27_spill] sm:$0xff] }
0x12eb   :  { %6941 = vmatmul.mubr.bf16.gmra.mxu0 %v5061_v55 }
0x12ec   :  { %5349 = vrot.lane.b32.xlu0 %v11937_v8, %s7632_s11  ;;  %6944 = vmatprep.mubr.bf16.mxu0 %v5062_v18 }
0x12ee   :  { %5467 = vrot.lane.b32.xlu1 %v10203_v23, %s7634_s13  ;;  %v10743_v49 = vpop.permute.xlu1 %5215 }
0x12f0   :  { %5353 = vrot.lane.b32.xlu0 %v11938_v5, %s7632_s11 }
0x12f2   :  { %5471 = vrot.lane.b32.xlu1 %v11939_v48, %s7634_s13  ;;  %v10750_v22 = vpop.permute.xlu1 %5219  ;;  %v11959_v48 = vld [vmem:[#allocation6_spill] sm:$0xff] }
0x12f3   :  { %6945 = vmatmul.mubr.bf16.gmra.mxu0 %v5063_v29 }
0x12f4   :  { %5357 = vrot.lane.b32.xlu0 %v11940_v25, %s7632_s11 }
0x12f6   :  { %5475 = vrot.lane.b32.xlu1 %v11941_v53, %s7634_s13  ;;  %v10756_v23 = vpop.permute.xlu1 %5223 }
0x12f8   :  { %5361 = vrot.lane.b32.xlu0 %v11942_v45, %s7632_s11  ;;  %v11960_v45 = vld [vmem:[#allocation11_spill] sm:$0xff] }
0x12fa   :  { %5479 = vrot.lane.b32.xlu1 %v11943_v28, %s7634_s13  ;;  %v10762_v9 = vpop.permute.xlu1 %5227  ;;  %v11961_v28 = vld [vmem:[#allocation26_spill] sm:$0xff] }
0x12fc   :  { %5397 = vrot.lane.b32.xlu0 %v11944_v41, %s7633_s12  ;;  %v5637_v41 = vsel %vm11962_vm6, %v11961_v28, %v10727_v33  ;;  %vm11988_vm6 = vmmov %vm11978_vm3 }
0x12fe   :  { %5483 = vrot.lane.b32.xlu1 %v11945_v3, %s7634_s13  ;;  %v5232_v37 = vpop.permute.xlu1 %5231 }
0x12ff   :  { %v5649_v8 = vsel %vm11956_vm8, %v11955_v11, %v5232_v37  ;;  %vm11985_vm8 = vmmov %vm11978_vm3 }
0x1300   :  { %5401 = vrot.lane.b32.xlu0 %v11946_v13, %s7633_s12 }
0x1302   :  { %5487 = vrot.lane.b32.xlu1 %v11947_v10, %s7634_s13  ;;  %v5268_v59 = vpop.permute.xlu1 %5267  ;;  %v11963_v10 = vld [vmem:[#allocation13_spill] sm:$0xff] }
0x1304   :  { %5405 = vrot.lane.b32.xlu0 %v11948_v7, %s7633_s12 }
0x1306   :  { %5523 = vrot.lane.b32.xlu1 %v10452_v46, %s7629_s5  ;;  %v5272_v2 = vpop.permute.xlu1 %5271 }
0x1307   :  { %v5654_v3 = vsel %vm5651_vm2, %v5637_v41, %v5272_v2  ;;  %v11966_v2 = vld [vmem:[#allocation89_spill] sm:$0xff] }
0x1308   :  { %5409 = vrot.lane.b32.xlu0 %v11949_v42, %s7633_s12 }
0x130a   :  { %5527 = vrot.lane.b32.xlu1 %v10450_v21, %s7629_s5  ;;  %v5276_v51 = vpop.permute.xlu1 %5275 }
0x130b   :  { %v5021_v1 = vpop.xlane.xlu0 %5020 }
0x130c   :  { %7600 = vrcp.f32 %v5021_v1  ;;  %5413 = vrot.lane.b32.xlu0 %v11950_v31, %s7633_s12 }
0x130d   :  { %7602 = vrcp.f32 %v10700_v50 }
0x130e   :  { %5531 = vrot.lane.b32.xlu1 %v10460_v0, %s7629_s5  ;;  %v5280_v46 = vpop.permute.xlu1 %5279 }
0x130f   :  { %v5025_v54 = vpop.xlane.xlu0 %5024 }
0x1310   :  { %7604 = vrcp.f32 %v5025_v54  ;;  %5417 = vrot.lane.b32.xlu0 %v11951_v56, %s7633_s12  ;;  %v11967_v54 = vld [vmem:[#allocation30_spill] sm:$0xff] }
0x1311   :  { %v5641_v56 = vsel %vm11968_vm5, %v11967_v54, %v10743_v49  ;;  %v11971_v49 = vld [vmem:[#allocation78_spill] sm:$0xff]  ;;  %vm11991_vm5 = vmmov %vm11978_vm3 }
0x1312   :  { %5535 = vrot.lane.b32.xlu1 %v10458_v6, %s7629_s5  ;;  %v5284_v21 = vpop.permute.xlu1 %5283 }
0x1313   :  { %v5204_v15 = vpop.permute.xlu0 %5203 }
0x1314   :  { %5421 = vrot.lane.b32.xlu0 %v11952_v24, %s7633_s12  ;;  %v5635_v60 = vsel %vm11958_vm9, %v11957_v14, %v5204_v15  ;;  %v5658_v15 = vsel %vm5651_vm2, %v5641_v56, %v5280_v46  ;;  %v11972_v46 = vld [vmem:[#allocation34_spill] sm:$0xff]  ;;  %vm11987_vm9 = vmmov %vm11984_vm0 }
0x1316   :  { %5539 = vrot.lane.b32.xlu1 %v10468_v44, %s7629_s5  ;;  %v5288_v50 = vpop.permute.xlu1 %5287  ;;  %v11954_v44 = vld [vmem:[#allocation7_spill] sm:$0xff] }
0x1317   :  { %v10794_v0 = vpop.permute.xlu0 %5209 }
0x1318   :  { %5425 = vrot.lane.b32.xlu0 %v11953_v26, %s7633_s12  ;;  %v11970_v26 = vld [vmem:[#allocation35_spill] sm:$0xff] }
0x1319   :  { %v7601_v58 = vpop.eup %7600 }
0x131a   :  { %5543 = vrot.lane.b32.xlu1 %v10466_v39, %s7629_s5  ;;  %v5292_v6 = vpop.permute.xlu1 %5291  ;;  %v5055_v35 = vmul.f32 %v7601_v58, %v10618_v40  ;;  %v7603_v16 = vpop.eup %7602  ;;  %v5643_v58 = vsel %vm11840_vm4, %v11970_v26, %v10750_v22  ;;  %v11974_v22 = vld [vmem:[#allocation81_spill] sm:$0xff]  ;;  %vm11993_vm4 = vmmov %vm11984_vm0 }
0x131b   :  { %v10802_v55 = vpop.permute.xlu0 %5213  ;;  %v5056_v62 = vmul.f32 %v7603_v16, %v10591_v57 }
0x131c   :  { %5461 = vrot.lane.b32.xlu0 %v11954_v44, %s7634_s13  ;;  %v5064_v30 = vpack.c.bf16 %v5055_v35, %v5054_v34  ;;  %v5660_v34 = vsel %vm5651_vm2, %v5643_v58, %v5284_v21  ;;  %v11975_v21 = vld [vmem:[#allocation39_spill] sm:$0xff]  ;;  %v11992_v58 = vld [vmem:[#allocation32_spill] sm:$0xff] }
0x131d   :  { %v7605_v18 = vpop.eup %7604 }
0x131e   :  { %5547 = vrot.lane.b32.xlu1 %v10476_v43, %s7629_s5  ;;  %6948 = vmatprep.mubr.bf16.mxu0 %v5064_v30  ;;  %v5296_v39 = vpop.permute.xlu1 %5295  ;;  %v5057_v40 = vmul.f32 %v7605_v18, %v10623_v63  ;;  %v5652_v43 = vsel %vm5651_vm2, %v5635_v60, %v5268_v59  ;;  %v11964_v59 = vld [vmem:[#allocation31_spill] sm:$0xff]  ;;  %v5645_v30 = vsel %vm11973_vm11, %v11972_v46, %v10756_v23  ;;  %vm11994_vm11 = vmmov %vm11978_vm3 }
0x131f   :  { %v5666_v5 = vsel %vm5651_vm2, %v5649_v8, %v5296_v39  ;;  %v10815_v29 = vpop.permute.xlu0 %5217  ;;  %v5639_v7 = vsel %vm11965_vm7, %v11964_v59, %v10736_v27  ;;  %v5662_v18 = vsel %vm5651_vm2, %v5645_v30, %v5288_v50  ;;  %vm11990_vm7 = vmmov %vm11984_vm0 }
0x1320   :  { %5465 = vrot.lane.b32.xlu0 %v11959_v48, %s7634_s13  ;;  %v5065_v25 = vpack.c.bf16 %v5057_v40, %v5056_v62  ;;  %v5656_v42 = vsel %vm5651_vm2, %v5639_v7, %v5276_v51  ;;  %v11969_v51 = vld [vmem:[#allocation87_spill] sm:$0xff]  ;;  %v5647_v62 = vsel %vm11976_vm1, %v11975_v21, %v10762_v9  ;;  %vm5701_vm1 = vcmask 654336  }
0x1321   :  { %v5664_v40 = vsel %vm5651_vm2, %v5647_v62, %v5292_v6 }
0x1322   :  { %5551 = vrot.lane.b32.xlu1 %v10474_v36, %s7629_s5  ;;  %6949 = vmatmul.mubr.bf16.gmra.mxu0 %v5065_v25  ;;  %v5332_v57 = vpop.permute.xlu1 %5331 }
0x1323   :  { %v5669_v63 = vsel %vm5668_vm10, %v5652_v43, %v5332_v57  ;;  %v10823_v53 = vpop.permute.xlu0 %5221 }
0x1324   :  { %5469 = vrot.lane.b32.xlu0 %v11960_v45, %s7634_s13 }
0x1326   :  { %v5336_v37 = vpop.permute.xlu1 %5335 }
0x1327   :  { %v5671_v36 = vsel %vm5668_vm10, %v5654_v3, %v5336_v37  ;;  %v10832_v13 = vpop.permute.xlu0 %5225 }
0x1328   :  { %5473 = vrot.lane.b32.xlu0 %v11963_v10, %s7634_s13 }
0x132a   :  { %v5340_v1 = vpop.permute.xlu1 %5339 }
0x132b   :  { %v5673_v31 = vsel %vm5668_vm10, %v5656_v42, %v5340_v1  ;;  %v10841_v33 = vpop.permute.xlu0 %5229 }
0x132c   :  { %5477 = vrot.lane.b32.xlu0 %v11966_v2, %s7634_s13 }
0x132e   :  { %v5344_v24 = vpop.permute.xlu1 %5343 }
0x132f   :  { %v5675_v17 = vsel %vm5668_vm10, %v5658_v15, %v5344_v24  ;;  %v5234_v27 = vpop.permute.xlu0 %5233  ;;  %v11989_v24 = vld [vmem:[#allocation33_spill] sm:$0xff] }
0x1330   :  { %5481 = vrot.lane.b32.xlu0 %v11969_v51, %s7634_s13 }
0x1332   :  { %v5348_v35 = vpop.permute.xlu1 %5347 }
0x1333   :  { %v5677_v16 = vsel %vm5668_vm10, %v5660_v34, %v5348_v35  ;;  %v5270_v44 = vpop.permute.xlu0 %5269  ;;  %v5642_v34 = vsel %vm11993_vm4, %v11992_v58, %v10815_v29 }
0x1334   :  { %5485 = vrot.lane.b32.xlu0 %v11971_v49, %s7634_s13  ;;  %v11995_v49 = vld [vmem:[#allocation37_spill] sm:$0xff] }
0x1336   :  { %v5352_v11 = vpop.permute.xlu1 %5351 }
0x1337   :  { %v5679_v8 = vsel %vm5668_vm10, %v5662_v18, %v5352_v11  ;;  %v5274_v39 = vpop.permute.xlu0 %5273 }
0x1338   :  { %5489 = vrot.lane.b32.xlu0 %v11974_v22, %s7634_s13 }
0x133a   :  { %v5356_v14 = vpop.permute.xlu1 %5355 }
0x133b   :  { %v5681_v60 = vsel %vm5668_vm10, %v5664_v40, %v5356_v14  ;;  %v5278_v48 = vpop.permute.xlu0 %5277  ;;  %v11999_v14 = vld [vmem:[#allocation41_spill] sm:$0xff] }
0x133c   :  { %5525 = vrot.lane.b32.xlu0 %v10456_v32, %s7629_s5 }
0x133e   :  { %v5360_v23 = vpop.permute.xlu1 %5359 }
0x133f   :  { %v5683_v50 = vsel %vm5668_vm10, %v5666_v5, %v5360_v23  ;;  %v5282_v25 = vpop.permute.xlu0 %5281 }
0x1340   :  { %5529 = vrot.lane.b32.xlu0 %v10454_v52, %s7629_s5 }
0x1342   :  { %v5396_v43 = vpop.permute.xlu1 %5395 }
0x1343   :  { %v5685_v57 = vsel %vm11977_vm12, %v5669_v63, %v5396_v43  ;;  %v5286_v9 = vpop.permute.xlu0 %5285  ;;  %v11980_v63 = vld [vmem:[#allocation40_spill] sm:$0xff]  ;;  %vm11996_vm12 = vmmov %vm11984_vm0 }
0x1344   :  { %5533 = vrot.lane.b32.xlu0 %v10464_v38, %s7629_s5  ;;  %v5650_v3 = vsel %vm11981_vm14, %v11980_v63, %v5234_v27  ;;  %v5644_v46 = vsel %vm11996_vm12, %v11995_v49, %v10823_v53  ;;  %vm12001_vm14 = vmmov %vm11991_vm5 }
0x1345   :  { %v5661_v18 = vsel %vm5651_vm2, %v5644_v46, %v5286_v9 }
0x1346   :  { %v5400_v6 = vpop.permute.xlu1 %5399 }
0x1347   :  { %v10880_v45 = vsel %vm11978_vm3, %v5671_v36, %v5400_v6  ;;  %v5290_v28 = vpop.permute.xlu0 %5289  ;;  %vm11998_vm3 = vmmov %vm11984_vm0 }
0x1348   :  { %5537 = vrot.lane.b32.xlu0 %v10462_v47, %s7629_s5  ;;  %v11983_v47 = vld [vmem:[#allocation29_spill] sm:$0xff] }
0x1349   :  { %v5636_v10 = vsel %vm11984_vm0, %v11983_v47, %v10720_v19 }
0x134a   :  { %v5404_v32 = vpop.permute.xlu1 %5403 }
0x134b   :  { %v5689_v5 = vsel %vm11979_vm13, %v5673_v31, %v5404_v32  ;;  %v5294_v41 = vpop.permute.xlu0 %5293  ;;  %v11986_v31 = vld [vmem:[#allocation28_spill] sm:$0xff]  ;;  %vm12000_vm13 = vmmov %vm11984_vm0 }
0x134c   :  { %5541 = vrot.lane.b32.xlu0 %v10472_v20, %s7629_s5  ;;  %v5653_v20 = vsel %vm5651_vm2, %v5636_v10, %v5270_v44  ;;  %v5638_v2 = vsel %vm11987_vm9, %v11986_v31, %v10794_v0 }
0x134d   :  { %v5655_v54 = vsel %vm5651_vm2, %v5638_v2, %v5274_v39  ;;  %v11997_v39 = vld [vmem:[#allocation36_spill] sm:$0xff] }
0x134e   :  { %v5408_v52 = vpop.permute.xlu1 %5407  ;;  %v5646_v22 = vsel %vm11998_vm3, %v11997_v39, %v10832_v13 }
0x134f   :  { %v10890_v38 = vsel %vm11982_vm15, %v5675_v17, %v5408_v52  ;;  %v5298_v37 = vpop.permute.xlu0 %5297  ;;  %v5663_v62 = vsel %vm5651_vm2, %v5646_v22, %v5290_v28 }
0x1350   :  { %v5667_v36 = vsel %vm5651_vm2, %v5650_v3, %v5298_v37  ;;  %5545 = vrot.lane.b32.xlu0 %v10470_v61, %s7629_s5 }
0x1352   :  { %v5412_v59 = vpop.permute.xlu1 %5411 }
0x1353   :  { %v5693_v7 = vsel %vm11985_vm8, %v5677_v16, %v5412_v59  ;;  %v5334_v42 = vpop.permute.xlu0 %5333  ;;  %v5659_v16 = vsel %vm5651_vm2, %v5642_v34, %v5282_v25 }
0x1354   :  { %v5670_v1 = vsel %vm5668_vm10, %v5653_v20, %v5334_v42  ;;  %5549 = vrot.lane.b32.xlu0 %v10480_v12, %s7629_s5  ;;  %v5640_v12 = vsel %vm11990_vm7, %v11989_v24, %v10802_v55  ;;  %vm5718_vm7 = vcmask 785408  }
0x1355   :  { %v5657_v27 = vsel %vm5651_vm2, %v5640_v12, %v5278_v48 }
0x1356   :  { %v5416_v61 = vpop.permute.xlu1 %5415 }
0x1357   :  { %v10908_v19 = vsel %vm11988_vm6, %v5679_v8, %v5416_v61  ;;  %v5338_v56 = vpop.permute.xlu0 %5337 }
0x1358   :  { %v5672_v15 = vsel %vm5668_vm10, %v5655_v54, %v5338_v56  ;;  %5553 = vrot.lane.b32.xlu0 %v10478_v4, %s7629_s5 }
0x135a   :  { %v5420_v17 = vpop.permute.xlu1 %5419 }
0x135b   :  { %v5697_v0 = vsel %vm11991_vm5, %v5681_v60, %v5420_v17  ;;  %v5342_v51 = vpop.permute.xlu0 %5341  ;;  %v5648_v60 = vsel %vm12000_vm13, %v11999_v14, %v10841_v33 }
0x135c   :  { %v5674_v26 = vsel %vm5668_vm10, %v5657_v27, %v5342_v51  ;;  %v5665_v23 = vsel %vm5651_vm2, %v5648_v60, %v5294_v41  ;;  %vm12002_vm2 = vmmov %vm11991_vm5  ;;  %vm5735_vm5 = vcmask 916480  }
0x135d   :  { %vm12003_vm15 = vmmov %vm12002_vm2 }
0x135e   :  { %v5424_v35 = vpop.permute.xlu1 %5423  ;;  %vm12005_vm0 = vmmov %vm12002_vm2 }
0x135f   :  { %v5699_v4 = vsel %vm11994_vm11, %v5683_v50, %v5424_v35  ;;  %v5346_v44 = vpop.permute.xlu0 %5345  ;;  %vm12006_vm8 = vmmov %vm12005_vm0 }
0x1360   :  { %v5676_v55 = vsel %vm5668_vm10, %v5659_v16, %v5346_v44  ;;  %vm12007_vm9 = vmmov %vm12005_vm0 }
0x1361   :  { %vm12008_vm6 = vmmov %vm12005_vm0 }
0x1362   :  { %v5460_v30 = vpop.permute.xlu1 %5459 }
0x1363   :  { %v10930_v11 = vsel %vm5701_vm1, %v5685_v57, %v5460_v30  ;;  %v5350_v29 = vpop.permute.xlu0 %5349 }
0x1364   :  { %v5678_v8 = vsel %vm5668_vm10, %v5661_v18, %v5350_v29 }
0x1366   :  { %v10936_v21 = vpop.permute.xlu1 %5463 }
0x1367   :  { %v5354_v40 = vpop.permute.xlu0 %5353 }
0x1368   :  { %v5680_v53 = vsel %vm5668_vm10, %v5663_v62, %v5354_v40 }
0x136a   :  { %v5468_v48 = vpop.permute.xlu1 %5467 }
0x136b   :  { %v10945_v50 = vsel %vm5701_vm1, %v5689_v5, %v5468_v48  ;;  %v5358_v25 = vpop.permute.xlu0 %5357 }
0x136c   :  { %v5682_v13 = vsel %vm5668_vm10, %v5665_v23, %v5358_v25 }
0x136e   :  { %v10948_v43 = vpop.permute.xlu1 %5471 }
0x136f   :  { %v5362_v57 = vpop.permute.xlu0 %5361 }
0x1370   :  { %v5684_v9 = vsel %vm5668_vm10, %v5667_v36, %v5362_v57  ;;  %vm12004_vm10 = vmmov %vm12002_vm2 }
0x1372   :  { %v5476_v6 = vpop.permute.xlu1 %5475 }
0x1373   :  { %v10952_v28 = vsel %vm5701_vm1, %v5693_v7, %v5476_v6  ;;  %v5398_v32 = vpop.permute.xlu0 %5397 }
0x1374   :  { %v5686_v33 = vsel %vm12001_vm14, %v5670_v1, %v5398_v32 }
0x1376   :  { %v10955_v52 = vpop.permute.xlu1 %5479 }
0x1377   :  { %v5402_v41 = vpop.permute.xlu0 %5401 }
0x1378   :  { %v10958_v5 = vsel %vm12002_vm2, %v5672_v15, %v5402_v41 }
0x137a   :  { %v5484_v63 = vpop.permute.xlu1 %5483 }
0x137b   :  { %v5714_v3 = vsel %vm5701_vm1, %v5697_v0, %v5484_v63  ;;  %v5406_v37 = vpop.permute.xlu0 %5405 }
0x137c   :  { %v5690_v47 = vsel %vm12003_vm15, %v5674_v26, %v5406_v37 }
0x137e   :  { %v5488_v36 = vpop.permute.xlu1 %5487 }
0x137f   :  { %v10963_v10 = vsel %vm5701_vm1, %v5699_v4, %v5488_v36  ;;  %v5410_v59 = vpop.permute.xlu0 %5409 }
0x1380   :  { %v10966_v20 = vsel %vm12004_vm10, %v5676_v55, %v5410_v59 }
0x1382   :  { %v10968_v7 = vpop.permute.xlu1 %5523 }
0x1383   :  { %v5414_v42 = vpop.permute.xlu0 %5413 }
0x1384   :  { %v5694_v1 = vsel %vm12005_vm0, %v5678_v8, %v5414_v42 }
0x1386   :  { %v10971_v31 = vpop.permute.xlu1 %5527 }
0x1387   :  { %v5418_v2 = vpop.permute.xlu0 %5417 }
0x1388   :  { %v10974_v61 = vsel %vm12006_vm8, %v5680_v53, %v5418_v2  ;;  %v5704_v2 = vsel %vm5701_vm1, %v10880_v45, %v10936_v21 }
0x138a   :  { %v10976_v54 = vpop.permute.xlu1 %5531 }
0x138b   :  { %v5422_v56 = vpop.permute.xlu0 %5421 }
0x138c   :  { %v5698_v15 = vsel %vm12007_vm9, %v5682_v13, %v5422_v56  ;;  %v5721_v56 = vsel %vm5718_vm7, %v5704_v2, %v10971_v31 }
0x138e   :  { %v10979_v24 = vpop.permute.xlu1 %5535 }
0x138f   :  { %v5426_v12 = vpop.permute.xlu0 %5425 }
0x1390   :  { %v5700_v17 = vsel %vm12008_vm6, %v5684_v9, %v5426_v12 }
0x1392   :  { %v10982_v27 = vpop.permute.xlu1 %5539 }
0x1393   :  { %v5462_v0 = vpop.permute.xlu0 %5461 }
0x1394   :  { %v10985_v51 = vsel %vm5701_vm1, %v5686_v33, %v5462_v0 }
0x1396   :  { %v10987_v26 = vpop.permute.xlu1 %5543 }
0x1397   :  { %v10989_v58 = vpop.permute.xlu0 %5465 }
0x1398   :  { %v5705_v0 = vsel %vm5701_vm1, %v10958_v5, %v10989_v58 }
0x139a   :  { %v5548_v34 = vpop.permute.xlu1 %5547 }
0x139b   :  { %v10992_v35 = vsel %vm5718_vm7, %v5714_v3, %v5548_v34  ;;  %v5470_v16 = vpop.permute.xlu0 %5469  ;;  %v5719_v34 = vsel %vm5718_vm7, %v10930_v11, %v10968_v7 }
0x139c   :  { %v10995_v4 = vsel %vm5701_vm1, %v5690_v47, %v5470_v16 }
0x139f   :  { %v10997_v44 = vpop.permute.xlu0 %5473 }
0x13a3   :  { %v5478_v55 = vpop.permute.xlu0 %5477  ;;  %v6938_v49 = vpop.f32.mrf.mxu0 }
0x13a4   :  { %v11000_v46 = vsel %vm5701_vm1, %v5694_v1, %v5478_v55  ;;  %5591 = vrot.lane.b32.xlu1 %v6938_v49, %s7628_s4  ;;  %v5552_v1 = vpop.permute.xlu1 %5551  ;;  %v5708_v49 = vsel %vm5701_vm1, %v10890_v38, %v10948_v43  ;;  %v5723_v38 = vsel %vm5718_vm7, %v10945_v50, %v10976_v54 }
0x13a5   :  { %v5124_v30 = vpop.f32.mrf.mxu0  ;;  %v5725_v5 = vsel %vm5718_vm7, %v5708_v49, %v10979_v24 }
0x13a7   :  { %v11003_v18 = vpop.permute.xlu0 %5481  ;;  %v6939_v29 = vpop.f32.mrf.mxu0 }
0x13a8   :  { %5593 = vrot.lane.b32.xlu0 %v6939_v29, %s7628_s4  ;;  %5587 = vrot.lane.b32.xlu1 %v5124_v30, %s7628_s4 }
0x13a9   :  { %v5127_v8 = vpop.f32.mrf.mxu0 }
0x13ab   :  { %v5486_v39 = vpop.permute.xlu0 %5485  ;;  %v6942_v22 = vpop.f32.mrf.mxu0 }
0x13ac   :  { %v5715_v62 = vsel %vm5701_vm1, %v5698_v15, %v5486_v39  ;;  %5589 = vrot.lane.b32.xlu0 %v5127_v8, %s7628_s4  ;;  %5599 = vrot.lane.b32.xlu1 %v6942_v22, %s7628_s4  ;;  %v5709_v8 = vsel %vm5701_vm1, %v10966_v20, %v10997_v44 }
0x13ad   :  { %v5140_v40 = vpop.f32.mrf.mxu0 }
0x13af   :  { %v5490_v53 = vpop.permute.xlu0 %5489  ;;  %v6943_v14 = vpop.f32.mrf.mxu0 }
0x13b0   :  { %v11011_v60 = vsel %vm5701_vm1, %v5700_v17, %v5490_v53  ;;  %5601 = vrot.lane.b32.xlu0 %v6943_v14, %s7628_s4  ;;  %5595 = vrot.lane.b32.xlu1 %v5140_v40, %s7628_s4  ;;  %v5713_v14 = vsel %vm5701_vm1, %v10974_v61, %v11003_v18 }
0x13b1   :  { %v5143_v48 = vpop.f32.mrf.mxu0 }
0x13b3   :  { %v5526_v23 = vpop.permute.xlu0 %5525  ;;  %v6946_v25 = vpop.f32.mrf.mxu0 }
0x13b4   :  { %5597 = vrot.lane.b32.xlu0 %v5143_v48, %s7628_s4  ;;  %5607 = vrot.lane.b32.xlu1 %v6946_v25, %s7628_s4  ;;  %v5720_v11 = vsel %vm5718_vm7, %v10985_v51, %v5526_v23 }
0x13b5   :  { %v5156_v13 = vpop.f32.mrf.mxu0 }
0x13b7   :  { %v5530_v57 = vpop.permute.xlu0 %5529  ;;  %v6947_v9 = vpop.f32.mrf.mxu0 }
0x13b8   :  { %5609 = vrot.lane.b32.xlu0 %v6947_v9, %s7628_s4  ;;  %5603 = vrot.lane.b32.xlu1 %v5156_v13, %s7628_s4  ;;  %v5722_v16 = vsel %vm5718_vm7, %v5705_v0, %v5530_v57 }
0x13b9   :  { %v5159_v6 = vpop.f32.mrf.mxu0 }
0x13bb   :  { %v5534_v32 = vpop.permute.xlu0 %5533 }
0x13bc   :  { %5605 = vrot.lane.b32.xlu0 %v5159_v6, %s7628_s4  ;;  %v5724_v50 = vsel %vm5718_vm7, %v10995_v4, %v5534_v32 }
0x13bf   :  { %v5538_v33 = vpop.permute.xlu0 %5537 }
0x13c0   :  { %v5726_v43 = vsel %vm5718_vm7, %v5709_v8, %v5538_v33 }
0x13c3   :  { %v11020_v41 = vpop.permute.xlu0 %5541 }
0x13c4   :  { %v5728_v25 = vsel %vm5718_vm7, %v11000_v46, %v11020_v41 }
0x13c7   :  { %v5546_v63 = vpop.permute.xlu0 %5545 }
0x13cb   :  { %v5550_v3 = vpop.permute.xlu0 %5549 }
0x13cc   :  { %v11023_v37 = vsel %vm5718_vm7, %v5715_v62, %v5550_v3  ;;  %v5712_v62 = vsel %vm5701_vm1, %v10908_v19, %v10955_v52  ;;  %v5727_v19 = vsel %vm5718_vm7, %v10952_v28, %v10982_v27  ;;  %v5730_v52 = vsel %vm5718_vm7, %v5713_v14, %v5546_v63 }
0x13cd   :  { %v5729_v20 = vsel %vm5718_vm7, %v5712_v62, %v10987_v26  ;;  %v5733_v27 = vsel %vm5718_vm7, %v10963_v10, %v5552_v1 }
0x13cf   :  { %v11034_v15 = vpop.permute.xlu0 %5553 }
0x13d0   :  { %v5734_v46 = vsel %vm5718_vm7, %v11011_v60, %v11034_v15 }
0x13e2   :  { %v6950_v47 = vpop.f32.mrf.mxu0 }
0x13e4   :  { %v5172_v36 = vpop.f32.mrf.mxu0 }
0x13e5   :  { %5611 = vrot.lane.b32.xlu1 %v5172_v36, %s7628_s4 }
0x13e6   :  { %v6951_v59 = vpop.f32.mrf.mxu0 }
0x13e8   :  { %v5175_v42 = vpop.f32.mrf.mxu0 }
0x13e9   :  { %5613 = vrot.lane.b32.xlu0 %v5175_v42, %s7628_s4  ;;  %5615 = vrot.lane.b32.xlu1 %v6950_v47, %s7628_s4 }
0x13ed   :  { %5617 = vrot.lane.b32.xlu0 %v6951_v59, %s7628_s4  ;;  %s7635_s4 = smov [#allocation2]  }
0x13ee   :  { %s5773_s5 = sshll.u32 %s7635_s4, 4  ;;  %s5774_s5 = int_to_ptr.vmem [resolvable:$true] %s5773_s5 }
0x13ef   :  { %s7606_s14 = scalar_lea.vmem %s5774_s5, 2048  ;;  %p7611_p1 = scmp.lt.s32.totalorder %s5774_s5, %s5774_s5 }
0x13f0   :  { %p7607_p0 = scmp.ne.s32.totalorder %s5774_s5, %s7606_s14  ;;  %p7612_p2 = scmp.lt.s32.totalorder %s7606_s14, %s7606_s14 }
0x13f2   :  { %p7613_p3 = por %p7612_p2, %p7611_p1 }
0x13f4   :  { %p7614_p4 = pnand %p7613_p3, %p7607_p0 }
0x1416   :  { %v5592_v12 = vpop.permute.xlu1 %5591 }
0x1417   :  { %v5738_v17 = vsel %vm5735_vm5, %v5721_v56, %v5592_v12 }
0x1418   :  { %5754 = vst [vmem:[#allocation2 + $0x10] sm:$0xff] %v5738_v17 }
0x141a   :  { %v5594_v45 = vpop.permute.xlu0 %5593  ;;  %v5588_v21 = vpop.permute.xlu1 %5587 }
0x141b   :  { %v5739_v31 = vsel %vm5735_vm5, %v5722_v16, %v5594_v45  ;;  %v5736_v55 = vsel %vm5735_vm5, %v5719_v34, %v5588_v21 }
0x141c   :  { %5755 = vst [vmem:[#allocation2 + $0x18] sm:$0xff] %v5739_v31  ;;  %5752 = vst [vmem:[#allocation2] sm:$0xff] %v5736_v55 }
0x141e   :  { %v5590_v7 = vpop.permute.xlu0 %5589  ;;  %v5600_v58 = vpop.permute.xlu1 %5599 }
0x141f   :  { %v5737_v30 = vsel %vm5735_vm5, %v5720_v11, %v5590_v7  ;;  %v5742_v29 = vsel %vm5735_vm5, %v5725_v5, %v5600_v58 }
0x1420   :  { %5753 = vst [vmem:[#allocation2 + $0x8] sm:$0xff] %v5737_v30  ;;  %5758 = vst [vmem:[#allocation2 + $0x30] sm:$0xff] %v5742_v29 }
0x1422   :  { %v5602_v24 = vpop.permute.xlu0 %5601  ;;  %v5596_v51 = vpop.permute.xlu1 %5595 }
0x1423   :  { %v5743_v39 = vsel %vm5735_vm5, %v5726_v43, %v5602_v24  ;;  %v5740_v22 = vsel %vm5735_vm5, %v5723_v38, %v5596_v51 }
0x1424   :  { %5759 = vst [vmem:[#allocation2 + $0x38] sm:$0xff] %v5743_v39  ;;  %5756 = vst [vmem:[#allocation2 + $0x20] sm:$0xff] %v5740_v22 }
0x1426   :  { %v5598_v54 = vpop.permute.xlu0 %5597  ;;  %v5608_v44 = vpop.permute.xlu1 %5607 }
0x1427   :  { %v5741_v40 = vsel %vm5735_vm5, %v5724_v50, %v5598_v54  ;;  %v5746_v53 = vsel %vm5735_vm5, %v5729_v20, %v5608_v44 }
0x1428   :  { %5757 = vst [vmem:[#allocation2 + $0x28] sm:$0xff] %v5741_v40  ;;  %5762 = vst [vmem:[#allocation2 + $0x50] sm:$0xff] %v5746_v53 }
0x142a   :  { %v5610_v26 = vpop.permute.xlu0 %5609  ;;  %v5604_v4 = vpop.permute.xlu1 %5603 }
0x142b   :  { %v5747_v48 = vsel %vm5735_vm5, %v5730_v52, %v5610_v26  ;;  %v5744_v23 = vsel %vm5735_vm5, %v5727_v19, %v5604_v4 }
0x142c   :  { %5763 = vst [vmem:[#allocation2 + $0x58] sm:$0xff] %v5747_v48  ;;  %5760 = vst [vmem:[#allocation2 + $0x40] sm:$0xff] %v5744_v23 }
0x142e   :  { %v5606_v13 = vpop.permute.xlu0 %5605 }
0x142f   :  { %v5745_v61 = vsel %vm5735_vm5, %v5728_v25, %v5606_v13 }
0x1430   :  { %5761 = vst [vmem:[#allocation2 + $0x48] sm:$0xff] %v5745_v61 }
0x1457   :  { %v5612_v18 = vpop.permute.xlu1 %5611 }
0x1458   :  { %v5748_v28 = vsel %vm5735_vm5, %v10992_v35, %v5612_v18 }
0x1459   :  { %5764 = vst [vmem:[#allocation2 + $0x60] sm:$0xff] %v5748_v28 }
0x145b   :  { %v5614_v57 = vpop.permute.xlu0 %5613  ;;  %v5616_v9 = vpop.permute.xlu1 %5615 }
0x145c   :  { %v5749_v6 = vsel %vm5735_vm5, %v11023_v37, %v5614_v57  ;;  %v5750_v32 = vsel %vm5735_vm5, %v5733_v27, %v5616_v9 }
0x145d   :  { %5765 = vst [vmem:[#allocation2 + $0x68] sm:$0xff] %v5749_v6  ;;  %5766 = vst [vmem:[#allocation2 + $0x70] sm:$0xff] %v5750_v32 }
0x145f   :  { %v5618_v35 = vpop.permute.xlu0 %5617 }
0x1460   :  { %v5751_v33 = vsel %vm5735_vm5, %v5734_v46, %v5618_v35 }
0x1461   :  { %5767 = vst [vmem:[#allocation2 + $0x78] sm:$0xff] %v5751_v33 }
0x1462   :  { %7617 = shalt.err (!%p7614_p4)
}
0x1463   :  { %s7636_s15 = smov 128   ;;  %s7637_s16 = smov 8  }
0x1464   :  { %5779 = dma.vmem_to_hbm [thread:$0]  %s5774_s5, 2048, %s11102_s2, [#allocation3], %s7636_s15, %s7636_s15, %s7637_s16  }
0x1465   :  { %7626 = dma.done.wait [#allocation3], 2048  }
0x1466   :  { %7627 = vsyncadd [#allocation3], 4294965248 }
0x1467   :  { %5783 = vsyncpa [#allocation3], 1 }

</bundles_post_ra>
